<compile_context>
chip_gen: v6e
topology: v6e:2x2x1
jax: 0.10.0
libtpu: 0.0.40
codegen_flags: <defaults>
</compile_context>

<pallas_src>
import jax
import jax.numpy as jnp
from jax.experimental import pallas as pl
from jax.experimental.pallas import tpu as pltpu

BT = 64            # images per grid step (batch tile)
GROUP = 4 * BT     # rows per parity group inside one batch tile (t-major, b-minor)


# --------------------------------------------------------------------------
# Fused kernel: conv1+relu -> conv2+relu -> conv3+relu -> avg_pool2d(4)
# --------------------------------------------------------------------------
def _shift_down(a):
    # Per-image "previous row" (h-1 tap): rows are t*BT + b, so shifting by one
    # t-block = BT rows; the shifted-in block is the h = -1 zero padding.
    return jnp.concatenate(
        [jnp.zeros((BT, a.shape[1]), a.dtype), a[:GROUP - BT]], axis=0)


def _net_fused_kernel(x_ref, w1_ref, b1_ref, w2_ref, b2_ref, w3_ref, b3_ref,
                      p_ref, r_ref, m_ref, o_ref):
    f32, bf16 = jnp.float32, jnp.bfloat16
    mask = m_ref[...]                       # (GROUP, 1) f32; zero on last BT rows

    def tap3(lo, mid, hi, w_ref, b_ref):
        # out = lo @ W[ky=0] + mid @ W[ky=1] + hi @ W[ky=2] + b, then ReLU.
        acc = jnp.dot(lo.astype(bf16), w_ref[0], preferred_element_type=f32)
        acc = acc + jnp.dot(mid.astype(bf16), w_ref[1], preferred_element_type=f32)
        acc = acc + jnp.dot(hi.astype(bf16), w_ref[2], preferred_element_type=f32)
        return jnp.maximum(acc + b_ref[...], 0.0)

    # conv1 -- input split by h mod 8: X[g][t*BT+b] = x[b, 8t+g, :]
    #          output split by r mod 4: Y[g][s*BT+b] = y1[b, 4s+g, :]
    X = [x_ref[g] for g in range(8)]
    Y0 = tap3(_shift_down(X[7]), X[0], X[1], w1_ref, b1_ref)
    Y1 = tap3(X[1], X[2], X[3], w1_ref, b1_ref)
    Y2 = tap3(X[3], X[4], X[5], w1_ref, b1_ref) * mask      # r=14 is H padding
    Y3 = tap3(X[5], X[6], X[7], w1_ref, b1_ref) * mask      # r=15 is H padding

    # conv2 -- output split by r mod 2: Z0 = even rows, Z1 = odd rows
    Z0 = tap3(_shift_down(Y3), Y0, Y1, w2_ref, b2_ref)
    Z1 = tap3(Y1, Y2, Y3, w2_ref, b2_ref) * mask            # r=7 is H padding

    # conv3 -- 4 real rows per image (no split / no masking needed)
    y3 = tap3(_shift_down(Z1), Z0, Z1, w3_ref, b3_ref)      # (GROUP, 4*10)

    # avg_pool2d(4): mean over the 4 rows (P) then over the 4 column blocks (R)
    pooled = jnp.dot(p_ref[...], y3.astype(bf16), preferred_element_type=f32)
    o_ref[...] = jnp.dot(pooled, r_ref[...], preferred_element_type=f32)


# --------------------------------------------------------------------------
# Weight / constant preprocessing (plain JAX; constant-folded by XLA)
# --------------------------------------------------------------------------
def _conv_weight_matrices(w_hwio, wi):
    """(3, wi*ci, wo*co): per kernel-row ky, a banded matrix implementing the
    stride-2 W-direction taps + channel contraction (W zero padding folded in)."""
    kh, kw, ci, co = w_hwio.shape
    wo = (wi - 1) // 2 + 1
    kx = jnp.arange(wi)[:, None] - 2 * jnp.arange(wo)[None, :] + 1   # (wi, wo)
    valid = (kx >= 0) & (kx < kw)
    wk = w_hwio[:, jnp.clip(kx, 0, kw - 1)]                  # (3, wi, wo, ci, co)
    wk = jnp.where(valid[None, :, :, None, None], wk, 0.0)
    return jnp.transpose(wk, (0, 1, 3, 2, 4)).reshape(3, wi * ci, wo * co)


def _bias_row(b, wo):
    return jnp.tile(b, wo).reshape(1, wo * b.shape[0]).astype(jnp.float32)


def _pool_matrices():
    # P[b, r*BT + b] = 0.25 (row mean); R[w*10 + c, c] = 0.25 (column-block mean)
    p = jnp.where(jnp.arange(BT)[:, None] == (jnp.arange(GROUP) % BT)[None, :],
                  0.25, 0.0).astype(jnp.bfloat16)
    r = jnp.where((jnp.arange(4 * 10) % 10)[:, None] == jnp.arange(10)[None, :],
                  0.25, 0.0).astype(jnp.float32)
    return p, r


# --------------------------------------------------------------------------
# Net forward
# --------------------------------------------------------------------------
def net_forward(x, params):
    # Matches x.view(-1, 1, 28, 28).  NOTE: params hold HWIO conv weights; raw
    # PyTorch OIHW tensors must be permuted (O,I,H,W) -> (H,W,I,O) first.
    x = x.reshape(-1, 1, 28, 28).astype(jnp.float32)
    B = x.shape[0]
    steps = 2 * (-(-B // (2 * BT)))          # even #grid steps (v7x megacore)
    Bp = steps * BT

    # Pad batch to Bp, pad H 28 -> 32 with zero rows, then split every image's
    # 32 rows by h mod 8.  Group g, tile i layout: row i*GROUP + t*BT + b_local.
    xp = jnp.pad(x[:, 0], ((0, Bp - B), (0, 4), (0, 0)))               # (Bp,32,28)
    xg = jnp.transpose(xp.reshape(steps, BT, 4, 8, 28),
                       (3, 0, 2, 1, 4)).reshape(8, Bp * 4, 28)

    bf16 = jnp.bfloat16
    w1 = _conv_weight_matrices(params["w1"], 28).astype(bf16)          # (3, 28,224)
    w2 = _conv_weight_matrices(params["w2"], 14).astype(bf16)          # (3,224,112)
    w3 = _conv_weight_matrices(params["w3"], 7).astype(bf16)           # (3,112, 40)
    b1 = _bias_row(params["b1"], 14)
    b2 = _bias_row(params["b2"], 7)
    b3 = _bias_row(params["b3"], 4)
    pmat, rmat = _pool_matrices()
    maskcol = (jnp.arange(GROUP) < 3 * BT).astype(jnp.float32).reshape(GROUP, 1)

    def full(a):   # whole-array block, constant index_map -> stays VMEM-resident
        return pl.BlockSpec(a.shape, lambda i, _n=a.ndim: (0,) * _n)

    macs = (4 * 3 * GROUP * 28 * 224 + 2 * 3 * GROUP * 224 * 112
            + 3 * GROUP * 112 * 40 + BT * GROUP * 40 + BT * 40 * 10)
    cost = pl.CostEstimate(
        flops=2 * macs * steps,
        transcendentals=0,
        bytes_accessed=int(xg.size * 4 + Bp * 10 * 4
                           + (w1.size + w2.size + w3.size + pmat.size) * 2
                           + (b1.size + b2.size + b3.size + rmat.size
                              + maskcol.size) * 4))

    out = pl.pallas_call(
        _net_fused_kernel,
        out_shape=jax.ShapeDtypeStruct((Bp, 10), jnp.float32),
        grid=(steps,),
        in_specs=[
            pl.BlockSpec((8, GROUP, 28), lambda i: (0, i, 0)),
            full(w1), full(b1), full(w2), full(b2), full(w3), full(b3),
            full(pmat), full(rmat), full(maskcol),
        ],
        out_specs=pl.BlockSpec((BT, 10), lambda i: (i, 0)),
        compiler_params=pltpu.CompilerParams(
            dimension_semantics=("parallel",)),
        cost_estimate=cost,
    )(xg, w1, b1, w2, b2, w3, b3, pmat, rmat, maskcol)
    return out[:B]                                   # == x.view(-1, 10)


# --------------------------------------------------------------------------
# Reference (pure JAX) + params
# --------------------------------------------------------------------------
def net_reference(x, params):
    x = x.reshape(-1, 1, 28, 28).astype(jnp.float32)
    x = jnp.transpose(x, (0, 2, 3, 1))
    def conv(x, w, b):
        y = jax.lax.conv_general_dilated(
            x, w, window_strides=(2, 2), padding=((1, 1), (1, 1)),
            dimension_numbers=("NHWC", "HWIO", "NHWC"),
            precision=jax.lax.Precision.HIGHEST)
        return jax.nn.relu(y + b)
    x = conv(x, params["w1"], params["b1"])
    x = conv(x, params["w2"], params["b2"])
    x = conv(x, params["w3"], params["b3"])
    return jnp.mean(x, axis=(1, 2))                  # (B, 10)


def init_params(key):
    def conv_init(k, kh, kw, cin, cout):
        k1, k2 = jax.random.split(k)
        bound = 1.0 / jnp.sqrt(float(cin * kh * kw))
        w = jax.random.uniform(k1, (kh, kw, cin, cout), jnp.float32, -bound, bound)
        b = jax.random.uniform(k2, (cout,), jnp.float32, -bound, bound)
        return w, b
    k1, k2, k3 = jax.random.split(key, 3)
    w1, b1 = conv_init(k1, 3, 3, 1, 16)
    w2, b2 = conv_init(k2, 3, 3, 16, 16)
    w3, b3 = conv_init(k3, 3, 3, 16, 10)
    return dict(w1=w1, b1=b1, w2=w2, b2=b2, w3=w3, b3=b3)


if __name__ == "__main__":
    key = jax.random.PRNGKey(0)
    k_param, k_x = jax.random.split(key)
    params = init_params(k_param)
    x = jax.random.normal(k_x, (2, 1, 28, 28), dtype=jnp.float32)

    out = jax.block_until_ready(jax.jit(net_forward)(x, params))
    assert out.shape == (2, 10), out.shape
    assert out.dtype == jnp.float32

    ref = jax.block_until_ready(jax.jit(net_reference)(x, params))
    max_err = float(jnp.max(jnp.abs(out - ref)))
    assert max_err < 1e-2, f"mismatch vs reference: {max_err}"
    print("KERNEL_OK")
</pallas_src>

<mosaic_0001>
module attributes {stable_mosaic.version = 11 : i64} {
  func.func @_net_fused_kernel(%arg0: i32, %arg1: memref<8x256x28xf32, #tpu.memory_space<vmem>>, %arg2: memref<3x28x224xbf16, #tpu.memory_space<vmem>>, %arg3: memref<1x224xf32, #tpu.memory_space<vmem>>, %arg4: memref<3x224x112xbf16, #tpu.memory_space<vmem>>, %arg5: memref<1x112xf32, #tpu.memory_space<vmem>>, %arg6: memref<3x112x40xbf16, #tpu.memory_space<vmem>>, %arg7: memref<1x40xf32, #tpu.memory_space<vmem>>, %arg8: memref<64x256xbf16, #tpu.memory_space<vmem>>, %arg9: memref<40x10xf32, #tpu.memory_space<vmem>>, %arg10: memref<256x1xf32, #tpu.memory_space<vmem>>, %arg11: memref<64x10xf32, #tpu.memory_space<vmem>>) attributes {dimension_semantics = [#tpu.dimension_semantics<parallel>], iteration_bounds = array<i64: 2>, scalar_prefetch = 0 : i64, scratch_operands = 0 : i64, tpu.core_type = #tpu.core_type<tc>, window_params = [{transform_indices = @transform_0, window_bounds = array<i64: 8, 256, 28>}, {pipeline_mode = #tpu.pipeline_mode<synchronous>, transform_indices = @transform_1, window_bounds = array<i64: 3, 28, 224>}, {pipeline_mode = #tpu.pipeline_mode<synchronous>, transform_indices = @transform_2, window_bounds = array<i64: 1, 224>}, {pipeline_mode = #tpu.pipeline_mode<synchronous>, transform_indices = @transform_3, window_bounds = array<i64: 3, 224, 112>}, {pipeline_mode = #tpu.pipeline_mode<synchronous>, transform_indices = @transform_4, window_bounds = array<i64: 1, 112>}, {pipeline_mode = #tpu.pipeline_mode<synchronous>, transform_indices = @transform_5, window_bounds = array<i64: 3, 112, 40>}, {pipeline_mode = #tpu.pipeline_mode<synchronous>, transform_indices = @transform_6, window_bounds = array<i64: 1, 40>}, {pipeline_mode = #tpu.pipeline_mode<synchronous>, transform_indices = @transform_7, window_bounds = array<i64: 64, 256>}, {pipeline_mode = #tpu.pipeline_mode<synchronous>, transform_indices = @transform_8, window_bounds = array<i64: 40, 10>}, {pipeline_mode = #tpu.pipeline_mode<synchronous>, transform_indices = @transform_9, window_bounds = array<i64: 256, 1>}, {transform_indices = @transform_10, window_bounds = array<i64: 64, 10>}]} {
    %c0 = arith.constant 0 : index
    %c0_0 = arith.constant 0 : index
    %0 = vector.load %arg10[%c0, %c0_0] : memref<256x1xf32, #tpu.memory_space<vmem>>, vector<256x1xf32>
    %c0_1 = arith.constant 0 : index
    %c0_2 = arith.constant 0 : index
    %c0_3 = arith.constant 0 : index
    %1 = vector.load %arg1[%c0_1, %c0_2, %c0_3] : memref<8x256x28xf32, #tpu.memory_space<vmem>>, vector<1x256x28xf32>
    %2 = vector.shape_cast %1 : vector<1x256x28xf32> to vector<256x28xf32>
    %c1 = arith.constant 1 : index
    %c0_4 = arith.constant 0 : index
    %c0_5 = arith.constant 0 : index
    %3 = vector.load %arg1[%c1, %c0_4, %c0_5] : memref<8x256x28xf32, #tpu.memory_space<vmem>>, vector<1x256x28xf32>
    %4 = vector.shape_cast %3 : vector<1x256x28xf32> to vector<256x28xf32>
    %c2 = arith.constant 2 : index
    %c0_6 = arith.constant 0 : index
    %c0_7 = arith.constant 0 : index
    %5 = vector.load %arg1[%c2, %c0_6, %c0_7] : memref<8x256x28xf32, #tpu.memory_space<vmem>>, vector<1x256x28xf32>
    %6 = vector.shape_cast %5 : vector<1x256x28xf32> to vector<256x28xf32>
    %c3 = arith.constant 3 : index
    %c0_8 = arith.constant 0 : index
    %c0_9 = arith.constant 0 : index
    %7 = vector.load %arg1[%c3, %c0_8, %c0_9] : memref<8x256x28xf32, #tpu.memory_space<vmem>>, vector<1x256x28xf32>
    %8 = vector.shape_cast %7 : vector<1x256x28xf32> to vector<256x28xf32>
    %c4 = arith.constant 4 : index
    %c0_10 = arith.constant 0 : index
    %c0_11 = arith.constant 0 : index
    %9 = vector.load %arg1[%c4, %c0_10, %c0_11] : memref<8x256x28xf32, #tpu.memory_space<vmem>>, vector<1x256x28xf32>
    %10 = vector.shape_cast %9 : vector<1x256x28xf32> to vector<256x28xf32>
    %c5 = arith.constant 5 : index
    %c0_12 = arith.constant 0 : index
    %c0_13 = arith.constant 0 : index
    %11 = vector.load %arg1[%c5, %c0_12, %c0_13] : memref<8x256x28xf32, #tpu.memory_space<vmem>>, vector<1x256x28xf32>
    %12 = vector.shape_cast %11 : vector<1x256x28xf32> to vector<256x28xf32>
    %c6 = arith.constant 6 : index
    %c0_14 = arith.constant 0 : index
    %c0_15 = arith.constant 0 : index
    %13 = vector.load %arg1[%c6, %c0_14, %c0_15] : memref<8x256x28xf32, #tpu.memory_space<vmem>>, vector<1x256x28xf32>
    %14 = vector.shape_cast %13 : vector<1x256x28xf32> to vector<256x28xf32>
    %c7 = arith.constant 7 : index
    %c0_16 = arith.constant 0 : index
    %c0_17 = arith.constant 0 : index
    %15 = vector.load %arg1[%c7, %c0_16, %c0_17] : memref<8x256x28xf32, #tpu.memory_space<vmem>>, vector<1x256x28xf32>
    %16 = vector.shape_cast %15 : vector<1x256x28xf32> to vector<256x28xf32>
    %cst = arith.constant 0.000000e+00 : f32
    %17 = vector.broadcast %cst : f32 to vector<64x28xf32>
    %18 = vector.extract_strided_slice %16 {offsets = [0, 0], sizes = [192, 28], strides = [1, 1]} : vector<256x28xf32> to vector<192x28xf32>
    %19 = tpu.concatenate %17, %18 in 0 : vector<64x28xf32>, vector<192x28xf32> -> vector<256x28xf32>
    %20 = arith.truncf %19 : vector<256x28xf32> to vector<256x28xbf16>
    %c0_18 = arith.constant 0 : index
    %c0_19 = arith.constant 0 : index
    %c0_20 = arith.constant 0 : index
    %21 = vector.load %arg2[%c0_18, %c0_19, %c0_20] : memref<3x28x224xbf16, #tpu.memory_space<vmem>>, vector<1x28x224xbf16>
    %22 = vector.shape_cast %21 : vector<1x28x224xbf16> to vector<28x224xbf16>
    %cst_21 = arith.constant dense<0.000000e+00> : vector<256x224xf32>
    %23 = tpu.matmul %20, %22, %cst_21 {dimension_numbers = #tpu.dot_dimension_numbers<[1], [0], [0], [1], [0, 0, 1, 1], [], []>} : vector<256x28xbf16>, vector<28x224xbf16>, vector<256x224xf32> -> vector<256x224xf32>
    %24 = arith.truncf %2 : vector<256x28xf32> to vector<256x28xbf16>
    %c1_22 = arith.constant 1 : index
    %c0_23 = arith.constant 0 : index
    %c0_24 = arith.constant 0 : index
    %25 = vector.load %arg2[%c1_22, %c0_23, %c0_24] : memref<3x28x224xbf16, #tpu.memory_space<vmem>>, vector<1x28x224xbf16>
    %26 = vector.shape_cast %25 : vector<1x28x224xbf16> to vector<28x224xbf16>
    %cst_25 = arith.constant dense<0.000000e+00> : vector<256x224xf32>
    %27 = tpu.matmul %24, %26, %cst_25 {dimension_numbers = #tpu.dot_dimension_numbers<[1], [0], [0], [1], [0, 0, 1, 1], [], []>} : vector<256x28xbf16>, vector<28x224xbf16>, vector<256x224xf32> -> vector<256x224xf32>
    %28 = arith.addf %23, %27 : vector<256x224xf32>
    %29 = arith.truncf %4 : vector<256x28xf32> to vector<256x28xbf16>
    %c2_26 = arith.constant 2 : index
    %c0_27 = arith.constant 0 : index
    %c0_28 = arith.constant 0 : index
    %30 = vector.load %arg2[%c2_26, %c0_27, %c0_28] : memref<3x28x224xbf16, #tpu.memory_space<vmem>>, vector<1x28x224xbf16>
    %31 = vector.shape_cast %30 : vector<1x28x224xbf16> to vector<28x224xbf16>
    %cst_29 = arith.constant dense<0.000000e+00> : vector<256x224xf32>
    %32 = tpu.matmul %29, %31, %cst_29 {dimension_numbers = #tpu.dot_dimension_numbers<[1], [0], [0], [1], [0, 0, 1, 1], [], []>} : vector<256x28xbf16>, vector<28x224xbf16>, vector<256x224xf32> -> vector<256x224xf32>
    %33 = arith.addf %28, %32 : vector<256x224xf32>
    %c0_30 = arith.constant 0 : index
    %c0_31 = arith.constant 0 : index
    %34 = vector.load %arg3[%c0_30, %c0_31] : memref<1x224xf32, #tpu.memory_space<vmem>>, vector<1x224xf32>
    %35 = vector.broadcast %34 : vector<1x224xf32> to vector<256x224xf32>
    %36 = arith.addf %33, %35 : vector<256x224xf32>
    %cst_32 = arith.constant 0.000000e+00 : f32
    %37 = vector.broadcast %cst_32 : f32 to vector<256x224xf32>
    %38 = arith.maximumf %36, %37 : vector<256x224xf32>
    %39 = arith.truncf %4 : vector<256x28xf32> to vector<256x28xbf16>
    %c0_33 = arith.constant 0 : index
    %c0_34 = arith.constant 0 : index
    %c0_35 = arith.constant 0 : index
    %40 = vector.load %arg2[%c0_33, %c0_34, %c0_35] : memref<3x28x224xbf16, #tpu.memory_space<vmem>>, vector<1x28x224xbf16>
    %41 = vector.shape_cast %40 : vector<1x28x224xbf16> to vector<28x224xbf16>
    %cst_36 = arith.constant dense<0.000000e+00> : vector<256x224xf32>
    %42 = tpu.matmul %39, %41, %cst_36 {dimension_numbers = #tpu.dot_dimension_numbers<[1], [0], [0], [1], [0, 0, 1, 1], [], []>} : vector<256x28xbf16>, vector<28x224xbf16>, vector<256x224xf32> -> vector<256x224xf32>
    %43 = arith.truncf %6 : vector<256x28xf32> to vector<256x28xbf16>
    %c1_37 = arith.constant 1 : index
    %c0_38 = arith.constant 0 : index
    %c0_39 = arith.constant 0 : index
    %44 = vector.load %arg2[%c1_37, %c0_38, %c0_39] : memref<3x28x224xbf16, #tpu.memory_space<vmem>>, vector<1x28x224xbf16>
    %45 = vector.shape_cast %44 : vector<1x28x224xbf16> to vector<28x224xbf16>
    %cst_40 = arith.constant dense<0.000000e+00> : vector<256x224xf32>
    %46 = tpu.matmul %43, %45, %cst_40 {dimension_numbers = #tpu.dot_dimension_numbers<[1], [0], [0], [1], [0, 0, 1, 1], [], []>} : vector<256x28xbf16>, vector<28x224xbf16>, vector<256x224xf32> -> vector<256x224xf32>
    %47 = arith.addf %42, %46 : vector<256x224xf32>
    %48 = arith.truncf %8 : vector<256x28xf32> to vector<256x28xbf16>
    %c2_41 = arith.constant 2 : index
    %c0_42 = arith.constant 0 : index
    %c0_43 = arith.constant 0 : index
    %49 = vector.load %arg2[%c2_41, %c0_42, %c0_43] : memref<3x28x224xbf16, #tpu.memory_space<vmem>>, vector<1x28x224xbf16>
    %50 = vector.shape_cast %49 : vector<1x28x224xbf16> to vector<28x224xbf16>
    %cst_44 = arith.constant dense<0.000000e+00> : vector<256x224xf32>
    %51 = tpu.matmul %48, %50, %cst_44 {dimension_numbers = #tpu.dot_dimension_numbers<[1], [0], [0], [1], [0, 0, 1, 1], [], []>} : vector<256x28xbf16>, vector<28x224xbf16>, vector<256x224xf32> -> vector<256x224xf32>
    %52 = arith.addf %47, %51 : vector<256x224xf32>
    %c0_45 = arith.constant 0 : index
    %c0_46 = arith.constant 0 : index
    %53 = vector.load %arg3[%c0_45, %c0_46] : memref<1x224xf32, #tpu.memory_space<vmem>>, vector<1x224xf32>
    %54 = vector.broadcast %53 : vector<1x224xf32> to vector<256x224xf32>
    %55 = arith.addf %52, %54 : vector<256x224xf32>
    %cst_47 = arith.constant 0.000000e+00 : f32
    %56 = vector.broadcast %cst_47 : f32 to vector<256x224xf32>
    %57 = arith.maximumf %55, %56 : vector<256x224xf32>
    %58 = arith.truncf %8 : vector<256x28xf32> to vector<256x28xbf16>
    %c0_48 = arith.constant 0 : index
    %c0_49 = arith.constant 0 : index
    %c0_50 = arith.constant 0 : index
    %59 = vector.load %arg2[%c0_48, %c0_49, %c0_50] : memref<3x28x224xbf16, #tpu.memory_space<vmem>>, vector<1x28x224xbf16>
    %60 = vector.shape_cast %59 : vector<1x28x224xbf16> to vector<28x224xbf16>
    %cst_51 = arith.constant dense<0.000000e+00> : vector<256x224xf32>
    %61 = tpu.matmul %58, %60, %cst_51 {dimension_numbers = #tpu.dot_dimension_numbers<[1], [0], [0], [1], [0, 0, 1, 1], [], []>} : vector<256x28xbf16>, vector<28x224xbf16>, vector<256x224xf32> -> vector<256x224xf32>
    %62 = arith.truncf %10 : vector<256x28xf32> to vector<256x28xbf16>
    %c1_52 = arith.constant 1 : index
    %c0_53 = arith.constant 0 : index
    %c0_54 = arith.constant 0 : index
    %63 = vector.load %arg2[%c1_52, %c0_53, %c0_54] : memref<3x28x224xbf16, #tpu.memory_space<vmem>>, vector<1x28x224xbf16>
    %64 = vector.shape_cast %63 : vector<1x28x224xbf16> to vector<28x224xbf16>
    %cst_55 = arith.constant dense<0.000000e+00> : vector<256x224xf32>
    %65 = tpu.matmul %62, %64, %cst_55 {dimension_numbers = #tpu.dot_dimension_numbers<[1], [0], [0], [1], [0, 0, 1, 1], [], []>} : vector<256x28xbf16>, vector<28x224xbf16>, vector<256x224xf32> -> vector<256x224xf32>
    %66 = arith.addf %61, %65 : vector<256x224xf32>
    %67 = arith.truncf %12 : vector<256x28xf32> to vector<256x28xbf16>
    %c2_56 = arith.constant 2 : index
    %c0_57 = arith.constant 0 : index
    %c0_58 = arith.constant 0 : index
    %68 = vector.load %arg2[%c2_56, %c0_57, %c0_58] : memref<3x28x224xbf16, #tpu.memory_space<vmem>>, vector<1x28x224xbf16>
    %69 = vector.shape_cast %68 : vector<1x28x224xbf16> to vector<28x224xbf16>
    %cst_59 = arith.constant dense<0.000000e+00> : vector<256x224xf32>
    %70 = tpu.matmul %67, %69, %cst_59 {dimension_numbers = #tpu.dot_dimension_numbers<[1], [0], [0], [1], [0, 0, 1, 1], [], []>} : vector<256x28xbf16>, vector<28x224xbf16>, vector<256x224xf32> -> vector<256x224xf32>
    %71 = arith.addf %66, %70 : vector<256x224xf32>
    %c0_60 = arith.constant 0 : index
    %c0_61 = arith.constant 0 : index
    %72 = vector.load %arg3[%c0_60, %c0_61] : memref<1x224xf32, #tpu.memory_space<vmem>>, vector<1x224xf32>
    %73 = vector.broadcast %72 : vector<1x224xf32> to vector<256x224xf32>
    %74 = arith.addf %71, %73 : vector<256x224xf32>
    %cst_62 = arith.constant 0.000000e+00 : f32
    %75 = vector.broadcast %cst_62 : f32 to vector<256x224xf32>
    %76 = arith.maximumf %74, %75 : vector<256x224xf32>
    %77 = vector.broadcast %0 : vector<256x1xf32> to vector<256x224xf32>
    %78 = arith.mulf %76, %77 : vector<256x224xf32>
    %79 = arith.truncf %12 : vector<256x28xf32> to vector<256x28xbf16>
    %c0_63 = arith.constant 0 : index
    %c0_64 = arith.constant 0 : index
    %c0_65 = arith.constant 0 : index
    %80 = vector.load %arg2[%c0_63, %c0_64, %c0_65] : memref<3x28x224xbf16, #tpu.memory_space<vmem>>, vector<1x28x224xbf16>
    %81 = vector.shape_cast %80 : vector<1x28x224xbf16> to vector<28x224xbf16>
    %cst_66 = arith.constant dense<0.000000e+00> : vector<256x224xf32>
    %82 = tpu.matmul %79, %81, %cst_66 {dimension_numbers = #tpu.dot_dimension_numbers<[1], [0], [0], [1], [0, 0, 1, 1], [], []>} : vector<256x28xbf16>, vector<28x224xbf16>, vector<256x224xf32> -> vector<256x224xf32>
    %83 = arith.truncf %14 : vector<256x28xf32> to vector<256x28xbf16>
    %c1_67 = arith.constant 1 : index
    %c0_68 = arith.constant 0 : index
    %c0_69 = arith.constant 0 : index
    %84 = vector.load %arg2[%c1_67, %c0_68, %c0_69] : memref<3x28x224xbf16, #tpu.memory_space<vmem>>, vector<1x28x224xbf16>
    %85 = vector.shape_cast %84 : vector<1x28x224xbf16> to vector<28x224xbf16>
    %cst_70 = arith.constant dense<0.000000e+00> : vector<256x224xf32>
    %86 = tpu.matmul %83, %85, %cst_70 {dimension_numbers = #tpu.dot_dimension_numbers<[1], [0], [0], [1], [0, 0, 1, 1], [], []>} : vector<256x28xbf16>, vector<28x224xbf16>, vector<256x224xf32> -> vector<256x224xf32>
    %87 = arith.addf %82, %86 : vector<256x224xf32>
    %88 = arith.truncf %16 : vector<256x28xf32> to vector<256x28xbf16>
    %c2_71 = arith.constant 2 : index
    %c0_72 = arith.constant 0 : index
    %c0_73 = arith.constant 0 : index
    %89 = vector.load %arg2[%c2_71, %c0_72, %c0_73] : memref<3x28x224xbf16, #tpu.memory_space<vmem>>, vector<1x28x224xbf16>
    %90 = vector.shape_cast %89 : vector<1x28x224xbf16> to vector<28x224xbf16>
    %cst_74 = arith.constant dense<0.000000e+00> : vector<256x224xf32>
    %91 = tpu.matmul %88, %90, %cst_74 {dimension_numbers = #tpu.dot_dimension_numbers<[1], [0], [0], [1], [0, 0, 1, 1], [], []>} : vector<256x28xbf16>, vector<28x224xbf16>, vector<256x224xf32> -> vector<256x224xf32>
    %92 = arith.addf %87, %91 : vector<256x224xf32>
    %c0_75 = arith.constant 0 : index
    %c0_76 = arith.constant 0 : index
    %93 = vector.load %arg3[%c0_75, %c0_76] : memref<1x224xf32, #tpu.memory_space<vmem>>, vector<1x224xf32>
    %94 = vector.broadcast %93 : vector<1x224xf32> to vector<256x224xf32>
    %95 = arith.addf %92, %94 : vector<256x224xf32>
    %cst_77 = arith.constant 0.000000e+00 : f32
    %96 = vector.broadcast %cst_77 : f32 to vector<256x224xf32>
    %97 = arith.maximumf %95, %96 : vector<256x224xf32>
    %98 = vector.broadcast %0 : vector<256x1xf32> to vector<256x224xf32>
    %99 = arith.mulf %97, %98 : vector<256x224xf32>
    %cst_78 = arith.constant 0.000000e+00 : f32
    %100 = vector.broadcast %cst_78 : f32 to vector<64x224xf32>
    %101 = vector.extract_strided_slice %99 {offsets = [0, 0], sizes = [192, 224], strides = [1, 1]} : vector<256x224xf32> to vector<192x224xf32>
    %102 = tpu.concatenate %100, %101 in 0 : vector<64x224xf32>, vector<192x224xf32> -> vector<256x224xf32>
    %103 = arith.truncf %102 : vector<256x224xf32> to vector<256x224xbf16>
    %c0_79 = arith.constant 0 : index
    %c0_80 = arith.constant 0 : index
    %c0_81 = arith.constant 0 : index
    %104 = vector.load %arg4[%c0_79, %c0_80, %c0_81] : memref<3x224x112xbf16, #tpu.memory_space<vmem>>, vector<1x224x112xbf16>
    %105 = vector.shape_cast %104 : vector<1x224x112xbf16> to vector<224x112xbf16>
    %cst_82 = arith.constant dense<0.000000e+00> : vector<256x112xf32>
    %106 = tpu.matmul %103, %105, %cst_82 {dimension_numbers = #tpu.dot_dimension_numbers<[1], [0], [0], [1], [0, 0, 1, 1], [], []>} : vector<256x224xbf16>, vector<224x112xbf16>, vector<256x112xf32> -> vector<256x112xf32>
    %107 = arith.truncf %38 : vector<256x224xf32> to vector<256x224xbf16>
    %c1_83 = arith.constant 1 : index
    %c0_84 = arith.constant 0 : index
    %c0_85 = arith.constant 0 : index
    %108 = vector.load %arg4[%c1_83, %c0_84, %c0_85] : memref<3x224x112xbf16, #tpu.memory_space<vmem>>, vector<1x224x112xbf16>
    %109 = vector.shape_cast %108 : vector<1x224x112xbf16> to vector<224x112xbf16>
    %cst_86 = arith.constant dense<0.000000e+00> : vector<256x112xf32>
    %110 = tpu.matmul %107, %109, %cst_86 {dimension_numbers = #tpu.dot_dimension_numbers<[1], [0], [0], [1], [0, 0, 1, 1], [], []>} : vector<256x224xbf16>, vector<224x112xbf16>, vector<256x112xf32> -> vector<256x112xf32>
    %111 = arith.addf %106, %110 : vector<256x112xf32>
    %112 = arith.truncf %57 : vector<256x224xf32> to vector<256x224xbf16>
    %c2_87 = arith.constant 2 : index
    %c0_88 = arith.constant 0 : index
    %c0_89 = arith.constant 0 : index
    %113 = vector.load %arg4[%c2_87, %c0_88, %c0_89] : memref<3x224x112xbf16, #tpu.memory_space<vmem>>, vector<1x224x112xbf16>
    %114 = vector.shape_cast %113 : vector<1x224x112xbf16> to vector<224x112xbf16>
    %cst_90 = arith.constant dense<0.000000e+00> : vector<256x112xf32>
    %115 = tpu.matmul %112, %114, %cst_90 {dimension_numbers = #tpu.dot_dimension_numbers<[1], [0], [0], [1], [0, 0, 1, 1], [], []>} : vector<256x224xbf16>, vector<224x112xbf16>, vector<256x112xf32> -> vector<256x112xf32>
    %116 = arith.addf %111, %115 : vector<256x112xf32>
    %c0_91 = arith.constant 0 : index
    %c0_92 = arith.constant 0 : index
    %117 = vector.load %arg5[%c0_91, %c0_92] : memref<1x112xf32, #tpu.memory_space<vmem>>, vector<1x112xf32>
    %118 = vector.broadcast %117 : vector<1x112xf32> to vector<256x112xf32>
    %119 = arith.addf %116, %118 : vector<256x112xf32>
    %cst_93 = arith.constant 0.000000e+00 : f32
    %120 = vector.broadcast %cst_93 : f32 to vector<256x112xf32>
    %121 = arith.maximumf %119, %120 : vector<256x112xf32>
    %122 = arith.truncf %57 : vector<256x224xf32> to vector<256x224xbf16>
    %c0_94 = arith.constant 0 : index
    %c0_95 = arith.constant 0 : index
    %c0_96 = arith.constant 0 : index
    %123 = vector.load %arg4[%c0_94, %c0_95, %c0_96] : memref<3x224x112xbf16, #tpu.memory_space<vmem>>, vector<1x224x112xbf16>
    %124 = vector.shape_cast %123 : vector<1x224x112xbf16> to vector<224x112xbf16>
    %cst_97 = arith.constant dense<0.000000e+00> : vector<256x112xf32>
    %125 = tpu.matmul %122, %124, %cst_97 {dimension_numbers = #tpu.dot_dimension_numbers<[1], [0], [0], [1], [0, 0, 1, 1], [], []>} : vector<256x224xbf16>, vector<224x112xbf16>, vector<256x112xf32> -> vector<256x112xf32>
    %126 = arith.truncf %78 : vector<256x224xf32> to vector<256x224xbf16>
    %c1_98 = arith.constant 1 : index
    %c0_99 = arith.constant 0 : index
    %c0_100 = arith.constant 0 : index
    %127 = vector.load %arg4[%c1_98, %c0_99, %c0_100] : memref<3x224x112xbf16, #tpu.memory_space<vmem>>, vector<1x224x112xbf16>
    %128 = vector.shape_cast %127 : vector<1x224x112xbf16> to vector<224x112xbf16>
    %cst_101 = arith.constant dense<0.000000e+00> : vector<256x112xf32>
    %129 = tpu.matmul %126, %128, %cst_101 {dimension_numbers = #tpu.dot_dimension_numbers<[1], [0], [0], [1], [0, 0, 1, 1], [], []>} : vector<256x224xbf16>, vector<224x112xbf16>, vector<256x112xf32> -> vector<256x112xf32>
    %130 = arith.addf %125, %129 : vector<256x112xf32>
    %131 = arith.truncf %99 : vector<256x224xf32> to vector<256x224xbf16>
    %c2_102 = arith.constant 2 : index
    %c0_103 = arith.constant 0 : index
    %c0_104 = arith.constant 0 : index
    %132 = vector.load %arg4[%c2_102, %c0_103, %c0_104] : memref<3x224x112xbf16, #tpu.memory_space<vmem>>, vector<1x224x112xbf16>
    %133 = vector.shape_cast %132 : vector<1x224x112xbf16> to vector<224x112xbf16>
    %cst_105 = arith.constant dense<0.000000e+00> : vector<256x112xf32>
    %134 = tpu.matmul %131, %133, %cst_105 {dimension_numbers = #tpu.dot_dimension_numbers<[1], [0], [0], [1], [0, 0, 1, 1], [], []>} : vector<256x224xbf16>, vector<224x112xbf16>, vector<256x112xf32> -> vector<256x112xf32>
    %135 = arith.addf %130, %134 : vector<256x112xf32>
    %c0_106 = arith.constant 0 : index
    %c0_107 = arith.constant 0 : index
    %136 = vector.load %arg5[%c0_106, %c0_107] : memref<1x112xf32, #tpu.memory_space<vmem>>, vector<1x112xf32>
    %137 = vector.broadcast %136 : vector<1x112xf32> to vector<256x112xf32>
    %138 = arith.addf %135, %137 : vector<256x112xf32>
    %cst_108 = arith.constant 0.000000e+00 : f32
    %139 = vector.broadcast %cst_108 : f32 to vector<256x112xf32>
    %140 = arith.maximumf %138, %139 : vector<256x112xf32>
    %141 = vector.broadcast %0 : vector<256x1xf32> to vector<256x112xf32>
    %142 = arith.mulf %140, %141 : vector<256x112xf32>
    %cst_109 = arith.constant 0.000000e+00 : f32
    %143 = vector.broadcast %cst_109 : f32 to vector<64x112xf32>
    %144 = vector.extract_strided_slice %142 {offsets = [0, 0], sizes = [192, 112], strides = [1, 1]} : vector<256x112xf32> to vector<192x112xf32>
    %145 = tpu.concatenate %143, %144 in 0 : vector<64x112xf32>, vector<192x112xf32> -> vector<256x112xf32>
    %146 = arith.truncf %145 : vector<256x112xf32> to vector<256x112xbf16>
    %c0_110 = arith.constant 0 : index
    %c0_111 = arith.constant 0 : index
    %c0_112 = arith.constant 0 : index
    %147 = vector.load %arg6[%c0_110, %c0_111, %c0_112] : memref<3x112x40xbf16, #tpu.memory_space<vmem>>, vector<1x112x40xbf16>
    %148 = vector.shape_cast %147 : vector<1x112x40xbf16> to vector<112x40xbf16>
    %cst_113 = arith.constant dense<0.000000e+00> : vector<256x40xf32>
    %149 = tpu.matmul %146, %148, %cst_113 {dimension_numbers = #tpu.dot_dimension_numbers<[1], [0], [0], [1], [0, 0, 1, 1], [], []>} : vector<256x112xbf16>, vector<112x40xbf16>, vector<256x40xf32> -> vector<256x40xf32>
    %150 = arith.truncf %121 : vector<256x112xf32> to vector<256x112xbf16>
    %c1_114 = arith.constant 1 : index
    %c0_115 = arith.constant 0 : index
    %c0_116 = arith.constant 0 : index
    %151 = vector.load %arg6[%c1_114, %c0_115, %c0_116] : memref<3x112x40xbf16, #tpu.memory_space<vmem>>, vector<1x112x40xbf16>
    %152 = vector.shape_cast %151 : vector<1x112x40xbf16> to vector<112x40xbf16>
    %cst_117 = arith.constant dense<0.000000e+00> : vector<256x40xf32>
    %153 = tpu.matmul %150, %152, %cst_117 {dimension_numbers = #tpu.dot_dimension_numbers<[1], [0], [0], [1], [0, 0, 1, 1], [], []>} : vector<256x112xbf16>, vector<112x40xbf16>, vector<256x40xf32> -> vector<256x40xf32>
    %154 = arith.addf %149, %153 : vector<256x40xf32>
    %155 = arith.truncf %142 : vector<256x112xf32> to vector<256x112xbf16>
    %c2_118 = arith.constant 2 : index
    %c0_119 = arith.constant 0 : index
    %c0_120 = arith.constant 0 : index
    %156 = vector.load %arg6[%c2_118, %c0_119, %c0_120] : memref<3x112x40xbf16, #tpu.memory_space<vmem>>, vector<1x112x40xbf16>
    %157 = vector.shape_cast %156 : vector<1x112x40xbf16> to vector<112x40xbf16>
    %cst_121 = arith.constant dense<0.000000e+00> : vector<256x40xf32>
    %158 = tpu.matmul %155, %157, %cst_121 {dimension_numbers = #tpu.dot_dimension_numbers<[1], [0], [0], [1], [0, 0, 1, 1], [], []>} : vector<256x112xbf16>, vector<112x40xbf16>, vector<256x40xf32> -> vector<256x40xf32>
    %159 = arith.addf %154, %158 : vector<256x40xf32>
    %c0_122 = arith.constant 0 : index
    %c0_123 = arith.constant 0 : index
    %160 = vector.load %arg7[%c0_122, %c0_123] : memref<1x40xf32, #tpu.memory_space<vmem>>, vector<1x40xf32>
    %161 = vector.broadcast %160 : vector<1x40xf32> to vector<256x40xf32>
    %162 = arith.addf %159, %161 : vector<256x40xf32>
    %cst_124 = arith.constant 0.000000e+00 : f32
    %163 = vector.broadcast %cst_124 : f32 to vector<256x40xf32>
    %164 = arith.maximumf %162, %163 : vector<256x40xf32>
    %c0_125 = arith.constant 0 : index
    %c0_126 = arith.constant 0 : index
    %165 = vector.load %arg8[%c0_125, %c0_126] : memref<64x256xbf16, #tpu.memory_space<vmem>>, vector<64x256xbf16>
    %166 = arith.truncf %164 : vector<256x40xf32> to vector<256x40xbf16>
    %cst_127 = arith.constant dense<0.000000e+00> : vector<64x40xf32>
    %167 = tpu.matmul %165, %166, %cst_127 {dimension_numbers = #tpu.dot_dimension_numbers<[1], [0], [0], [1], [0, 0, 1, 1], [], []>} : vector<64x256xbf16>, vector<256x40xbf16>, vector<64x40xf32> -> vector<64x40xf32>
    %c0_128 = arith.constant 0 : index
    %c0_129 = arith.constant 0 : index
    %168 = vector.load %arg9[%c0_128, %c0_129] : memref<40x10xf32, #tpu.memory_space<vmem>>, vector<40x10xf32>
    %cst_130 = arith.constant dense<0.000000e+00> : vector<64x10xf32>
    %169 = tpu.matmul %167, %168, %cst_130 {dimension_numbers = #tpu.dot_dimension_numbers<[1], [0], [0], [1], [0, 0, 1, 1], [], []>} : vector<64x40xf32>, vector<40x10xf32>, vector<64x10xf32> -> vector<64x10xf32>
    %c0_131 = arith.constant 0 : index
    %c0_132 = arith.constant 0 : index
    %170 = vector.load %arg11[%c0_131, %c0_132] : memref<64x10xf32, #tpu.memory_space<vmem>>, vector<64x10xf32>
    tpu.vector_store %arg11[%c0_131, %c0_132], %169 {strides = array<i32>} : memref<64x10xf32, #tpu.memory_space<vmem>>, vector<64x10xf32>,
    return
  }
  func.func @transform_0(%arg0: i32) -> (i32, i32, i32) {
    %c0_i32 = arith.constant 0 : i32
    %c0_i32_0 = arith.constant 0 : i32
    %c0_i32_1 = arith.constant 0 : i32
    return %c0_i32, %arg0, %c0_i32_0 : i32, i32, i32
  }
  func.func @transform_1(%arg0: i32) -> (i32, i32, i32) {
    %c0_i32 = arith.constant 0 : i32
    %c0_i32_0 = arith.constant 0 : i32
    %c0_i32_1 = arith.constant 0 : i32
    %c0_i32_2 = arith.constant 0 : i32
    return %c0_i32, %c0_i32_0, %c0_i32_1 : i32, i32, i32
  }
  func.func @transform_2(%arg0: i32) -> (i32, i32) {
    %c0_i32 = arith.constant 0 : i32
    %c0_i32_0 = arith.constant 0 : i32
    %c0_i32_1 = arith.constant 0 : i32
    return %c0_i32, %c0_i32_0 : i32, i32
  }
  func.func @transform_3(%arg0: i32) -> (i32, i32, i32) {
    %c0_i32 = arith.constant 0 : i32
    %c0_i32_0 = arith.constant 0 : i32
    %c0_i32_1 = arith.constant 0 : i32
    %c0_i32_2 = arith.constant 0 : i32
    return %c0_i32, %c0_i32_0, %c0_i32_1 : i32, i32, i32
  }
  func.func @transform_4(%arg0: i32) -> (i32, i32) {
    %c0_i32 = arith.constant 0 : i32
    %c0_i32_0 = arith.constant 0 : i32
    %c0_i32_1 = arith.constant 0 : i32
    return %c0_i32, %c0_i32_0 : i32, i32
  }
  func.func @transform_5(%arg0: i32) -> (i32, i32, i32) {
    %c0_i32 = arith.constant 0 : i32
    %c0_i32_0 = arith.constant 0 : i32
    %c0_i32_1 = arith.constant 0 : i32
    %c0_i32_2 = arith.constant 0 : i32
    return %c0_i32, %c0_i32_0, %c0_i32_1 : i32, i32, i32
  }
  func.func @transform_6(%arg0: i32) -> (i32, i32) {
    %c0_i32 = arith.constant 0 : i32
    %c0_i32_0 = arith.constant 0 : i32
    %c0_i32_1 = arith.constant 0 : i32
    return %c0_i32, %c0_i32_0 : i32, i32
  }
  func.func @transform_7(%arg0: i32) -> (i32, i32) {
    %c0_i32 = arith.constant 0 : i32
    %c0_i32_0 = arith.constant 0 : i32
    %c0_i32_1 = arith.constant 0 : i32
    return %c0_i32, %c0_i32_0 : i32, i32
  }
  func.func @transform_8(%arg0: i32) -> (i32, i32) {
    %c0_i32 = arith.constant 0 : i32
    %c0_i32_0 = arith.constant 0 : i32
    %c0_i32_1 = arith.constant 0 : i32
    return %c0_i32, %c0_i32_0 : i32, i32
  }
  func.func @transform_9(%arg0: i32) -> (i32, i32) {
    %c0_i32 = arith.constant 0 : i32
    %c0_i32_0 = arith.constant 0 : i32
    %c0_i32_1 = arith.constant 0 : i32
    return %c0_i32, %c0_i32_0 : i32, i32
  }
  func.func @transform_10(%arg0: i32) -> (i32, i32) {
    %c0_i32 = arith.constant 0 : i32
    %c0_i32_0 = arith.constant 0 : i32
    return %arg0, %c0_i32 : i32, i32
  }
}

</mosaic_0001>

<bundles_post_ra>
// kernel: tile.18
= control target key start
LH: loop header
LB: loop body
LE: loop exit
PB: predicated region body
PF: predicated region fallthrough
CT: control target
= control target key end

     0   :  { %s28_s0 = inlined_call_operand.vmem [shape: f32[16], index: 0, kind: input, shape index: {}]   ;;  %s29_s1 = inlined_call_operand.vmem [shape: f32[14,16], index: 1, kind: output, shape index: {}]  }
   0x1   :  { %v4_v0 = vld [vmem:[%s28_s0] ss:$0 sm:$0xff] }
   0x2   :  { %5 = vst [vmem:[%s29_s1] sm:$0xff] %v4_v0  ;;  %8 = vst [vmem:[%s29_s1 + $0x8] sm:$0xff] %v4_v0 }

// kernel: tile.19
= control target key start
LH: loop header
LB: loop body
LE: loop exit
PB: predicated region body
PF: predicated region fallthrough
CT: control target
= control target key end

     0   :  { %s19_s8 = smov 3  ;;  %s82_s9 = smov 112   ;;  %vm4_vm0 = vcmask 130048   ;;  %vm10_vm1 = vcmask 1048448   ;;  %vm16_vm2 = vcmask 917248   ;;  %vm23_vm3 = vcmask 786048   ;;  %s129_s0 = inlined_call_operand.vmem [shape: f32[14,16], index: 0, kind: input, shape index: {}]   ;;  %s130_s1 = inlined_call_operand.vmem [shape: f32[1,224], index: 1, kind: output, shape index: {}]  }
   0x1   :  { %v67_v0 = vld [vmem:[%s129_s0 + $0x7] sm:$0x1]   ;;  %v69_v1 = vld [vmem:[%s129_s0 + $0x5] ss:$8 sm:%s19_s8]   ;;  %s83_s12 = smov 80   ;;  %s26_s15 = smov 3 }
   0x2   :  { %8 = vrot.lane.b32.xlu0 %v67_v0, %s82_s9  ;;  %21 = vrot.lane.b32.xlu1 %v69_v1, %s83_s12  ;;  %v68_v2 = vld [vmem:[%s129_s0 + $0x6] sm:$0x1]   ;;  %s33_s18 = smov 3  ;;  %s40_s19 = smov 3  ;;  %vm30_vm4 = vcmask 654848   ;;  %vm37_vm5 = vcmask 523648  }
   0x3   :  { %v70_v3 = vld [vmem:[%s129_s0 + $0x4] ss:$8 sm:%s26_s15]   ;;  %s84_s20 = smov 96   ;;  %s85_s21 = smov 64   ;;  %v71_v4 = vld [vmem:[%s129_s0 + $0x3] ss:$8 sm:%s33_s18]  }
   0x4   :  { %s2_s24 = smov 3  ;;  %v72_v5 = vld [vmem:[%s129_s0 + $0x2] ss:$8 sm:%s40_s19]   ;;  %s47_s27 = smov 3  ;;  %vm44_vm6 = vcmask 392448   ;;  %vm51_vm7 = vcmask 261248  }
   0x5   :  { %v3_v6 = vld [vmem:[%s129_s0] ss:$8 sm:%s2_s24]   ;;  %s86_s30 = smov 48   ;;  %s87_s2 = smov 32   ;;  %v73_v7 = vld [vmem:[%s129_s0 + $0x1] ss:$8 sm:%s47_s27]  }
   0x6   :  { %14 = vrot.lane.b32.xlu0 %v68_v2, %s84_s20  ;;  %28 = vrot.lane.b32.xlu1 %v70_v3, %s85_s21  ;;  %5 = vst.msk [vmem:[#allocation0] ss:$8 sm:$0x3] %vm4_vm0, %v3_v6   ;;  %s88_s0 = smov 16  }
   0xa   :  { %35 = vrot.lane.b32.xlu0 %v71_v4, %s86_s30  ;;  %42 = vrot.lane.b32.xlu1 %v72_v5, %s87_s2 }
   0xe   :  { %49 = vrot.lane.b32.xlu0 %v73_v7, %s88_s0 }
  0x74   :  { %v9_v8 = vpop.permute.xlu0 %8   ;;  %v22_v9 = vpop.permute.xlu1 %21  }
  0x75   :  { %11 = vst.msk [vmem:[#allocation0] sm:$0x1] %vm10_vm1, %v9_v8  }
  0x78   :  { %v15_v10 = vpop.permute.xlu0 %14   ;;  %v29_v11 = vpop.permute.xlu1 %28  }
  0x79   :  { %17 = vst.msk [vmem:[#allocation0] sm:$0x1] %vm16_vm2, %v15_v10  }
  0x7a   :  { %24 = vst.msk [vmem:[#allocation0] ss:$8 sm:$0x3] %vm23_vm3, %v22_v9  }
  0x7b   :  { %31 = vst.msk [vmem:[#allocation0] ss:$8 sm:$0x3] %vm30_vm4, %v29_v11  }
  0x7c   :  { %v36_v12 = vpop.permute.xlu0 %35   ;;  %v43_v13 = vpop.permute.xlu1 %42  }
  0x7d   :  { %38 = vst.msk [vmem:[#allocation0] ss:$8 sm:$0x3] %vm37_vm5, %v36_v12  }
  0x7e   :  { %45 = vst.msk [vmem:[#allocation0] ss:$8 sm:$0x3] %vm44_vm6, %v43_v13  }
  0x80   :  { %v50_v14 = vpop.permute.xlu0 %49  }
  0x81   :  { %52 = vst.msk [vmem:[#allocation0] ss:$8 sm:$0x3] %vm51_vm7, %v50_v14  }
  0x88   :  { %v57_v15 = vld [vmem:[#allocation0] sm:$0x1]  ;;  %v62_v16 = vld [vmem:[#allocation0 + $0x8] sm:$0x1] }
  0x89   :  { %60 = vst [vmem:[%s130_s1] sm:$0x1] %v57_v15  ;;  %74 = vst [vmem:[%s130_s1 + $0x1] sm:$0x1] %v62_v16 }

// kernel: tile.23
= control target key start
LH: loop header
LB: loop body
LE: loop exit
PB: predicated region body
PF: predicated region fallthrough
CT: control target
= control target key end

     0   :  { %s22_s0 = inlined_call_operand.vmem [shape: f32[16], index: 0, kind: input, shape index: {}]   ;;  %s23_s1 = inlined_call_operand.vmem [shape: f32[7,16], index: 1, kind: output, shape index: {}]  }
   0x1   :  { %v4_v0 = vld [vmem:[%s22_s0] ss:$0 sm:$0xff] }
   0x2   :  { %5 = vst [vmem:[%s23_s1] sm:$0xff] %v4_v0 }

// kernel: tile.24
= control target key start
LH: loop header
LB: loop body
LE: loop exit
PB: predicated region body
PF: predicated region fallthrough
CT: control target
= control target key end

     0   :  { %s61_s10 = smov 96   ;;  %s62_s11 = smov 64   ;;  %vm3_vm0 = vcmask 130048   ;;  %vm9_vm1 = vcmask 917248   ;;  %vm15_vm2 = vcmask 786048   ;;  %vm21_vm3 = vcmask 654848   ;;  %s101_s0 = inlined_call_operand.vmem [shape: f32[7,16], index: 0, kind: input, shape index: {}]   ;;  %s102_s1 = inlined_call_operand.vmem [shape: f32[1,112], index: 1, kind: output, shape index: {}]  }
   0x1   :  { %v49_v0 = vld [vmem:[%s101_s0 + $0x6] sm:$0x1]   ;;  %v51_v1 = vld [vmem:[%s101_s0 + $0x4] sm:$0x1]   ;;  %v50_v2 = vld [vmem:[%s101_s0 + $0x5] sm:$0x1]  }
   0x2   :  { %7 = vrot.lane.b32.xlu0 %v49_v0, %s61_s10  ;;  %19 = vrot.lane.b32.xlu1 %v51_v1, %s62_s11  ;;  %v52_v3 = vld [vmem:[%s101_s0 + $0x3] sm:$0x1]   ;;  %v2_v4 = vld [vmem:[%s101_s0] sm:$0x1]   ;;  %s63_s18 = smov 80   ;;  %s64_s19 = smov 48  }
   0x3   :  { %4 = vst.msk [vmem:[#allocation0] sm:$0x1] %vm3_vm0, %v2_v4   ;;  %v53_v5 = vld [vmem:[%s101_s0 + $0x2] sm:$0x1]   ;;  %v54_v6 = vld [vmem:[%s101_s0 + $0x1] sm:$0x1]  }
   0x4   :  { %s65_s0 = smov 32   ;;  %s66_s24 = smov 16   ;;  %vm27_vm4 = vcmask 523648   ;;  %vm33_vm5 = vcmask 392448   ;;  %vm39_vm6 = vcmask 261248  }
   0x6   :  { %13 = vrot.lane.b32.xlu0 %v50_v2, %s63_s18  ;;  %25 = vrot.lane.b32.xlu1 %v52_v3, %s64_s19 }
   0xa   :  { %31 = vrot.lane.b32.xlu0 %v53_v5, %s65_s0  ;;  %37 = vrot.lane.b32.xlu1 %v54_v6, %s66_s24 }
  0x74   :  { %v8_v7 = vpop.permute.xlu0 %7   ;;  %v20_v8 = vpop.permute.xlu1 %19  }
  0x75   :  { %10 = vst.msk [vmem:[#allocation0] sm:$0x1] %vm9_vm1, %v8_v7  }
  0x78   :  { %v14_v9 = vpop.permute.xlu0 %13   ;;  %v26_v10 = vpop.permute.xlu1 %25  }
  0x79   :  { %16 = vst.msk [vmem:[#allocation0] sm:$0x1] %vm15_vm2, %v14_v9  }
  0x7a   :  { %22 = vst.msk [vmem:[#allocation0] sm:$0x1] %vm21_vm3, %v20_v8  }
  0x7b   :  { %28 = vst.msk [vmem:[#allocation0] sm:$0x1] %vm27_vm4, %v26_v10  }
  0x7c   :  { %v32_v11 = vpop.permute.xlu0 %31   ;;  %v38_v12 = vpop.permute.xlu1 %37  }
  0x7d   :  { %34 = vst.msk [vmem:[#allocation0] sm:$0x1] %vm33_vm5, %v32_v11  }
  0x7e   :  { %40 = vst.msk [vmem:[#allocation0] sm:$0x1] %vm39_vm6, %v38_v12  }
  0x85   :  { %v45_v13 = vld [vmem:[#allocation0] sm:$0x1] }
  0x86   :  { %48 = vst [vmem:[%s102_s1] sm:$0x1] %v45_v13 }

// kernel: tile.28
= control target key start
LH: loop header
LB: loop body
LE: loop exit
PB: predicated region body
PF: predicated region fallthrough
CT: control target
= control target key end

     0   :  { %s22_s0 = inlined_call_operand.vmem [shape: f32[10], index: 0, kind: input, shape index: {}]   ;;  %s23_s1 = inlined_call_operand.vmem [shape: f32[4,10], index: 1, kind: output, shape index: {}]  }
   0x1   :  { %v4_v0 = vld [vmem:[%s22_s0] ss:$0 sm:$0xff] }
   0x2   :  { %5 = vst [vmem:[%s23_s1] sm:$0xf] %v4_v0 }

// kernel: tile.29
= control target key start
LH: loop header
LB: loop body
LE: loop exit
PB: predicated region body
PF: predicated region fallthrough
CT: control target
= control target key end

     0   :  { %vm8_vm0 = vcmask 80896   ;;  %s40_s8 = smov 10   ;;  %s41_s9 = smov 20   ;;  %vm14_vm1 = vcmask 326896   ;;  %vm20_vm2 = vcmask 244896   ;;  %vm26_vm3 = vcmask 162896   ;;  %s58_s0 = inlined_call_operand.vmem [shape: f32[4,10], index: 0, kind: input, shape index: {}]   ;;  %s59_s1 = inlined_call_operand.vmem [shape: f32[1,40], index: 1, kind: output, shape index: {}]  }
   0x1   :  { %v5_v0 = vld [vmem:[%s58_s0] sm:$0xf]  ;;  %s39_s0 = smov 30  }
   0x2   :  { %6 = vst [vmem:[#allocation1] sm:$0xf] %v5_v0 }
   0x9   :  { %v11_v1 = vld [vmem:[#allocation1 + $0x3] sm:$0x1]   ;;  %v23_v2 = vld [vmem:[#allocation1 + $0x1] sm:$0x1]   ;;  %v7_v3 = vld [vmem:[#allocation1] sm:$0x1]  }
   0xa   :  { %12 = vrot.lane.b32.xlu0 %v11_v1, %s39_s0  ;;  %24 = vrot.lane.b32.xlu1 %v23_v2, %s40_s8  ;;  %v17_v4 = vld [vmem:[#allocation1 + $0x2] sm:$0x1]   ;;  %9 = vst.msk [vmem:[#allocation0] sm:$0x1] %vm8_vm0, %v7_v3  }
   0xe   :  { %18 = vrot.lane.b32.xlu0 %v17_v4, %s41_s9 }
  0x7c   :  { %v13_v5 = vpop.permute.xlu0 %12   ;;  %v25_v6 = vpop.permute.xlu1 %24  }
  0x7d   :  { %15 = vst.msk [vmem:[#allocation0] sm:$0x1] %vm14_vm1, %v13_v5  }
  0x80   :  { %v19_v7 = vpop.permute.xlu0 %18  }
  0x81   :  { %21 = vst.msk [vmem:[#allocation0] sm:$0x1] %vm20_vm2, %v19_v7  }
  0x82   :  { %27 = vst.msk [vmem:[#allocation0] sm:$0x1] %vm26_vm3, %v25_v6  }
  0x89   :  { %v32_v8 = vld [vmem:[#allocation0] sm:$0x1] }
  0x8a   :  { %35 = vst [vmem:[%s59_s1] sm:$0x1] %v32_v8 }

// kernel: net_forward.1
= control target key start
LH: loop header
LB: loop body
LE: loop exit
PB: predicated region body
PF: predicated region fallthrough
CT: control target
= control target key end

     0   :  { %s10085_s13 = smov 0   ;;  %s10087_s14 = smov 0   ;;  %s15318_s0 = inlined_call_operand.vmem [shape: f32[8,512,28], index: 0, kind: input, shape index: {}]   ;;  %s15319_s1 = inlined_call_operand.vmem [shape: bf16[3,28,224], index: 1, kind: input, shape index: {}]   ;;  %s15320_s2 = inlined_call_operand.vmem [shape: f32[1,224], index: 2, kind: input, shape index: {}]   ;;  %s15321_s3 = inlined_call_operand.vmem [shape: bf16[3,224,112], index: 3, kind: input, shape index: {}]   ;;  %s15322_s4 = inlined_call_operand.vmem [shape: f32[1,112], index: 4, kind: input, shape index: {}]   ;;  %s15323_s5 = inlined_call_operand.vmem [shape: bf16[3,112,40], index: 5, kind: input, shape index: {}]   ;;  %s15324_s6 = inlined_call_operand.vmem [shape: f32[1,40], index: 6, kind: input, shape index: {}]   ;;  %s15325_s7 = inlined_call_operand.vmem [shape: bf16[64,256], index: 7, kind: input, shape index: {}]   ;;  %s15326_s8 = inlined_call_operand.vmem [shape: f32[40,10], index: 8, kind: input, shape index: {}]   ;;  %s15327_s9 = inlined_call_operand.vmem [shape: f32[256,1], index: 9, kind: input, shape index: {}]   ;;  %s15328_s10 = inlined_call_operand.vmem [shape: f32[128,10], index: 10, kind: output, shape index: {}]  }
   0x1   :  { %s10089_s15 = smov 0  }
   0x2 LB: > { %s8782_s16 = sadd.s32 4294967295, %s10026_s15   ;;  %s10102_s17 = sadd.s32 1, %s10026_s15   ;;  %s10026_s15 = sphi %s10089_s15, %s16365_s15   ;;  %s10022_s14 = sphi %s10087_s14, %s16364_s14   ;;  %s10018_s13 = sphi %s10085_s13, %s16363_s13  }
   0x3   : > { %s24_s18 = ssub.s32 %s10026_s15, %s10102_s17  ;;  %s27_s19 = sadd.s32 1, %s10022_s14 }
   0x4   : > { %p25_p0 = scmp.eq.s32.totalorder %s24_s18, 0  ;;  %p34_p1 = scmp.ne.s32.totalorder %s10022_s14, %s10018_s13 }
   0x5   : > { %p35_p2 = scmp.eq.s32.totalorder %s10026_s15, 0  ;;  %p8785_p4 = scmp.ge.s32.totalorder %s10026_s15, 2 }
   0x6   : > { %s10111_s20 = scalar_select %p25_p0, %s10022_s14, %s27_s19  }
   0x7   : > { %p36_p3 = por %p35_p2, %p34_p1  ;;  %302 = sbr.rel (%p8785_p4) target bundleno = 144 (0x90), region = 52 }
   0xc   : > { %305 = sbr.rel (!%p36_p3) target bundleno = 144 (0x90), region = 56  ;;  %s307_s21 = sand.u32 (%p36_p3), 1, %s10022_s14  }
   0xd   : > { %s9540_s22 = sshll.u32 (%p36_p3), %s10026_s15, 8  ;;  %s8786_s23 = sshll.u32 (%p36_p3), %s307_s21, 11 }
   0xe   : > { %s10119_s26 = scalar_lea.vmem (%p36_p3), %s15318_s0, %s9540_s22  ;;  %s10124_s27 = scalar_lea.vmem (%p36_p3), [#allocation2], %s8786_s23 }
   0xf   : > { %v851_v0 = vld [vmem:[%s10119_s26] sm:$0xff] (%p36_p3)  ;;  %v853_v1 = vld [vmem:[%s10119_s26 + $0x8] sm:$0xff] (%p36_p3)  ;;  %v855_v2 = vld [vmem:[%s10119_s26 + $0x10] sm:$0xff] (%p36_p3) }
  0x10   : > { %852 = vst [vmem:[%s10124_s27] sm:$0xff] (%p36_p3), %v851_v0  ;;  %854 = vst [vmem:[%s10124_s27 + $0x8] sm:$0xff] (%p36_p3), %v853_v1  ;;  %v857_v3 = vld [vmem:[%s10119_s26 + $0x18] sm:$0xff] (%p36_p3)  ;;  %v859_v4 = vld [vmem:[%s10119_s26 + $0x20] sm:$0xff] (%p36_p3) }
  0x11   : > { %856 = vst [vmem:[%s10124_s27 + $0x10] sm:$0xff] %v855_v2  ;;  %v861_v5 = vld [vmem:[%s10119_s26 + $0x28] sm:$0xff]  ;;  %858 = vst [vmem:[%s10124_s27 + $0x18] sm:$0xff] %v857_v3  ;;  %v863_v6 = vld [vmem:[%s10119_s26 + $0x30] sm:$0xff] }
  0x12   : > { %860 = vst [vmem:[%s10124_s27 + $0x20] sm:$0xff] %v859_v4  ;;  %862 = vst [vmem:[%s10124_s27 + $0x28] sm:$0xff] %v861_v5  ;;  %v865_v7 = vld [vmem:[%s10119_s26 + $0x38] sm:$0xff]  ;;  %v867_v8 = vld [vmem:[%s10119_s26 + $0x40] sm:$0xff] }
  0x13   : > { %864 = vst [vmem:[%s10124_s27 + $0x30] sm:$0xff] %v863_v6  ;;  %866 = vst [vmem:[%s10124_s27 + $0x38] sm:$0xff] %v865_v7  ;;  %v869_v9 = vld [vmem:[%s10119_s26 + $0x48] sm:$0xff]  ;;  %v871_v10 = vld [vmem:[%s10119_s26 + $0x50] sm:$0xff] }
  0x14   : > { %868 = vst [vmem:[%s10124_s27 + $0x40] sm:$0xff] %v867_v8  ;;  %v873_v11 = vld [vmem:[%s10119_s26 + $0x58] sm:$0xff]  ;;  %870 = vst [vmem:[%s10124_s27 + $0x48] sm:$0xff] %v869_v9  ;;  %v875_v12 = vld [vmem:[%s10119_s26 + $0x60] sm:$0xff] }
  0x15   : > { %872 = vst [vmem:[%s10124_s27 + $0x50] sm:$0xff] %v871_v10  ;;  %874 = vst [vmem:[%s10124_s27 + $0x58] sm:$0xff] %v873_v11  ;;  %v877_v13 = vld [vmem:[%s10119_s26 + $0x68] sm:$0xff]  ;;  %v879_v14 = vld [vmem:[%s10119_s26 + $0x70] sm:$0xff] }
  0x16   : > { %876 = vst [vmem:[%s10124_s27 + $0x60] sm:$0xff] %v875_v12  ;;  %878 = vst [vmem:[%s10124_s27 + $0x68] sm:$0xff] %v877_v13  ;;  %v881_v15 = vld [vmem:[%s10119_s26 + $0x78] sm:$0xff]  ;;  %v883_v16 = vld [vmem:[%s10119_s26 + $0x80] sm:$0xff] }
  0x17   : > { %880 = vst [vmem:[%s10124_s27 + $0x70] sm:$0xff] %v879_v14  ;;  %v885_v17 = vld [vmem:[%s10119_s26 + $0x88] sm:$0xff]  ;;  %882 = vst [vmem:[%s10124_s27 + $0x78] sm:$0xff] %v881_v15  ;;  %v887_v18 = vld [vmem:[%s10119_s26 + $0x90] sm:$0xff] }
  0x18   : > { %884 = vst [vmem:[%s10124_s27 + $0x80] sm:$0xff] %v883_v16  ;;  %886 = vst [vmem:[%s10124_s27 + $0x88] sm:$0xff] %v885_v17  ;;  %v889_v19 = vld [vmem:[%s10119_s26 + $0x98] sm:$0xff]  ;;  %v891_v20 = vld [vmem:[%s10119_s26 + $0xa0] sm:$0xff] }
  0x19   : > { %888 = vst [vmem:[%s10124_s27 + $0x90] sm:$0xff] %v887_v18  ;;  %890 = vst [vmem:[%s10124_s27 + $0x98] sm:$0xff] %v889_v19  ;;  %v893_v21 = vld [vmem:[%s10119_s26 + $0xa8] sm:$0xff]  ;;  %v895_v22 = vld [vmem:[%s10119_s26 + $0xb0] sm:$0xff] }
  0x1a   : > { %892 = vst [vmem:[%s10124_s27 + $0xa0] sm:$0xff] %v891_v20  ;;  %v897_v23 = vld [vmem:[%s10119_s26 + $0xb8] sm:$0xff]  ;;  %894 = vst [vmem:[%s10124_s27 + $0xa8] sm:$0xff] %v893_v21  ;;  %v899_v24 = vld [vmem:[%s10119_s26 + $0xc0] sm:$0xff] }
  0x1b   : > { %896 = vst [vmem:[%s10124_s27 + $0xb0] sm:$0xff] %v895_v22  ;;  %898 = vst [vmem:[%s10124_s27 + $0xb8] sm:$0xff] %v897_v23  ;;  %v901_v25 = vld [vmem:[%s10119_s26 + $0xc8] sm:$0xff]  ;;  %v903_v26 = vld [vmem:[%s10119_s26 + $0xd0] sm:$0xff] }
  0x1c   : > { %900 = vst [vmem:[%s10124_s27 + $0xc0] sm:$0xff] %v899_v24  ;;  %902 = vst [vmem:[%s10124_s27 + $0xc8] sm:$0xff] %v901_v25  ;;  %v905_v27 = vld [vmem:[%s10119_s26 + $0xd8] sm:$0xff]  ;;  %v907_v28 = vld [vmem:[%s10119_s26 + $0xe0] sm:$0xff] }
  0x1d   : > { %904 = vst [vmem:[%s10124_s27 + $0xd0] sm:$0xff] %v903_v26  ;;  %v909_v29 = vld [vmem:[%s10119_s26 + $0xe8] sm:$0xff]  ;;  %906 = vst [vmem:[%s10124_s27 + $0xd8] sm:$0xff] %v905_v27  ;;  %v911_v30 = vld [vmem:[%s10119_s26 + $0xf0] sm:$0xff] }
  0x1e   : > { %908 = vst [vmem:[%s10124_s27 + $0xe0] sm:$0xff] %v907_v28  ;;  %910 = vst [vmem:[%s10124_s27 + $0xe8] sm:$0xff] %v909_v29  ;;  %v913_v31 = vld [vmem:[%s10119_s26 + $0xf8] sm:$0xff]  ;;  %v915_v32 = vld [vmem:[%s10119_s26 + $0x200] sm:$0xff] }
  0x1f   : > { %912 = vst [vmem:[%s10124_s27 + $0xf0] sm:$0xff] %v911_v30  ;;  %914 = vst [vmem:[%s10124_s27 + $0xf8] sm:$0xff] %v913_v31  ;;  %v917_v33 = vld [vmem:[%s10119_s26 + $0x208] sm:$0xff]  ;;  %v919_v34 = vld [vmem:[%s10119_s26 + $0x210] sm:$0xff] }
  0x20   : > { %916 = vst [vmem:[%s10124_s27 + $0x100] sm:$0xff] %v915_v32  ;;  %v921_v35 = vld [vmem:[%s10119_s26 + $0x218] sm:$0xff]  ;;  %918 = vst [vmem:[%s10124_s27 + $0x108] sm:$0xff] %v917_v33  ;;  %v923_v36 = vld [vmem:[%s10119_s26 + $0x220] sm:$0xff] }
  0x21   : > { %920 = vst [vmem:[%s10124_s27 + $0x110] sm:$0xff] %v919_v34  ;;  %922 = vst [vmem:[%s10124_s27 + $0x118] sm:$0xff] %v921_v35  ;;  %v925_v37 = vld [vmem:[%s10119_s26 + $0x228] sm:$0xff]  ;;  %v927_v38 = vld [vmem:[%s10119_s26 + $0x230] sm:$0xff] }
  0x22   : > { %924 = vst [vmem:[%s10124_s27 + $0x120] sm:$0xff] %v923_v36  ;;  %926 = vst [vmem:[%s10124_s27 + $0x128] sm:$0xff] %v925_v37  ;;  %v929_v39 = vld [vmem:[%s10119_s26 + $0x238] sm:$0xff]  ;;  %v931_v40 = vld [vmem:[%s10119_s26 + $0x240] sm:$0xff] }
  0x23   : > { %928 = vst [vmem:[%s10124_s27 + $0x130] sm:$0xff] %v927_v38  ;;  %v933_v41 = vld [vmem:[%s10119_s26 + $0x248] sm:$0xff]  ;;  %930 = vst [vmem:[%s10124_s27 + $0x138] sm:$0xff] %v929_v39  ;;  %v935_v42 = vld [vmem:[%s10119_s26 + $0x250] sm:$0xff] }
  0x24   : > { %932 = vst [vmem:[%s10124_s27 + $0x140] sm:$0xff] %v931_v40  ;;  %934 = vst [vmem:[%s10124_s27 + $0x148] sm:$0xff] %v933_v41  ;;  %v937_v43 = vld [vmem:[%s10119_s26 + $0x258] sm:$0xff]  ;;  %v939_v44 = vld [vmem:[%s10119_s26 + $0x260] sm:$0xff] }
  0x25   : > { %936 = vst [vmem:[%s10124_s27 + $0x150] sm:$0xff] %v935_v42  ;;  %938 = vst [vmem:[%s10124_s27 + $0x158] sm:$0xff] %v937_v43  ;;  %v941_v45 = vld [vmem:[%s10119_s26 + $0x268] sm:$0xff]  ;;  %v943_v46 = vld [vmem:[%s10119_s26 + $0x270] sm:$0xff] }
  0x26   : > { %940 = vst [vmem:[%s10124_s27 + $0x160] sm:$0xff] %v939_v44  ;;  %v945_v47 = vld [vmem:[%s10119_s26 + $0x278] sm:$0xff]  ;;  %942 = vst [vmem:[%s10124_s27 + $0x168] sm:$0xff] %v941_v45  ;;  %v947_v48 = vld [vmem:[%s10119_s26 + $0x280] sm:$0xff] }
  0x27   : > { %944 = vst [vmem:[%s10124_s27 + $0x170] sm:$0xff] %v943_v46  ;;  %946 = vst [vmem:[%s10124_s27 + $0x178] sm:$0xff] %v945_v47  ;;  %v949_v49 = vld [vmem:[%s10119_s26 + $0x288] sm:$0xff]  ;;  %v951_v50 = vld [vmem:[%s10119_s26 + $0x290] sm:$0xff] }
  0x28   : > { %948 = vst [vmem:[%s10124_s27 + $0x180] sm:$0xff] %v947_v48  ;;  %950 = vst [vmem:[%s10124_s27 + $0x188] sm:$0xff] %v949_v49  ;;  %v953_v51 = vld [vmem:[%s10119_s26 + $0x298] sm:$0xff]  ;;  %v955_v52 = vld [vmem:[%s10119_s26 + $0x2a0] sm:$0xff] }
  0x29   : > { %952 = vst [vmem:[%s10124_s27 + $0x190] sm:$0xff] %v951_v50  ;;  %v957_v53 = vld [vmem:[%s10119_s26 + $0x2a8] sm:$0xff]  ;;  %954 = vst [vmem:[%s10124_s27 + $0x198] sm:$0xff] %v953_v51  ;;  %v959_v54 = vld [vmem:[%s10119_s26 + $0x2b0] sm:$0xff] }
  0x2a   : > { %956 = vst [vmem:[%s10124_s27 + $0x1a0] sm:$0xff] %v955_v52  ;;  %958 = vst [vmem:[%s10124_s27 + $0x1a8] sm:$0xff] %v957_v53  ;;  %v961_v55 = vld [vmem:[%s10119_s26 + $0x2b8] sm:$0xff]  ;;  %v963_v56 = vld [vmem:[%s10119_s26 + $0x2c0] sm:$0xff] }
  0x2b   : > { %960 = vst [vmem:[%s10124_s27 + $0x1b0] sm:$0xff] %v959_v54  ;;  %962 = vst [vmem:[%s10124_s27 + $0x1b8] sm:$0xff] %v961_v55  ;;  %v965_v57 = vld [vmem:[%s10119_s26 + $0x2c8] sm:$0xff]  ;;  %v967_v58 = vld [vmem:[%s10119_s26 + $0x2d0] sm:$0xff] }
  0x2c   : > { %964 = vst [vmem:[%s10124_s27 + $0x1c0] sm:$0xff] %v963_v56  ;;  %v969_v59 = vld [vmem:[%s10119_s26 + $0x2d8] sm:$0xff]  ;;  %966 = vst [vmem:[%s10124_s27 + $0x1c8] sm:$0xff] %v965_v57  ;;  %v971_v60 = vld [vmem:[%s10119_s26 + $0x2e0] sm:$0xff] }
  0x2d   : > { %968 = vst [vmem:[%s10124_s27 + $0x1d0] sm:$0xff] %v967_v58  ;;  %970 = vst [vmem:[%s10124_s27 + $0x1d8] sm:$0xff] %v969_v59  ;;  %v973_v61 = vld [vmem:[%s10119_s26 + $0x2e8] sm:$0xff]  ;;  %v975_v62 = vld [vmem:[%s10119_s26 + $0x2f0] sm:$0xff] }
  0x2e   : > { %972 = vst [vmem:[%s10124_s27 + $0x1e0] sm:$0xff] %v971_v60  ;;  %974 = vst [vmem:[%s10124_s27 + $0x1e8] sm:$0xff] %v973_v61  ;;  %v977_v63 = vld [vmem:[%s10119_s26 + $0x2f8] sm:$0xff]  ;;  %v979_v0 = vld [vmem:[%s10119_s26 + $0x400] sm:$0xff] }
  0x2f   : > { %976 = vst [vmem:[%s10124_s27 + $0x1f0] sm:$0xff] %v975_v62  ;;  %v981_v1 = vld [vmem:[%s10119_s26 + $0x408] sm:$0xff]  ;;  %978 = vst [vmem:[%s10124_s27 + $0x1f8] sm:$0xff] %v977_v63  ;;  %v983_v2 = vld [vmem:[%s10119_s26 + $0x410] sm:$0xff] }
  0x30   : > { %980 = vst [vmem:[%s10124_s27 + $0x200] sm:$0xff] %v979_v0  ;;  %982 = vst [vmem:[%s10124_s27 + $0x208] sm:$0xff] %v981_v1  ;;  %v985_v3 = vld [vmem:[%s10119_s26 + $0x418] sm:$0xff]  ;;  %v987_v4 = vld [vmem:[%s10119_s26 + $0x420] sm:$0xff] }
  0x31   : > { %984 = vst [vmem:[%s10124_s27 + $0x210] sm:$0xff] %v983_v2  ;;  %986 = vst [vmem:[%s10124_s27 + $0x218] sm:$0xff] %v985_v3  ;;  %v989_v5 = vld [vmem:[%s10119_s26 + $0x428] sm:$0xff]  ;;  %v991_v6 = vld [vmem:[%s10119_s26 + $0x430] sm:$0xff] }
  0x32   : > { %988 = vst [vmem:[%s10124_s27 + $0x220] sm:$0xff] %v987_v4  ;;  %v993_v7 = vld [vmem:[%s10119_s26 + $0x438] sm:$0xff]  ;;  %990 = vst [vmem:[%s10124_s27 + $0x228] sm:$0xff] %v989_v5  ;;  %v995_v8 = vld [vmem:[%s10119_s26 + $0x440] sm:$0xff] }
  0x33   : > { %992 = vst [vmem:[%s10124_s27 + $0x230] sm:$0xff] %v991_v6  ;;  %994 = vst [vmem:[%s10124_s27 + $0x238] sm:$0xff] %v993_v7  ;;  %v997_v9 = vld [vmem:[%s10119_s26 + $0x448] sm:$0xff]  ;;  %v999_v10 = vld [vmem:[%s10119_s26 + $0x450] sm:$0xff] }
  0x34   : > { %996 = vst [vmem:[%s10124_s27 + $0x240] sm:$0xff] %v995_v8  ;;  %998 = vst [vmem:[%s10124_s27 + $0x248] sm:$0xff] %v997_v9  ;;  %v1001_v11 = vld [vmem:[%s10119_s26 + $0x458] sm:$0xff]  ;;  %v1003_v12 = vld [vmem:[%s10119_s26 + $0x460] sm:$0xff] }
  0x35   : > { %1000 = vst [vmem:[%s10124_s27 + $0x250] sm:$0xff] %v999_v10  ;;  %v1005_v13 = vld [vmem:[%s10119_s26 + $0x468] sm:$0xff]  ;;  %1002 = vst [vmem:[%s10124_s27 + $0x258] sm:$0xff] %v1001_v11  ;;  %v1007_v14 = vld [vmem:[%s10119_s26 + $0x470] sm:$0xff] }
  0x36   : > { %1004 = vst [vmem:[%s10124_s27 + $0x260] sm:$0xff] %v1003_v12  ;;  %1006 = vst [vmem:[%s10124_s27 + $0x268] sm:$0xff] %v1005_v13  ;;  %v1009_v15 = vld [vmem:[%s10119_s26 + $0x478] sm:$0xff]  ;;  %v1011_v16 = vld [vmem:[%s10119_s26 + $0x480] sm:$0xff] }
  0x37   : > { %1008 = vst [vmem:[%s10124_s27 + $0x270] sm:$0xff] %v1007_v14  ;;  %1010 = vst [vmem:[%s10124_s27 + $0x278] sm:$0xff] %v1009_v15  ;;  %v1013_v17 = vld [vmem:[%s10119_s26 + $0x488] sm:$0xff]  ;;  %v1015_v18 = vld [vmem:[%s10119_s26 + $0x490] sm:$0xff] }
  0x38   : > { %1012 = vst [vmem:[%s10124_s27 + $0x280] sm:$0xff] %v1011_v16  ;;  %v1017_v19 = vld [vmem:[%s10119_s26 + $0x498] sm:$0xff]  ;;  %1014 = vst [vmem:[%s10124_s27 + $0x288] sm:$0xff] %v1013_v17  ;;  %v1019_v20 = vld [vmem:[%s10119_s26 + $0x4a0] sm:$0xff] }
  0x39   : > { %1016 = vst [vmem:[%s10124_s27 + $0x290] sm:$0xff] %v1015_v18  ;;  %1018 = vst [vmem:[%s10124_s27 + $0x298] sm:$0xff] %v1017_v19  ;;  %v1021_v21 = vld [vmem:[%s10119_s26 + $0x4a8] sm:$0xff]  ;;  %v1023_v22 = vld [vmem:[%s10119_s26 + $0x4b0] sm:$0xff] }
  0x3a   : > { %1020 = vst [vmem:[%s10124_s27 + $0x2a0] sm:$0xff] %v1019_v20  ;;  %1022 = vst [vmem:[%s10124_s27 + $0x2a8] sm:$0xff] %v1021_v21  ;;  %v1025_v23 = vld [vmem:[%s10119_s26 + $0x4b8] sm:$0xff]  ;;  %v1027_v24 = vld [vmem:[%s10119_s26 + $0x4c0] sm:$0xff] }
  0x3b   : > { %1024 = vst [vmem:[%s10124_s27 + $0x2b0] sm:$0xff] %v1023_v22  ;;  %v1029_v25 = vld [vmem:[%s10119_s26 + $0x4c8] sm:$0xff]  ;;  %1026 = vst [vmem:[%s10124_s27 + $0x2b8] sm:$0xff] %v1025_v23  ;;  %v1031_v26 = vld [vmem:[%s10119_s26 + $0x4d0] sm:$0xff] }
  0x3c   : > { %1028 = vst [vmem:[%s10124_s27 + $0x2c0] sm:$0xff] %v1027_v24  ;;  %1030 = vst [vmem:[%s10124_s27 + $0x2c8] sm:$0xff] %v1029_v25  ;;  %v1033_v27 = vld [vmem:[%s10119_s26 + $0x4d8] sm:$0xff]  ;;  %v1035_v28 = vld [vmem:[%s10119_s26 + $0x4e0] sm:$0xff] }
  0x3d   : > { %1032 = vst [vmem:[%s10124_s27 + $0x2d0] sm:$0xff] %v1031_v26  ;;  %1034 = vst [vmem:[%s10124_s27 + $0x2d8] sm:$0xff] %v1033_v27  ;;  %v1037_v29 = vld [vmem:[%s10119_s26 + $0x4e8] sm:$0xff]  ;;  %v1039_v30 = vld [vmem:[%s10119_s26 + $0x4f0] sm:$0xff] }
  0x3e   : > { %1036 = vst [vmem:[%s10124_s27 + $0x2e0] sm:$0xff] %v1035_v28  ;;  %v1041_v31 = vld [vmem:[%s10119_s26 + $0x4f8] sm:$0xff]  ;;  %1038 = vst [vmem:[%s10124_s27 + $0x2e8] sm:$0xff] %v1037_v29  ;;  %v1043_v32 = vld [vmem:[%s10119_s26 + $0x600] sm:$0xff] }
  0x3f   : > { %1040 = vst [vmem:[%s10124_s27 + $0x2f0] sm:$0xff] %v1039_v30  ;;  %1042 = vst [vmem:[%s10124_s27 + $0x2f8] sm:$0xff] %v1041_v31  ;;  %v1045_v33 = vld [vmem:[%s10119_s26 + $0x608] sm:$0xff]  ;;  %v1047_v34 = vld [vmem:[%s10119_s26 + $0x610] sm:$0xff] }
  0x40   : > { %1044 = vst [vmem:[%s10124_s27 + $0x300] sm:$0xff] %v1043_v32  ;;  %1046 = vst [vmem:[%s10124_s27 + $0x308] sm:$0xff] %v1045_v33  ;;  %v1049_v35 = vld [vmem:[%s10119_s26 + $0x618] sm:$0xff]  ;;  %v1051_v36 = vld [vmem:[%s10119_s26 + $0x620] sm:$0xff] }
  0x41   : > { %1048 = vst [vmem:[%s10124_s27 + $0x310] sm:$0xff] %v1047_v34  ;;  %v1053_v37 = vld [vmem:[%s10119_s26 + $0x628] sm:$0xff]  ;;  %1050 = vst [vmem:[%s10124_s27 + $0x318] sm:$0xff] %v1049_v35  ;;  %v1055_v38 = vld [vmem:[%s10119_s26 + $0x630] sm:$0xff] }
  0x42   : > { %1052 = vst [vmem:[%s10124_s27 + $0x320] sm:$0xff] %v1051_v36  ;;  %1054 = vst [vmem:[%s10124_s27 + $0x328] sm:$0xff] %v1053_v37  ;;  %v1057_v39 = vld [vmem:[%s10119_s26 + $0x638] sm:$0xff]  ;;  %v1059_v40 = vld [vmem:[%s10119_s26 + $0x640] sm:$0xff] }
  0x43   : > { %1056 = vst [vmem:[%s10124_s27 + $0x330] sm:$0xff] %v1055_v38  ;;  %1058 = vst [vmem:[%s10124_s27 + $0x338] sm:$0xff] %v1057_v39  ;;  %v1061_v41 = vld [vmem:[%s10119_s26 + $0x648] sm:$0xff]  ;;  %v1063_v42 = vld [vmem:[%s10119_s26 + $0x650] sm:$0xff] }
  0x44   : > { %1060 = vst [vmem:[%s10124_s27 + $0x340] sm:$0xff] %v1059_v40  ;;  %v1065_v43 = vld [vmem:[%s10119_s26 + $0x658] sm:$0xff]  ;;  %1062 = vst [vmem:[%s10124_s27 + $0x348] sm:$0xff] %v1061_v41  ;;  %v1067_v44 = vld [vmem:[%s10119_s26 + $0x660] sm:$0xff] }
  0x45   : > { %1064 = vst [vmem:[%s10124_s27 + $0x350] sm:$0xff] %v1063_v42  ;;  %1066 = vst [vmem:[%s10124_s27 + $0x358] sm:$0xff] %v1065_v43  ;;  %v1069_v45 = vld [vmem:[%s10119_s26 + $0x668] sm:$0xff]  ;;  %v1071_v46 = vld [vmem:[%s10119_s26 + $0x670] sm:$0xff] }
  0x46   : > { %1068 = vst [vmem:[%s10124_s27 + $0x360] sm:$0xff] %v1067_v44  ;;  %1070 = vst [vmem:[%s10124_s27 + $0x368] sm:$0xff] %v1069_v45  ;;  %v1073_v47 = vld [vmem:[%s10119_s26 + $0x678] sm:$0xff]  ;;  %v1075_v48 = vld [vmem:[%s10119_s26 + $0x680] sm:$0xff] }
  0x47   : > { %1072 = vst [vmem:[%s10124_s27 + $0x370] sm:$0xff] %v1071_v46  ;;  %v1077_v49 = vld [vmem:[%s10119_s26 + $0x688] sm:$0xff]  ;;  %1074 = vst [vmem:[%s10124_s27 + $0x378] sm:$0xff] %v1073_v47  ;;  %v1079_v50 = vld [vmem:[%s10119_s26 + $0x690] sm:$0xff] }
  0x48   : > { %1076 = vst [vmem:[%s10124_s27 + $0x380] sm:$0xff] %v1075_v48  ;;  %1078 = vst [vmem:[%s10124_s27 + $0x388] sm:$0xff] %v1077_v49  ;;  %v1081_v51 = vld [vmem:[%s10119_s26 + $0x698] sm:$0xff]  ;;  %v1083_v52 = vld [vmem:[%s10119_s26 + $0x6a0] sm:$0xff] }
  0x49   : > { %1080 = vst [vmem:[%s10124_s27 + $0x390] sm:$0xff] %v1079_v50  ;;  %1082 = vst [vmem:[%s10124_s27 + $0x398] sm:$0xff] %v1081_v51  ;;  %v1085_v53 = vld [vmem:[%s10119_s26 + $0x6a8] sm:$0xff]  ;;  %v1087_v54 = vld [vmem:[%s10119_s26 + $0x6b0] sm:$0xff] }
  0x4a   : > { %1084 = vst [vmem:[%s10124_s27 + $0x3a0] sm:$0xff] %v1083_v52  ;;  %v1089_v55 = vld [vmem:[%s10119_s26 + $0x6b8] sm:$0xff]  ;;  %1086 = vst [vmem:[%s10124_s27 + $0x3a8] sm:$0xff] %v1085_v53  ;;  %v1091_v56 = vld [vmem:[%s10119_s26 + $0x6c0] sm:$0xff] }
  0x4b   : > { %1088 = vst [vmem:[%s10124_s27 + $0x3b0] sm:$0xff] %v1087_v54  ;;  %1090 = vst [vmem:[%s10124_s27 + $0x3b8] sm:$0xff] %v1089_v55  ;;  %v1093_v57 = vld [vmem:[%s10119_s26 + $0x6c8] sm:$0xff]  ;;  %v1095_v58 = vld [vmem:[%s10119_s26 + $0x6d0] sm:$0xff] }
  0x4c   : > { %1092 = vst [vmem:[%s10124_s27 + $0x3c0] sm:$0xff] %v1091_v56  ;;  %1094 = vst [vmem:[%s10124_s27 + $0x3c8] sm:$0xff] %v1093_v57  ;;  %v1097_v59 = vld [vmem:[%s10119_s26 + $0x6d8] sm:$0xff]  ;;  %v1099_v60 = vld [vmem:[%s10119_s26 + $0x6e0] sm:$0xff] }
  0x4d   : > { %1096 = vst [vmem:[%s10124_s27 + $0x3d0] sm:$0xff] %v1095_v58  ;;  %v1101_v61 = vld [vmem:[%s10119_s26 + $0x6e8] sm:$0xff]  ;;  %1098 = vst [vmem:[%s10124_s27 + $0x3d8] sm:$0xff] %v1097_v59  ;;  %v1103_v62 = vld [vmem:[%s10119_s26 + $0x6f0] sm:$0xff] }
  0x4e   : > { %1100 = vst [vmem:[%s10124_s27 + $0x3e0] sm:$0xff] %v1099_v60  ;;  %1102 = vst [vmem:[%s10124_s27 + $0x3e8] sm:$0xff] %v1101_v61  ;;  %v1105_v63 = vld [vmem:[%s10119_s26 + $0x6f8] sm:$0xff]  ;;  %v1107_v0 = vld [vmem:[%s10119_s26 + $0x800] sm:$0xff] }
  0x4f   : > { %1104 = vst [vmem:[%s10124_s27 + $0x3f0] sm:$0xff] %v1103_v62  ;;  %1106 = vst [vmem:[%s10124_s27 + $0x3f8] sm:$0xff] %v1105_v63  ;;  %v1109_v1 = vld [vmem:[%s10119_s26 + $0x808] sm:$0xff]  ;;  %v1111_v2 = vld [vmem:[%s10119_s26 + $0x810] sm:$0xff] }
  0x50   : > { %1108 = vst [vmem:[%s10124_s27 + $0x400] sm:$0xff] %v1107_v0  ;;  %v1113_v3 = vld [vmem:[%s10119_s26 + $0x818] sm:$0xff]  ;;  %1110 = vst [vmem:[%s10124_s27 + $0x408] sm:$0xff] %v1109_v1  ;;  %v1115_v4 = vld [vmem:[%s10119_s26 + $0x820] sm:$0xff] }
  0x51   : > { %1112 = vst [vmem:[%s10124_s27 + $0x410] sm:$0xff] %v1111_v2  ;;  %1114 = vst [vmem:[%s10124_s27 + $0x418] sm:$0xff] %v1113_v3  ;;  %v1117_v5 = vld [vmem:[%s10119_s26 + $0x828] sm:$0xff]  ;;  %v1119_v6 = vld [vmem:[%s10119_s26 + $0x830] sm:$0xff] }
  0x52   : > { %1116 = vst [vmem:[%s10124_s27 + $0x420] sm:$0xff] %v1115_v4  ;;  %1118 = vst [vmem:[%s10124_s27 + $0x428] sm:$0xff] %v1117_v5  ;;  %v1121_v7 = vld [vmem:[%s10119_s26 + $0x838] sm:$0xff]  ;;  %v1123_v8 = vld [vmem:[%s10119_s26 + $0x840] sm:$0xff] }
  0x53   : > { %1120 = vst [vmem:[%s10124_s27 + $0x430] sm:$0xff] %v1119_v6  ;;  %v1125_v9 = vld [vmem:[%s10119_s26 + $0x848] sm:$0xff]  ;;  %1122 = vst [vmem:[%s10124_s27 + $0x438] sm:$0xff] %v1121_v7  ;;  %v1127_v10 = vld [vmem:[%s10119_s26 + $0x850] sm:$0xff] }
  0x54   : > { %1124 = vst [vmem:[%s10124_s27 + $0x440] sm:$0xff] %v1123_v8  ;;  %1126 = vst [vmem:[%s10124_s27 + $0x448] sm:$0xff] %v1125_v9  ;;  %v1129_v11 = vld [vmem:[%s10119_s26 + $0x858] sm:$0xff]  ;;  %v1131_v12 = vld [vmem:[%s10119_s26 + $0x860] sm:$0xff] }
  0x55   : > { %1128 = vst [vmem:[%s10124_s27 + $0x450] sm:$0xff] %v1127_v10  ;;  %1130 = vst [vmem:[%s10124_s27 + $0x458] sm:$0xff] %v1129_v11  ;;  %v1133_v13 = vld [vmem:[%s10119_s26 + $0x868] sm:$0xff]  ;;  %v1135_v14 = vld [vmem:[%s10119_s26 + $0x870] sm:$0xff] }
  0x56   : > { %1132 = vst [vmem:[%s10124_s27 + $0x460] sm:$0xff] %v1131_v12  ;;  %v1137_v15 = vld [vmem:[%s10119_s26 + $0x878] sm:$0xff]  ;;  %1134 = vst [vmem:[%s10124_s27 + $0x468] sm:$0xff] %v1133_v13  ;;  %v1139_v16 = vld [vmem:[%s10119_s26 + $0x880] sm:$0xff] }
  0x57   : > { %1136 = vst [vmem:[%s10124_s27 + $0x470] sm:$0xff] %v1135_v14  ;;  %1138 = vst [vmem:[%s10124_s27 + $0x478] sm:$0xff] %v1137_v15  ;;  %v1141_v17 = vld [vmem:[%s10119_s26 + $0x888] sm:$0xff]  ;;  %v1143_v18 = vld [vmem:[%s10119_s26 + $0x890] sm:$0xff] }
  0x58   : > { %1140 = vst [vmem:[%s10124_s27 + $0x480] sm:$0xff] %v1139_v16  ;;  %1142 = vst [vmem:[%s10124_s27 + $0x488] sm:$0xff] %v1141_v17  ;;  %v1145_v19 = vld [vmem:[%s10119_s26 + $0x898] sm:$0xff]  ;;  %v1147_v20 = vld [vmem:[%s10119_s26 + $0x8a0] sm:$0xff] }
  0x59   : > { %1144 = vst [vmem:[%s10124_s27 + $0x490] sm:$0xff] %v1143_v18  ;;  %v1149_v21 = vld [vmem:[%s10119_s26 + $0x8a8] sm:$0xff]  ;;  %1146 = vst [vmem:[%s10124_s27 + $0x498] sm:$0xff] %v1145_v19  ;;  %v1151_v22 = vld [vmem:[%s10119_s26 + $0x8b0] sm:$0xff] }
  0x5a   : > { %1148 = vst [vmem:[%s10124_s27 + $0x4a0] sm:$0xff] %v1147_v20  ;;  %1150 = vst [vmem:[%s10124_s27 + $0x4a8] sm:$0xff] %v1149_v21  ;;  %v1153_v23 = vld [vmem:[%s10119_s26 + $0x8b8] sm:$0xff]  ;;  %v1155_v24 = vld [vmem:[%s10119_s26 + $0x8c0] sm:$0xff] }
  0x5b   : > { %1152 = vst [vmem:[%s10124_s27 + $0x4b0] sm:$0xff] %v1151_v22  ;;  %1154 = vst [vmem:[%s10124_s27 + $0x4b8] sm:$0xff] %v1153_v23  ;;  %v1157_v25 = vld [vmem:[%s10119_s26 + $0x8c8] sm:$0xff]  ;;  %v1159_v26 = vld [vmem:[%s10119_s26 + $0x8d0] sm:$0xff] }
  0x5c   : > { %1156 = vst [vmem:[%s10124_s27 + $0x4c0] sm:$0xff] %v1155_v24  ;;  %v1161_v27 = vld [vmem:[%s10119_s26 + $0x8d8] sm:$0xff]  ;;  %1158 = vst [vmem:[%s10124_s27 + $0x4c8] sm:$0xff] %v1157_v25  ;;  %v1163_v28 = vld [vmem:[%s10119_s26 + $0x8e0] sm:$0xff] }
  0x5d   : > { %1160 = vst [vmem:[%s10124_s27 + $0x4d0] sm:$0xff] %v1159_v26  ;;  %1162 = vst [vmem:[%s10124_s27 + $0x4d8] sm:$0xff] %v1161_v27  ;;  %v1165_v29 = vld [vmem:[%s10119_s26 + $0x8e8] sm:$0xff]  ;;  %v1167_v30 = vld [vmem:[%s10119_s26 + $0x8f0] sm:$0xff] }
  0x5e   : > { %1164 = vst [vmem:[%s10124_s27 + $0x4e0] sm:$0xff] %v1163_v28  ;;  %1166 = vst [vmem:[%s10124_s27 + $0x4e8] sm:$0xff] %v1165_v29  ;;  %v1169_v31 = vld [vmem:[%s10119_s26 + $0x8f8] sm:$0xff]  ;;  %v1171_v32 = vld [vmem:[%s10119_s26 + $0xa00] sm:$0xff] }
  0x5f   : > { %1168 = vst [vmem:[%s10124_s27 + $0x4f0] sm:$0xff] %v1167_v30  ;;  %v1173_v33 = vld [vmem:[%s10119_s26 + $0xa08] sm:$0xff]  ;;  %1170 = vst [vmem:[%s10124_s27 + $0x4f8] sm:$0xff] %v1169_v31  ;;  %v1175_v34 = vld [vmem:[%s10119_s26 + $0xa10] sm:$0xff] }
  0x60   : > { %1172 = vst [vmem:[%s10124_s27 + $0x500] sm:$0xff] %v1171_v32  ;;  %1174 = vst [vmem:[%s10124_s27 + $0x508] sm:$0xff] %v1173_v33  ;;  %v1177_v35 = vld [vmem:[%s10119_s26 + $0xa18] sm:$0xff]  ;;  %v1179_v36 = vld [vmem:[%s10119_s26 + $0xa20] sm:$0xff] }
  0x61   : > { %1176 = vst [vmem:[%s10124_s27 + $0x510] sm:$0xff] %v1175_v34  ;;  %1178 = vst [vmem:[%s10124_s27 + $0x518] sm:$0xff] %v1177_v35  ;;  %v1181_v37 = vld [vmem:[%s10119_s26 + $0xa28] sm:$0xff]  ;;  %v1183_v38 = vld [vmem:[%s10119_s26 + $0xa30] sm:$0xff] }
  0x62   : > { %1180 = vst [vmem:[%s10124_s27 + $0x520] sm:$0xff] %v1179_v36  ;;  %v1185_v39 = vld [vmem:[%s10119_s26 + $0xa38] sm:$0xff]  ;;  %1182 = vst [vmem:[%s10124_s27 + $0x528] sm:$0xff] %v1181_v37  ;;  %v1187_v40 = vld [vmem:[%s10119_s26 + $0xa40] sm:$0xff] }
  0x63   : > { %1184 = vst [vmem:[%s10124_s27 + $0x530] sm:$0xff] %v1183_v38  ;;  %1186 = vst [vmem:[%s10124_s27 + $0x538] sm:$0xff] %v1185_v39  ;;  %v1189_v41 = vld [vmem:[%s10119_s26 + $0xa48] sm:$0xff]  ;;  %v1191_v42 = vld [vmem:[%s10119_s26 + $0xa50] sm:$0xff] }
  0x64   : > { %1188 = vst [vmem:[%s10124_s27 + $0x540] sm:$0xff] %v1187_v40  ;;  %1190 = vst [vmem:[%s10124_s27 + $0x548] sm:$0xff] %v1189_v41  ;;  %v1193_v43 = vld [vmem:[%s10119_s26 + $0xa58] sm:$0xff]  ;;  %v1195_v44 = vld [vmem:[%s10119_s26 + $0xa60] sm:$0xff] }
  0x65   : > { %1192 = vst [vmem:[%s10124_s27 + $0x550] sm:$0xff] %v1191_v42  ;;  %v1197_v45 = vld [vmem:[%s10119_s26 + $0xa68] sm:$0xff]  ;;  %1194 = vst [vmem:[%s10124_s27 + $0x558] sm:$0xff] %v1193_v43  ;;  %v1199_v46 = vld [vmem:[%s10119_s26 + $0xa70] sm:$0xff] }
  0x66   : > { %1196 = vst [vmem:[%s10124_s27 + $0x560] sm:$0xff] %v1195_v44  ;;  %1198 = vst [vmem:[%s10124_s27 + $0x568] sm:$0xff] %v1197_v45  ;;  %v1201_v47 = vld [vmem:[%s10119_s26 + $0xa78] sm:$0xff]  ;;  %v1203_v48 = vld [vmem:[%s10119_s26 + $0xa80] sm:$0xff] }
  0x67   : > { %1200 = vst [vmem:[%s10124_s27 + $0x570] sm:$0xff] %v1199_v46  ;;  %1202 = vst [vmem:[%s10124_s27 + $0x578] sm:$0xff] %v1201_v47  ;;  %v1205_v49 = vld [vmem:[%s10119_s26 + $0xa88] sm:$0xff]  ;;  %v1207_v50 = vld [vmem:[%s10119_s26 + $0xa90] sm:$0xff] }
  0x68   : > { %1204 = vst [vmem:[%s10124_s27 + $0x580] sm:$0xff] %v1203_v48  ;;  %v1209_v51 = vld [vmem:[%s10119_s26 + $0xa98] sm:$0xff]  ;;  %1206 = vst [vmem:[%s10124_s27 + $0x588] sm:$0xff] %v1205_v49  ;;  %v1211_v52 = vld [vmem:[%s10119_s26 + $0xaa0] sm:$0xff] }
  0x69   : > { %1208 = vst [vmem:[%s10124_s27 + $0x590] sm:$0xff] %v1207_v50  ;;  %1210 = vst [vmem:[%s10124_s27 + $0x598] sm:$0xff] %v1209_v51  ;;  %v1213_v53 = vld [vmem:[%s10119_s26 + $0xaa8] sm:$0xff]  ;;  %v1215_v54 = vld [vmem:[%s10119_s26 + $0xab0] sm:$0xff] }
  0x6a   : > { %1212 = vst [vmem:[%s10124_s27 + $0x5a0] sm:$0xff] %v1211_v52  ;;  %1214 = vst [vmem:[%s10124_s27 + $0x5a8] sm:$0xff] %v1213_v53  ;;  %v1217_v55 = vld [vmem:[%s10119_s26 + $0xab8] sm:$0xff]  ;;  %v1219_v56 = vld [vmem:[%s10119_s26 + $0xac0] sm:$0xff] }
  0x6b   : > { %1216 = vst [vmem:[%s10124_s27 + $0x5b0] sm:$0xff] %v1215_v54  ;;  %v1221_v57 = vld [vmem:[%s10119_s26 + $0xac8] sm:$0xff]  ;;  %1218 = vst [vmem:[%s10124_s27 + $0x5b8] sm:$0xff] %v1217_v55  ;;  %v1223_v58 = vld [vmem:[%s10119_s26 + $0xad0] sm:$0xff] }
  0x6c   : > { %1220 = vst [vmem:[%s10124_s27 + $0x5c0] sm:$0xff] %v1219_v56  ;;  %1222 = vst [vmem:[%s10124_s27 + $0x5c8] sm:$0xff] %v1221_v57  ;;  %v1225_v59 = vld [vmem:[%s10119_s26 + $0xad8] sm:$0xff]  ;;  %v1227_v60 = vld [vmem:[%s10119_s26 + $0xae0] sm:$0xff] }
  0x6d   : > { %1224 = vst [vmem:[%s10124_s27 + $0x5d0] sm:$0xff] %v1223_v58  ;;  %1226 = vst [vmem:[%s10124_s27 + $0x5d8] sm:$0xff] %v1225_v59  ;;  %v1229_v61 = vld [vmem:[%s10119_s26 + $0xae8] sm:$0xff]  ;;  %v1231_v62 = vld [vmem:[%s10119_s26 + $0xaf0] sm:$0xff] }
  0x6e   : > { %1228 = vst [vmem:[%s10124_s27 + $0x5e0] sm:$0xff] %v1227_v60  ;;  %v1233_v63 = vld [vmem:[%s10119_s26 + $0xaf8] sm:$0xff]  ;;  %1230 = vst [vmem:[%s10124_s27 + $0x5e8] sm:$0xff] %v1229_v61  ;;  %v1235_v0 = vld [vmem:[%s10119_s26 + $0xc00] sm:$0xff] }
  0x6f   : > { %1232 = vst [vmem:[%s10124_s27 + $0x5f0] sm:$0xff] %v1231_v62  ;;  %1234 = vst [vmem:[%s10124_s27 + $0x5f8] sm:$0xff] %v1233_v63  ;;  %v1237_v1 = vld [vmem:[%s10119_s26 + $0xc08] sm:$0xff]  ;;  %v1239_v2 = vld [vmem:[%s10119_s26 + $0xc10] sm:$0xff] }
  0x70   : > { %1236 = vst [vmem:[%s10124_s27 + $0x600] sm:$0xff] %v1235_v0  ;;  %1238 = vst [vmem:[%s10124_s27 + $0x608] sm:$0xff] %v1237_v1  ;;  %v1241_v3 = vld [vmem:[%s10119_s26 + $0xc18] sm:$0xff]  ;;  %v1243_v4 = vld [vmem:[%s10119_s26 + $0xc20] sm:$0xff] }
  0x71   : > { %1240 = vst [vmem:[%s10124_s27 + $0x610] sm:$0xff] %v1239_v2  ;;  %v1245_v5 = vld [vmem:[%s10119_s26 + $0xc28] sm:$0xff]  ;;  %1242 = vst [vmem:[%s10124_s27 + $0x618] sm:$0xff] %v1241_v3  ;;  %v1247_v6 = vld [vmem:[%s10119_s26 + $0xc30] sm:$0xff] }
  0x72   : > { %1244 = vst [vmem:[%s10124_s27 + $0x620] sm:$0xff] %v1243_v4  ;;  %1246 = vst [vmem:[%s10124_s27 + $0x628] sm:$0xff] %v1245_v5  ;;  %v1249_v7 = vld [vmem:[%s10119_s26 + $0xc38] sm:$0xff]  ;;  %v1251_v8 = vld [vmem:[%s10119_s26 + $0xc40] sm:$0xff] }
  0x73   : > { %1248 = vst [vmem:[%s10124_s27 + $0x630] sm:$0xff] %v1247_v6  ;;  %1250 = vst [vmem:[%s10124_s27 + $0x638] sm:$0xff] %v1249_v7  ;;  %v1253_v9 = vld [vmem:[%s10119_s26 + $0xc48] sm:$0xff]  ;;  %v1255_v10 = vld [vmem:[%s10119_s26 + $0xc50] sm:$0xff] }
  0x74   : > { %1252 = vst [vmem:[%s10124_s27 + $0x640] sm:$0xff] %v1251_v8  ;;  %v1257_v11 = vld [vmem:[%s10119_s26 + $0xc58] sm:$0xff]  ;;  %1254 = vst [vmem:[%s10124_s27 + $0x648] sm:$0xff] %v1253_v9  ;;  %v1259_v12 = vld [vmem:[%s10119_s26 + $0xc60] sm:$0xff] }
  0x75   : > { %1256 = vst [vmem:[%s10124_s27 + $0x650] sm:$0xff] %v1255_v10  ;;  %1258 = vst [vmem:[%s10124_s27 + $0x658] sm:$0xff] %v1257_v11  ;;  %v1261_v13 = vld [vmem:[%s10119_s26 + $0xc68] sm:$0xff]  ;;  %v1263_v14 = vld [vmem:[%s10119_s26 + $0xc70] sm:$0xff] }
  0x76   : > { %1260 = vst [vmem:[%s10124_s27 + $0x660] sm:$0xff] %v1259_v12  ;;  %1262 = vst [vmem:[%s10124_s27 + $0x668] sm:$0xff] %v1261_v13  ;;  %v1265_v15 = vld [vmem:[%s10119_s26 + $0xc78] sm:$0xff]  ;;  %v1267_v16 = vld [vmem:[%s10119_s26 + $0xc80] sm:$0xff] }
  0x77   : > { %1264 = vst [vmem:[%s10124_s27 + $0x670] sm:$0xff] %v1263_v14  ;;  %v1269_v17 = vld [vmem:[%s10119_s26 + $0xc88] sm:$0xff]  ;;  %1266 = vst [vmem:[%s10124_s27 + $0x678] sm:$0xff] %v1265_v15  ;;  %v1271_v18 = vld [vmem:[%s10119_s26 + $0xc90] sm:$0xff] }
  0x78   : > { %1268 = vst [vmem:[%s10124_s27 + $0x680] sm:$0xff] %v1267_v16  ;;  %1270 = vst [vmem:[%s10124_s27 + $0x688] sm:$0xff] %v1269_v17  ;;  %v1273_v19 = vld [vmem:[%s10119_s26 + $0xc98] sm:$0xff]  ;;  %v1275_v20 = vld [vmem:[%s10119_s26 + $0xca0] sm:$0xff] }
  0x79   : > { %1272 = vst [vmem:[%s10124_s27 + $0x690] sm:$0xff] %v1271_v18  ;;  %1274 = vst [vmem:[%s10124_s27 + $0x698] sm:$0xff] %v1273_v19  ;;  %v1277_v21 = vld [vmem:[%s10119_s26 + $0xca8] sm:$0xff]  ;;  %v1279_v22 = vld [vmem:[%s10119_s26 + $0xcb0] sm:$0xff] }
  0x7a   : > { %1276 = vst [vmem:[%s10124_s27 + $0x6a0] sm:$0xff] %v1275_v20  ;;  %v1281_v23 = vld [vmem:[%s10119_s26 + $0xcb8] sm:$0xff]  ;;  %1278 = vst [vmem:[%s10124_s27 + $0x6a8] sm:$0xff] %v1277_v21  ;;  %v1283_v24 = vld [vmem:[%s10119_s26 + $0xcc0] sm:$0xff] }
  0x7b   : > { %1280 = vst [vmem:[%s10124_s27 + $0x6b0] sm:$0xff] %v1279_v22  ;;  %1282 = vst [vmem:[%s10124_s27 + $0x6b8] sm:$0xff] %v1281_v23  ;;  %v1285_v25 = vld [vmem:[%s10119_s26 + $0xcc8] sm:$0xff]  ;;  %v1287_v26 = vld [vmem:[%s10119_s26 + $0xcd0] sm:$0xff] }
  0x7c   : > { %1284 = vst [vmem:[%s10124_s27 + $0x6c0] sm:$0xff] %v1283_v24  ;;  %1286 = vst [vmem:[%s10124_s27 + $0x6c8] sm:$0xff] %v1285_v25  ;;  %v1289_v27 = vld [vmem:[%s10119_s26 + $0xcd8] sm:$0xff]  ;;  %v1291_v28 = vld [vmem:[%s10119_s26 + $0xce0] sm:$0xff] }
  0x7d   : > { %1288 = vst [vmem:[%s10124_s27 + $0x6d0] sm:$0xff] %v1287_v26  ;;  %v1293_v29 = vld [vmem:[%s10119_s26 + $0xce8] sm:$0xff]  ;;  %1290 = vst [vmem:[%s10124_s27 + $0x6d8] sm:$0xff] %v1289_v27  ;;  %v1295_v30 = vld [vmem:[%s10119_s26 + $0xcf0] sm:$0xff] }
  0x7e   : > { %1292 = vst [vmem:[%s10124_s27 + $0x6e0] sm:$0xff] %v1291_v28  ;;  %1294 = vst [vmem:[%s10124_s27 + $0x6e8] sm:$0xff] %v1293_v29  ;;  %v1297_v31 = vld [vmem:[%s10119_s26 + $0xcf8] sm:$0xff]  ;;  %v1299_v32 = vld [vmem:[%s10119_s26 + $0xe00] sm:$0xff] }
  0x7f   : > { %1296 = vst [vmem:[%s10124_s27 + $0x6f0] sm:$0xff] %v1295_v30  ;;  %1298 = vst [vmem:[%s10124_s27 + $0x6f8] sm:$0xff] %v1297_v31  ;;  %v1301_v33 = vld [vmem:[%s10119_s26 + $0xe08] sm:$0xff]  ;;  %v1303_v34 = vld [vmem:[%s10119_s26 + $0xe10] sm:$0xff] }
  0x80   : > { %1300 = vst [vmem:[%s10124_s27 + $0x700] sm:$0xff] %v1299_v32  ;;  %v1305_v35 = vld [vmem:[%s10119_s26 + $0xe18] sm:$0xff]  ;;  %1302 = vst [vmem:[%s10124_s27 + $0x708] sm:$0xff] %v1301_v33  ;;  %v1307_v36 = vld [vmem:[%s10119_s26 + $0xe20] sm:$0xff] }
  0x81   : > { %1304 = vst [vmem:[%s10124_s27 + $0x710] sm:$0xff] %v1303_v34  ;;  %1306 = vst [vmem:[%s10124_s27 + $0x718] sm:$0xff] %v1305_v35  ;;  %v1309_v37 = vld [vmem:[%s10119_s26 + $0xe28] sm:$0xff]  ;;  %v1311_v38 = vld [vmem:[%s10119_s26 + $0xe30] sm:$0xff] }
  0x82   : > { %1308 = vst [vmem:[%s10124_s27 + $0x720] sm:$0xff] %v1307_v36  ;;  %1310 = vst [vmem:[%s10124_s27 + $0x728] sm:$0xff] %v1309_v37  ;;  %v1313_v39 = vld [vmem:[%s10119_s26 + $0xe38] sm:$0xff]  ;;  %v1315_v40 = vld [vmem:[%s10119_s26 + $0xe40] sm:$0xff] }
  0x83   : > { %1312 = vst [vmem:[%s10124_s27 + $0x730] sm:$0xff] %v1311_v38  ;;  %v1317_v41 = vld [vmem:[%s10119_s26 + $0xe48] sm:$0xff]  ;;  %1314 = vst [vmem:[%s10124_s27 + $0x738] sm:$0xff] %v1313_v39  ;;  %v1319_v42 = vld [vmem:[%s10119_s26 + $0xe50] sm:$0xff] }
  0x84   : > { %1316 = vst [vmem:[%s10124_s27 + $0x740] sm:$0xff] %v1315_v40  ;;  %1318 = vst [vmem:[%s10124_s27 + $0x748] sm:$0xff] %v1317_v41  ;;  %v1321_v43 = vld [vmem:[%s10119_s26 + $0xe58] sm:$0xff]  ;;  %v1323_v44 = vld [vmem:[%s10119_s26 + $0xe60] sm:$0xff] }
  0x85   : > { %1320 = vst [vmem:[%s10124_s27 + $0x750] sm:$0xff] %v1319_v42  ;;  %1322 = vst [vmem:[%s10124_s27 + $0x758] sm:$0xff] %v1321_v43  ;;  %v1325_v45 = vld [vmem:[%s10119_s26 + $0xe68] sm:$0xff]  ;;  %v1327_v46 = vld [vmem:[%s10119_s26 + $0xe70] sm:$0xff] }
  0x86   : > { %1324 = vst [vmem:[%s10124_s27 + $0x760] sm:$0xff] %v1323_v44  ;;  %v1329_v47 = vld [vmem:[%s10119_s26 + $0xe78] sm:$0xff]  ;;  %1326 = vst [vmem:[%s10124_s27 + $0x768] sm:$0xff] %v1325_v45  ;;  %v1331_v48 = vld [vmem:[%s10119_s26 + $0xe80] sm:$0xff] }
  0x87   : > { %1328 = vst [vmem:[%s10124_s27 + $0x770] sm:$0xff] %v1327_v46  ;;  %1330 = vst [vmem:[%s10124_s27 + $0x778] sm:$0xff] %v1329_v47  ;;  %v1333_v49 = vld [vmem:[%s10119_s26 + $0xe88] sm:$0xff]  ;;  %v1335_v50 = vld [vmem:[%s10119_s26 + $0xe90] sm:$0xff] }
  0x88   : > { %1332 = vst [vmem:[%s10124_s27 + $0x780] sm:$0xff] %v1331_v48  ;;  %1334 = vst [vmem:[%s10124_s27 + $0x788] sm:$0xff] %v1333_v49  ;;  %v1337_v51 = vld [vmem:[%s10119_s26 + $0xe98] sm:$0xff]  ;;  %v1339_v52 = vld [vmem:[%s10119_s26 + $0xea0] sm:$0xff] }
  0x89   : > { %1336 = vst [vmem:[%s10124_s27 + $0x790] sm:$0xff] %v1335_v50  ;;  %v1341_v53 = vld [vmem:[%s10119_s26 + $0xea8] sm:$0xff]  ;;  %1338 = vst [vmem:[%s10124_s27 + $0x798] sm:$0xff] %v1337_v51  ;;  %v1343_v54 = vld [vmem:[%s10119_s26 + $0xeb0] sm:$0xff] }
  0x8a   : > { %1340 = vst [vmem:[%s10124_s27 + $0x7a0] sm:$0xff] %v1339_v52  ;;  %1342 = vst [vmem:[%s10124_s27 + $0x7a8] sm:$0xff] %v1341_v53  ;;  %v1345_v55 = vld [vmem:[%s10119_s26 + $0xeb8] sm:$0xff]  ;;  %v1347_v56 = vld [vmem:[%s10119_s26 + $0xec0] sm:$0xff] }
  0x8b   : > { %1344 = vst [vmem:[%s10124_s27 + $0x7b0] sm:$0xff] %v1343_v54  ;;  %1346 = vst [vmem:[%s10124_s27 + $0x7b8] sm:$0xff] %v1345_v55  ;;  %v1349_v57 = vld [vmem:[%s10119_s26 + $0xec8] sm:$0xff]  ;;  %v1351_v58 = vld [vmem:[%s10119_s26 + $0xed0] sm:$0xff] }
  0x8c   : > { %1348 = vst [vmem:[%s10124_s27 + $0x7c0] sm:$0xff] %v1347_v56  ;;  %v1353_v59 = vld [vmem:[%s10119_s26 + $0xed8] sm:$0xff]  ;;  %1350 = vst [vmem:[%s10124_s27 + $0x7c8] sm:$0xff] %v1349_v57  ;;  %v1355_v60 = vld [vmem:[%s10119_s26 + $0xee0] sm:$0xff] }
  0x8d   : > { %1352 = vst [vmem:[%s10124_s27 + $0x7d0] sm:$0xff] %v1351_v58  ;;  %1354 = vst [vmem:[%s10124_s27 + $0x7d8] sm:$0xff] %v1353_v59  ;;  %v1357_v61 = vld [vmem:[%s10119_s26 + $0xee8] sm:$0xff]  ;;  %v1359_v62 = vld [vmem:[%s10119_s26 + $0xef0] sm:$0xff] }
  0x8e   : > { %1356 = vst [vmem:[%s10124_s27 + $0x7e0] sm:$0xff] %v1355_v60  ;;  %1358 = vst [vmem:[%s10124_s27 + $0x7e8] sm:$0xff] %v1357_v61  ;;  %v1361_v63 = vld [vmem:[%s10119_s26 + $0xef8] sm:$0xff] }
  0x8f   : > { %1360 = vst [vmem:[%s10124_s27 + $0x7f0] sm:$0xff] %v1359_v62  ;;  %1362 = vst [vmem:[%s10124_s27 + $0x7f8] sm:$0xff] %v1361_v63 }
  0x90 PF: > { %p8789_p5 = scmp.ge.s32.totalorder %s10026_s15, 1  ;;  %p1367_p6 = scmp.lt.s32.totalorder %s10026_s15, 3 }
  0x92   : > { %p1368_p7 = pnand %p8789_p5, %p1367_p6 }
  0x94   : > { %1371 = sbr.rel (%p1368_p7) target bundleno = 2233 (0x8b9), region = 94 }
  0x99   : > { %v10640_v0 = vld [vmem:[%s15319_s1 + $0x34] ss:$8 sps:$4 sm:$0x3f]   ;;  %vm1819_vm0 = vcmask 1045504   ;;  %v9858_v2 = vld [vmem:[%s15319_s1 + $0x24] ss:$8 sps:$4 sm:$0xff]  }
  0x9a   : > { %v9857_v1 = vld [vmem:[%s15319_s1 + $0x30] ss:$8 sps:$4 sm:$0x3f]   ;;  %9025 = vmatprep.subr.msk.bf16.mxu0 %vm1819_vm0, %v10640_v0  ;;  %9823 = vmatprep.subr.msk.bf16.mxu1 %vm1819_vm0, %v10640_v0  ;;  %v9860_v3 = vld [vmem:[%s15319_s1 + $0x20] ss:$8 sps:$4 sm:$0xff]   ;;  %s1374_s22 = sand.u32 1, %s10018_s13  }
  0x9b   : > { %v10657_v4 = vsel %vm1819_vm0, %v9857_v1, 0  ;;  %v15331_v5 = vmov 0   ;;  %s8790_s23 = sshll.u32 %s1374_s22, 11  ;;  %v10666_v6 = vld [vmem:[%s15319_s1 + $0x14] ss:$8 sps:$4 sm:$0x3f]  }
  0x9c   : > { %15570 = vst [vmem:[#allocation3_spill] sm:$0xff] %v10657_v4  ;;  %1858 = vmatprep.mubr.bf16.mxu0 %v15331_v5  ;;  %2008 = vmatprep.mubr.bf16.mxu1 %v15331_v5  ;;  %s10668_s13 = scalar_lea.vmem [#allocation2], %s8790_s23  ;;  %v9863_v11 = vld [vmem:[%s15319_s1 + $0x10] ss:$8 sps:$4 sm:$0x3f]   ;;  %vm1770_vm1 = vcmask 228352  }
  0x9d   : > { %1839 = vmatpush1.bf16.msra.mxu0 %v10657_v4  ;;  %9825 = vmatpush1.bf16.msra.mxu1 %v10657_v4  ;;  %v1451_v7 = vld [vmem:[%s10668_s13] sm:$0xff]  ;;  %v1452_v8 = vld [vmem:[%s10668_s13 + $0x8] sm:$0xff]  ;;  %v1481_v9 = vld [vmem:[%s10668_s13 + $0xf0] sm:$0xff]  ;;  %v10682_v14 = vsel %vm1819_vm0, %v9863_v11, 0  ;;  %v15329_v23 = vmov 0.0|0.0   ;;  %vm5899_vm2 = vcmask 785408  }
  0x9e   : > { %1840 = vmatprep.subr.bf16.mxu0 %v9858_v2  ;;  %9824 = vmatprep.subr.bf16.mxu1 %v9858_v2  ;;  %v1482_v10 = vld [vmem:[%s10668_s13 + $0xf8] sm:$0xff]  ;;  %v1731_v12 = vpack.c.bf16 %v1452_v8, %v1451_v7  ;;  %15571 = vst [vmem:[#allocation4_spill] sm:$0xff] %v10682_v14  ;;  %v10687_v15 = vld [vmem:[%s15319_s1 + $0x4] ss:$8 sps:$4 sm:$0xff]   ;;  %v10692_v16 = vld [vmem:[%s15319_s1] ss:$8 sps:$4 sm:$0xff]  }
  0x9f   : > { %9853 = vset.pattern.permute.xlu0 %v15331_v5  ;;  %9854 = vset.pattern.permute.xlu1 %v15331_v5  ;;  %v1746_v13 = vpack.c.bf16 %v1482_v10, %v1481_v9  ;;  %v1453_v17 = vld [vmem:[%s10668_s13 + $0x10] sm:$0xff]  ;;  %v1454_v18 = vld [vmem:[%s10668_s13 + $0x18] sm:$0xff]  ;;  %v1455_v24 = vld [vmem:[%s10668_s13 + $0x20] sm:$0xff]  ;;  %vm7659_vm3 = vcmask 916480   ;;  %vm8581_vm4 = vcmask 326656   ;;  %s8791_s25 = sshll.u32 %s8782_s16, 3 }
  0xa0   : > { %v9867_v19 = vld [vmem:[%s15319_s1 + $0x54] ss:$8 sps:$4 sm:$0x3f]   ;;  %v9869_v20 = vld [vmem:[%s15319_s1 + $0x50] ss:$8 sps:$4 sm:$0x3f]   ;;  %v1732_v22 = vpack.c.bf16 %v1454_v18, %v1453_v17 }
  0xa1   : > { %1841 = vmatpush1.bf16.msra.mxu0 %v9860_v3  ;;  %9826 = vmatpush1.bf16.msra.mxu1 %v9860_v3  ;;  %v10710_v21 = vsel %vm1819_vm0, %v9869_v20, 0  ;;  %v1456_v25 = vld [vmem:[%s10668_s13 + $0x28] sm:$0xff]  ;;  %v1457_v29 = vld [vmem:[%s10668_s13 + $0x30] sm:$0xff]  ;;  %v1458_v30 = vld [vmem:[%s10668_s13 + $0x38] sm:$0xff]  ;;  %p1413_p8 = scmp.lt.s32.totalorder %s8791_s25, 15  ;;  %vm8711_vm5 = vcmask 80896  }
  0xa2   : > { %9046 = vmatprep.subr.msk.bf16.mxu1 %vm1819_vm0, %v10666_v6  ;;  %9067 = vmatprep.subr.msk.bf16.mxu0 %vm1819_vm0, %v9867_v19  ;;  %15572 = vst [vmem:[#allocation5_spill] sm:$0xff] %v10710_v21  ;;  %v1733_v26 = vpack.c.bf16 %v1456_v25, %v1455_v24  ;;  %v10726_v27 = vld [vmem:[%s15319_s1 + $0x44] ss:$8 sps:$4 sm:$0xff]   ;;  %v10731_v28 = vld [vmem:[%s15319_s1 + $0x40] ss:$8 sps:$4 sm:$0xff]   ;;  %v1734_v31 = vpack.c.bf16 %v1458_v30, %v1457_v29  ;;  %v1461_v35 = vld [vmem:[%s10668_s13 + $0x50] sm:$0xff] }
  0xa3   : > { %v1459_v32 = vld [vmem:[%s10668_s13 + $0x40] sm:$0xff]  ;;  %v1460_v33 = vld [vmem:[%s10668_s13 + $0x48] sm:$0xff]  ;;  %v1462_v36 = vld [vmem:[%s10668_s13 + $0x58] sm:$0xff]  ;;  %s16367_s25 = smov (!%p1413_p8, %s8791_s25), 15 }
  0xa4   : > { %9026 = vmatmul.mubr.msk.bf16.vlgmr.msra.gmra.mxu0 %vm1770_vm1, %v1731_v12  ;;  %9041 = vmatmul.mubr.msk.bf16.vlgmr.msra.gmra.mxu1 %vm1770_vm1, %v1746_v13  ;;  %v1735_v34 = vpack.c.bf16 %v1460_v33, %v1459_v32  ;;  %v8985_v37 = vld [vmem:[%s10668_s13 + $0x700] sm:$0xff]  ;;  %v8986_v38 = vld [vmem:[%s10668_s13 + $0x708] sm:$0xff]  ;;  %v1736_v39 = vpack.c.bf16 %v1462_v36, %v1461_v35  ;;  %v8987_v43 = vld [vmem:[%s10668_s13 + $0x710] sm:$0xff]  ;;  %s8792_s26 = sshll.u32 %s16367_s25, 3 }
  0xa5   : > { %2095 = vmatpush1.bf16.msra.mxu1 %v10682_v14  ;;  %1868 = vmatprep.mubr.bf16.mxu0 %v15331_v5  ;;  %v10758_v40 = vpack.c.bf16 %v8986_v38, %v8985_v37  ;;  %v1463_v41 = vld [vmem:[%s10668_s13 + $0x60] sm:$0xff]  ;;  %v1464_v42 = vld [vmem:[%s10668_s13 + $0x68] sm:$0xff]  ;;  %v8988_v44 = vld [vmem:[%s10668_s13 + $0x718] sm:$0xff]  ;;  %s1416_s29 = scalar_lea.vmem %s15328_s10, %s8792_s26 }
  0xa6   : > { %2096 = vmatprep.subr.bf16.mxu1 %v10687_v15  ;;  %2114 = vmatprep.mubr.bf16.mxu1 %v15331_v5  ;;  %v1737_v45 = vpack.c.bf16 %v1464_v42, %v1463_v41  ;;  %v10769_v46 = vpack.c.bf16 %v8988_v44, %v8987_v43  ;;  %v1465_v47 = vld [vmem:[%s10668_s13 + $0x70] sm:$0xff]  ;;  %v1466_v48 = vld [vmem:[%s10668_s13 + $0x78] sm:$0xff]  ;;  %v8989_v49 = vld [vmem:[%s10668_s13 + $0x720] sm:$0xff] }
  0xa7   : > { %2381 = vmatpush1.bf16.msra.mxu0 %v10710_v21  ;;  %15573 = vst [vmem:[#allocation6_spill] sm:$0xff] %v10758_v40  ;;  %v8990_v50 = vld [vmem:[%s10668_s13 + $0x728] sm:$0xff]  ;;  %v1738_v51 = vpack.c.bf16 %v1466_v48, %v1465_v47  ;;  %v1467_v53 = vld [vmem:[%s10668_s13 + $0x80] sm:$0xff]  ;;  %v8991_v55 = vld [vmem:[%s10668_s13 + $0x730] sm:$0xff] }
  0xa8   : > { %2382 = vmatprep.subr.bf16.mxu0 %v10726_v27  ;;  %15574 = vst [vmem:[#allocation7_spill] sm:$0xff] %v10769_v46  ;;  %v10780_v52 = vpack.c.bf16 %v8990_v50, %v8989_v49  ;;  %v1468_v54 = vld [vmem:[%s10668_s13 + $0x88] sm:$0xff]  ;;  %v8992_v56 = vld [vmem:[%s10668_s13 + $0x738] sm:$0xff]  ;;  %v1469_v59 = vld [vmem:[%s10668_s13 + $0x90] sm:$0xff] }
  0xa9   : > { %2097 = vmatpush1.bf16.msra.mxu1 %v10692_v16  ;;  %v1739_v57 = vpack.c.bf16 %v1468_v54, %v1467_v53  ;;  %v10791_v58 = vpack.c.bf16 %v8992_v56, %v8991_v55  ;;  %v1470_v60 = vld [vmem:[%s10668_s13 + $0x98] sm:$0xff]  ;;  %v8993_v61 = vld [vmem:[%s10668_s13 + $0x740] sm:$0xff]  ;;  %v8994_v62 = vld [vmem:[%s10668_s13 + $0x748] sm:$0xff] }
  0xaa   : > { %9084 = vmatprep.subr.msk.bf16.mxu1 %vm1819_vm0, %v10640_v0  ;;  %15575 = vst [vmem:[#allocation8_spill] sm:$0xff] %v10780_v52  ;;  %v1740_v63 = vpack.c.bf16 %v1470_v60, %v1469_v59  ;;  %v10802_v1 = vpack.c.bf16 %v8994_v62, %v8993_v61  ;;  %v8995_v7 = vld [vmem:[%s10668_s13 + $0x750] sm:$0xff]  ;;  %v8996_v8 = vld [vmem:[%s10668_s13 + $0x758] sm:$0xff]  ;;  %v8997_v13 = vld [vmem:[%s10668_s13 + $0x760] sm:$0xff] }
  0xab   : > { %2383 = vmatpush1.bf16.msra.mxu0 %v10731_v28  ;;  %15576 = vst [vmem:[#allocation9_spill] sm:$0xff] %v10791_v58  ;;  %v10813_v10 = vpack.c.bf16 %v8996_v8, %v8995_v7  ;;  %v1473_v11 = vld [vmem:[%s10668_s13 + $0xb0] sm:$0xff]  ;;  %v1474_v12 = vld [vmem:[%s10668_s13 + $0xb8] sm:$0xff]  ;;  %v8998_v17 = vld [vmem:[%s10668_s13 + $0x768] sm:$0xff] }
  0xac   : > { %9027 = vmatmul.mubr.msk.bf16.gmra.mxu0 %vm1770_vm1, %v1732_v22  ;;  %2115 = vmatmul.mubr.bf16.vlgmr.msra.gmra.mxu1 %v15329_v23  ;;  %15577 = vst [vmem:[#allocation10_spill] sm:$0xff] %v10802_v1  ;;  %v1742_v18 = vpack.c.bf16 %v1474_v12, %v1473_v11  ;;  %v1475_v20 = vld [vmem:[%s10668_s13 + $0xc0] sm:$0xff]  ;;  %v1476_v22 = vld [vmem:[%s10668_s13 + $0xc8] sm:$0xff]  ;;  %v8999_v24 = vld [vmem:[%s10668_s13 + $0x770] sm:$0xff] }
  0xad   : > { %1878 = vmatprep.mubr.bf16.mxu0 %v15331_v5  ;;  %2124 = vmatprep.mubr.bf16.mxu1 %v15331_v5  ;;  %15578 = vst [vmem:[#allocation11_spill] sm:$0xff] %v10813_v10  ;;  %v9000_v25 = vld [vmem:[%s10668_s13 + $0x778] sm:$0xff]  ;;  %v1477_v30 = vld [vmem:[%s10668_s13 + $0xd0] sm:$0xff]  ;;  %v9001_v32 = vld [vmem:[%s10668_s13 + $0x780] sm:$0xff] }
  0xae   : > { %2842 = vmatpush1.bf16.msra.mxu1 %v10657_v4  ;;  %9101 = vmatprep.subr.msk.bf16.mxu0 %vm1819_vm0, %v10666_v6  ;;  %v10835_v29 = vpack.c.bf16 %v9000_v25, %v8999_v24  ;;  %v9002_v33 = vld [vmem:[%s10668_s13 + $0x788] sm:$0xff]  ;;  %v1479_v36 = vld [vmem:[%s10668_s13 + $0xe0] sm:$0xff]  ;;  %v9003_v38 = vld [vmem:[%s10668_s13 + $0x790] sm:$0xff] }
  0xaf   : > { %2843 = vmatprep.subr.bf16.mxu1 %v9858_v2  ;;  %v1471_v2 = vld [vmem:[%s10668_s13 + $0xa0] sm:$0xff]  ;;  %v10846_v35 = vpack.c.bf16 %v9002_v33, %v9001_v32  ;;  %v1480_v37 = vld [vmem:[%s10668_s13 + $0xe8] sm:$0xff]  ;;  %v9007_v50 = vld [vmem:[%s10668_s13 + $0x7b0] sm:$0xff] }
  0xb0   : > { %15580 = vst [vmem:[#allocation13_spill] sm:$0xff] %v10835_v29  ;;  %v1745_v41 = vpack.c.bf16 %v1480_v37, %v1479_v36  ;;  %v9005_v43 = vld [vmem:[%s10668_s13 + $0x7a0] sm:$0xff]  ;;  %v9006_v44 = vld [vmem:[%s10668_s13 + $0x7a8] sm:$0xff]  ;;  %v8795_v53 = vld [vmem:[%s10668_s13 + $0x110] sm:$0xff] }
  0xb1   : > { %15581 = vst [vmem:[#allocation14_spill] sm:$0xff] %v10846_v35  ;;  %v8794_v47 = vld [vmem:[%s10668_s13 + $0x108] sm:$0xff]  ;;  %v10868_v48 = vpack.c.bf16 %v9006_v44, %v9005_v43  ;;  %v8796_v54 = vld [vmem:[%s10668_s13 + $0x118] sm:$0xff]  ;;  %v8825_v59 = vld [vmem:[%s10668_s13 + $0x200] sm:$0xff] }
  0xb2   : > { %2844 = vmatpush1.bf16.msra.mxu1 %v9860_v3  ;;  %v1472_v3 = vld [vmem:[%s10668_s13 + $0xa8] sm:$0xff]  ;;  %v10886_v56 = vpack.c.bf16 %v8796_v54, %v8795_v53  ;;  %v8799_v61 = vld [vmem:[%s10668_s13 + $0x130] sm:$0xff]  ;;  %v8800_v62 = vld [vmem:[%s10668_s13 + $0x138] sm:$0xff] }
  0xb3   : > { %9118 = vmatprep.subr.msk.bf16.mxu1 %vm1819_vm0, %v9867_v19  ;;  %v1741_v9 = vpack.c.bf16 %v1472_v3, %v1471_v2  ;;  %v10824_v19 = vpack.c.bf16 %v8998_v17, %v8997_v13  ;;  %15583 = vst [vmem:[#allocation16_spill] sm:$0xff] %v10868_v48  ;;  %v8828_v2 = vld [vmem:[%s10668_s13 + $0x218] sm:$0xff]  ;;  %v10914_v3 = vpack.c.bf16 %v8800_v62, %v8799_v61  ;;  %v8801_v8 = vld [vmem:[%s10668_s13 + $0x140] sm:$0xff]  ;;  %v8803_v12 = vld [vmem:[%s10668_s13 + $0x150] sm:$0xff] }
  0xb4   : > { %9028 = vmatmul.mubr.msk.bf16.gmra.mxu0 %vm1770_vm1, %v1733_v26  ;;  %2125 = vmatmul.mubr.bf16.gmra.mxu1 %v15329_v23  ;;  %v1743_v26 = vpack.c.bf16 %v1476_v22, %v1475_v20  ;;  %v8804_v13 = vld [vmem:[%s10668_s13 + $0x158] sm:$0xff]  ;;  %v8831_v17 = vld [vmem:[%s10668_s13 + $0x230] sm:$0xff]  ;;  %v8805_v24 = vld [vmem:[%s10668_s13 + $0x160] sm:$0xff] }
  0xb5   : > { %1888 = vmatprep.mubr.bf16.mxu0 %v15331_v5  ;;  %2134 = vmatprep.mubr.bf16.mxu1 %v15331_v5  ;;  %15579 = vst [vmem:[#allocation12_spill] sm:$0xff] %v10824_v19  ;;  %v10939_v20 = vpack.c.bf16 %v8804_v13, %v8803_v12  ;;  %v8806_v25 = vld [vmem:[%s10668_s13 + $0x168] sm:$0xff]  ;;  %v8807_v33 = vld [vmem:[%s10668_s13 + $0x170] sm:$0xff]  ;;  %v8836_v37 = vld [vmem:[%s10668_s13 + $0x258] sm:$0xff] }
  0xb6   : > { %v8835_v36 = vld [vmem:[%s10668_s13 + $0x250] sm:$0xff]  ;;  %v8810_v43 = vld [vmem:[%s10668_s13 + $0x188] sm:$0xff]  ;;  %v8837_v44 = vld [vmem:[%s10668_s13 + $0x260] sm:$0xff] }
  0xb7   : > { %v8812_v53 = vld [vmem:[%s10668_s13 + $0x198] sm:$0xff]  ;;  %v8839_v54 = vld [vmem:[%s10668_s13 + $0x270] sm:$0xff]  ;;  %v8813_v61 = vld [vmem:[%s10668_s13 + $0x1a0] sm:$0xff] }
  0xb8   : > { %v8814_v62 = vld [vmem:[%s10668_s13 + $0x1a8] sm:$0xff] }
  0xbc   : > { %9029 = vmatmul.mubr.msk.bf16.gmra.mxu0 %vm1770_vm1, %v1734_v31  ;;  %2135 = vmatmul.mubr.bf16.gmra.mxu1 %v15329_v23  ;;  %v1478_v31 = vld [vmem:[%s10668_s13 + $0xd8] sm:$0xff] }
  0xbd   : > { %1898 = vmatprep.mubr.bf16.mxu0 %v15331_v5  ;;  %2144 = vmatprep.mubr.bf16.mxu1 %v15331_v5 }
  0xc4   : > { %9030 = vmatmul.mubr.msk.bf16.gmra.mxu0 %vm1770_vm1, %v1735_v34  ;;  %2145 = vmatmul.mubr.bf16.gmra.mxu1 %v15329_v23  ;;  %v1744_v34 = vpack.c.bf16 %v1478_v31, %v1477_v30  ;;  %v8834_v30 = vld [vmem:[%s10668_s13 + $0x248] sm:$0xff]  ;;  %v10950_v31 = vpack.c.bf16 %v8806_v25, %v8805_v24  ;;  %v8816_v25 = vld [vmem:[%s10668_s13 + $0x1b8] sm:$0xff] }
  0xc5   : > { %1908 = vmatprep.mubr.bf16.mxu0 %v15331_v5  ;;  %2154 = vmatprep.mubr.bf16.mxu1 %v15331_v5 }
  0xcc   : > { %9031 = vmatmul.mubr.msk.bf16.gmra.mxu0 %vm1770_vm1, %v1736_v39  ;;  %9047 = vmatmul.mubr.msk.bf16.gmra.mxu1 %vm1770_vm1, %v10758_v40  ;;  %v9004_v39 = vld [vmem:[%s10668_s13 + $0x798] sm:$0xff] }
  0xcd   : > { %1918 = vmatprep.mubr.bf16.mxu0 %v15331_v5  ;;  %2164 = vmatprep.mubr.bf16.mxu1 %v15331_v5  ;;  %v10857_v42 = vpack.c.bf16 %v9004_v39, %v9003_v38  ;;  %v2770_v39 = vpack.c.bf16 %v8836_v37, %v8835_v36 }
  0xcf   : > { %15582 = vst [vmem:[#allocation15_spill] sm:$0xff] %v10857_v42 }
  0xd4   : > { %9032 = vmatmul.mubr.msk.bf16.gmra.mxu0 %vm1770_vm1, %v1737_v45  ;;  %9048 = vmatmul.mubr.msk.bf16.gmra.mxu1 %vm1770_vm1, %v10769_v46  ;;  %v8793_v45 = vld [vmem:[%s10668_s13 + $0x100] sm:$0xff] }
  0xd5   : > { %1928 = vmatprep.mubr.bf16.mxu0 %v15331_v5  ;;  %2174 = vmatprep.mubr.bf16.mxu1 %v15331_v5  ;;  %v10870_v49 = vpack.c.bf16 %v8794_v47, %v8793_v45  ;;  %v8838_v45 = vld [vmem:[%s10668_s13 + $0x268] sm:$0xff] }
  0xdc   : > { %9033 = vmatmul.mubr.msk.bf16.gmra.mxu0 %vm1770_vm1, %v1738_v51  ;;  %9049 = vmatmul.mubr.msk.bf16.gmra.mxu1 %vm1770_vm1, %v10780_v52  ;;  %v9008_v51 = vld [vmem:[%s10668_s13 + $0x7b8] sm:$0xff] }
  0xdd   : > { %1938 = vmatprep.mubr.bf16.mxu0 %v15331_v5  ;;  %2184 = vmatprep.mubr.bf16.mxu1 %v15331_v5  ;;  %v10884_v55 = vpack.c.bf16 %v9008_v51, %v9007_v50  ;;  %v2771_v50 = vpack.c.bf16 %v8838_v45, %v8837_v44  ;;  %v8811_v51 = vld [vmem:[%s10668_s13 + $0x190] sm:$0xff] }
  0xdf   : > { %15584 = vst [vmem:[#allocation17_spill] sm:$0xff] %v10884_v55 }
  0xe4   : > { %9034 = vmatmul.mubr.msk.bf16.gmra.mxu0 %vm1770_vm1, %v1739_v57  ;;  %9050 = vmatmul.mubr.msk.bf16.gmra.mxu1 %vm1770_vm1, %v10791_v58  ;;  %v8798_v57 = vld [vmem:[%s10668_s13 + $0x128] sm:$0xff] }
  0xe5   : > { %1948 = vmatprep.mubr.bf16.mxu0 %v15331_v5  ;;  %2194 = vmatprep.mubr.bf16.mxu1 %v15331_v5 }
  0xec   : > { %9035 = vmatmul.mubr.msk.bf16.gmra.mxu0 %vm1770_vm1, %v1740_v63  ;;  %9051 = vmatmul.mubr.msk.bf16.gmra.mxu1 %vm1770_vm1, %v10802_v1  ;;  %v8827_v63 = vld [vmem:[%s10668_s13 + $0x210] sm:$0xff] }
  0xed   : > { %1958 = vmatprep.mubr.bf16.mxu0 %v15331_v5  ;;  %2204 = vmatprep.mubr.bf16.mxu1 %v15331_v5  ;;  %v2766_v7 = vpack.c.bf16 %v8828_v2, %v8827_v63  ;;  %v8841_v63 = vld [vmem:[%s10668_s13 + $0x280] sm:$0xff]  ;;  %v8842_v2 = vld [vmem:[%s10668_s13 + $0x288] sm:$0xff] }
  0xf4   : > { %9036 = vmatmul.mubr.msk.bf16.gmra.mxu0 %vm1770_vm1, %v1741_v9  ;;  %9052 = vmatmul.mubr.msk.bf16.gmra.mxu1 %vm1770_vm1, %v10813_v10  ;;  %v8829_v9 = vld [vmem:[%s10668_s13 + $0x220] sm:$0xff] }
  0xf5   : > { %1968 = vmatprep.mubr.bf16.mxu0 %v15331_v5  ;;  %2214 = vmatprep.mubr.bf16.mxu1 %v15331_v5 }
  0xfc   : > { %9037 = vmatmul.mubr.msk.bf16.gmra.mxu0 %vm1770_vm1, %v1742_v18  ;;  %9053 = vmatmul.mubr.msk.bf16.gmra.mxu1 %vm1770_vm1, %v10824_v19  ;;  %v8832_v18 = vld [vmem:[%s10668_s13 + $0x238] sm:$0xff] }
  0xfd   : > { %1978 = vmatprep.mubr.bf16.mxu0 %v15331_v5  ;;  %2224 = vmatprep.mubr.bf16.mxu1 %v15331_v5  ;;  %v2768_v22 = vpack.c.bf16 %v8832_v18, %v8831_v17 }
 0x104   : > { %9038 = vmatmul.mubr.msk.bf16.gmra.mxu0 %vm1770_vm1, %v1743_v26  ;;  %9054 = vmatmul.mubr.msk.bf16.gmra.mxu1 %vm1770_vm1, %v10835_v29  ;;  %v8833_v26 = vld [vmem:[%s10668_s13 + $0x240] sm:$0xff] }
 0x105   : > { %1988 = vmatprep.mubr.bf16.mxu0 %v15331_v5  ;;  %2234 = vmatprep.mubr.bf16.mxu1 %v15331_v5  ;;  %v2769_v32 = vpack.c.bf16 %v8834_v30, %v8833_v26  ;;  %v8843_v26 = vld [vmem:[%s10668_s13 + $0x290] sm:$0xff]  ;;  %v8844_v30 = vld [vmem:[%s10668_s13 + $0x298] sm:$0xff] }
 0x10c   : > { %9039 = vmatmul.mubr.msk.bf16.gmra.mxu0 %vm1770_vm1, %v1744_v34  ;;  %9055 = vmatmul.mubr.msk.bf16.gmra.mxu1 %vm1770_vm1, %v10846_v35  ;;  %v8808_v34 = vld [vmem:[%s10668_s13 + $0x178] sm:$0xff] }
 0x10d   : > { %1998 = vmatprep.mubr.bf16.mxu0 %v15331_v5  ;;  %2244 = vmatprep.mubr.bf16.mxu1 %v15331_v5  ;;  %v10961_v38 = vpack.c.bf16 %v8808_v34, %v8807_v33 }
 0x114   : > { %9040 = vmatmul.mubr.msk.bf16.gmra.mxu0 %vm1770_vm1, %v1745_v41  ;;  %9056 = vmatmul.mubr.msk.bf16.gmra.mxu1 %vm1770_vm1, %v10857_v42  ;;  %v8809_v41 = vld [vmem:[%s10668_s13 + $0x180] sm:$0xff] }
 0x115   : > { %2254 = vmatprep.mubr.bf16.mxu1 %v15331_v5  ;;  %2400 = vmatprep.mubr.bf16.mxu0 %v15331_v5  ;;  %v10972_v47 = vpack.c.bf16 %v8810_v43, %v8809_v41  ;;  %v2774_v41 = vpack.c.bf16 %v8844_v30, %v8843_v26 }
 0x11c   : > { %9057 = vmatmul.mubr.msk.bf16.gmra.mxu1 %vm1770_vm1, %v10868_v48  ;;  %9068 = vmatmul.mubr.msk.bf16.vlgmr.msra.gmra.mxu0 %vm1770_vm1, %v10870_v49 }
 0x11d   : > { %2264 = vmatprep.mubr.bf16.mxu1 %v15331_v5  ;;  %2410 = vmatprep.mubr.bf16.mxu0 %v15331_v5 }
 0x11e   : > { %3035 = vmatpush1.bf16.msra.mxu0 %v10682_v14 }
 0x11f   : > { %3036 = vmatprep.subr.bf16.mxu0 %v10687_v15  ;;  %v8797_v15 = vld [vmem:[%s10668_s13 + $0x120] sm:$0xff] }
 0x120   : > { %v10901_v60 = vpack.c.bf16 %v8798_v57, %v8797_v15  ;;  %v8840_v15 = vld [vmem:[%s10668_s13 + $0x278] sm:$0xff]  ;;  %v10983_v57 = vpack.c.bf16 %v8812_v53, %v8811_v51 }
 0x122   : > { %3037 = vmatpush1.bf16.msra.mxu0 %v10692_v16  ;;  %v8826_v16 = vld [vmem:[%s10668_s13 + $0x208] sm:$0xff] }
 0x123   : > { %9135 = vmatprep.subr.msk.bf16.mxu0 %vm1819_vm0, %v10640_v0  ;;  %v2765_v0 = vpack.c.bf16 %v8826_v16, %v8825_v59  ;;  %v2772_v59 = vpack.c.bf16 %v8840_v15, %v8839_v54  ;;  %v8817_v54 = vld [vmem:[%s10668_s13 + $0x1c0] sm:$0xff] }
 0x124   : > { %9058 = vmatmul.mubr.msk.bf16.gmra.mxu1 %vm1770_vm1, %v10884_v55  ;;  %9069 = vmatmul.mubr.msk.bf16.gmra.mxu0 %vm1770_vm1, %v10886_v56 }
 0x125   : > { %2420 = vmatprep.mubr.bf16.mxu0 %v15331_v5  ;;  %2861 = vmatprep.mubr.bf16.mxu1 %v15331_v5 }
 0x12c   : > { %9070 = vmatmul.mubr.msk.bf16.gmra.mxu0 %vm1770_vm1, %v10901_v60  ;;  %9085 = vmatmul.mubr.msk.bf16.vlgmr.msra.gmra.mxu1 %vm1770_vm1, %v2765_v0 }
 0x12d   : > { %2430 = vmatprep.mubr.bf16.mxu0 %v15331_v5  ;;  %2871 = vmatprep.mubr.bf16.mxu1 %v15331_v5 }
 0x12e   : > { %3292 = vmatpush1.bf16.msra.mxu1 %v10710_v21 }
 0x12f   : > { %3293 = vmatprep.subr.bf16.mxu1 %v10726_v27  ;;  %v8802_v27 = vld [vmem:[%s10668_s13 + $0x148] sm:$0xff] }
 0x130   : > { %v10928_v11 = vpack.c.bf16 %v8802_v27, %v8801_v8 }
 0x132   : > { %3294 = vmatpush1.bf16.msra.mxu1 %v10731_v28  ;;  %v8830_v28 = vld [vmem:[%s10668_s13 + $0x228] sm:$0xff] }
 0x133   : > { %9152 = vmatprep.subr.msk.bf16.mxu1 %vm1819_vm0, %v10666_v6  ;;  %v2767_v6 = vpack.c.bf16 %v8830_v28, %v8829_v9  ;;  %v11000_v28 = vpack.c.bf16 %v8814_v62, %v8813_v61  ;;  %v8846_v61 = vld [vmem:[%s10668_s13 + $0x2a8] sm:$0xff] }
 0x134   : > { %9071 = vmatmul.mubr.msk.bf16.gmra.mxu0 %vm1770_vm1, %v10914_v3  ;;  %9086 = vmatmul.mubr.msk.bf16.gmra.mxu1 %vm1770_vm1, %v2766_v7 }
 0x135   : > { %2440 = vmatprep.mubr.bf16.mxu0 %v15331_v5  ;;  %2881 = vmatprep.mubr.bf16.mxu1 %v15331_v5 }
 0x13c   : > { %9072 = vmatmul.mubr.msk.bf16.gmra.mxu0 %vm1770_vm1, %v10928_v11  ;;  %9087 = vmatmul.mubr.msk.bf16.gmra.mxu1 %vm1770_vm1, %v2767_v6  ;;  %v2773_v6 = vpack.c.bf16 %v8842_v2, %v8841_v63 }
 0x13d   : > { %2450 = vmatprep.mubr.bf16.mxu0 %v15331_v5  ;;  %2891 = vmatprep.mubr.bf16.mxu1 %v15331_v5 }
 0x144   : > { %9073 = vmatmul.mubr.msk.bf16.gmra.mxu0 %vm1770_vm1, %v10939_v20  ;;  %9088 = vmatmul.mubr.msk.bf16.gmra.mxu1 %vm1770_vm1, %v2768_v22  ;;  %v8815_v22 = vld [vmem:[%s10668_s13 + $0x1b0] sm:$0xff] }
 0x145   : > { %2460 = vmatprep.mubr.bf16.mxu0 %v15331_v5  ;;  %2901 = vmatprep.mubr.bf16.mxu1 %v15331_v5 }
 0x14c   : > { %9074 = vmatmul.mubr.msk.bf16.gmra.mxu0 %vm1770_vm1, %v10950_v31  ;;  %9089 = vmatmul.mubr.msk.bf16.gmra.mxu1 %vm1770_vm1, %v2769_v32 }
 0x14d   : > { %2470 = vmatprep.mubr.bf16.mxu0 %v15331_v5  ;;  %2911 = vmatprep.mubr.bf16.mxu1 %v15331_v5 }
 0x154   : > { %9075 = vmatmul.mubr.msk.bf16.gmra.mxu0 %vm1770_vm1, %v10961_v38  ;;  %9090 = vmatmul.mubr.msk.bf16.gmra.mxu1 %vm1770_vm1, %v2770_v39  ;;  %v11017_v39 = vpack.c.bf16 %v8816_v25, %v8815_v22 }
 0x155   : > { %2480 = vmatprep.mubr.bf16.mxu0 %v15331_v5  ;;  %2921 = vmatprep.mubr.bf16.mxu1 %v15331_v5 }
 0x15c   : > { %9076 = vmatmul.mubr.msk.bf16.gmra.mxu0 %vm1770_vm1, %v10972_v47  ;;  %9091 = vmatmul.mubr.msk.bf16.gmra.mxu1 %vm1770_vm1, %v2771_v50 }
 0x15d   : > { %2490 = vmatprep.mubr.bf16.mxu0 %v15331_v5  ;;  %2931 = vmatprep.mubr.bf16.mxu1 %v15331_v5 }
 0x164   : > { %v1860_v16 = vpop.f32.mrf.mxu0  ;;  %v10985_v0 = vpop.f32.mrf.mxu1  ;;  %9077 = vmatmul.mubr.msk.bf16.gmra.mxu0 %vm1770_vm1, %v10983_v57  ;;  %9092 = vmatmul.mubr.msk.bf16.gmra.mxu1 %vm1770_vm1, %v2772_v59  ;;  %v8818_v59 = vld [vmem:[%s10668_s13 + $0x1c8] sm:$0xff] }
 0x165   : > { %15585 = vst [vmem:[#allocation18_spill] sm:$0xff] %v10985_v0  ;;  %2500 = vmatprep.mubr.bf16.mxu0 %v15331_v5  ;;  %2941 = vmatprep.mubr.bf16.mxu1 %v15331_v5 }
 0x166   : > { %v1862_v7 = vpop.f32.mrf.mxu0  ;;  %v10996_v8 = vpop.f32.mrf.mxu1 }
 0x167   : > { %15586 = vst [vmem:[#allocation19_spill] sm:$0xff] %v10996_v8 }
 0x168   : > { %v1864_v27 = vpop.f32.mrf.mxu0  ;;  %v10998_v9 = vpop.f32.mrf.mxu1 }
 0x169   : > { %15587 = vst [vmem:[#allocation20_spill] sm:$0xff] %v10998_v9 }
 0x16a   : > { %v1866_v12 = vpop.f32.mrf.mxu0  ;;  %v11002_v13 = vpop.f32.mrf.mxu1 }
 0x16b   : > { %15588 = vst [vmem:[#allocation21_spill] sm:$0xff] %v11002_v13  ;;  %v11145_v13 = vld [vmem:[%s15319_s1 + $0x54] ss:$8 sps:$4 sm:$0x3f]  }
 0x16c   : > { %v1870_v17 = vpop.f32.mrf.mxu0  ;;  %v2116_v18 = vpop.f32.mrf.mxu1  ;;  %9078 = vmatmul.mubr.msk.bf16.gmra.mxu0 %vm1770_vm1, %v11000_v28  ;;  %9093 = vmatmul.mubr.msk.bf16.gmra.mxu1 %vm1770_vm1, %v2773_v6  ;;  %v11036_v6 = vpack.c.bf16 %v8818_v59, %v8817_v54  ;;  %15592 = vst [vmem:[#allocation24_spill] sm:$0xff] %v11145_v13 }
 0x16d   : > { %v11008_v24 = vadd.f32 %v2116_v18, %v1860_v16  ;;  %2510 = vmatprep.mubr.bf16.mxu0 %v15331_v5  ;;  %2951 = vmatprep.mubr.bf16.mxu1 %v15331_v5  ;;  %v8845_v16 = vld [vmem:[%s10668_s13 + $0x2a0] sm:$0xff] }
 0x16e   : > { %v1872_v32 = vpop.f32.mrf.mxu0  ;;  %v2118_v33 = vpop.f32.mrf.mxu1 }
 0x16f   : > { %v11015_v34 = vadd.f32 %v2118_v33, %v1862_v7 }
 0x170   : > { %v1874_v36 = vpop.f32.mrf.mxu0  ;;  %v2120_v37 = vpop.f32.mrf.mxu1 }
 0x171   : > { %v11019_v43 = vadd.f32 %v2120_v37, %v1864_v27  ;;  %v8847_v37 = vld [vmem:[%s10668_s13 + $0x2b0] sm:$0xff] }
 0x172   : > { %v1876_v44 = vpop.f32.mrf.mxu0  ;;  %v2122_v45 = vpop.f32.mrf.mxu1 }
 0x173   : > { %v11021_v50 = vadd.f32 %v2122_v45, %v1866_v12  ;;  %v2775_v12 = vpack.c.bf16 %v8846_v61, %v8845_v16 }
 0x174   : > { %v1880_v51 = vpop.f32.mrf.mxu0  ;;  %v2126_v53 = vpop.f32.mrf.mxu1  ;;  %9079 = vmatmul.mubr.msk.bf16.gmra.mxu0 %vm1770_vm1, %v11017_v39  ;;  %9094 = vmatmul.mubr.msk.bf16.gmra.mxu1 %vm1770_vm1, %v2774_v41  ;;  %v8848_v41 = vld [vmem:[%s10668_s13 + $0x2b8] sm:$0xff] }
 0x175   : > { %v11027_v15 = vadd.f32 %v2126_v53, %v1870_v17  ;;  %2520 = vmatprep.mubr.bf16.mxu0 %v15331_v5  ;;  %2961 = vmatprep.mubr.bf16.mxu1 %v15331_v5 }
 0x176   : > { %v1882_v62 = vpop.f32.mrf.mxu0  ;;  %v2128_v63 = vpop.f32.mrf.mxu1 }
 0x177   : > { %v11034_v2 = vadd.f32 %v2128_v63, %v1872_v32  ;;  %v8819_v32 = vld [vmem:[%s10668_s13 + $0x1d0] sm:$0xff] }
 0x178   : > { %v1884_v7 = vpop.f32.mrf.mxu0  ;;  %v2130_v27 = vpop.f32.mrf.mxu1 }
 0x179   : > { %v11038_v17 = vadd.f32 %v2130_v27, %v1874_v36  ;;  %v8820_v36 = vld [vmem:[%s10668_s13 + $0x1d8] sm:$0xff] }
 0x17a   : > { %v1886_v18 = vpop.f32.mrf.mxu0  ;;  %v2132_v22 = vpop.f32.mrf.mxu1  ;;  %v11055_v16 = vpack.c.bf16 %v8820_v36, %v8819_v32  ;;  %v8849_v32 = vld [vmem:[%s10668_s13 + $0x2c0] sm:$0xff]  ;;  %v8850_v36 = vld [vmem:[%s10668_s13 + $0x2c8] sm:$0xff] }
 0x17b   : > { %v11040_v25 = vadd.f32 %v2132_v22, %v1876_v44 }
 0x17c   : > { %v1890_v26 = vpop.f32.mrf.mxu0  ;;  %v2136_v30 = vpop.f32.mrf.mxu1  ;;  %9080 = vmatmul.mubr.msk.bf16.gmra.mxu0 %vm1770_vm1, %v11036_v6  ;;  %9095 = vmatmul.mubr.msk.bf16.gmra.mxu1 %vm1770_vm1, %v2775_v12 }
 0x17d   : > { %v11046_v33 = vadd.f32 %v2136_v30, %v1880_v51  ;;  %2530 = vmatprep.mubr.bf16.mxu0 %v15331_v5  ;;  %2971 = vmatprep.mubr.bf16.mxu1 %v15331_v5  ;;  %v2776_v51 = vpack.c.bf16 %v8848_v41, %v8847_v37 }
 0x17e   : > { %v1892_v44 = vpop.f32.mrf.mxu0  ;;  %v2138_v45 = vpop.f32.mrf.mxu1 }
 0x17f   : > { %v11053_v53 = vadd.f32 %v2138_v45, %v1882_v62  ;;  %v8821_v62 = vld [vmem:[%s10668_s13 + $0x1e0] sm:$0xff] }
 0x180   : > { %v1894_v54 = vpop.f32.mrf.mxu0  ;;  %v2140_v59 = vpop.f32.mrf.mxu1 }
 0x181   : > { %v11057_v61 = vadd.f32 %v2140_v59, %v1884_v7  ;;  %v8822_v7 = vld [vmem:[%s10668_s13 + $0x1e8] sm:$0xff] }
 0x182   : > { %v1896_v63 = vpop.f32.mrf.mxu0  ;;  %v2142_v27 = vpop.f32.mrf.mxu1 }
 0x183   : > { %v11059_v12 = vadd.f32 %v2142_v27, %v1886_v18 }
 0x184   : > { %v1900_v22 = vpop.f32.mrf.mxu0  ;;  %v2146_v30 = vpop.f32.mrf.mxu1  ;;  %9081 = vmatmul.mubr.msk.bf16.gmra.mxu0 %vm1770_vm1, %v11055_v16  ;;  %9096 = vmatmul.mubr.msk.bf16.gmra.mxu1 %vm1770_vm1, %v2776_v51  ;;  %v11074_v51 = vpack.c.bf16 %v8822_v7, %v8821_v62  ;;  %v15589_v62 = vmov 0   ;;  %v8851_v7 = vld [vmem:[%s10668_s13 + $0x2d0] sm:$0xff] }
 0x185   : > { %v11065_v45 = vadd.f32 %v2146_v30, %v1890_v26  ;;  %2540 = vmatprep.mubr.bf16.mxu0 %v15331_v5  ;;  %2981 = vmatprep.mubr.bf16.mxu1 %v15331_v5  ;;  %v2777_v26 = vpack.c.bf16 %v8850_v36, %v8849_v32  ;;  %v8852_v32 = vld [vmem:[%s10668_s13 + $0x2d8] sm:$0xff] }
 0x186   : > { %v1902_v18 = vpop.f32.mrf.mxu0  ;;  %v2148_v37 = vpop.f32.mrf.mxu1 }
 0x187   : > { %v11072_v41 = vadd.f32 %v2148_v37, %v1892_v44  ;;  %v8823_v44 = vld [vmem:[%s10668_s13 + $0x1f0] sm:$0xff] }
 0x188   : > { %v1904_v59 = vpop.f32.mrf.mxu0  ;;  %v2150_v27 = vpop.f32.mrf.mxu1 }
 0x189   : > { %v11076_v30 = vadd.f32 %v2150_v27, %v1894_v54  ;;  %v8824_v54 = vld [vmem:[%s10668_s13 + $0x1f8] sm:$0xff] }
 0x18a   : > { %v1906_v23 = vpop.f32.mrf.mxu0  ;;  %v2152_v5 = vpop.f32.mrf.mxu1  ;;  %v11093_v29 = vpack.c.bf16 %v8824_v54, %v8823_v44  ;;  %v8853_v44 = vld [vmem:[%s10668_s13 + $0x2e0] sm:$0xff] }
 0x18b   : > { %v11078_v55 = vadd.f32 %v2152_v5, %v1896_v63 }
 0x18c   : > { %v1910_v48 = vpop.f32.mrf.mxu0  ;;  %v2156_v42 = vpop.f32.mrf.mxu1  ;;  %9082 = vmatmul.mubr.msk.bf16.gmra.mxu0 %vm1770_vm1, %v11074_v51  ;;  %9097 = vmatmul.mubr.msk.bf16.gmra.mxu1 %vm1770_vm1, %v2777_v26  ;;  %v2778_v26 = vpack.c.bf16 %v8852_v32, %v8851_v7 }
 0x18d   : > { %v11084_v37 = vadd.f32 %v2156_v42, %v1900_v22  ;;  %2550 = vmatprep.mubr.bf16.mxu0 %v15589_v62  ;;  %2991 = vmatprep.mubr.bf16.mxu1 %v15589_v62 }
 0x18e   : > { %v1912_v36 = vpop.f32.mrf.mxu0  ;;  %v2158_v5 = vpop.f32.mrf.mxu1 }
 0x18f   : > { %v11091_v63 = vadd.f32 %v2158_v5, %v1902_v18 }
 0x190   : > { %v1914_v27 = vpop.f32.mrf.mxu0  ;;  %v2160_v35 = vpop.f32.mrf.mxu1 }
 0x191   : > { %v11095_v42 = vadd.f32 %v2160_v35, %v1904_v59  ;;  %v8854_v35 = vld [vmem:[%s10668_s13 + $0x2e8] sm:$0xff] }
 0x192   : > { %v1916_v22 = vpop.f32.mrf.mxu0  ;;  %v2162_v19 = vpop.f32.mrf.mxu1  ;;  %v2779_v32 = vpack.c.bf16 %v8854_v35, %v8853_v44 }
 0x193   : > { %v11097_v10 = vadd.f32 %v2162_v19, %v1906_v23 }
 0x194   : > { %v1920_v1 = vpop.f32.mrf.mxu0  ;;  %v2166_v58 = vpop.f32.mrf.mxu1  ;;  %9083 = vmatmul.mubr.msk.bf16.gmra.mxu0 %vm1770_vm1, %v11093_v29  ;;  %9098 = vmatmul.mubr.msk.bf16.gmra.mxu1 %vm1770_vm1, %v2778_v26 }
 0x195   : > { %v11102_v18 = vadd.f32 %v2166_v58, %v1910_v48  ;;  %3001 = vmatprep.mubr.bf16.mxu1 %v15589_v62  ;;  %3054 = vmatprep.mubr.bf16.mxu0 %v15589_v62 }
 0x196   : > { %v1922_v59 = vpop.f32.mrf.mxu0  ;;  %v2168_v54 = vpop.f32.mrf.mxu1 }
 0x197   : > { %v11108_v23 = vadd.f32 %v2168_v54, %v1912_v36  ;;  %v8855_v36 = vld [vmem:[%s10668_s13 + $0x2f0] sm:$0xff]  ;;  %v11129_v54 = vld [vmem:[%s15319_s1 + $0x24] ss:$8 sps:$4 sm:$0xff]  }
 0x198   : > { %v1924_v19 = vpop.f32.mrf.mxu0  ;;  %v2170_v7 = vpop.f32.mrf.mxu1  ;;  %15590 = vst [vmem:[#allocation22_spill] sm:$0xff] %v11129_v54 }
 0x199   : > { %v11110_v5 = vadd.f32 %v2170_v7, %v1914_v27  ;;  %v8856_v27 = vld [vmem:[%s10668_s13 + $0x2f8] sm:$0xff] }
 0x19a   : > { %v1926_v26 = vpop.f32.mrf.mxu0  ;;  %v2172_v58 = vpop.f32.mrf.mxu1 }
 0x19b   : > { %v11112_v48 = vadd.f32 %v2172_v58, %v1916_v22 }
 0x19c   : > { %v1930_v52 = vpop.f32.mrf.mxu0  ;;  %v2176_v46 = vpop.f32.mrf.mxu1  ;;  %9099 = vmatmul.mubr.msk.bf16.gmra.mxu1 %vm1770_vm1, %v2779_v32  ;;  %9102 = vmatmul.mubr.msk.bf16.vlgmr.msra.gmra.mxu0 %vm1770_vm1, %v10870_v49  ;;  %v2780_v49 = vpack.c.bf16 %v8856_v27, %v8855_v36 }
 0x19d   : > { %v11117_v40 = vadd.f32 %v2176_v46, %v1920_v1  ;;  %3011 = vmatprep.mubr.bf16.mxu1 %v15589_v62  ;;  %3064 = vmatprep.mubr.bf16.mxu0 %v15589_v62 }
 0x19e   : > { %v1932_v44 = vpop.f32.mrf.mxu0  ;;  %v2178_v35 = vpop.f32.mrf.mxu1  ;;  %3741 = vmatpush1.bf16.msra.mxu0 %v10657_v4 }
 0x19f   : > { %v11124_v22 = vadd.f32 %v2178_v35, %v1922_v59  ;;  %3742 = vmatprep.subr.bf16.mxu0 %v11129_v54  ;;  %v11137_v59 = vld [vmem:[%s15319_s1 + $0x20] ss:$8 sps:$4 sm:$0xff]  }
 0x1a0   : > { %v1934_v46 = vpop.f32.mrf.mxu0  ;;  %v2180_v1 = vpop.f32.mrf.mxu1  ;;  %15591 = vst [vmem:[#allocation23_spill] sm:$0xff] %v11137_v59 }
 0x1a1   : > { %v11132_v7 = vadd.f32 %v2180_v1, %v1924_v19  ;;  %v8858_v1 = vld [vmem:[%s10668_s13 + $0x308] sm:$0xff] }
 0x1a2   : > { %v1936_v32 = vpop.f32.mrf.mxu0  ;;  %v2182_v58 = vpop.f32.mrf.mxu1  ;;  %3743 = vmatpush1.bf16.msra.mxu0 %v11137_v59 }
 0x1a3   : > { %v11140_v35 = vadd.f32 %v2182_v58, %v1926_v26  ;;  %9169 = vmatprep.subr.msk.bf16.mxu0 %vm1819_vm0, %v11145_v13  ;;  %v8857_v26 = vld [vmem:[%s10668_s13 + $0x300] sm:$0xff] }
 0x1a4   : > { %v1940_v19 = vpop.f32.mrf.mxu0  ;;  %v2186_v36 = vpop.f32.mrf.mxu1  ;;  %9100 = vmatmul.mubr.msk.bf16.gmra.mxu1 %vm1770_vm1, %v2780_v49  ;;  %9103 = vmatmul.mubr.msk.bf16.gmra.mxu0 %vm1770_vm1, %v10886_v56  ;;  %v11160_v49 = vpack.c.bf16 %v8858_v1, %v8857_v26 }
 0x1a5   : > { %v11152_v27 = vadd.f32 %v2186_v36, %v1930_v52  ;;  %3074 = vmatprep.mubr.bf16.mxu0 %v15589_v62  ;;  %3311 = vmatprep.mubr.bf16.mxu1 %v15589_v62 }
 0x1a6   : > { %v1942_v58 = vpop.f32.mrf.mxu0  ;;  %v2188_v9 = vpop.f32.mrf.mxu1  ;;  %15593 = vst [vmem:[#allocation25_spill] sm:$0xff] %v11160_v49 }
 0x1a7   : > { %v11158_v8 = vadd.f32 %v2188_v9, %v1932_v44  ;;  %v8860_v44 = vld [vmem:[%s10668_s13 + $0x318] sm:$0xff] }
 0x1a8   : > { %v1944_v0 = vpop.f32.mrf.mxu0  ;;  %v2190_v13 = vpop.f32.mrf.mxu1 }
 0x1a9   : > { %v11162_v59 = vadd.f32 %v2190_v13, %v1934_v46  ;;  %v8859_v13 = vld [vmem:[%s10668_s13 + $0x310] sm:$0xff] }
 0x1aa   : > { %v1946_v52 = vpop.f32.mrf.mxu0  ;;  %v2192_v56 = vpop.f32.mrf.mxu1 }
 0x1ab   : > { %v11164_v36 = vadd.f32 %v2192_v56, %v1936_v32 }
 0x1ac   : > { %v1950_v54 = vpop.f32.mrf.mxu0  ;;  %v2196_v4 = vpop.f32.mrf.mxu1  ;;  %9104 = vmatmul.mubr.msk.bf16.gmra.mxu0 %vm1770_vm1, %v10901_v60  ;;  %9119 = vmatmul.mubr.msk.bf16.vlgmr.msra.gmra.mxu1 %vm1770_vm1, %v11160_v49  ;;  %v9951_v60 = vld [vmem:[%s15319_s1 + $0x4] ss:$8 sps:$4 sm:$0xff]  }
 0x1ad   : > { %v11170_v9 = vadd.f32 %v2196_v4, %v1940_v19  ;;  %3084 = vmatprep.mubr.bf16.mxu0 %v15589_v62  ;;  %3321 = vmatprep.mubr.bf16.mxu1 %v15589_v62  ;;  %v11182_v19 = vpack.c.bf16 %v8860_v44, %v8859_v13 }
 0x1ae   : > { %v1952_v46 = vpop.f32.mrf.mxu0  ;;  %v2198_v26 = vpop.f32.mrf.mxu1  ;;  %3934 = vmatpush1.bf16.msra.mxu1 %v10682_v14 }
 0x1af   : > { %v11177_v32 = vadd.f32 %v2198_v26, %v1942_v58  ;;  %3935 = vmatprep.subr.bf16.mxu1 %v9951_v60  ;;  %15595 = vst [vmem:[#allocation27_spill] sm:$0xff] %v11182_v19  ;;  %v9952_v58 = vld [vmem:[%s15319_s1] ss:$8 sps:$4 sm:$0xff]   ;;  %v9953_v60 = vld [vmem:[%s15319_s1 + $0x34] ss:$8 sps:$4 sm:$0x3f]  }
 0x1b0   : > { %v1954_v1 = vpop.f32.mrf.mxu0  ;;  %v2200_v4 = vpop.f32.mrf.mxu1 }
 0x1b1   : > { %15594 = vst [vmem:[#allocation26_spill] sm:$0xff] %v11177_v32  ;;  %v11184_v56 = vadd.f32 %v2200_v4, %v1944_v0 }
 0x1b2   : > { %v1956_v49 = vpop.f32.mrf.mxu0  ;;  %v2202_v21 = vpop.f32.mrf.mxu1  ;;  %3936 = vmatpush1.bf16.msra.mxu1 %v9952_v58 }
 0x1b3   : > { %15596 = vst [vmem:[#allocation28_spill] sm:$0xff] %v11184_v56  ;;  %v11189_v26 = vadd.f32 %v2202_v21, %v1946_v52  ;;  %9186 = vmatprep.subr.msk.bf16.mxu1 %vm1819_vm0, %v9953_v60  ;;  %v8861_v21 = vld [vmem:[%s10668_s13 + $0x320] sm:$0xff]  ;;  %v8862_v52 = vld [vmem:[%s10668_s13 + $0x328] sm:$0xff] }
 0x1b4   : > { %v1960_v13 = vpop.f32.mrf.mxu0  ;;  %v2206_v44 = vpop.f32.mrf.mxu1  ;;  %9105 = vmatmul.mubr.msk.bf16.gmra.mxu0 %vm1770_vm1, %v10914_v3  ;;  %9120 = vmatmul.mubr.msk.bf16.gmra.mxu1 %vm1770_vm1, %v11182_v19  ;;  %v11207_v3 = vpack.c.bf16 %v8862_v52, %v8861_v21 }
 0x1b5   : > { %15597 = vst [vmem:[#allocation29_spill] sm:$0xff] %v11189_v26  ;;  %v11199_v0 = vadd.f32 %v2206_v44, %v1950_v54  ;;  %3094 = vmatprep.mubr.bf16.mxu0 %v15589_v62  ;;  %3331 = vmatprep.mubr.bf16.mxu1 %v15589_v62 }
 0x1b6   : > { %v1962_v4 = vpop.f32.mrf.mxu0  ;;  %v2208_v58 = vpop.f32.mrf.mxu1  ;;  %15599 = vst [vmem:[#allocation31_spill] sm:$0xff] %v11207_v3 }
 0x1b7   : > { %15598 = vst [vmem:[#allocation30_spill] sm:$0xff] %v11199_v0  ;;  %v11205_v60 = vadd.f32 %v2208_v58, %v1952_v46 }
 0x1b8   : > { %v1964_v14 = vpop.f32.mrf.mxu0  ;;  %v2210_v26 = vpop.f32.mrf.mxu1 }
 0x1b9   : > { %v11209_v56 = vadd.f32 %v2210_v26, %v1954_v1  ;;  %v8863_v1 = vld [vmem:[%s10668_s13 + $0x330] sm:$0xff]  ;;  %v8864_v26 = vld [vmem:[%s10668_s13 + $0x338] sm:$0xff] }
 0x1ba   : > { %v1966_v54 = vpop.f32.mrf.mxu0  ;;  %v2212_v44 = vpop.f32.mrf.mxu1 }
 0x1bb   : > { %15600 = vst [vmem:[#allocation32_spill] sm:$0xff] %v11209_v56  ;;  %v11211_v19 = vadd.f32 %v2212_v44, %v1956_v49 }
 0x1bc   : > { %v1970_v0 = vpop.f32.mrf.mxu0  ;;  %v2216_v32 = vpop.f32.mrf.mxu1  ;;  %9106 = vmatmul.mubr.msk.bf16.gmra.mxu0 %vm1770_vm1, %v10928_v11  ;;  %9121 = vmatmul.mubr.msk.bf16.gmra.mxu1 %vm1770_vm1, %v11207_v3  ;;  %v11225_v11 = vpack.c.bf16 %v8864_v26, %v8863_v1  ;;  %v8866_v1 = vld [vmem:[%s10668_s13 + $0x348] sm:$0xff] }
 0x1bd   : > { %15601 = vst [vmem:[#allocation33_spill] sm:$0xff] %v11211_v19  ;;  %v11217_v46 = vadd.f32 %v2216_v32, %v1960_v13  ;;  %3104 = vmatprep.mubr.bf16.mxu0 %v15589_v62  ;;  %3341 = vmatprep.mubr.bf16.mxu1 %v15589_v62 }
 0x1be   : > { %v1972_v21 = vpop.f32.mrf.mxu0  ;;  %v2218_v52 = vpop.f32.mrf.mxu1  ;;  %15603 = vst [vmem:[#allocation35_spill] sm:$0xff] %v11225_v11 }
 0x1bf   : > { %15602 = vst [vmem:[#allocation34_spill] sm:$0xff] %v11217_v46  ;;  %v11223_v49 = vadd.f32 %v2218_v52, %v1962_v4 }
 0x1c0   : > { %v1974_v58 = vpop.f32.mrf.mxu0  ;;  %v2220_v44 = vpop.f32.mrf.mxu1 }
 0x1c1   : > { %v11227_v19 = vadd.f32 %v2220_v44, %v1964_v14  ;;  %v8865_v14 = vld [vmem:[%s10668_s13 + $0x340] sm:$0xff] }
 0x1c2   : > { %v1976_v32 = vpop.f32.mrf.mxu0  ;;  %v2222_v13 = vpop.f32.mrf.mxu1 }
 0x1c3   : > { %15604 = vst [vmem:[#allocation36_spill] sm:$0xff] %v11227_v19  ;;  %v11229_v3 = vadd.f32 %v2222_v13, %v1966_v54 }
 0x1c4   : > { %v1980_v46 = vpop.f32.mrf.mxu0  ;;  %v2226_v56 = vpop.f32.mrf.mxu1  ;;  %9107 = vmatmul.mubr.msk.bf16.gmra.mxu0 %vm1770_vm1, %v10939_v20  ;;  %9122 = vmatmul.mubr.msk.bf16.gmra.mxu1 %vm1770_vm1, %v11225_v11  ;;  %v11243_v20 = vpack.c.bf16 %v8866_v1, %v8865_v14  ;;  %v8868_v14 = vld [vmem:[%s10668_s13 + $0x358] sm:$0xff] }
 0x1c5   : > { %15605 = vst [vmem:[#allocation37_spill] sm:$0xff] %v11229_v3  ;;  %v11235_v4 = vadd.f32 %v2226_v56, %v1970_v0  ;;  %3114 = vmatprep.mubr.bf16.mxu0 %v15589_v62  ;;  %3351 = vmatprep.mubr.bf16.mxu1 %v15589_v62 }
 0x1c6   : > { %v1982_v26 = vpop.f32.mrf.mxu0  ;;  %v2228_v52 = vpop.f32.mrf.mxu1  ;;  %15608 = vst [vmem:[#allocation40_spill] sm:$0xff] %v11243_v20 }
 0x1c7   : > { %15606 = vst [vmem:[#allocation38_spill] sm:$0xff] %v11235_v4  ;;  %v11241_v54 = vadd.f32 %v2228_v52, %v1972_v21 }
 0x1c8   : > { %v1984_v44 = vpop.f32.mrf.mxu0  ;;  %v2230_v13 = vpop.f32.mrf.mxu1 }
 0x1c9   : > { %15607 = vst [vmem:[#allocation39_spill] sm:$0xff] %v11241_v54  ;;  %v11245_v3 = vadd.f32 %v2230_v13, %v1974_v58  ;;  %v8867_v58 = vld [vmem:[%s10668_s13 + $0x350] sm:$0xff] }
 0x1ca   : > { %v1986_v56 = vpop.f32.mrf.mxu0  ;;  %v2232_v0 = vpop.f32.mrf.mxu1 }
 0x1cb   : > { %15609 = vst [vmem:[#allocation41_spill] sm:$0xff] %v11245_v3  ;;  %v11247_v11 = vadd.f32 %v2232_v0, %v1976_v32 }
 0x1cc   : > { %v1990_v4 = vpop.f32.mrf.mxu0  ;;  %v2236_v19 = vpop.f32.mrf.mxu1  ;;  %9108 = vmatmul.mubr.msk.bf16.gmra.mxu0 %vm1770_vm1, %v10950_v31  ;;  %9123 = vmatmul.mubr.msk.bf16.gmra.mxu1 %vm1770_vm1, %v11243_v20  ;;  %v11261_v31 = vpack.c.bf16 %v8868_v14, %v8867_v58  ;;  %v8869_v58 = vld [vmem:[%s10668_s13 + $0x360] sm:$0xff]  ;;  %v8870_v14 = vld [vmem:[%s10668_s13 + $0x368] sm:$0xff] }
 0x1cd   : > { %15610 = vst [vmem:[#allocation42_spill] sm:$0xff] %v11247_v11  ;;  %v11253_v21 = vadd.f32 %v2236_v19, %v1980_v46  ;;  %3124 = vmatprep.mubr.bf16.mxu0 %v15589_v62  ;;  %3361 = vmatprep.mubr.bf16.mxu1 %v15589_v62  ;;  %v2627_v19 = vlaneseq }
 0x1ce   : > { %v1992_v1 = vpop.f32.mrf.mxu0  ;;  %v2238_v52 = vpop.f32.mrf.mxu1  ;;  %15613 = vst [vmem:[#allocation45_spill] sm:$0xff] %v11261_v31 }
 0x1cf   : > { %15611 = vst [vmem:[#allocation43_spill] sm:$0xff] %v11253_v21  ;;  %v11259_v32 = vadd.f32 %v2238_v52, %v1982_v26 }
 0x1d0   : > { %v1994_v13 = vpop.f32.mrf.mxu0  ;;  %v2240_v0 = vpop.f32.mrf.mxu1 }
 0x1d1   : > { %15612 = vst [vmem:[#allocation44_spill] sm:$0xff] %v11259_v32  ;;  %v11263_v11 = vadd.f32 %v2240_v0, %v1984_v44  ;;  %v2628_v44 = vshrl.u32 %v2627_v19, 7  ;;  %v2625_v19 = vld [vmem:[%s15320_s2] sm:$0x3] }
 0x1d2   : > { %v1996_v46 = vpop.f32.mrf.mxu0  ;;  %v2242_v20 = vpop.f32.mrf.mxu1 }
 0x1d3   : > { %15614 = vst [vmem:[#allocation46_spill] sm:$0xff] %v11263_v11  ;;  %v11265_v21 = vadd.f32 %v2242_v20, %v1986_v56  ;;  %v11279_v11 = vpack.c.bf16 %v8870_v14, %v8869_v58  ;;  %v2633_v32 = vsub.s32 1, %v2628_v44 }
 0x1d4   : > { %v2000_v3 = vpop.f32.mrf.mxu0  ;;  %v2246_v54 = vpop.f32.mrf.mxu1  ;;  %9109 = vmatmul.mubr.msk.bf16.gmra.mxu0 %vm1770_vm1, %v10961_v38  ;;  %9124 = vmatmul.mubr.msk.bf16.gmra.mxu1 %vm1770_vm1, %v11261_v31 }
 0x1d5   : > { %15615 = vst [vmem:[#allocation47_spill] sm:$0xff] %v11265_v21  ;;  %v11271_v26 = vadd.f32 %v2246_v54, %v1990_v4  ;;  %3134 = vmatprep.mubr.bf16.mxu0 %v15589_v62  ;;  %3371 = vmatprep.mubr.bf16.mxu1 %v15589_v62  ;;  %15618 = vst [vmem:[#allocation50_spill] sm:$0xff] %v11279_v11  ;;  %v2629_v4 = vsub.s32 0, %v2628_v44 }
 0x1d6   : > { %v2002_v52 = vpop.f32.mrf.mxu0  ;;  %v2248_v20 = vpop.f32.mrf.mxu1 }
 0x1d7   : > { %15616 = vst [vmem:[#allocation48_spill] sm:$0xff] %v11271_v26  ;;  %v11277_v56 = vadd.f32 %v2248_v20, %v1992_v1  ;;  %v11295_v58 = vrot.slane %v2625_v19, %v2629_v4 }
 0x1d8   : > { %v2004_v0 = vpop.f32.mrf.mxu0  ;;  %v2250_v21 = vpop.f32.mrf.mxu1 }
 0x1d9   : > { %15617 = vst [vmem:[#allocation49_spill] sm:$0xff] %v11277_v56  ;;  %v11281_v38 = vadd.f32 %v2250_v21, %v1994_v13 }
 0x1da   : > { %v2006_v54 = vpop.f32.mrf.mxu0  ;;  %v2252_v31 = vpop.f32.mrf.mxu1 }
 0x1db   : > { %15619 = vst [vmem:[#allocation51_spill] sm:$0xff] %v11281_v38  ;;  %v11286_v26 = vadd.f32 %v2252_v31, %v1996_v46  ;;  %v8871_v31 = vld [vmem:[%s10668_s13 + $0x370] sm:$0xff]  ;;  %v8872_v46 = vld [vmem:[%s10668_s13 + $0x378] sm:$0xff]  ;;  %v11304_v38 = vrot.slane %v2625_v19, %v2633_v32 }
 0x1dc   : > { %v2256_v1 = vpop.f32.mrf.mxu1  ;;  %v2402_v20 = vpop.f32.mrf.mxu0  ;;  %9110 = vmatmul.mubr.msk.bf16.gmra.mxu0 %vm1770_vm1, %v10972_v47  ;;  %9125 = vmatmul.mubr.msk.bf16.gmra.mxu1 %vm1770_vm1, %v11279_v11  ;;  %v11306_v11 = vpack.c.bf16 %v8872_v46, %v8871_v31 }
 0x1dd   : > { %15620 = vst [vmem:[#allocation52_spill] sm:$0xff] %v11286_v26  ;;  %v11292_v21 = vadd.f32 %v2256_v1, %v2000_v3  ;;  %v2561_v13 = vadd.f32 %v2402_v20, %v11008_v24  ;;  %3144 = vmatprep.mubr.bf16.mxu0 %v15589_v62  ;;  %3381 = vmatprep.mubr.bf16.mxu1 %v15589_v62 }
 0x1de   : > { %v2258_v44 = vpop.f32.mrf.mxu1  ;;  %v2404_v14 = vpop.f32.mrf.mxu0 }
 0x1df   : > { %15621 = vst [vmem:[#allocation53_spill] sm:$0xff] %v11292_v21  ;;  %v11301_v26 = vadd.f32 %v2258_v44, %v2002_v52  ;;  %v2562_v47 = vadd.f32 %v2404_v14, %v11015_v34  ;;  %v2637_v24 = vadd.f32 %v11295_v58, %v2561_v13 }
 0x1e0   : > { %v2260_v3 = vpop.f32.mrf.mxu1  ;;  %v2406_v1 = vpop.f32.mrf.mxu0 }
 0x1e1   : > { %v11309_v4 = vadd.f32 %v2260_v3, %v2004_v0  ;;  %v2563_v20 = vadd.f32 %v2406_v1, %v11019_v43  ;;  %v2638_v52 = vadd.f32 %v11304_v38, %v2562_v47  ;;  %v2701_v43 = vmax.f32 %v2637_v24, 0.0 }
 0x1e2   : > { %v2262_v21 = vpop.f32.mrf.mxu1  ;;  %v2408_v56 = vpop.f32.mrf.mxu0 }
 0x1e3   : > { %v2639_v34 = vadd.f32 %v11295_v58, %v2563_v20  ;;  %v11314_v32 = vadd.f32 %v2262_v21, %v2006_v54  ;;  %v2564_v19 = vadd.f32 %v2408_v56, %v11021_v50  ;;  %v8873_v50 = vld [vmem:[%s10668_s13 + $0x380] sm:$0xff]  ;;  %v8874_v56 = vld [vmem:[%s10668_s13 + $0x388] sm:$0xff]  ;;  %v2702_v14 = vmax.f32 %v2638_v52, 0.0 }
 0x1e4   : > { %v11317_v31 = vpop.f32.mrf.mxu1  ;;  %v2412_v46 = vpop.f32.mrf.mxu0  ;;  %9111 = vmatmul.mubr.msk.bf16.gmra.mxu0 %vm1770_vm1, %v10983_v57  ;;  %9126 = vmatmul.mubr.msk.bf16.gmra.mxu1 %vm1770_vm1, %v11306_v11  ;;  %v11336_v20 = vpack.c.bf16 %v8874_v56, %v8873_v50 }
 0x1e5   : > { %v2703_v0 = vmax.f32 %v2639_v34, 0.0  ;;  %v2640_v13 = vadd.f32 %v11304_v38, %v2564_v19  ;;  %v2565_v44 = vadd.f32 %v2412_v46, %v11027_v15  ;;  %3154 = vmatprep.mubr.bf16.mxu0 %v15589_v62  ;;  %3391 = vmatprep.mubr.bf16.mxu1 %v15589_v62 }
 0x1e6   : > { %v11329_v54 = vpop.f32.mrf.mxu1  ;;  %v2414_v21 = vpop.f32.mrf.mxu0 }
 0x1e7   : > { %v11331_v57 = vpack.c.bf16 %v2703_v0, %v2701_v43  ;;  %v2704_v47 = vmax.f32 %v2640_v13, 0.0  ;;  %v2566_v3 = vadd.f32 %v2414_v21, %v11034_v2  ;;  %v2641_v34 = vadd.f32 %v11295_v58, %v2565_v44 }
 0x1e8   : > { %v11334_v1 = vpop.f32.mrf.mxu1  ;;  %v2416_v24 = vpop.f32.mrf.mxu0 }
 0x1e9   : > { %15622 = vst [vmem:[#allocation54_spill] sm:$0xff] %v11331_v57  ;;  %v11338_v15 = vpack.c.bf16 %v2704_v47, %v2702_v14  ;;  %v2567_v19 = vadd.f32 %v2416_v24, %v11038_v17  ;;  %v2642_v43 = vadd.f32 %v11304_v38, %v2566_v3  ;;  %v2705_v17 = vmax.f32 %v2641_v34, 0.0  ;;  %v8876_v14 = vld [vmem:[%s10668_s13 + $0x398] sm:$0xff] }
 0x1ea   : > { %v11342_v46 = vpop.f32.mrf.mxu1  ;;  %v2418_v52 = vpop.f32.mrf.mxu0 }
 0x1eb   : > { %15623 = vst [vmem:[#allocation55_spill] sm:$0xff] %v11338_v15  ;;  %v2643_v2 = vadd.f32 %v11295_v58, %v2567_v19  ;;  %v2568_v0 = vadd.f32 %v2418_v52, %v11040_v25  ;;  %v8875_v25 = vld [vmem:[%s10668_s13 + $0x390] sm:$0xff]  ;;  %v2706_v24 = vmax.f32 %v2642_v43, 0.0 }
 0x1ec   : > { %v2422_v13 = vpop.f32.mrf.mxu0  ;;  %v11347_v50 = vpop.f32.mrf.mxu1  ;;  %9112 = vmatmul.mubr.msk.bf16.gmra.mxu0 %vm1770_vm1, %v11000_v28  ;;  %9127 = vmatmul.mubr.msk.bf16.gmra.mxu1 %vm1770_vm1, %v11336_v20 }
 0x1ed   : > { %v2707_v44 = vmax.f32 %v2643_v2, 0.0  ;;  %v2644_v56 = vadd.f32 %v11304_v38, %v2568_v0  ;;  %v2569_v21 = vadd.f32 %v2422_v13, %v11046_v33  ;;  %3164 = vmatprep.mubr.bf16.mxu0 %v15589_v62  ;;  %3401 = vmatprep.mubr.bf16.mxu1 %v15589_v62  ;;  %v11366_v0 = vpack.c.bf16 %v8876_v14, %v8875_v25 }
 0x1ee   : > { %v2424_v47 = vpop.f32.mrf.mxu0  ;;  %v11359_v3 = vpop.f32.mrf.mxu1 }
 0x1ef   : > { %v11361_v28 = vpack.c.bf16 %v2707_v44, %v2705_v17  ;;  %v2708_v19 = vmax.f32 %v2644_v56, 0.0  ;;  %v2570_v34 = vadd.f32 %v2424_v47, %v11053_v53  ;;  %v2645_v13 = vadd.f32 %v11295_v58, %v2569_v21 }
 0x1f0   : > { %v2426_v52 = vpop.f32.mrf.mxu0  ;;  %v11364_v2 = vpop.f32.mrf.mxu1 }
 0x1f1   : > { %15624 = vst [vmem:[#allocation56_spill] sm:$0xff] %v11361_v28  ;;  %v11368_v33 = vpack.c.bf16 %v2708_v19, %v2706_v24  ;;  %v2571_v57 = vadd.f32 %v2426_v52, %v11057_v61  ;;  %v2646_v17 = vadd.f32 %v11304_v38, %v2570_v34  ;;  %v2709_v61 = vmax.f32 %v2645_v13, 0.0 }
 0x1f2   : > { %v2428_v15 = vpop.f32.mrf.mxu0  ;;  %v11372_v43 = vpop.f32.mrf.mxu1 }
 0x1f3   : > { %15625 = vst [vmem:[#allocation57_spill] sm:$0xff] %v11368_v33  ;;  %v2647_v53 = vadd.f32 %v11295_v58, %v2571_v57  ;;  %v2572_v44 = vadd.f32 %v2428_v15, %v11059_v12  ;;  %v8877_v12 = vld [vmem:[%s10668_s13 + $0x3a0] sm:$0xff]  ;;  %v8878_v57 = vld [vmem:[%s10668_s13 + $0x3a8] sm:$0xff]  ;;  %v2710_v19 = vmax.f32 %v2646_v17, 0.0 }
 0x1f4   : > { %v2432_v56 = vpop.f32.mrf.mxu0  ;;  %v11377_v25 = vpop.f32.mrf.mxu1  ;;  %9113 = vmatmul.mubr.msk.bf16.gmra.mxu0 %vm1770_vm1, %v11017_v39  ;;  %9128 = vmatmul.mubr.msk.bf16.gmra.mxu1 %vm1770_vm1, %v11366_v0 }
 0x1f5   : > { %v2711_v21 = vmax.f32 %v2647_v53, 0.0  ;;  %v2648_v14 = vadd.f32 %v11304_v38, %v2572_v44  ;;  %v2573_v47 = vadd.f32 %v2432_v56, %v11065_v45  ;;  %3174 = vmatprep.mubr.bf16.mxu0 %v15589_v62  ;;  %3411 = vmatprep.mubr.bf16.mxu1 %v15589_v62  ;;  %v11396_v44 = vpack.c.bf16 %v8878_v57, %v8877_v12 }
 0x1f6   : > { %v2434_v15 = vpop.f32.mrf.mxu0  ;;  %v11389_v24 = vpop.f32.mrf.mxu1 }
 0x1f7   : > { %v11391_v39 = vpack.c.bf16 %v2711_v21, %v2709_v61  ;;  %v2712_v34 = vmax.f32 %v2648_v14, 0.0  ;;  %v2574_v52 = vadd.f32 %v2434_v15, %v11072_v41  ;;  %v2649_v56 = vadd.f32 %v11295_v58, %v2573_v47 }
 0x1f8   : > { %v2436_v13 = vpop.f32.mrf.mxu0  ;;  %v11394_v53 = vpop.f32.mrf.mxu1 }
 0x1f9   : > { %15626 = vst [vmem:[#allocation58_spill] sm:$0xff] %v11391_v39  ;;  %v11398_v45 = vpack.c.bf16 %v2712_v34, %v2710_v19  ;;  %v2575_v28 = vadd.f32 %v2436_v13, %v11076_v30  ;;  %v2650_v61 = vadd.f32 %v11304_v38, %v2574_v52  ;;  %v2713_v30 = vmax.f32 %v2649_v56, 0.0 }
 0x1fa   : > { %v2438_v33 = vpop.f32.mrf.mxu0  ;;  %v11402_v17 = vpop.f32.mrf.mxu1 }
 0x1fb   : > { %15627 = vst [vmem:[#allocation59_spill] sm:$0xff] %v11398_v45  ;;  %v2651_v41 = vadd.f32 %v11295_v58, %v2575_v28  ;;  %v2576_v21 = vadd.f32 %v2438_v33, %v11078_v55  ;;  %v8879_v55 = vld [vmem:[%s10668_s13 + $0x3b0] sm:$0xff]  ;;  %v8880_v28 = vld [vmem:[%s10668_s13 + $0x3b8] sm:$0xff]  ;;  %v2714_v34 = vmax.f32 %v2650_v61, 0.0 }
 0x1fc   : > { %v2442_v14 = vpop.f32.mrf.mxu0  ;;  %v11407_v12 = vpop.f32.mrf.mxu1  ;;  %9114 = vmatmul.mubr.msk.bf16.gmra.mxu0 %vm1770_vm1, %v11036_v6  ;;  %9129 = vmatmul.mubr.msk.bf16.gmra.mxu1 %vm1770_vm1, %v11396_v44 }
 0x1fd   : > { %v2715_v47 = vmax.f32 %v2651_v41, 0.0  ;;  %v2652_v57 = vadd.f32 %v11304_v38, %v2576_v21  ;;  %v2577_v15 = vadd.f32 %v2442_v14, %v11084_v37  ;;  %3184 = vmatprep.mubr.bf16.mxu0 %v15589_v62  ;;  %3421 = vmatprep.mubr.bf16.mxu1 %v15589_v62  ;;  %v11426_v21 = vpack.c.bf16 %v8880_v28, %v8879_v55 }
 0x1fe   : > { %v2444_v33 = vpop.f32.mrf.mxu0  ;;  %v11419_v19 = vpop.f32.mrf.mxu1 }
 0x1ff   : > { %v11421_v6 = vpack.c.bf16 %v2715_v47, %v2713_v30  ;;  %v2716_v52 = vmax.f32 %v2652_v57, 0.0  ;;  %v2578_v13 = vadd.f32 %v2444_v33, %v11091_v63  ;;  %v2653_v14 = vadd.f32 %v11295_v58, %v2577_v15 }
 0x200   : > { %v2446_v56 = vpop.f32.mrf.mxu0  ;;  %v11424_v41 = vpop.f32.mrf.mxu1 }
 0x201   : > { %15628 = vst [vmem:[#allocation60_spill] sm:$0xff] %v11421_v6  ;;  %v11428_v37 = vpack.c.bf16 %v2716_v52, %v2714_v34  ;;  %v2579_v39 = vadd.f32 %v2446_v56, %v11095_v42  ;;  %v2654_v30 = vadd.f32 %v11304_v38, %v2578_v13  ;;  %v2717_v42 = vmax.f32 %v2653_v14, 0.0 }
 0x202   : > { %v2448_v45 = vpop.f32.mrf.mxu0  ;;  %v11432_v61 = vpop.f32.mrf.mxu1 }
 0x203   : > { %15629 = vst [vmem:[#allocation61_spill] sm:$0xff] %v11428_v37  ;;  %v2655_v63 = vadd.f32 %v11295_v58, %v2579_v39  ;;  %v2580_v47 = vadd.f32 %v2448_v45, %v11097_v10  ;;  %v8881_v10 = vld [vmem:[%s10668_s13 + $0x3c0] sm:$0xff]  ;;  %v8882_v39 = vld [vmem:[%s10668_s13 + $0x3c8] sm:$0xff]  ;;  %v2718_v52 = vmax.f32 %v2654_v30, 0.0 }
 0x204   : > { %v2452_v57 = vpop.f32.mrf.mxu0  ;;  %v11437_v55 = vpop.f32.mrf.mxu1  ;;  %9115 = vmatmul.mubr.msk.bf16.gmra.mxu0 %vm1770_vm1, %v11055_v16  ;;  %9130 = vmatmul.mubr.msk.bf16.gmra.mxu1 %vm1770_vm1, %v11426_v21 }
 0x205   : > { %v2719_v15 = vmax.f32 %v2655_v63, 0.0  ;;  %v2656_v28 = vadd.f32 %v11304_v38, %v2580_v47  ;;  %v2581_v33 = vadd.f32 %v2452_v57, %v11102_v18  ;;  %3194 = vmatprep.mubr.bf16.mxu0 %v15589_v62  ;;  %3431 = vmatprep.mubr.bf16.mxu1 %v15589_v62  ;;  %v11456_v47 = vpack.c.bf16 %v8882_v39, %v8881_v10 }
 0x206   : > { %v2454_v45 = vpop.f32.mrf.mxu0  ;;  %v11449_v34 = vpop.f32.mrf.mxu1 }
 0x207   : > { %v11451_v16 = vpack.c.bf16 %v2719_v15, %v2717_v42  ;;  %v2720_v13 = vmax.f32 %v2656_v28, 0.0  ;;  %v2582_v56 = vadd.f32 %v2454_v45, %v11108_v23  ;;  %v2657_v57 = vadd.f32 %v11295_v58, %v2581_v33 }
 0x208   : > { %v2456_v14 = vpop.f32.mrf.mxu0  ;;  %v11454_v63 = vpop.f32.mrf.mxu1 }
 0x209   : > { %15630 = vst [vmem:[#allocation62_spill] sm:$0xff] %v11451_v16  ;;  %v11458_v18 = vpack.c.bf16 %v2720_v13, %v2718_v52  ;;  %v2583_v6 = vadd.f32 %v2456_v14, %v11110_v5  ;;  %v2658_v42 = vadd.f32 %v11304_v38, %v2582_v56  ;;  %v2721_v5 = vmax.f32 %v2657_v57, 0.0 }
 0x20a   : > { %v2458_v37 = vpop.f32.mrf.mxu0  ;;  %v11462_v30 = vpop.f32.mrf.mxu1 }
 0x20b   : > { %15631 = vst [vmem:[#allocation63_spill] sm:$0xff] %v11458_v18  ;;  %v2659_v23 = vadd.f32 %v11295_v58, %v2583_v6  ;;  %v2584_v15 = vadd.f32 %v2458_v37, %v11112_v48  ;;  %v8883_v48 = vld [vmem:[%s10668_s13 + $0x3d0] sm:$0xff]  ;;  %v8884_v6 = vld [vmem:[%s10668_s13 + $0x3d8] sm:$0xff]  ;;  %v2722_v13 = vmax.f32 %v2658_v42, 0.0 }
 0x20c   : > { %v2462_v28 = vpop.f32.mrf.mxu0  ;;  %v11467_v10 = vpop.f32.mrf.mxu1  ;;  %9116 = vmatmul.mubr.msk.bf16.gmra.mxu0 %vm1770_vm1, %v11074_v51  ;;  %9131 = vmatmul.mubr.msk.bf16.gmra.mxu1 %vm1770_vm1, %v11456_v47 }
 0x20d   : > { %v2723_v33 = vmax.f32 %v2659_v23, 0.0  ;;  %v2660_v39 = vadd.f32 %v11304_v38, %v2584_v15  ;;  %v2585_v45 = vadd.f32 %v2462_v28, %v11117_v40  ;;  %3204 = vmatprep.mubr.bf16.mxu0 %v15589_v62  ;;  %3441 = vmatprep.mubr.bf16.mxu1 %v15589_v62  ;;  %v11486_v40 = vpack.c.bf16 %v8884_v6, %v8883_v48 }
 0x20e   : > { %v2464_v37 = vpop.f32.mrf.mxu0  ;;  %v11479_v52 = vpop.f32.mrf.mxu1 }
 0x20f   : > { %v11481_v51 = vpack.c.bf16 %v2723_v33, %v2721_v5  ;;  %v2724_v56 = vmax.f32 %v2660_v39, 0.0  ;;  %v2586_v14 = vadd.f32 %v2464_v37, %v11124_v22  ;;  %15633 = vst [vmem:[#allocation65_spill] sm:$0xff] %v11486_v40  ;;  %v2661_v28 = vadd.f32 %v11295_v58, %v2585_v45 }
 0x210   : > { %v2466_v57 = vpop.f32.mrf.mxu0  ;;  %v11484_v23 = vpop.f32.mrf.mxu1 }
 0x211   : > { %15632 = vst [vmem:[#allocation64_spill] sm:$0xff] %v11481_v51  ;;  %v11488_v15 = vpack.c.bf16 %v2724_v56, %v2722_v13  ;;  %v2587_v16 = vadd.f32 %v2466_v57, %v11132_v7  ;;  %v2662_v5 = vadd.f32 %v11304_v38, %v2586_v14  ;;  %v8885_v7 = vld [vmem:[%s10668_s13 + $0x3e0] sm:$0xff]  ;;  %v2725_v45 = vmax.f32 %v2661_v28, 0.0 }
 0x212   : > { %v2468_v18 = vpop.f32.mrf.mxu0  ;;  %v11492_v42 = vpop.f32.mrf.mxu1 }
 0x213   : > { %15634 = vst [vmem:[#allocation66_spill] sm:$0xff] %v11488_v15  ;;  %v2663_v22 = vadd.f32 %v11295_v58, %v2587_v16  ;;  %v2588_v33 = vadd.f32 %v2468_v18, %v11140_v35  ;;  %v8886_v35 = vld [vmem:[%s10668_s13 + $0x3e8] sm:$0xff]  ;;  %v8889_v16 = vld [vmem:[%s10668_s13 + $0x400] sm:$0xff] }
 0x214   : > { %v2472_v39 = vpop.f32.mrf.mxu0  ;;  %v11497_v48 = vpop.f32.mrf.mxu1  ;;  %9117 = vmatmul.mubr.msk.bf16.gmra.mxu0 %vm1770_vm1, %v11093_v29  ;;  %9132 = vmatmul.mubr.msk.bf16.gmra.mxu1 %vm1770_vm1, %v11486_v40  ;;  %v8890_v18 = vld [vmem:[%s10668_s13 + $0x408] sm:$0xff]  ;;  %v2726_v29 = vmax.f32 %v2662_v5, 0.0 }
 0x215   : > { %15635 = vst [vmem:[#allocation67_spill] sm:$0xff] %v11497_v48  ;;  %v2727_v6 = vmax.f32 %v2663_v22, 0.0  ;;  %v2664_v37 = vadd.f32 %v11304_v38, %v2588_v33  ;;  %v2589_v13 = vadd.f32 %v2472_v39, %v11152_v27  ;;  %3451 = vmatprep.mubr.bf16.mxu1 %v15589_v62  ;;  %3760 = vmatprep.mubr.bf16.mxu0 %v15589_v62 }
 0x216   : > { %v2474_v56 = vpop.f32.mrf.mxu0  ;;  %v11511_v14 = vpop.f32.mrf.mxu1  ;;  %v11518_v27 = vpack.c.bf16 %v8886_v35, %v8885_v7  ;;  %v3664_v39 = vpack.c.bf16 %v8890_v18, %v8889_v16  ;;  %v8892_v18 = vld [vmem:[%s10668_s13 + $0x418] sm:$0xff] }
 0x217   : > { %15636 = vst [vmem:[#allocation68_spill] sm:$0xff] %v11511_v14  ;;  %v11513_v57 = vpack.c.bf16 %v2727_v6, %v2725_v45  ;;  %v2728_v51 = vmax.f32 %v2664_v37, 0.0  ;;  %v2590_v28 = vadd.f32 %v2474_v56, %v11158_v8  ;;  %v2665_v40 = vadd.f32 %v11295_v58, %v2589_v13 }
 0x218   : > { %v2476_v22 = vpop.f32.mrf.mxu0  ;;  %v11516_v33 = vpop.f32.mrf.mxu1 }
 0x219   : > { %15637 = vst [vmem:[#allocation69_spill] sm:$0xff] %v11513_v57  ;;  %v11520_v15 = vpack.c.bf16 %v2728_v51, %v2726_v29  ;;  %v2591_v48 = vadd.f32 %v2476_v22, %v11162_v59  ;;  %v2666_v8 = vadd.f32 %v11304_v38, %v2590_v28  ;;  %v8887_v59 = vld [vmem:[%s10668_s13 + $0x3f0] sm:$0xff]  ;;  %v2729_v51 = vmax.f32 %v2665_v40, 0.0 }
 0x21a   : > { %v2478_v14 = vpop.f32.mrf.mxu0  ;;  %v11524_v5 = vpop.f32.mrf.mxu1  ;;  %v15640_v29 = vld [vmem:[#allocation5_spill] sm:$0xff] }
 0x21b   : > { %15638 = vst [vmem:[#allocation70_spill] sm:$0xff] %v11520_v15  ;;  %v2667_v45 = vadd.f32 %v11295_v58, %v2591_v48  ;;  %v2592_v7 = vadd.f32 %v2478_v14, %v11164_v36  ;;  %v8888_v36 = vld [vmem:[%s10668_s13 + $0x3f8] sm:$0xff]  ;;  %v8891_v48 = vld [vmem:[%s10668_s13 + $0x410] sm:$0xff]  ;;  %v2730_v28 = vmax.f32 %v2666_v8, 0.0 }
 0x21c   : > { %v2482_v6 = vpop.f32.mrf.mxu0  ;;  %v11529_v37 = vpop.f32.mrf.mxu1  ;;  %9133 = vmatmul.mubr.msk.bf16.gmra.mxu1 %vm1770_vm1, %v11518_v27  ;;  %9136 = vmatmul.mubr.msk.bf16.vlgmr.msra.gmra.mxu0 %vm1770_vm1, %v3664_v39  ;;  %v15642_v39 = vld [vmem:[#allocation26_spill] sm:$0xff]  ;;  %v11553_v57 = vpack.c.bf16 %v8888_v36, %v8887_v59  ;;  %v3665_v15 = vpack.c.bf16 %v8892_v18, %v8891_v48  ;;  %v15647_v36 = vld [vmem:[#allocation29_spill] sm:$0xff] }
 0x21d   : > { %v2731_v13 = vmax.f32 %v2667_v45, 0.0  ;;  %v2668_v35 = vadd.f32 %v11304_v38, %v2592_v7  ;;  %v2593_v16 = vadd.f32 %v2482_v6, %v11170_v9  ;;  %3461 = vmatprep.mubr.bf16.mxu1 %v15589_v62  ;;  %3770 = vmatprep.mubr.bf16.mxu0 %v15589_v62  ;;  %v9954_v9 = vld [vmem:[%s15319_s1 + $0x44] ss:$8 sps:$4 sm:$0xff]  }
 0x21e   : > { %v2484_v56 = vpop.f32.mrf.mxu0  ;;  %v11542_v14 = vpop.f32.mrf.mxu1  ;;  %4191 = vmatpush1.bf16.msra.mxu0 %v15640_v29  ;;  %15643 = vst [vmem:[#allocation26_spill] sm:$0xff] %v11553_v57 }
 0x21f   : > { %15639 = vst [vmem:[#allocation71_spill] sm:$0xff] %v11542_v14  ;;  %v11545_v22 = vpack.c.bf16 %v2731_v13, %v2729_v51  ;;  %v2732_v40 = vmax.f32 %v2668_v35, 0.0  ;;  %v2594_v45 = vadd.f32 %v2484_v56, %v15642_v39  ;;  %4192 = vmatprep.subr.bf16.mxu0 %v9954_v9  ;;  %v2669_v8 = vadd.f32 %v11295_v58, %v2593_v16  ;;  %v15645_v51 = vld [vmem:[#allocation28_spill] sm:$0xff]  ;;  %v9956_v16 = vld [vmem:[%s15319_s1 + $0x14] ss:$8 sps:$4 sm:$0x3f]  }
 0x220   : > { %v2486_v7 = vpop.f32.mrf.mxu0  ;;  %v11551_v6 = vpop.f32.mrf.mxu1  ;;  %v9955_v56 = vld [vmem:[%s15319_s1 + $0x40] ss:$8 sps:$4 sm:$0xff]  }
 0x221   : > { %15641 = vst [vmem:[#allocation72_spill] sm:$0xff] %v11545_v22  ;;  %v11555_v14 = vpack.c.bf16 %v2732_v40, %v2730_v28  ;;  %v2595_v13 = vadd.f32 %v2486_v7, %v15645_v51  ;;  %v2670_v39 = vadd.f32 %v11304_v38, %v2594_v45  ;;  %v2733_v40 = vmax.f32 %v2669_v8, 0.0  ;;  %v15649_v7 = vld [vmem:[#allocation30_spill] sm:$0xff] }
 0x222   : > { %v2488_v35 = vpop.f32.mrf.mxu0  ;;  %v11559_v22 = vpop.f32.mrf.mxu1  ;;  %4193 = vmatpush1.bf16.msra.mxu0 %v9955_v56 }
 0x223   : > { %15644 = vst [vmem:[#allocation73_spill] sm:$0xff] %v11555_v14  ;;  %15646 = vst [vmem:[#allocation28_spill] sm:$0xff] %v11559_v22  ;;  %v2671_v59 = vadd.f32 %v11295_v58, %v2595_v13  ;;  %v2596_v48 = vadd.f32 %v2488_v35, %v15647_v36  ;;  %9203 = vmatprep.subr.msk.bf16.mxu0 %vm1819_vm0, %v9956_v16  ;;  %v8893_v13 = vld [vmem:[%s10668_s13 + $0x420] sm:$0xff]  ;;  %v8894_v35 = vld [vmem:[%s10668_s13 + $0x428] sm:$0xff]  ;;  %v2734_v16 = vmax.f32 %v2670_v39, 0.0 }
 0x224   : > { %v2492_v18 = vpop.f32.mrf.mxu0  ;;  %v11571_v28 = vpop.f32.mrf.mxu1  ;;  %9134 = vmatmul.mubr.msk.bf16.gmra.mxu1 %vm1770_vm1, %v11553_v57  ;;  %9137 = vmatmul.mubr.msk.bf16.gmra.mxu0 %vm1770_vm1, %v3665_v15  ;;  %v15654_v57 = vld [vmem:[#allocation32_spill] sm:$0xff] }
 0x225   : > { %15648 = vst [vmem:[#allocation29_spill] sm:$0xff] %v11571_v28  ;;  %v2735_v45 = vmax.f32 %v2671_v59, 0.0  ;;  %v2672_v9 = vadd.f32 %v11304_v38, %v2596_v48  ;;  %v2597_v51 = vadd.f32 %v2492_v18, %v15649_v7  ;;  %3780 = vmatprep.mubr.bf16.mxu0 %v15589_v62  ;;  %3953 = vmatprep.mubr.bf16.mxu1 %v15589_v62 }
 0x226   : > { %v2494_v56 = vpop.f32.mrf.mxu0  ;;  %v11582_v36 = vpop.f32.mrf.mxu1  ;;  %v3666_v48 = vpack.c.bf16 %v8894_v35, %v8893_v13  ;;  %v15659_v35 = vld [vmem:[#allocation34_spill] sm:$0xff] }
 0x227   : > { %15650 = vst [vmem:[#allocation30_spill] sm:$0xff] %v11582_v36  ;;  %v11584_v14 = vpack.c.bf16 %v2735_v45, %v2733_v40  ;;  %v2736_v29 = vmax.f32 %v2672_v9, 0.0  ;;  %v2598_v15 = vadd.f32 %v2494_v56, %v11205_v60  ;;  %v2673_v7 = vadd.f32 %v11295_v58, %v2597_v51  ;;  %v15656_v60 = vld [vmem:[#allocation33_spill] sm:$0xff] }
 0x228   : > { %v2496_v8 = vpop.f32.mrf.mxu0  ;;  %v11587_v59 = vpop.f32.mrf.mxu1 }
 0x229   : > { %15651 = vst [vmem:[#allocation74_spill] sm:$0xff] %v11584_v14  ;;  %15652 = vst [vmem:[#allocation75_spill] sm:$0xff] %v11587_v59  ;;  %v11589_v18 = vpack.c.bf16 %v2736_v29, %v2734_v16  ;;  %v2599_v28 = vadd.f32 %v2496_v8, %v15654_v57  ;;  %v2674_v39 = vadd.f32 %v11304_v38, %v2598_v15  ;;  %v15658_v29 = vld [vmem:[#allocation25_spill] sm:$0xff]  ;;  %v2737_v57 = vmax.f32 %v2673_v7, 0.0 }
 0x22a   : > { %v2498_v22 = vpop.f32.mrf.mxu0  ;;  %v11593_v36 = vpop.f32.mrf.mxu1 }
 0x22b   : > { %15653 = vst [vmem:[#allocation76_spill] sm:$0xff] %v11589_v18  ;;  %15655 = vst [vmem:[#allocation32_spill] sm:$0xff] %v11593_v36  ;;  %v2675_v40 = vadd.f32 %v11295_v58, %v2599_v28  ;;  %v2600_v45 = vadd.f32 %v2498_v22, %v15656_v60  ;;  %v8895_v28 = vld [vmem:[%s10668_s13 + $0x430] sm:$0xff]  ;;  %v8896_v22 = vld [vmem:[%s10668_s13 + $0x438] sm:$0xff] }
 0x22c   : > { %v2502_v9 = vpop.f32.mrf.mxu0  ;;  %v11598_v56 = vpop.f32.mrf.mxu1  ;;  %9138 = vmatmul.mubr.msk.bf16.gmra.mxu0 %vm1770_vm1, %v3666_v48  ;;  %9153 = vmatmul.mubr.msk.bf16.vlgmr.msra.gmra.mxu1 %vm1770_vm1, %v15658_v29  ;;  %v15661_v60 = vld [vmem:[#allocation3_spill] sm:$0xff]  ;;  %v2738_v48 = vmax.f32 %v2674_v39, 0.0  ;;  %v15665_v36 = vld [vmem:[#allocation36_spill] sm:$0xff] }
 0x22d   : > { %15657 = vst [vmem:[#allocation33_spill] sm:$0xff] %v11598_v56  ;;  %v2739_v51 = vmax.f32 %v2675_v40, 0.0  ;;  %v2676_v13 = vadd.f32 %v11304_v38, %v2600_v45  ;;  %v2601_v16 = vadd.f32 %v2502_v9, %v15659_v35  ;;  %3790 = vmatprep.mubr.bf16.mxu0 %v15589_v62  ;;  %3963 = vmatprep.mubr.bf16.mxu1 %v15589_v62  ;;  %v15663_v45 = vld [vmem:[#allocation22_spill] sm:$0xff]  ;;  %v15667_v39 = vld [vmem:[#allocation23_spill] sm:$0xff] }
 0x22e   : > { %v2504_v15 = vpop.f32.mrf.mxu0  ;;  %v11609_v8 = vpop.f32.mrf.mxu1  ;;  %4864 = vmatpush1.bf16.msra.mxu1 %v15661_v60  ;;  %v3667_v35 = vpack.c.bf16 %v8896_v22, %v8895_v28  ;;  %v15669_v28 = vld [vmem:[#allocation24_spill] sm:$0xff] }
 0x22f   : > { %15660 = vst [vmem:[#allocation25_spill] sm:$0xff] %v11609_v8  ;;  %v11612_v14 = vpack.c.bf16 %v2739_v51, %v2737_v57  ;;  %v2740_v7 = vmax.f32 %v2676_v13, 0.0  ;;  %v2602_v40 = vadd.f32 %v2504_v15, %v11223_v49  ;;  %4865 = vmatprep.subr.bf16.mxu1 %v15663_v45  ;;  %v2677_v56 = vadd.f32 %v11295_v58, %v2601_v16  ;;  %v15668_v51 = vld [vmem:[#allocation37_spill] sm:$0xff] }
 0x230   : > { %v2506_v9 = vpop.f32.mrf.mxu0  ;;  %v11616_v29 = vpop.f32.mrf.mxu1 }
 0x231   : > { %15662 = vst [vmem:[#allocation34_spill] sm:$0xff] %v11612_v14  ;;  %v11618_v18 = vpack.c.bf16 %v2740_v7, %v2738_v48  ;;  %v2603_v8 = vadd.f32 %v2506_v9, %v15665_v36  ;;  %v2678_v49 = vadd.f32 %v11304_v38, %v2602_v40  ;;  %v15671_v36 = vld [vmem:[#allocation27_spill] sm:$0xff]  ;;  %v2741_v15 = vmax.f32 %v2677_v56, 0.0  ;;  %v15672_v40 = vld [vmem:[#allocation38_spill] sm:$0xff] }
 0x232   : > { %v2508_v59 = vpop.f32.mrf.mxu0  ;;  %v11622_v60 = vpop.f32.mrf.mxu1  ;;  %4866 = vmatpush1.bf16.msra.mxu1 %v15667_v39 }
 0x233   : > { %15664 = vst [vmem:[#allocation3_spill] sm:$0xff] %v11618_v18  ;;  %15666 = vst [vmem:[#allocation22_spill] sm:$0xff] %v11622_v60  ;;  %v2679_v57 = vadd.f32 %v11295_v58, %v2603_v8  ;;  %v2604_v13 = vadd.f32 %v2508_v59, %v15668_v51  ;;  %9220 = vmatprep.subr.msk.bf16.mxu1 %vm1819_vm0, %v15669_v28  ;;  %v8897_v59 = vld [vmem:[%s10668_s13 + $0x440] sm:$0xff]  ;;  %v8898_v8 = vld [vmem:[%s10668_s13 + $0x448] sm:$0xff]  ;;  %v2742_v51 = vmax.f32 %v2678_v49, 0.0 }
 0x234   : > { %v2512_v22 = vpop.f32.mrf.mxu0  ;;  %v11630_v16 = vpop.f32.mrf.mxu1  ;;  %9139 = vmatmul.mubr.msk.bf16.gmra.mxu0 %vm1770_vm1, %v3667_v35  ;;  %9154 = vmatmul.mubr.msk.bf16.gmra.mxu1 %vm1770_vm1, %v15671_v36  ;;  %v15675_v36 = vld [vmem:[#allocation39_spill] sm:$0xff]  ;;  %v15678_v18 = vld [vmem:[#allocation41_spill] sm:$0xff] }
 0x235   : > { %15670 = vst [vmem:[#allocation36_spill] sm:$0xff] %v11630_v16  ;;  %v2743_v48 = vmax.f32 %v2679_v57, 0.0  ;;  %v2680_v7 = vadd.f32 %v11304_v38, %v2604_v13  ;;  %v2605_v45 = vadd.f32 %v2512_v22, %v15672_v40  ;;  %3800 = vmatprep.mubr.bf16.mxu0 %v15589_v62  ;;  %3973 = vmatprep.mubr.bf16.mxu1 %v15589_v62 }
 0x236   : > { %v2514_v9 = vpop.f32.mrf.mxu0  ;;  %v11641_v39 = vpop.f32.mrf.mxu1  ;;  %v3668_v13 = vpack.c.bf16 %v8898_v8, %v8897_v59  ;;  %v15682_v59 = vld [vmem:[#allocation31_spill] sm:$0xff] }
 0x237   : > { %15673 = vst [vmem:[#allocation23_spill] sm:$0xff] %v11641_v39  ;;  %v11643_v35 = vpack.c.bf16 %v2743_v48, %v2741_v15  ;;  %v2744_v28 = vmax.f32 %v2680_v7, 0.0  ;;  %v2606_v56 = vadd.f32 %v2514_v9, %v15675_v36  ;;  %v2681_v40 = vadd.f32 %v11295_v58, %v2605_v45  ;;  %v15680_v48 = vld [vmem:[#allocation42_spill] sm:$0xff] }
 0x238   : > { %v2516_v57 = vpop.f32.mrf.mxu0  ;;  %v11646_v14 = vpop.f32.mrf.mxu1 }
 0x239   : > { %15674 = vst [vmem:[#allocation37_spill] sm:$0xff] %v11643_v35  ;;  %15676 = vst [vmem:[#allocation24_spill] sm:$0xff] %v11646_v14  ;;  %v11648_v22 = vpack.c.bf16 %v2744_v28, %v2742_v51  ;;  %v2607_v16 = vadd.f32 %v2516_v57, %v15678_v18  ;;  %v2682_v49 = vadd.f32 %v11304_v38, %v2606_v56  ;;  %v2745_v18 = vmax.f32 %v2681_v40, 0.0  ;;  %v15683_v51 = vld [vmem:[#allocation43_spill] sm:$0xff] }
 0x23a   : > { %v2518_v60 = vpop.f32.mrf.mxu0  ;;  %v11652_v39 = vpop.f32.mrf.mxu1 }
 0x23b   : > { %15677 = vst [vmem:[#allocation27_spill] sm:$0xff] %v11648_v22  ;;  %15679 = vst [vmem:[#allocation38_spill] sm:$0xff] %v11652_v39  ;;  %v2683_v15 = vadd.f32 %v11295_v58, %v2607_v16  ;;  %v2608_v7 = vadd.f32 %v2518_v60, %v15680_v48  ;;  %v8899_v16 = vld [vmem:[%s10668_s13 + $0x450] sm:$0xff]  ;;  %v8900_v60 = vld [vmem:[%s10668_s13 + $0x458] sm:$0xff]  ;;  %v2746_v48 = vmax.f32 %v2682_v49, 0.0 }
 0x23c   : > { %v2522_v9 = vpop.f32.mrf.mxu0  ;;  %v11657_v36 = vpop.f32.mrf.mxu1  ;;  %9140 = vmatmul.mubr.msk.bf16.gmra.mxu0 %vm1770_vm1, %v3668_v13  ;;  %9155 = vmatmul.mubr.msk.bf16.gmra.mxu1 %vm1770_vm1, %v15682_v59  ;;  %v15686_v59 = vld [vmem:[#allocation44_spill] sm:$0xff] }
 0x23d   : > { %15681 = vst [vmem:[#allocation39_spill] sm:$0xff] %v11657_v36  ;;  %v2747_v45 = vmax.f32 %v2683_v15, 0.0  ;;  %v2684_v8 = vadd.f32 %v11304_v38, %v2608_v7  ;;  %v2609_v28 = vadd.f32 %v2522_v9, %v15683_v51  ;;  %3810 = vmatprep.mubr.bf16.mxu0 %v15589_v62  ;;  %3983 = vmatprep.mubr.bf16.mxu1 %v15589_v62  ;;  %v15689_v36 = vld [vmem:[#allocation46_spill] sm:$0xff] }
 0x23e   : > { %v2524_v56 = vpop.f32.mrf.mxu0  ;;  %v11668_v57 = vpop.f32.mrf.mxu1  ;;  %v3669_v7 = vpack.c.bf16 %v8900_v60, %v8899_v16  ;;  %v15694_v60 = vld [vmem:[#allocation48_spill] sm:$0xff] }
 0x23f   : > { %15684 = vst [vmem:[#allocation41_spill] sm:$0xff] %v11668_v57  ;;  %v11670_v13 = vpack.c.bf16 %v2747_v45, %v2745_v18  ;;  %v2748_v35 = vmax.f32 %v2684_v8, 0.0  ;;  %v2610_v40 = vadd.f32 %v2524_v56, %v15686_v59  ;;  %v2685_v51 = vadd.f32 %v11295_v58, %v2609_v28  ;;  %v15691_v45 = vld [vmem:[#allocation47_spill] sm:$0xff] }
 0x240   : > { %v2526_v15 = vpop.f32.mrf.mxu0  ;;  %v11673_v22 = vpop.f32.mrf.mxu1 }
 0x241   : > { %15685 = vst [vmem:[#allocation42_spill] sm:$0xff] %v11670_v13  ;;  %15687 = vst [vmem:[#allocation31_spill] sm:$0xff] %v11673_v22  ;;  %v11675_v9 = vpack.c.bf16 %v2748_v35, %v2746_v48  ;;  %v2611_v39 = vadd.f32 %v2526_v15, %v15689_v36  ;;  %v2686_v49 = vadd.f32 %v11304_v38, %v2610_v40  ;;  %v15693_v35 = vld [vmem:[#allocation35_spill] sm:$0xff]  ;;  %v2749_v36 = vmax.f32 %v2685_v51, 0.0 }
 0x242   : > { %v2528_v14 = vpop.f32.mrf.mxu0  ;;  %v11679_v57 = vpop.f32.mrf.mxu1 }
 0x243   : > { %15688 = vst [vmem:[#allocation43_spill] sm:$0xff] %v11675_v9  ;;  %15690 = vst [vmem:[#allocation44_spill] sm:$0xff] %v11679_v57  ;;  %v2687_v18 = vadd.f32 %v11295_v58, %v2611_v39  ;;  %v2612_v8 = vadd.f32 %v2528_v14, %v15691_v45  ;;  %v8901_v39 = vld [vmem:[%s10668_s13 + $0x460] sm:$0xff]  ;;  %v8902_v14 = vld [vmem:[%s10668_s13 + $0x468] sm:$0xff]  ;;  %v2750_v45 = vmax.f32 %v2686_v49, 0.0 }
 0x244   : > { %v2532_v56 = vpop.f32.mrf.mxu0  ;;  %v11684_v59 = vpop.f32.mrf.mxu1  ;;  %9141 = vmatmul.mubr.msk.bf16.gmra.mxu0 %vm1770_vm1, %v3669_v7  ;;  %9156 = vmatmul.mubr.msk.bf16.gmra.mxu1 %vm1770_vm1, %v15693_v35  ;;  %v15697_v35 = vld [vmem:[#allocation49_spill] sm:$0xff] }
 0x245   : > { %15692 = vst [vmem:[#allocation46_spill] sm:$0xff] %v11684_v59  ;;  %v2751_v28 = vmax.f32 %v2687_v18, 0.0  ;;  %v2688_v16 = vadd.f32 %v11304_v38, %v2612_v8  ;;  %v2613_v48 = vadd.f32 %v2532_v56, %v15694_v60  ;;  %3820 = vmatprep.mubr.bf16.mxu0 %v15589_v62  ;;  %3993 = vmatprep.mubr.bf16.mxu1 %v15589_v62  ;;  %v15699_v59 = vld [vmem:[#allocation51_spill] sm:$0xff] }
 0x246   : > { %v2534_v40 = vpop.f32.mrf.mxu0  ;;  %v11695_v15 = vpop.f32.mrf.mxu1  ;;  %v3670_v8 = vpack.c.bf16 %v8902_v14, %v8901_v39  ;;  %v15704_v14 = vld [vmem:[#allocation53_spill] sm:$0xff] }
 0x247   : > { %15695 = vst [vmem:[#allocation47_spill] sm:$0xff] %v11695_v15  ;;  %v11697_v7 = vpack.c.bf16 %v2751_v28, %v2749_v36  ;;  %v2752_v13 = vmax.f32 %v2688_v16, 0.0  ;;  %v2614_v51 = vadd.f32 %v2534_v40, %v15697_v35  ;;  %v2689_v60 = vadd.f32 %v11295_v58, %v2613_v48  ;;  %v15701_v28 = vld [vmem:[#allocation52_spill] sm:$0xff] }
 0x248   : > { %v2536_v18 = vpop.f32.mrf.mxu0  ;;  %v11700_v9 = vpop.f32.mrf.mxu1 }
 0x249   : > { %15696 = vst [vmem:[#allocation35_spill] sm:$0xff] %v11697_v7  ;;  %v11702_v56 = vpack.c.bf16 %v2752_v13, %v2750_v45  ;;  %v2615_v57 = vadd.f32 %v2536_v18, %v15699_v59  ;;  %v2690_v49 = vadd.f32 %v11304_v38, %v2614_v51  ;;  %v15703_v13 = vld [vmem:[#allocation40_spill] sm:$0xff]  ;;  %v2753_v59 = vmax.f32 %v2689_v60, 0.0 }
 0x24a   : > { %v2538_v22 = vpop.f32.mrf.mxu0  ;;  %v11706_v15 = vpop.f32.mrf.mxu1 }
 0x24b   : > { %15698 = vst [vmem:[#allocation48_spill] sm:$0xff] %v11702_v56  ;;  %15700 = vst [vmem:[#allocation49_spill] sm:$0xff] %v11706_v15  ;;  %v2691_v36 = vadd.f32 %v11295_v58, %v2615_v57  ;;  %v2616_v16 = vadd.f32 %v2538_v22, %v15701_v28  ;;  %v8903_v57 = vld [vmem:[%s10668_s13 + $0x470] sm:$0xff]  ;;  %v8904_v22 = vld [vmem:[%s10668_s13 + $0x478] sm:$0xff]  ;;  %v2754_v28 = vmax.f32 %v2690_v49, 0.0 }
 0x24c   : > { %v2542_v40 = vpop.f32.mrf.mxu0  ;;  %v11711_v35 = vpop.f32.mrf.mxu1  ;;  %9142 = vmatmul.mubr.msk.bf16.gmra.mxu0 %vm1770_vm1, %v3670_v8  ;;  %9157 = vmatmul.mubr.msk.bf16.gmra.mxu1 %vm1770_vm1, %v15703_v13 }
 0x24d   : > { %15702 = vst [vmem:[#allocation51_spill] sm:$0xff] %v11711_v35  ;;  %v2755_v48 = vmax.f32 %v2691_v36, 0.0  ;;  %v2692_v39 = vadd.f32 %v11304_v38, %v2616_v16  ;;  %v2617_v45 = vadd.f32 %v2542_v40, %v15704_v14  ;;  %3830 = vmatprep.mubr.bf16.mxu0 %v15589_v62  ;;  %4003 = vmatprep.mubr.bf16.mxu1 %v15589_v62 }
 0x24e   : > { %v2544_v51 = vpop.f32.mrf.mxu0  ;;  %v11722_v18 = vpop.f32.mrf.mxu1  ;;  %v3671_v16 = vpack.c.bf16 %v8904_v22, %v8903_v57 }
 0x24f   : > { %15705 = vst [vmem:[#allocation52_spill] sm:$0xff] %v11722_v18  ;;  %v11724_v8 = vpack.c.bf16 %v2755_v48, %v2753_v59  ;;  %v2756_v7 = vmax.f32 %v2692_v39, 0.0  ;;  %v2618_v60 = vadd.f32 %v2544_v51, %v11301_v26  ;;  %v2693_v14 = vadd.f32 %v11295_v58, %v2617_v45  ;;  %v15708_v18 = vld [vmem:[#allocation18_spill] sm:$0xff] }
 0x250   : > { %v2546_v36 = vpop.f32.mrf.mxu0  ;;  %v11727_v13 = vpop.f32.mrf.mxu1  ;;  %v2267_v49 = vadd.f32 %v11317_v31, %v15708_v18 }
 0x251   : > { %15706 = vst [vmem:[#allocation40_spill] sm:$0xff] %v11724_v8  ;;  %v11729_v40 = vpack.c.bf16 %v2756_v7, %v2754_v28  ;;  %v2619_v56 = vadd.f32 %v2546_v36, %v11309_v4  ;;  %v2694_v26 = vadd.f32 %v11304_v38, %v2618_v60  ;;  %v15709_v7 = vld [vmem:[#allocation19_spill] sm:$0xff]  ;;  %v15710_v4 = vld [vmem:[#allocation45_spill] sm:$0xff]  ;;  %v2757_v22 = vmax.f32 %v2693_v14, 0.0 }
 0x252   : > { %v2548_v35 = vpop.f32.mrf.mxu0  ;;  %v11733_v15 = vpop.f32.mrf.mxu1  ;;  %v2269_v39 = vadd.f32 %v11329_v54, %v15709_v7  ;;  %v15711_v54 = vld [vmem:[#allocation20_spill] sm:$0xff] }
 0x253   : > { %15707 = vst [vmem:[#allocation53_spill] sm:$0xff] %v11729_v40  ;;  %v2695_v59 = vadd.f32 %v11295_v58, %v2619_v56  ;;  %v2620_v48 = vadd.f32 %v2548_v35, %v11314_v32  ;;  %v8905_v32 = vld [vmem:[%s10668_s13 + $0x480] sm:$0xff]  ;;  %v8906_v56 = vld [vmem:[%s10668_s13 + $0x488] sm:$0xff]  ;;  %v2271_v35 = vadd.f32 %v11334_v1, %v15711_v54  ;;  %v2758_v36 = vmax.f32 %v2694_v26, 0.0 }
 0x254   : > { %v2552_v45 = vpop.f32.mrf.mxu0  ;;  %v11742_v57 = vpop.f32.mrf.mxu1  ;;  %9143 = vmatmul.mubr.msk.bf16.gmra.mxu0 %vm1770_vm1, %v3671_v16  ;;  %9158 = vmatmul.mubr.msk.bf16.gmra.mxu1 %vm1770_vm1, %v15710_v4 }
 0x255   : > { %v2759_v31 = vmax.f32 %v2695_v59, 0.0  ;;  %v2696_v51 = vadd.f32 %v11304_v38, %v2620_v48  ;;  %v2621_v18 = vadd.f32 %v2552_v45, %v2267_v49  ;;  %3840 = vmatprep.mubr.bf16.mxu0 %v15589_v62  ;;  %4013 = vmatprep.mubr.bf16.mxu1 %v15589_v62  ;;  %v3672_v49 = vpack.c.bf16 %v8906_v56, %v8905_v32  ;;  %v15713_v45 = vld [vmem:[#allocation21_spill] sm:$0xff] }
 0x256   : > { %v2554_v28 = vpop.f32.mrf.mxu0  ;;  %v11754_v60 = vpop.f32.mrf.mxu1  ;;  %v2273_v4 = vadd.f32 %v11342_v46, %v15713_v45  ;;  %v15715_v46 = vld [vmem:[#allocation50_spill] sm:$0xff] }
 0x257   : > { %v11756_v16 = vpack.c.bf16 %v2759_v31, %v2757_v22  ;;  %v2760_v14 = vmax.f32 %v2696_v51, 0.0  ;;  %v2622_v59 = vadd.f32 %v2554_v28, %v2269_v39  ;;  %v2697_v40 = vadd.f32 %v11295_v58, %v2621_v18  ;;  %v8907_v28 = vld [vmem:[%s10668_s13 + $0x490] sm:$0xff] }
 0x258   : > { %v2556_v7 = vpop.f32.mrf.mxu0  ;;  %v11758_v48 = vpop.f32.mrf.mxu1 }
 0x259   : > { %15712 = vst [vmem:[#allocation18_spill] sm:$0xff] %v11756_v16  ;;  %v11762_v8 = vpack.c.bf16 %v2760_v14, %v2758_v36  ;;  %v2623_v1 = vadd.f32 %v2556_v7, %v2271_v35  ;;  %v2698_v22 = vadd.f32 %v11304_v38, %v2622_v59  ;;  %v2761_v18 = vmax.f32 %v2697_v40, 0.0  ;;  %v8908_v36 = vld [vmem:[%s10668_s13 + $0x498] sm:$0xff] }
 0x25a   : > { %v2558_v54 = vpop.f32.mrf.mxu0  ;;  %v11765_v26 = vpop.f32.mrf.mxu1 }
 0x25b   : > { %15714 = vst [vmem:[#allocation19_spill] sm:$0xff] %v11762_v8  ;;  %v2699_v39 = vadd.f32 %v11295_v58, %v2623_v1  ;;  %v2624_v31 = vadd.f32 %v2558_v54, %v2273_v4  ;;  %v2762_v7 = vmax.f32 %v2698_v22, 0.0  ;;  %v3673_v1 = vpack.c.bf16 %v8908_v36, %v8907_v28  ;;  %v8909_v22 = vld [vmem:[%s10668_s13 + $0x4a0] sm:$0xff] }
 0x25c   : > { %v11769_v51 = vpop.f32.mrf.mxu1  ;;  %v3056_v32 = vpop.f32.mrf.mxu0  ;;  %9144 = vmatmul.mubr.msk.bf16.gmra.mxu0 %vm1770_vm1, %v3672_v49  ;;  %9159 = vmatmul.mubr.msk.bf16.gmra.mxu1 %vm1770_vm1, %v15715_v46  ;;  %v1419_v28 = vld [vmem:[%s15327_s9] sm:$0xff] }
 0x25d   : > { %v2763_v56 = vmax.f32 %v2699_v39, 0.0  ;;  %v2700_v35 = vadd.f32 %v11304_v38, %v2624_v31  ;;  %3850 = vmatprep.mubr.bf16.mxu0 %v15589_v62  ;;  %4023 = vmatprep.mubr.bf16.mxu1 %v15589_v62 }
 0x25e   : > { %v11779_v14 = vpop.f32.mrf.mxu1  ;;  %v3058_v59 = vpop.f32.mrf.mxu0  ;;  %4565 = vperm.xlu0 %9853, %v1419_v28  }
 0x25f   : > { %v11781_v49 = vpack.c.bf16 %v2763_v56, %v2761_v18  ;;  %v2764_v45 = vmax.f32 %v2700_v35, 0.0  ;;  %v8910_v18 = vld [vmem:[%s10668_s13 + $0x4a8] sm:$0xff] }
 0x260   : > { %v11783_v4 = vpop.f32.mrf.mxu1  ;;  %v3060_v40 = vpop.f32.mrf.mxu0 }
 0x261   : > { %15716 = vst [vmem:[#allocation45_spill] sm:$0xff] %v11781_v49  ;;  %15717 = vst [vmem:[#allocation20_spill] sm:$0xff] %v11783_v4  ;;  %v11785_v54 = vpack.c.bf16 %v2764_v45, %v2762_v7  ;;  %v3674_v45 = vpack.c.bf16 %v8910_v18, %v8909_v22  ;;  %v3057_v49 = vadd.f32 %v3056_v32, %v11347_v50  ;;  %v8911_v18 = vld [vmem:[%s10668_s13 + $0x4b0] sm:$0xff]  ;;  %v8912_v50 = vld [vmem:[%s10668_s13 + $0x4b8] sm:$0xff] }
 0x262   : > { %v11787_v39 = vpop.f32.mrf.mxu1  ;;  %v3062_v31 = vpop.f32.mrf.mxu0 }
 0x263   : > { %15718 = vst [vmem:[#allocation21_spill] sm:$0xff] %v11785_v54  ;;  %15719 = vst [vmem:[#allocation50_spill] sm:$0xff] %v11787_v39  ;;  %v1420_v54 = vld [vmem:[%s15327_s9 + $0x8] sm:$0xff] }
 0x264   : > { %v11789_v46 = vpop.f32.mrf.mxu1  ;;  %v3066_v16 = vpop.f32.mrf.mxu0  ;;  %9145 = vmatmul.mubr.msk.bf16.gmra.mxu0 %vm1770_vm1, %v3673_v1  ;;  %9160 = vmatmul.mubr.msk.bf16.gmra.mxu1 %vm1770_vm1, %v11306_v11 }
 0x265   : > { %15720 = vst [vmem:[#allocation77_spill] sm:$0xff] %v11789_v46  ;;  %3860 = vmatprep.mubr.bf16.mxu0 %v15589_v62  ;;  %4033 = vmatprep.mubr.bf16.mxu1 %v15589_v62 }
 0x266   : > { %v11798_v56 = vpop.f32.mrf.mxu1  ;;  %v3068_v35 = vpop.f32.mrf.mxu0  ;;  %4570 = vperm.xlu0 %9853, %v1420_v54  }
 0x267   : > { %15721 = vst [vmem:[#allocation78_spill] sm:$0xff] %v11798_v56 }
 0x268   : > { %v11803_v36 = vpop.f32.mrf.mxu1  ;;  %v3070_v7 = vpop.f32.mrf.mxu0 }
 0x269   : > { %15722 = vst [vmem:[#allocation79_spill] sm:$0xff] %v11803_v36  ;;  %v3059_v36 = vadd.f32 %v3058_v59, %v11359_v3  ;;  %v3675_v59 = vpack.c.bf16 %v8912_v50, %v8911_v18  ;;  %v1422_v18 = vld [vmem:[%s15327_s9 + $0x18] sm:$0xff]  ;;  %v3069_v50 = vadd.f32 %v3068_v35, %v11389_v24 }
 0x26a   : > { %v11805_v11 = vpop.f32.mrf.mxu1  ;;  %v3072_v1 = vpop.f32.mrf.mxu0 }
 0x26b   : > { %15723 = vst [vmem:[#allocation80_spill] sm:$0xff] %v11805_v11  ;;  %v3061_v11 = vadd.f32 %v3060_v40, %v11364_v2  ;;  %v3067_v2 = vadd.f32 %v3066_v16, %v11377_v25  ;;  %v3073_v24 = vadd.f32 %v3072_v1, %v11402_v17  ;;  %v1424_v17 = vld [vmem:[%s15327_s9 + $0x28] sm:$0xff] }
 0x26c   : > { %v3076_v8 = vpop.f32.mrf.mxu0  ;;  %v3313_v56 = vpop.f32.mrf.mxu1  ;;  %9146 = vmatmul.mubr.msk.bf16.gmra.mxu0 %vm1770_vm1, %v3674_v45  ;;  %9161 = vmatmul.mubr.msk.bf16.gmra.mxu1 %vm1770_vm1, %v11336_v20  ;;  %v1421_v20 = vld [vmem:[%s15327_s9 + $0x10] sm:$0xff] }
 0x26d   : > { %v3472_v22 = vadd.f32 %v3313_v56, %v3057_v49  ;;  %3870 = vmatprep.mubr.bf16.mxu0 %v15589_v62  ;;  %4043 = vmatprep.mubr.bf16.mxu1 %v15589_v62  ;;  %v3063_v49 = vadd.f32 %v3062_v31, %v11372_v43 }
 0x26e   : > { %v11819_v32 = vpop.f32.mrf.mxu0  ;;  %v3315_v28 = vpop.f32.mrf.mxu1  ;;  %4575 = vperm.xlu1 %9854, %v1421_v20  }
 0x26f   : > { %v3473_v46 = vadd.f32 %v3315_v28, %v3059_v36  ;;  %v3536_v56 = vadd.f32 %v3472_v22, %v11295_v58  ;;  %v8914_v22 = vld [vmem:[%s10668_s13 + $0x4c8] sm:$0xff] }
 0x270   : > { %v11825_v45 = vpop.f32.mrf.mxu0  ;;  %v3317_v3 = vpop.f32.mrf.mxu1 }
 0x271   : > { %v3474_v39 = vadd.f32 %v3317_v3, %v3061_v11  ;;  %v3537_v40 = vadd.f32 %v3473_v46, %v11304_v38  ;;  %v3600_v11 = vmax.f32 %v3536_v56, 0.0 }
 0x272   : > { %v11829_v4 = vpop.f32.mrf.mxu0  ;;  %v3319_v54 = vpop.f32.mrf.mxu1  ;;  %4580 = vperm.xlu1 %9854, %v1422_v18  }
 0x273   : > { %v3538_v36 = vadd.f32 %v3474_v39, %v11295_v58  ;;  %v3475_v28 = vadd.f32 %v3319_v54, %v3063_v49  ;;  %v8913_v39 = vld [vmem:[%s10668_s13 + $0x4c0] sm:$0xff] }
 0x274   : > { %v11837_v43 = vpop.f32.mrf.mxu0  ;;  %v3323_v31 = vpop.f32.mrf.mxu1  ;;  %9147 = vmatmul.mubr.msk.bf16.gmra.mxu0 %vm1770_vm1, %v3675_v59  ;;  %9162 = vmatmul.mubr.msk.bf16.gmra.mxu1 %vm1770_vm1, %v11366_v0  ;;  %v3071_v59 = vadd.f32 %v3070_v7, %v11394_v53  ;;  %v3601_v0 = vmax.f32 %v3537_v40, 0.0  ;;  %v1423_v54 = vld [vmem:[%s15327_s9 + $0x20] sm:$0xff] }
 0x275   : > { %v3602_v25 = vmax.f32 %v3538_v36, 0.0  ;;  %v3539_v16 = vadd.f32 %v3475_v28, %v11304_v38  ;;  %v3476_v46 = vadd.f32 %v3323_v31, %v3067_v2  ;;  %3880 = vmatprep.mubr.bf16.mxu0 %v15589_v62  ;;  %4053 = vmatprep.mubr.bf16.mxu1 %v15589_v62  ;;  %v3676_v31 = vpack.c.bf16 %v8914_v22, %v8913_v39 }
 0x276   : > { %v11848_v20 = vpop.f32.mrf.mxu0  ;;  %v3325_v3 = vpop.f32.mrf.mxu1  ;;  %4585 = vperm.xlu0 %9853, %v1423_v54   ;;  %4590 = vperm.xlu1 %9854, %v1424_v17  }
 0x277   : > { %v11851_v49 = vpack.c.bf16 %v3602_v25, %v3600_v11  ;;  %v3603_v56 = vmax.f32 %v3539_v16, 0.0  ;;  %v3477_v2 = vadd.f32 %v3325_v3, %v3069_v50  ;;  %v3540_v53 = vadd.f32 %v3476_v46, %v11295_v58  ;;  %v8915_v3 = vld [vmem:[%s10668_s13 + $0x4d0] sm:$0xff] }
 0x278   : > { %v11856_v36 = vpop.f32.mrf.mxu0  ;;  %v3327_v28 = vpop.f32.mrf.mxu1  ;;  %v3077_v11 = vadd.f32 %v3076_v8, %v11407_v12 }
 0x279   : > { %15724 = vst [vmem:[#allocation81_spill] sm:$0xff] %v11851_v49  ;;  %v11859_v35 = vpack.c.bf16 %v3603_v56, %v3601_v0  ;;  %v3478_v7 = vadd.f32 %v3327_v28, %v3071_v59  ;;  %v3541_v25 = vadd.f32 %v3477_v2, %v11304_v38  ;;  %v3604_v22 = vmax.f32 %v3540_v53, 0.0  ;;  %v8916_v59 = vld [vmem:[%s10668_s13 + $0x4d8] sm:$0xff] }
 0x27a   : > { %v11862_v40 = vpop.f32.mrf.mxu0  ;;  %v3329_v18 = vpop.f32.mrf.mxu1  ;;  %v3079_v0 = vadd.f32 %v11819_v32, %v11419_v19  ;;  %v3677_v19 = vpack.c.bf16 %v8916_v59, %v8915_v3  ;;  %v3083_v32 = vadd.f32 %v11829_v4, %v11432_v61  ;;  %v1426_v61 = vld [vmem:[%s15327_s9 + $0x38] sm:$0xff]  ;;  %v8917_v3 = vld [vmem:[%s10668_s13 + $0x4e0] sm:$0xff]  ;;  %v8918_v59 = vld [vmem:[%s10668_s13 + $0x4e8] sm:$0xff] }
 0x27b   : > { %15725 = vst [vmem:[#allocation82_spill] sm:$0xff] %v11859_v35  ;;  %v3542_v16 = vadd.f32 %v3478_v7, %v11295_v58  ;;  %v3479_v39 = vadd.f32 %v3329_v18, %v3073_v24  ;;  %v3605_v2 = vmax.f32 %v3541_v25, 0.0  ;;  %v1425_v24 = vld [vmem:[%s15327_s9 + $0x30] sm:$0xff]  ;;  %4600 = vperm.xlu1 %9854, %v1426_v61  }
 0x27c   : > { %v11870_v1 = vpop.f32.mrf.mxu0  ;;  %v3333_v46 = vpop.f32.mrf.mxu1  ;;  %9148 = vmatmul.mubr.msk.bf16.gmra.mxu0 %vm1770_vm1, %v3676_v31  ;;  %9163 = vmatmul.mubr.msk.bf16.gmra.mxu1 %vm1770_vm1, %v11396_v44  ;;  %v3081_v44 = vadd.f32 %v11825_v45, %v11424_v41 }
 0x27d   : > { %v3606_v12 = vmax.f32 %v3542_v16, 0.0  ;;  %v3543_v8 = vadd.f32 %v3479_v39, %v11304_v38  ;;  %v3480_v50 = vadd.f32 %v3333_v46, %v3077_v11  ;;  %3890 = vmatprep.mubr.bf16.mxu0 %v15589_v62  ;;  %4063 = vmatprep.mubr.bf16.mxu1 %v15589_v62  ;;  %v3087_v39 = vadd.f32 %v11837_v43, %v11437_v55 }
 0x27e   : > { %v11882_v56 = vpop.f32.mrf.mxu0  ;;  %v3335_v54 = vpop.f32.mrf.mxu1  ;;  %4595 = vperm.xlu0 %9853, %v1425_v24  }
 0x27f   : > { %v11886_v28 = vpack.c.bf16 %v3606_v12, %v3604_v22  ;;  %v3607_v31 = vmax.f32 %v3543_v8, 0.0  ;;  %v3481_v53 = vadd.f32 %v3335_v54, %v3079_v0  ;;  %v3544_v41 = vadd.f32 %v3480_v50, %v11295_v58 }
 0x280   : > { %v11891_v7 = vpop.f32.mrf.mxu0  ;;  %v3337_v18 = vpop.f32.mrf.mxu1  ;;  %v3089_v0 = vadd.f32 %v11848_v20, %v11449_v34  ;;  %v3678_v34 = vpack.c.bf16 %v8918_v59, %v8917_v3  ;;  %v3093_v20 = vadd.f32 %v11862_v40, %v11462_v30  ;;  %v1428_v30 = vld [vmem:[%s15327_s9 + $0x48] sm:$0xff] }
 0x281   : > { %15726 = vst [vmem:[#allocation83_spill] sm:$0xff] %v11886_v28  ;;  %v11895_v11 = vpack.c.bf16 %v3607_v31, %v3605_v2  ;;  %v3482_v45 = vadd.f32 %v3337_v18, %v3081_v44  ;;  %v3545_v17 = vadd.f32 %v3481_v53, %v11304_v38  ;;  %v3608_v8 = vmax.f32 %v3544_v41, 0.0  ;;  %v1427_v53 = vld [vmem:[%s15327_s9 + $0x40] sm:$0xff]  ;;  %4610 = vperm.xlu1 %9854, %v1428_v30  }
 0x282   : > { %v11898_v25 = vpop.f32.mrf.mxu0  ;;  %v3339_v16 = vpop.f32.mrf.mxu1  ;;  %4605 = vperm.xlu0 %9853, %v1427_v53  }
 0x283   : > { %15727 = vst [vmem:[#allocation84_spill] sm:$0xff] %v11895_v11  ;;  %v3546_v46 = vadd.f32 %v3482_v45, %v11295_v58  ;;  %v3483_v22 = vadd.f32 %v3339_v16, %v3083_v32  ;;  %v3609_v2 = vmax.f32 %v3545_v17, 0.0 }
 0x284   : > { %v11907_v4 = vpop.f32.mrf.mxu0  ;;  %v3343_v12 = vpop.f32.mrf.mxu1  ;;  %9149 = vmatmul.mubr.msk.bf16.gmra.mxu0 %vm1770_vm1, %v3677_v19  ;;  %9164 = vmatmul.mubr.msk.bf16.gmra.mxu1 %vm1770_vm1, %v11426_v21  ;;  %v3091_v21 = vadd.f32 %v11856_v36, %v11454_v63 }
 0x285   : > { %v3610_v55 = vmax.f32 %v3546_v46, 0.0  ;;  %v3547_v43 = vadd.f32 %v3483_v22, %v11304_v38  ;;  %v3484_v50 = vadd.f32 %v3343_v12, %v3087_v39  ;;  %3900 = vmatprep.mubr.bf16.mxu0 %v15589_v62  ;;  %4073 = vmatprep.mubr.bf16.mxu1 %v15589_v62  ;;  %v3097_v39 = vadd.f32 %v11870_v1, %v11467_v10 }
 0x286   : > { %v11919_v54 = vpop.f32.mrf.mxu0  ;;  %v3345_v44 = vpop.f32.mrf.mxu1 }
 0x287   : > { %v11923_v31 = vpack.c.bf16 %v3610_v55, %v3608_v8  ;;  %v3611_v24 = vmax.f32 %v3547_v43, 0.0  ;;  %v3485_v18 = vadd.f32 %v3345_v44, %v3089_v0  ;;  %v3548_v63 = vadd.f32 %v3484_v50, %v11295_v58  ;;  %v8919_v55 = vld [vmem:[%s10668_s13 + $0x4f0] sm:$0xff]  ;;  %v8920_v43 = vld [vmem:[%s10668_s13 + $0x4f8] sm:$0xff] }
 0x288   : > { %v11928_v19 = vpop.f32.mrf.mxu0  ;;  %v3347_v32 = vpop.f32.mrf.mxu1  ;;  %v3099_v50 = vadd.f32 %v11882_v56, %v11479_v52  ;;  %v3679_v52 = vpack.c.bf16 %v8920_v43, %v8919_v55  ;;  %v3103_v56 = vadd.f32 %v11898_v25, %v11492_v42  ;;  %v1430_v42 = vld [vmem:[%s15327_s9 + $0x58] sm:$0xff] }
 0x289   : > { %15728 = vst [vmem:[#allocation85_spill] sm:$0xff] %v11923_v31  ;;  %v11932_v41 = vpack.c.bf16 %v3611_v24, %v3609_v2  ;;  %v3486_v36 = vadd.f32 %v3347_v32, %v3091_v21  ;;  %v3549_v17 = vadd.f32 %v3485_v18, %v11304_v38  ;;  %v3612_v12 = vmax.f32 %v3548_v63, 0.0  ;;  %v1429_v2 = vld [vmem:[%s15327_s9 + $0x50] sm:$0xff]  ;;  %v15732_v63 = vld [vmem:[#allocation67_spill] sm:$0xff]  ;;  %4620 = vperm.xlu1 %9854, %v1430_v42  }
 0x28a   : > { %v11935_v45 = vpop.f32.mrf.mxu0  ;;  %v3349_v16 = vpop.f32.mrf.mxu1  ;;  %4615 = vperm.xlu0 %9853, %v1429_v2   ;;  %v1431_v2 = vld [vmem:[%s15327_s9 + $0x60] sm:$0xff] }
 0x28b   : > { %15729 = vst [vmem:[#allocation86_spill] sm:$0xff] %v11932_v41  ;;  %v3550_v46 = vadd.f32 %v3486_v36, %v11295_v58  ;;  %v3487_v22 = vadd.f32 %v3349_v16, %v3093_v20  ;;  %v3613_v0 = vmax.f32 %v3549_v17, 0.0  ;;  %v3107_v36 = vadd.f32 %v11907_v4, %v15732_v63 }
 0x28c   : > { %v11944_v40 = vpop.f32.mrf.mxu0  ;;  %v3353_v61 = vpop.f32.mrf.mxu1  ;;  %9150 = vmatmul.mubr.msk.bf16.gmra.mxu0 %vm1770_vm1, %v3678_v34  ;;  %9165 = vmatmul.mubr.msk.bf16.gmra.mxu1 %vm1770_vm1, %v11456_v47  ;;  %v3101_v47 = vadd.f32 %v11891_v7, %v11484_v23 }
 0x28d   : > { %v3614_v10 = vmax.f32 %v3550_v46, 0.0  ;;  %v3551_v1 = vadd.f32 %v3487_v22, %v11304_v38  ;;  %v3488_v8 = vadd.f32 %v3353_v61, %v3097_v39  ;;  %3910 = vmatprep.mubr.bf16.mxu0 %v15589_v62  ;;  %4083 = vmatprep.mubr.bf16.mxu1 %v15589_v62  ;;  %v15733_v22 = vld [vmem:[#allocation65_spill] sm:$0xff]  ;;  %v3117_v63 = vadd.f32 %v11944_v40, %v11529_v37 }
 0x28e   : > { %v11956_v3 = vpop.f32.mrf.mxu0  ;;  %v3355_v59 = vpop.f32.mrf.mxu1  ;;  %4625 = vperm.xlu0 %9853, %v1431_v2  }
 0x28f   : > { %v11960_v44 = vpack.c.bf16 %v3614_v10, %v3612_v12  ;;  %v3615_v21 = vmax.f32 %v3551_v1, 0.0  ;;  %v3489_v24 = vadd.f32 %v3355_v59, %v3099_v50  ;;  %v3552_v23 = vadd.f32 %v3488_v8, %v11295_v58  ;;  %v8921_v10 = vld [vmem:[%s10668_s13 + $0x500] sm:$0xff]  ;;  %v8922_v1 = vld [vmem:[%s10668_s13 + $0x508] sm:$0xff] }
 0x290   : > { %v11965_v53 = vpop.f32.mrf.mxu0  ;;  %v3357_v18 = vpop.f32.mrf.mxu1  ;;  %v15734_v8 = vld [vmem:[#allocation68_spill] sm:$0xff]  ;;  %v3111_v59 = vadd.f32 %v11928_v19, %v11516_v33 }
 0x291   : > { %15730 = vst [vmem:[#allocation87_spill] sm:$0xff] %v11960_v44  ;;  %v11969_v32 = vpack.c.bf16 %v3615_v21, %v3613_v0  ;;  %v3490_v7 = vadd.f32 %v3357_v18, %v3101_v47  ;;  %v3553_v16 = vadd.f32 %v3489_v24, %v11304_v38  ;;  %v3616_v30 = vmax.f32 %v3552_v23, 0.0 }
 0x292   : > { %v11972_v34 = vpop.f32.mrf.mxu0  ;;  %v3359_v20 = vpop.f32.mrf.mxu1  ;;  %v3109_v55 = vadd.f32 %v11919_v54, %v15734_v8  ;;  %v12004_v54 = vpack.c.bf16 %v8922_v1, %v8921_v10  ;;  %v15738_v10 = vld [vmem:[#allocation4_spill] sm:$0xff]  ;;  %v3121_v1 = vadd.f32 %v11965_v53, %v11551_v6 }
 0x293   : > { %15731 = vst [vmem:[#allocation88_spill] sm:$0xff] %v11969_v32  ;;  %v3554_v39 = vadd.f32 %v3490_v7, %v11295_v58  ;;  %v3491_v17 = vadd.f32 %v3359_v20, %v3103_v56  ;;  %v3617_v47 = vmax.f32 %v3553_v16, 0.0  ;;  %v3113_v56 = vadd.f32 %v11935_v45, %v11524_v5  ;;  %v1432_v5 = vld [vmem:[%s15327_s9 + $0x68] sm:$0xff] }
 0x294   : > { %v11981_v25 = vpop.f32.mrf.mxu0  ;;  %v3363_v46 = vpop.f32.mrf.mxu1  ;;  %9151 = vmatmul.mubr.msk.bf16.gmra.mxu0 %vm1770_vm1, %v3679_v52  ;;  %9166 = vmatmul.mubr.msk.bf16.gmra.mxu1 %vm1770_vm1, %v15733_v22  ;;  %v8923_v22 = vld [vmem:[%s10668_s13 + $0x510] sm:$0xff]  ;;  %v15740_v6 = vld [vmem:[#allocation28_spill] sm:$0xff] }
 0x295   : > { %v3618_v4 = vmax.f32 %v3554_v39, 0.0  ;;  %v3555_v61 = vadd.f32 %v3491_v17, %v11304_v38  ;;  %v3492_v12 = vadd.f32 %v3363_v46, %v3107_v36  ;;  %4093 = vmatprep.mubr.bf16.mxu1 %v15589_v62  ;;  %4210 = vmatprep.mubr.bf16.mxu0 %v15589_v62  ;;  %v3123_v53 = vadd.f32 %v11972_v34, %v15740_v6 }
 0x296   : > { %v11993_v43 = vpop.f32.mrf.mxu0  ;;  %v3365_v50 = vpop.f32.mrf.mxu1  ;;  %4630 = vperm.xlu1 %9854, %v1432_v5  }
 0x297   : > { %v11997_v0 = vpack.c.bf16 %v3618_v4, %v3616_v30  ;;  %v3619_v21 = vmax.f32 %v3555_v61, 0.0  ;;  %v3493_v24 = vadd.f32 %v3365_v50, %v3109_v55  ;;  %v3556_v33 = vadd.f32 %v3492_v12, %v11295_v58  ;;  %v8924_v30 = vld [vmem:[%s10668_s13 + $0x518] sm:$0xff]  ;;  %v15737_v4 = vld [vmem:[#allocation71_spill] sm:$0xff] }
 0x298   : > { %v12002_v18 = vpop.f32.mrf.mxu0  ;;  %v3367_v52 = vpop.f32.mrf.mxu1  ;;  %v3119_v61 = vadd.f32 %v11956_v3, %v15737_v4  ;;  %v1433_v3 = vld [vmem:[%s15327_s9 + $0x70] sm:$0xff] }
 0x299   : > { %15735 = vst [vmem:[#allocation67_spill] sm:$0xff] %v11997_v0  ;;  %v12008_v23 = vpack.c.bf16 %v3619_v21, %v3617_v47  ;;  %v3494_v19 = vadd.f32 %v3367_v52, %v3111_v59  ;;  %v3557_v36 = vadd.f32 %v3493_v24, %v11304_v38  ;;  %v3620_v37 = vmax.f32 %v3556_v33, 0.0  ;;  %v9957_v59 = vld [vmem:[%s15319_s1 + $0x4] ss:$8 sps:$4 sm:$0xff]   ;;  %4635 = vperm.xlu0 %9853, %v1433_v3  }
 0x29a   : > { %v12011_v7 = vpop.f32.mrf.mxu0  ;;  %v3369_v20 = vpop.f32.mrf.mxu1  ;;  %v12048_v24 = vpack.c.bf16 %v8924_v30, %v8923_v22  ;;  %v15745_v3 = vld [vmem:[#allocation75_spill] sm:$0xff] }
 0x29b   : > { %15736 = vst [vmem:[#allocation65_spill] sm:$0xff] %v12008_v23  ;;  %v3558_v16 = vadd.f32 %v3494_v19, %v11295_v58  ;;  %v3495_v39 = vadd.f32 %v3369_v20, %v3113_v56  ;;  %v3621_v8 = vmax.f32 %v3557_v36, 0.0  ;;  %v15742_v36 = vld [vmem:[#allocation29_spill] sm:$0xff] }
 0x29c   : > { %v12020_v45 = vpop.f32.mrf.mxu0  ;;  %v3373_v17 = vpop.f32.mrf.mxu1  ;;  %9167 = vmatmul.mubr.msk.bf16.gmra.mxu1 %vm1770_vm1, %v11518_v27  ;;  %9170 = vmatmul.mubr.msk.bf16.vlgmr.msra.gmra.mxu0 %vm1770_vm1, %v12004_v54 }
 0x29d   : > { %v3622_v40 = vmax.f32 %v3558_v16, 0.0  ;;  %v3559_v42 = vadd.f32 %v3495_v39, %v11304_v38  ;;  %v3496_v46 = vadd.f32 %v3373_v17, %v3117_v63  ;;  %4103 = vmatprep.mubr.bf16.mxu1 %v15589_v62  ;;  %4220 = vmatprep.mubr.bf16.mxu0 %v15589_v62  ;;  %v9958_v63 = vld [vmem:[%s15319_s1] ss:$8 sps:$4 sm:$0xff]   ;;  %v3127_v16 = vadd.f32 %v11981_v25, %v15742_v36  ;;  %v1434_v17 = vld [vmem:[%s15327_s9 + $0x78] sm:$0xff] }
 0x29e   : > { %v12033_v12 = vpop.f32.mrf.mxu0  ;;  %v3375_v27 = vpop.f32.mrf.mxu1  ;;  %5057 = vmatpush1.bf16.msra.mxu0 %v15738_v10  ;;  %v8925_v25 = vld [vmem:[%s10668_s13 + $0x520] sm:$0xff]  ;;  %v8954_v10 = vld [vmem:[%s10668_s13 + $0x608] sm:$0xff]  ;;  %4640 = vperm.xlu1 %9854, %v1434_v17  }
 0x29f   : > { %v12038_v55 = vpack.c.bf16 %v3622_v40, %v3620_v37  ;;  %v3623_v50 = vmax.f32 %v3559_v42, 0.0  ;;  %5058 = vmatprep.subr.bf16.mxu0 %v9957_v59  ;;  %v3497_v47 = vadd.f32 %v3375_v27, %v3119_v61  ;;  %v3560_v56 = vadd.f32 %v3496_v46, %v11295_v58  ;;  %v15743_v42 = vld [vmem:[#allocation26_spill] sm:$0xff]  ;;  %v8926_v61 = vld [vmem:[%s10668_s13 + $0x528] sm:$0xff]  ;;  %v8953_v27 = vld [vmem:[%s10668_s13 + $0x600] sm:$0xff] }
 0x2a0   : > { %v12046_v21 = vpop.f32.mrf.mxu0  ;;  %v3377_v2 = vpop.f32.mrf.mxu1  ;;  %v4787_v36 = vpack.c.bf16 %v8954_v10, %v8953_v27 }
 0x2a1   : > { %15739 = vst [vmem:[#allocation68_spill] sm:$0xff] %v12038_v55  ;;  %v12052_v52 = vpack.c.bf16 %v3623_v50, %v3621_v8  ;;  %v3498_v33 = vadd.f32 %v3377_v2, %v3121_v1  ;;  %v3561_v39 = vadd.f32 %v3497_v47, %v11304_v38  ;;  %v3624_v46 = vmax.f32 %v3560_v56, 0.0  ;;  %v15744_v1 = vld [vmem:[#allocation30_spill] sm:$0xff]  ;;  %v1435_v56 = vld [vmem:[%s15327_s9 + $0x80] sm:$0xff] }
 0x2a2   : > { %v12055_v19 = vpop.f32.mrf.mxu0  ;;  %v3379_v20 = vpop.f32.mrf.mxu1  ;;  %5059 = vmatpush1.bf16.msra.mxu0 %v9958_v63  ;;  %v3129_v8 = vadd.f32 %v11993_v43, %v15744_v1  ;;  %v3131_v47 = vadd.f32 %v12002_v18, %v15745_v3  ;;  %v12094_v43 = vpack.c.bf16 %v8926_v61, %v8925_v25  ;;  %4645 = vperm.xlu0 %9853, %v1435_v56   ;;  %v8955_v3 = vld [vmem:[%s10668_s13 + $0x610] sm:$0xff] }
 0x2a3   : > { %15741 = vst [vmem:[#allocation71_spill] sm:$0xff] %v12052_v52  ;;  %v3562_v34 = vadd.f32 %v3498_v33, %v11295_v58  ;;  %v3499_v5 = vadd.f32 %v3379_v20, %v3123_v53  ;;  %5948 = vmatprep.subr.bf16.mxu0 %v15589_v62  ;;  %v3625_v2 = vmax.f32 %v3561_v39, 0.0 }
 0x2a4   : > { %v12068_v37 = vpop.f32.mrf.mxu0  ;;  %v3383_v40 = vpop.f32.mrf.mxu1  ;;  %9168 = vmatmul.mubr.msk.bf16.gmra.mxu1 %vm1770_vm1, %v15743_v42  ;;  %9171 = vmatmul.mubr.msk.bf16.gmra.mxu0 %vm1770_vm1, %v12048_v24  ;;  %v15749_v42 = vld [vmem:[#allocation33_spill] sm:$0xff] }
 0x2a5   : > { %v3626_v22 = vmax.f32 %v3562_v34, 0.0  ;;  %v3563_v30 = vadd.f32 %v3499_v5, %v11304_v38  ;;  %v3500_v4 = vadd.f32 %v3383_v40, %v3127_v16  ;;  %4230 = vmatprep.mubr.bf16.mxu0 %v15589_v62  ;;  %4883 = vmatprep.mubr.bf16.mxu1 %v15589_v62  ;;  %v15747_v16 = vld [vmem:[#allocation32_spill] sm:$0xff] }
 0x2a6   : > { %v12083_v50 = vpop.f32.mrf.mxu0  ;;  %v3385_v59 = vpop.f32.mrf.mxu1  ;;  %v3133_v18 = vadd.f32 %v12011_v7, %v15747_v16  ;;  %v1436_v7 = vld [vmem:[%s15327_s9 + $0x88] sm:$0xff] }
 0x2a7   : > { %v12087_v6 = vpack.c.bf16 %v3626_v22, %v3624_v46  ;;  %v3627_v53 = vmax.f32 %v3563_v30, 0.0  ;;  %v3501_v33 = vadd.f32 %v3385_v59, %v3129_v8  ;;  %v3564_v34 = vadd.f32 %v3500_v4, %v11295_v58  ;;  %v8928_v59 = vld [vmem:[%s10668_s13 + $0x538] sm:$0xff]  ;;  %4650 = vperm.xlu1 %9854, %v1436_v7  }
 0x2a8   : > { %v12092_v20 = vpop.f32.mrf.mxu0  ;;  %v3387_v63 = vpop.f32.mrf.mxu1  ;;  %v3137_v46 = vadd.f32 %v12020_v45, %v15749_v42  ;;  %v8927_v45 = vld [vmem:[%s10668_s13 + $0x530] sm:$0xff] }
 0x2a9   : > { %15746 = vst [vmem:[#allocation4_spill] sm:$0xff] %v12087_v6  ;;  %v12098_v39 = vpack.c.bf16 %v3627_v53, %v3625_v2  ;;  %v3502_v5 = vadd.f32 %v3387_v63, %v3131_v47  ;;  %v3565_v25 = vadd.f32 %v3501_v33, %v11304_v38  ;;  %v3628_v27 = vmax.f32 %v3564_v34, 0.0  ;;  %v8956_v47 = vld [vmem:[%s10668_s13 + $0x618] sm:$0xff]  ;;  %v15750_v2 = vld [vmem:[#allocation25_spill] sm:$0xff] }
 0x2aa   : > { %v12101_v17 = vpop.f32.mrf.mxu0  ;;  %v3389_v40 = vpop.f32.mrf.mxu1  ;;  %v3139_v53 = vadd.f32 %v12033_v12, %v15750_v2  ;;  %v15751_v63 = vld [vmem:[#allocation5_spill] sm:$0xff] }
 0x2ab   : > { %15748 = vst [vmem:[#allocation28_spill] sm:$0xff] %v12098_v39  ;;  %v3566_v22 = vadd.f32 %v3502_v5, %v11295_v58  ;;  %v3503_v30 = vadd.f32 %v3389_v40, %v3133_v18  ;;  %v3629_v16 = vmax.f32 %v3565_v25, 0.0  ;;  %v9959_v5 = vld [vmem:[%s15319_s1 + $0x44] ss:$8 sps:$4 sm:$0xff]   ;;  %v1437_v12 = vld [vmem:[%s15327_s9 + $0x90] sm:$0xff] }
 0x2ac   : > { %v12110_v4 = vpop.f32.mrf.mxu0  ;;  %v3393_v61 = vpop.f32.mrf.mxu1  ;;  %9172 = vmatmul.mubr.msk.bf16.gmra.mxu0 %vm1770_vm1, %v12094_v43  ;;  %9187 = vmatmul.mubr.msk.bf16.vlgmr.msra.gmra.mxu1 %vm1770_vm1, %v4787_v36  ;;  %v3141_v36 = vadd.f32 %v12046_v21, %v11616_v29  ;;  %v4788_v29 = vpack.c.bf16 %v8956_v47, %v8955_v3  ;;  %v15753_v21 = vld [vmem:[#allocation22_spill] sm:$0xff] }
 0x2ad   : > { %v3630_v10 = vmax.f32 %v3566_v22, 0.0  ;;  %v3567_v1 = vadd.f32 %v3503_v30, %v11304_v38  ;;  %v3504_v8 = vadd.f32 %v3393_v61, %v3137_v46  ;;  %4240 = vmatprep.mubr.bf16.mxu0 %v15589_v62  ;;  %4893 = vmatprep.mubr.bf16.mxu1 %v15589_v62  ;;  %v12139_v22 = vpack.c.bf16 %v8928_v59, %v8927_v45  ;;  %v15755_v45 = vld [vmem:[#allocation36_spill] sm:$0xff]  ;;  %v1438_v47 = vld [vmem:[%s15327_s9 + $0x98] sm:$0xff] }
 0x2ae   : > { %v12124_v56 = vpop.f32.mrf.mxu0  ;;  %v3395_v33 = vpop.f32.mrf.mxu1  ;;  %5266 = vmatpush1.bf16.msra.mxu1 %v15751_v63  ;;  %4655 = vperm.xlu0 %9853, %v1437_v12   ;;  %v3143_v25 = vadd.f32 %v12055_v19, %v15753_v21  ;;  %v3147_v59 = vadd.f32 %v12068_v37, %v15755_v45  ;;  %v8929_v37 = vld [vmem:[%s10668_s13 + $0x540] sm:$0xff]  ;;  %v8958_v12 = vld [vmem:[%s10668_s13 + $0x628] sm:$0xff] }
 0x2af   : > { %v12129_v18 = vpack.c.bf16 %v3630_v10, %v3628_v27  ;;  %v3631_v34 = vmax.f32 %v3567_v1, 0.0  ;;  %5267 = vmatprep.subr.bf16.mxu1 %v9959_v5  ;;  %v3505_v40 = vadd.f32 %v3395_v33, %v3139_v53  ;;  %v3568_v7 = vadd.f32 %v3504_v8, %v11295_v58  ;;  %v9960_v1 = vld [vmem:[%s15319_s1 + $0x40] ss:$8 sps:$4 sm:$0xff]   ;;  %4660 = vperm.xlu1 %9854, %v1438_v47   ;;  %v15759_v47 = vld [vmem:[#allocation38_spill] sm:$0xff] }
 0x2b0   : > { %v12137_v42 = vpop.f32.mrf.mxu0  ;;  %v3397_v46 = vpop.f32.mrf.mxu1  ;;  %v8957_v5 = vld [vmem:[%s10668_s13 + $0x620] sm:$0xff] }
 0x2b1   : > { %15752 = vst [vmem:[#allocation29_spill] sm:$0xff] %v12129_v18  ;;  %v12143_v30 = vpack.c.bf16 %v3631_v34, %v3629_v16  ;;  %v3506_v61 = vadd.f32 %v3397_v46, %v3141_v36  ;;  %v3569_v3 = vadd.f32 %v3505_v40, %v11304_v38  ;;  %v3632_v33 = vmax.f32 %v3568_v7, 0.0  ;;  %v8930_v34 = vld [vmem:[%s10668_s13 + $0x548] sm:$0xff]  ;;  %v15756_v40 = vld [vmem:[#allocation23_spill] sm:$0xff] }
 0x2b2   : > { %v12146_v27 = vpop.f32.mrf.mxu0  ;;  %v3399_v10 = vpop.f32.mrf.mxu1  ;;  %5268 = vmatpush1.bf16.msra.mxu1 %v9960_v1  ;;  %v3149_v46 = vadd.f32 %v12083_v50, %v15756_v40  ;;  %v1439_v45 = vld [vmem:[%s15327_s9 + $0xa0] sm:$0xff]  ;;  %v12184_v50 = vpack.c.bf16 %v8930_v34, %v8929_v37 }
 0x2b3   : > { %15754 = vst [vmem:[#allocation26_spill] sm:$0xff] %v12143_v30  ;;  %v3570_v19 = vadd.f32 %v3506_v61, %v11295_v58  ;;  %v3507_v8 = vadd.f32 %v3399_v10, %v3143_v25  ;;  %6231 = vmatprep.subr.bf16.mxu1 %v15589_v62  ;;  %v3633_v61 = vmax.f32 %v3569_v3, 0.0  ;;  %4665 = vperm.xlu0 %9853, %v1439_v45   ;;  %v8932_v45 = vld [vmem:[%s10668_s13 + $0x558] sm:$0xff] }
 0x2b4   : > { %v12159_v2 = vpop.f32.mrf.mxu0  ;;  %v3403_v53 = vpop.f32.mrf.mxu1  ;;  %9173 = vmatmul.mubr.msk.bf16.gmra.mxu0 %vm1770_vm1, %v12139_v22  ;;  %9188 = vmatmul.mubr.msk.bf16.gmra.mxu1 %vm1770_vm1, %v4788_v29  ;;  %v15757_v29 = vld [vmem:[#allocation24_spill] sm:$0xff] }
 0x2b5   : > { %v3634_v63 = vmax.f32 %v3570_v19, 0.0  ;;  %v3571_v36 = vadd.f32 %v3507_v8, %v11304_v38  ;;  %v3508_v16 = vadd.f32 %v3403_v53, %v3147_v59  ;;  %4250 = vmatprep.mubr.bf16.mxu0 %v15589_v62  ;;  %4903 = vmatprep.mubr.bf16.mxu1 %v15589_v62  ;;  %v3151_v7 = vadd.f32 %v12092_v20, %v15757_v29 }
 0x2b6   : > { %v12173_v21 = vpop.f32.mrf.mxu0  ;;  %v3405_v25 = vpop.f32.mrf.mxu1  ;;  %v4789_v53 = vpack.c.bf16 %v8958_v12, %v8957_v5  ;;  %v3153_v20 = vadd.f32 %v12101_v17, %v15759_v47  ;;  %v1440_v17 = vld [vmem:[%s15327_s9 + $0xa8] sm:$0xff]  ;;  %v15762_v47 = vld [vmem:[#allocation41_spill] sm:$0xff] }
 0x2b7   : > { %v12177_v10 = vpack.c.bf16 %v3634_v63, %v3632_v33  ;;  %v3635_v1 = vmax.f32 %v3571_v36, 0.0  ;;  %v3509_v59 = vadd.f32 %v3405_v25, %v3149_v46  ;;  %v3572_v33 = vadd.f32 %v3508_v16, %v11295_v58  ;;  %v15761_v46 = vld [vmem:[#allocation39_spill] sm:$0xff]  ;;  %4670 = vperm.xlu1 %9854, %v1440_v17   ;;  %v15765_v17 = vld [vmem:[#allocation44_spill] sm:$0xff] }
 0x2b8   : > { %v12182_v19 = vpop.f32.mrf.mxu0  ;;  %v3407_v8 = vpop.f32.mrf.mxu1  ;;  %v3157_v25 = vadd.f32 %v12110_v4, %v15761_v46  ;;  %v8931_v4 = vld [vmem:[%s10668_s13 + $0x550] sm:$0xff] }
 0x2b9   : > { %15758 = vst [vmem:[#allocation30_spill] sm:$0xff] %v12177_v10  ;;  %v12188_v3 = vpack.c.bf16 %v3635_v1, %v3633_v61  ;;  %v3510_v63 = vadd.f32 %v3407_v8, %v3151_v7  ;;  %v3573_v37 = vadd.f32 %v3509_v59, %v11304_v38  ;;  %v3636_v29 = vmax.f32 %v3572_v33, 0.0  ;;  %v8959_v59 = vld [vmem:[%s10668_s13 + $0x630] sm:$0xff]  ;;  %v8960_v8 = vld [vmem:[%s10668_s13 + $0x638] sm:$0xff] }
 0x2ba   : > { %v12191_v36 = vpop.f32.mrf.mxu0  ;;  %v3409_v40 = vpop.f32.mrf.mxu1 }
 0x2bb   : > { %15760 = vst [vmem:[#allocation75_spill] sm:$0xff] %v12188_v3  ;;  %v3574_v34 = vadd.f32 %v3510_v63, %v11295_v58  ;;  %v3511_v5 = vadd.f32 %v3409_v40, %v3153_v20  ;;  %v3159_v20 = vadd.f32 %v12124_v56, %v15762_v47  ;;  %v3637_v46 = vmax.f32 %v3573_v37, 0.0 }
 0x2bc   : > { %v12200_v16 = vpop.f32.mrf.mxu0  ;;  %v3413_v12 = vpop.f32.mrf.mxu1  ;;  %9174 = vmatmul.mubr.msk.bf16.gmra.mxu0 %vm1770_vm1, %v12184_v50  ;;  %9189 = vmatmul.mubr.msk.bf16.gmra.mxu1 %vm1770_vm1, %v4789_v53  ;;  %v15763_v53 = vld [vmem:[#allocation31_spill] sm:$0xff]  ;;  %v12225_v56 = vpack.c.bf16 %v8932_v45, %v8931_v4  ;;  %v4790_v47 = vpack.c.bf16 %v8960_v8, %v8959_v59 }
 0x2bd   : > { %v3638_v7 = vmax.f32 %v3574_v34, 0.0  ;;  %v3575_v61 = vadd.f32 %v3511_v5, %v11304_v38  ;;  %v3512_v1 = vadd.f32 %v3413_v12, %v3157_v25  ;;  %4260 = vmatprep.mubr.bf16.mxu0 %v15589_v62  ;;  %4913 = vmatprep.mubr.bf16.mxu1 %v15589_v62  ;;  %v3161_v33 = vadd.f32 %v12137_v42, %v15763_v53  ;;  %v1441_v5 = vld [vmem:[%s15327_s9 + $0xb0] sm:$0xff] }
 0x2be   : > { %v12214_v63 = vpop.f32.mrf.mxu0  ;;  %v3415_v40 = vpop.f32.mrf.mxu1  ;;  %4675 = vperm.xlu0 %9853, %v1441_v5   ;;  %v3163_v42 = vadd.f32 %v12146_v27, %v15765_v17  ;;  %v1442_v27 = vld [vmem:[%s15327_s9 + $0xb8] sm:$0xff]  ;;  %v8934_v5 = vld [vmem:[%s10668_s13 + $0x568] sm:$0xff] }
 0x2bf   : > { %v12218_v34 = vpack.c.bf16 %v3638_v7, %v3636_v29  ;;  %v3639_v25 = vmax.f32 %v3575_v61, 0.0  ;;  %v3513_v12 = vadd.f32 %v3415_v40, %v3159_v20  ;;  %v3576_v29 = vadd.f32 %v3512_v1, %v11295_v58  ;;  %v15767_v20 = vld [vmem:[#allocation46_spill] sm:$0xff]  ;;  %v8962_v17 = vld [vmem:[%s10668_s13 + $0x648] sm:$0xff]  ;;  %4680 = vperm.xlu1 %9854, %v1442_v27   ;;  %v15770_v27 = vld [vmem:[#allocation49_spill] sm:$0xff] }
 0x2c0   : > { %v12223_v10 = vpop.f32.mrf.mxu0  ;;  %v3417_v3 = vpop.f32.mrf.mxu1  ;;  %v3167_v40 = vadd.f32 %v12159_v2, %v15767_v20  ;;  %v8933_v2 = vld [vmem:[%s10668_s13 + $0x560] sm:$0xff] }
 0x2c1   : > { %15764 = vst [vmem:[#allocation32_spill] sm:$0xff] %v12218_v34  ;;  %v12229_v37 = vpack.c.bf16 %v3639_v25, %v3637_v46  ;;  %v3514_v7 = vadd.f32 %v3417_v3, %v3161_v33  ;;  %v3577_v4 = vadd.f32 %v3513_v12, %v11304_v38  ;;  %v3640_v8 = vmax.f32 %v3576_v29, 0.0  ;;  %v8961_v12 = vld [vmem:[%s10668_s13 + $0x640] sm:$0xff] }
 0x2c2   : > { %v12232_v61 = vpop.f32.mrf.mxu0  ;;  %v3419_v53 = vpop.f32.mrf.mxu1 }
 0x2c3   : > { %15766 = vst [vmem:[#allocation33_spill] sm:$0xff] %v12229_v37  ;;  %v3578_v45 = vadd.f32 %v3514_v7, %v11295_v58  ;;  %v3515_v59 = vadd.f32 %v3419_v53, %v3163_v42  ;;  %v15768_v42 = vld [vmem:[#allocation47_spill] sm:$0xff]  ;;  %v3641_v29 = vmax.f32 %v3577_v4, 0.0 }
 0x2c4   : > { %v12241_v1 = vpop.f32.mrf.mxu0  ;;  %v3423_v3 = vpop.f32.mrf.mxu1  ;;  %9175 = vmatmul.mubr.msk.bf16.gmra.mxu0 %vm1770_vm1, %v12225_v56  ;;  %9190 = vmatmul.mubr.msk.bf16.gmra.mxu1 %vm1770_vm1, %v4790_v47  ;;  %v3169_v7 = vadd.f32 %v12173_v21, %v15768_v42  ;;  %v3171_v47 = vadd.f32 %v12182_v19, %v11700_v9  ;;  %v12266_v21 = vpack.c.bf16 %v8934_v5, %v8933_v2 }
 0x2c5   : > { %v3642_v33 = vmax.f32 %v3578_v45, 0.0  ;;  %v3579_v46 = vadd.f32 %v3515_v59, %v11304_v38  ;;  %v3516_v25 = vadd.f32 %v3423_v3, %v3167_v40  ;;  %4270 = vmatprep.mubr.bf16.mxu0 %v15589_v62  ;;  %4923 = vmatprep.mubr.bf16.mxu1 %v15589_v62  ;;  %v1443_v59 = vld [vmem:[%s15327_s9 + $0xc0] sm:$0xff]  ;;  %v4791_v42 = vpack.c.bf16 %v8962_v17, %v8961_v12 }
 0x2c6   : > { %v12255_v53 = vpop.f32.mrf.mxu0  ;;  %v3425_v20 = vpop.f32.mrf.mxu1  ;;  %4685 = vperm.xlu0 %9853, %v1443_v59   ;;  %v3173_v9 = vadd.f32 %v12191_v36, %v15770_v27  ;;  %v1444_v36 = vld [vmem:[%s15327_s9 + $0xc8] sm:$0xff]  ;;  %v8936_v59 = vld [vmem:[%s10668_s13 + $0x578] sm:$0xff] }
 0x2c7   : > { %v12259_v45 = vpack.c.bf16 %v3642_v33, %v3640_v8  ;;  %v3643_v40 = vmax.f32 %v3579_v46, 0.0  ;;  %v3517_v3 = vadd.f32 %v3425_v20, %v3169_v7  ;;  %v3580_v4 = vadd.f32 %v3516_v25, %v11295_v58  ;;  %v15772_v7 = vld [vmem:[#allocation51_spill] sm:$0xff]  ;;  %v8964_v27 = vld [vmem:[%s10668_s13 + $0x658] sm:$0xff]  ;;  %4690 = vperm.xlu1 %9854, %v1444_v36  }
 0x2c8   : > { %v12264_v34 = vpop.f32.mrf.mxu0  ;;  %v3427_v37 = vpop.f32.mrf.mxu1  ;;  %v3177_v20 = vadd.f32 %v12200_v16, %v15772_v7  ;;  %v8935_v16 = vld [vmem:[%s10668_s13 + $0x570] sm:$0xff] }
 0x2c9   : > { %15769 = vst [vmem:[#allocation25_spill] sm:$0xff] %v12259_v45  ;;  %v12270_v19 = vpack.c.bf16 %v3643_v40, %v3641_v29  ;;  %v3518_v8 = vadd.f32 %v3427_v37, %v3171_v47  ;;  %v3581_v2 = vadd.f32 %v3517_v3, %v11304_v38  ;;  %v3644_v17 = vmax.f32 %v3580_v4, 0.0  ;;  %v8963_v3 = vld [vmem:[%s10668_s13 + $0x650] sm:$0xff] }
 0x2ca   : > { %v12273_v33 = vpop.f32.mrf.mxu0  ;;  %v3429_v46 = vpop.f32.mrf.mxu1 }
 0x2cb   : > { %15771 = vst [vmem:[#allocation5_spill] sm:$0xff] %v12270_v19  ;;  %v3582_v5 = vadd.f32 %v3518_v8, %v11295_v58  ;;  %v3519_v12 = vadd.f32 %v3429_v46, %v3173_v9  ;;  %v15773_v9 = vld [vmem:[#allocation52_spill] sm:$0xff]  ;;  %v3645_v4 = vmax.f32 %v3581_v2, 0.0 }
 0x2cc   : > { %v12282_v25 = vpop.f32.mrf.mxu0  ;;  %v3433_v37 = vpop.f32.mrf.mxu1  ;;  %9176 = vmatmul.mubr.msk.bf16.gmra.mxu0 %vm1770_vm1, %v12266_v21  ;;  %9191 = vmatmul.mubr.msk.bf16.gmra.mxu1 %vm1770_vm1, %v4791_v42  ;;  %v3179_v8 = vadd.f32 %v12214_v63, %v15773_v9  ;;  %v3181_v42 = vadd.f32 %v12223_v10, %v11727_v13  ;;  %v12307_v63 = vpack.c.bf16 %v8936_v59, %v8935_v16 }
 0x2cd   : > { %v3646_v47 = vmax.f32 %v3582_v5, 0.0  ;;  %v3583_v29 = vadd.f32 %v3519_v12, %v11304_v38  ;;  %v3520_v40 = vadd.f32 %v3433_v37, %v3177_v20  ;;  %4280 = vmatprep.mubr.bf16.mxu0 %v15589_v62  ;;  %4933 = vmatprep.mubr.bf16.mxu1 %v15589_v62  ;;  %v1445_v12 = vld [vmem:[%s15327_s9 + $0xd0] sm:$0xff]  ;;  %v4792_v9 = vpack.c.bf16 %v8964_v27, %v8963_v3 }
 0x2ce   : > { %v12296_v46 = vpop.f32.mrf.mxu0  ;;  %v3435_v7 = vpop.f32.mrf.mxu1  ;;  %4695 = vperm.xlu0 %9853, %v1445_v12   ;;  %v3183_v13 = vadd.f32 %v12232_v61, %v11733_v15  ;;  %v1446_v15 = vld [vmem:[%s15327_s9 + $0xd8] sm:$0xff] }
 0x2cf   : > { %v12300_v5 = vpack.c.bf16 %v3646_v47, %v3644_v17  ;;  %v3647_v20 = vmax.f32 %v3583_v29, 0.0  ;;  %v3521_v37 = vadd.f32 %v3435_v7, %v3179_v8  ;;  %v3584_v2 = vadd.f32 %v3520_v40, %v11295_v58  ;;  %v8938_v7 = vld [vmem:[%s10668_s13 + $0x588] sm:$0xff]  ;;  %4700 = vperm.xlu1 %9854, %v1446_v15  }
 0x2d0   : > { %v12305_v45 = vpop.f32.mrf.mxu0  ;;  %v3437_v19 = vpop.f32.mrf.mxu1  ;;  %v3187_v29 = vadd.f32 %v12241_v1, %v11742_v57  ;;  %v8937_v57 = vld [vmem:[%s10668_s13 + $0x580] sm:$0xff]  ;;  %v3193_v15 = vadd.f32 %v12273_v33, %v11765_v26  ;;  %v1448_v26 = vld [vmem:[%s15327_s9 + $0xe8] sm:$0xff]  ;;  %v3199_v33 = vadd.f32 %v12296_v46, %v11779_v14  ;;  %v8967_v14 = vld [vmem:[%s10668_s13 + $0x670] sm:$0xff] }
 0x2d1   : > { %15774 = vst [vmem:[#allocation22_spill] sm:$0xff] %v12300_v5  ;;  %v12311_v10 = vpack.c.bf16 %v3647_v20, %v3645_v4  ;;  %v3522_v36 = vadd.f32 %v3437_v19, %v3181_v42  ;;  %v3585_v16 = vadd.f32 %v3521_v37, %v11304_v38  ;;  %v3648_v1 = vmax.f32 %v3584_v2, 0.0  ;;  %v8965_v42 = vld [vmem:[%s10668_s13 + $0x660] sm:$0xff]  ;;  %v8966_v4 = vld [vmem:[%s10668_s13 + $0x668] sm:$0xff]  ;;  %v8968_v46 = vld [vmem:[%s10668_s13 + $0x678] sm:$0xff] }
 0x2d2   : > { %v12314_v17 = vpop.f32.mrf.mxu0  ;;  %v3439_v47 = vpop.f32.mrf.mxu1  ;;  %v3189_v20 = vadd.f32 %v12255_v53, %v11754_v60  ;;  %v12348_v60 = vpack.c.bf16 %v8938_v7, %v8937_v57  ;;  %v4793_v53 = vpack.c.bf16 %v8966_v4, %v8965_v42 }
 0x2d3   : > { %15775 = vst [vmem:[#allocation36_spill] sm:$0xff] %v12311_v10  ;;  %v3586_v59 = vadd.f32 %v3522_v36, %v11295_v58  ;;  %v3523_v3 = vadd.f32 %v3439_v47, %v3183_v13  ;;  %v3649_v13 = vmax.f32 %v3585_v16, 0.0  ;;  %v1447_v47 = vld [vmem:[%s15327_s9 + $0xe0] sm:$0xff]  ;;  %4710 = vperm.xlu1 %9854, %v1448_v26  }
 0x2d4   : > { %v12323_v61 = vpop.f32.mrf.mxu0  ;;  %v3443_v19 = vpop.f32.mrf.mxu1  ;;  %9177 = vmatmul.mubr.msk.bf16.gmra.mxu0 %vm1770_vm1, %v12307_v63  ;;  %9192 = vmatmul.mubr.msk.bf16.gmra.mxu1 %vm1770_vm1, %v4792_v9  ;;  %v3191_v9 = vadd.f32 %v12264_v34, %v11758_v48 }
 0x2d5   : > { %v3650_v40 = vmax.f32 %v3586_v59, 0.0  ;;  %v3587_v27 = vadd.f32 %v3523_v3, %v11304_v38  ;;  %v3524_v8 = vadd.f32 %v3443_v19, %v3187_v29  ;;  %4290 = vmatprep.mubr.bf16.mxu0 %v15589_v62  ;;  %4943 = vmatprep.mubr.bf16.mxu1 %v15589_v62 }
 0x2d6   : > { %v12337_v12 = vpop.f32.mrf.mxu0  ;;  %v3445_v37 = vpop.f32.mrf.mxu1  ;;  %4705 = vperm.xlu0 %9853, %v1447_v47  }
 0x2d7   : > { %v12341_v2 = vpack.c.bf16 %v3650_v40, %v3648_v1  ;;  %v3651_v36 = vmax.f32 %v3587_v27, 0.0  ;;  %v3525_v29 = vadd.f32 %v3445_v37, %v3189_v20  ;;  %v3588_v34 = vadd.f32 %v3524_v8, %v11295_v58 }
 0x2d8   : > { %v12346_v59 = vpop.f32.mrf.mxu0  ;;  %v3447_v3 = vpop.f32.mrf.mxu1  ;;  %v3197_v40 = vadd.f32 %v12282_v25, %v11769_v51  ;;  %v8939_v51 = vld [vmem:[%s10668_s13 + $0x590] sm:$0xff] }
 0x2d9   : > { %15776 = vst [vmem:[#allocation23_spill] sm:$0xff] %v12341_v2  ;;  %v12352_v48 = vpack.c.bf16 %v3651_v36, %v3649_v13  ;;  %v3526_v16 = vadd.f32 %v3447_v3, %v3191_v9  ;;  %v3589_v57 = vadd.f32 %v3525_v29, %v11304_v38  ;;  %v3652_v25 = vmax.f32 %v3588_v34, 0.0  ;;  %v8940_v9 = vld [vmem:[%s10668_s13 + $0x598] sm:$0xff]  ;;  %v15778_v13 = vld [vmem:[#allocation20_spill] sm:$0xff] }
 0x2da   : > { %v12355_v19 = vpop.f32.mrf.mxu0  ;;  %v3449_v1 = vpop.f32.mrf.mxu1  ;;  %v3201_v36 = vadd.f32 %v12305_v45, %v15778_v13  ;;  %v15780_v45 = vld [vmem:[#allocation50_spill] sm:$0xff] }
 0x2db   : > { %15777 = vst [vmem:[#allocation24_spill] sm:$0xff] %v12352_v48  ;;  %v3590_v27 = vadd.f32 %v3526_v16, %v11295_v58  ;;  %v3527_v7 = vadd.f32 %v3449_v1, %v3193_v15  ;;  %v3653_v3 = vmax.f32 %v3589_v57, 0.0  ;;  %v1449_v16 = vld [vmem:[%s15327_s9 + $0xf0] sm:$0xff] }
 0x2dc   : > { %v3453_v8 = vpop.f32.mrf.mxu1  ;;  %v12366_v42 = vpop.f32.mrf.mxu0  ;;  %9178 = vmatmul.mubr.msk.bf16.gmra.mxu0 %vm1770_vm1, %v12348_v60  ;;  %9193 = vmatmul.mubr.msk.bf16.gmra.mxu1 %vm1770_vm1, %v4793_v53 }
 0x2dd   : > { %v3654_v4 = vmax.f32 %v3590_v27, 0.0  ;;  %v3591_v20 = vadd.f32 %v3527_v7, %v11304_v38  ;;  %v3528_v37 = vadd.f32 %v3453_v8, %v3197_v40  ;;  %4300 = vmatprep.mubr.bf16.mxu0 %v15589_v62  ;;  %4953 = vmatprep.mubr.bf16.mxu1 %v15589_v62  ;;  %v12389_v27 = vpack.c.bf16 %v8940_v9, %v8939_v51 }
 0x2de   : > { %v3455_v47 = vpop.f32.mrf.mxu1  ;;  %v12380_v29 = vpop.f32.mrf.mxu0  ;;  %v4794_v7 = vpack.c.bf16 %v8968_v46, %v8967_v14  ;;  %4715 = vperm.xlu0 %9853, %v1449_v16   ;;  %v3203_v8 = vadd.f32 %v12314_v17, %v15780_v45  ;;  %v1450_v17 = vld [vmem:[%s15327_s9 + $0xf8] sm:$0xff]  ;;  %v8970_v45 = vld [vmem:[%s10668_s13 + $0x688] sm:$0xff] }
 0x2df   : > { %v12382_v53 = vpack.c.bf16 %v3654_v4, %v3652_v25  ;;  %v3655_v15 = vmax.f32 %v3591_v20, 0.0  ;;  %v3529_v34 = vadd.f32 %v3455_v47, %v3199_v33  ;;  %v3592_v26 = vadd.f32 %v3528_v37, %v11295_v58  ;;  %v15782_v20 = vld [vmem:[#allocation77_spill] sm:$0xff]  ;;  %v15783_v37 = vld [vmem:[#allocation78_spill] sm:$0xff]  ;;  %4720 = vperm.xlu1 %9854, %v1450_v17  }
 0x2e0   : > { %v3457_v1 = vpop.f32.mrf.mxu1  ;;  %v12387_v40 = vpop.f32.mrf.mxu0  ;;  %v3207_v13 = vadd.f32 %v12323_v61, %v15782_v20  ;;  %v3209_v46 = vadd.f32 %v12337_v12, %v15783_v37  ;;  %v8941_v61 = vld [vmem:[%s10668_s13 + $0x5a0] sm:$0xff] }
 0x2e1   : > { %15779 = vst [vmem:[#allocation38_spill] sm:$0xff] %v12382_v53  ;;  %v12393_v57 = vpack.c.bf16 %v3655_v15, %v3653_v3  ;;  %v3530_v33 = vadd.f32 %v3457_v1, %v3201_v36  ;;  %v3593_v51 = vadd.f32 %v3529_v34, %v11304_v38  ;;  %v3656_v3 = vmax.f32 %v3592_v26, 0.0  ;;  %v8942_v1 = vld [vmem:[%s10668_s13 + $0x5a8] sm:$0xff]  ;;  %v8969_v12 = vld [vmem:[%s10668_s13 + $0x680] sm:$0xff] }
 0x2e2   : > { %v3459_v25 = vpop.f32.mrf.mxu1  ;;  %v12396_v4 = vpop.f32.mrf.mxu0  ;;  %v4795_v53 = vpack.c.bf16 %v8970_v45, %v8969_v12  ;;  %v8971_v45 = vld [vmem:[%s10668_s13 + $0x690] sm:$0xff] }
 0x2e3   : > { %15781 = vst [vmem:[#allocation39_spill] sm:$0xff] %v12393_v57  ;;  %v3594_v9 = vadd.f32 %v3530_v33, %v11295_v58  ;;  %v3531_v14 = vadd.f32 %v3459_v25, %v3203_v8  ;;  %v15784_v8 = vld [vmem:[#allocation79_spill] sm:$0xff]  ;;  %v15786_v57 = vld [vmem:[#allocation80_spill] sm:$0xff] }
 0x2e4   : > { %v3463_v36 = vpop.f32.mrf.mxu1  ;;  %v12407_v47 = vpop.f32.mrf.mxu0  ;;  %9179 = vmatmul.mubr.msk.bf16.gmra.mxu0 %vm1770_vm1, %v12389_v27  ;;  %9194 = vmatmul.mubr.msk.bf16.gmra.mxu1 %vm1770_vm1, %v4794_v7  ;;  %v3211_v33 = vadd.f32 %v12346_v59, %v15784_v8  ;;  %v3657_v7 = vmax.f32 %v3593_v51, 0.0  ;;  %v3213_v2 = vadd.f32 %v12355_v19, %v15786_v57  ;;  %v8943_v19 = vld [vmem:[%s10668_s13 + $0x5b0] sm:$0xff] }
 0x2e5   : > { %v3658_v15 = vmax.f32 %v3594_v9, 0.0  ;;  %v3595_v34 = vadd.f32 %v3531_v14, %v11304_v38  ;;  %v3532_v16 = vadd.f32 %v3463_v36, %v3207_v13  ;;  %4310 = vmatprep.mubr.bf16.mxu0 %v15589_v62  ;;  %4963 = vmatprep.mubr.bf16.mxu1 %v15589_v62  ;;  %v12423_v36 = vpack.c.bf16 %v8942_v1, %v8941_v61 }
 0x2e6   : > { %v3465_v25 = vpop.f32.mrf.mxu1  ;;  %v3774_v20 = vpop.f32.mrf.mxu0 }
 0x2e7   : > { %v12421_v37 = vpack.c.bf16 %v3658_v15, %v3656_v3  ;;  %v3659_v26 = vmax.f32 %v3595_v34, 0.0  ;;  %v3533_v9 = vadd.f32 %v3465_v25, %v3209_v46  ;;  %v3596_v59 = vadd.f32 %v3532_v16, %v11295_v58 }
 0x2e8   : > { %v3467_v14 = vpop.f32.mrf.mxu1  ;;  %v3776_v13 = vpop.f32.mrf.mxu0 }
 0x2e9   : > { %15785 = vst [vmem:[#allocation41_spill] sm:$0xff] %v12421_v37  ;;  %v12427_v48 = vpack.c.bf16 %v3659_v26, %v3657_v7  ;;  %v3534_v8 = vadd.f32 %v3467_v14, %v3211_v33  ;;  %v3597_v46 = vadd.f32 %v3533_v9, %v11304_v38  ;;  %v3660_v57 = vmax.f32 %v3596_v59, 0.0  ;;  %v8972_v33 = vld [vmem:[%s10668_s13 + $0x698] sm:$0xff] }
 0x2ea   : > { %v3469_v17 = vpop.f32.mrf.mxu1  ;;  %v3778_v51 = vpop.f32.mrf.mxu0 }
 0x2eb   : > { %15787 = vst [vmem:[#allocation31_spill] sm:$0xff] %v12427_v48  ;;  %v3598_v3 = vadd.f32 %v3534_v8, %v11295_v58  ;;  %v3535_v61 = vadd.f32 %v3469_v17, %v3213_v2  ;;  %v8944_v2 = vld [vmem:[%s10668_s13 + $0x5b8] sm:$0xff]  ;;  %v3661_v26 = vmax.f32 %v3597_v46, 0.0  ;;  %v4796_v17 = vpack.c.bf16 %v8972_v33, %v8971_v45  ;;  %v8974_v45 = vld [vmem:[%s10668_s13 + $0x6a8] sm:$0xff] }
 0x2ec   : > { %v3782_v15 = vpop.f32.mrf.mxu0  ;;  %v3955_v34 = vpop.f32.mrf.mxu1  ;;  %9180 = vmatmul.mubr.msk.bf16.gmra.mxu0 %vm1770_vm1, %v12423_v36  ;;  %9195 = vmatmul.mubr.msk.bf16.gmra.mxu1 %vm1770_vm1, %v4795_v53  ;;  %v12450_v8 = vpack.c.bf16 %v8944_v2, %v8943_v19  ;;  %v8945_v19 = vld [vmem:[%s10668_s13 + $0x5c0] sm:$0xff] }
 0x2ed   : > { %v3662_v16 = vmax.f32 %v3598_v3, 0.0  ;;  %v3599_v1 = vadd.f32 %v3535_v61, %v11304_v38  ;;  %v12438_v12 = vadd.f32 %v3955_v34, %v12366_v42  ;;  %4320 = vmatprep.mubr.bf16.mxu0 %v15589_v62  ;;  %4973 = vmatprep.mubr.bf16.mxu1 %v15589_v62  ;;  %v8973_v2 = vld [vmem:[%s10668_s13 + $0x6a0] sm:$0xff] }
 0x2ee   : > { %v3784_v25 = vpop.f32.mrf.mxu0  ;;  %v3957_v7 = vpop.f32.mrf.mxu1 }
 0x2ef   : > { %v12445_v9 = vpack.c.bf16 %v3662_v16, %v3660_v57  ;;  %v3663_v53 = vmax.f32 %v3599_v1, 0.0  ;;  %v12448_v14 = vadd.f32 %v3957_v7, %v12380_v29 }
 0x2f0   : > { %v3786_v59 = vpop.f32.mrf.mxu0  ;;  %v3959_v42 = vpop.f32.mrf.mxu1 }
 0x2f1   : > { %15788 = vst [vmem:[#allocation44_spill] sm:$0xff] %v12445_v9  ;;  %v12452_v3 = vpack.c.bf16 %v3663_v53, %v3661_v26  ;;  %v12455_v61 = vadd.f32 %v3959_v42, %v12387_v40  ;;  %v8946_v40 = vld [vmem:[%s10668_s13 + $0x5c8] sm:$0xff] }
 0x2f2   : > { %v3788_v46 = vpop.f32.mrf.mxu0  ;;  %v3961_v34 = vpop.f32.mrf.mxu1  ;;  %v12474_v42 = vpack.c.bf16 %v8946_v40, %v8945_v19  ;;  %v8975_v19 = vld [vmem:[%s10668_s13 + $0x6b0] sm:$0xff]  ;;  %v8976_v40 = vld [vmem:[%s10668_s13 + $0x6b8] sm:$0xff] }
 0x2f3   : > { %15789 = vst [vmem:[#allocation46_spill] sm:$0xff] %v12452_v3  ;;  %v12458_v57 = vadd.f32 %v3961_v34, %v12396_v4 }
 0x2f4   : > { %v3792_v29 = vpop.f32.mrf.mxu0  ;;  %v3965_v16 = vpop.f32.mrf.mxu1  ;;  %9181 = vmatmul.mubr.msk.bf16.gmra.mxu0 %vm1770_vm1, %v12450_v8  ;;  %9196 = vmatmul.mubr.msk.bf16.gmra.mxu1 %vm1770_vm1, %v4796_v17 }
 0x2f5   : > { %v12465_v1 = vadd.f32 %v3965_v16, %v12407_v47  ;;  %4330 = vmatprep.mubr.bf16.mxu0 %v15589_v62  ;;  %4983 = vmatprep.mubr.bf16.mxu1 %v15589_v62  ;;  %v4797_v47 = vpack.c.bf16 %v8974_v45, %v8973_v2 }
 0x2f6   : > { %v3794_v4 = vpop.f32.mrf.mxu0  ;;  %v3967_v33 = vpop.f32.mrf.mxu1 }
 0x2f7   : > { %v12472_v7 = vadd.f32 %v3967_v33, %v3774_v20  ;;  %v8947_v20 = vld [vmem:[%s10668_s13 + $0x5d0] sm:$0xff] }
 0x2f8   : > { %v3796_v26 = vpop.f32.mrf.mxu0  ;;  %v3969_v53 = vpop.f32.mrf.mxu1 }
 0x2f9   : > { %v12476_v17 = vadd.f32 %v3969_v53, %v3776_v13  ;;  %v8948_v13 = vld [vmem:[%s10668_s13 + $0x5d8] sm:$0xff] }
 0x2fa   : > { %v3798_v34 = vpop.f32.mrf.mxu0  ;;  %v3971_v16 = vpop.f32.mrf.mxu1 }
 0x2fb   : > { %v12478_v9 = vadd.f32 %v3971_v16, %v3778_v51 }
 0x2fc   : > { %v3802_v3 = vpop.f32.mrf.mxu0  ;;  %v3975_v37 = vpop.f32.mrf.mxu1  ;;  %9182 = vmatmul.mubr.msk.bf16.gmra.mxu0 %vm1770_vm1, %v12474_v42  ;;  %9197 = vmatmul.mubr.msk.bf16.gmra.mxu1 %vm1770_vm1, %v4797_v47  ;;  %v12493_v47 = vpack.c.bf16 %v8948_v13, %v8947_v20  ;;  %v8977_v20 = vld [vmem:[%s10668_s13 + $0x6c0] sm:$0xff]  ;;  %v8978_v13 = vld [vmem:[%s10668_s13 + $0x6c8] sm:$0xff] }
 0x2fd   : > { %v12484_v33 = vadd.f32 %v3975_v37, %v3782_v15  ;;  %4340 = vmatprep.mubr.bf16.mxu0 %v15589_v62  ;;  %4993 = vmatprep.mubr.bf16.mxu1 %v15589_v62  ;;  %v4798_v37 = vpack.c.bf16 %v8976_v40, %v8975_v19 }
 0x2fe   : > { %v3804_v51 = vpop.f32.mrf.mxu0  ;;  %v3977_v2 = vpop.f32.mrf.mxu1 }
 0x2ff   : > { %v12491_v45 = vadd.f32 %v3977_v2, %v3784_v25  ;;  %v8949_v25 = vld [vmem:[%s10668_s13 + $0x5e0] sm:$0xff] }
 0x300   : > { %v3806_v53 = vpop.f32.mrf.mxu0  ;;  %v3979_v16 = vpop.f32.mrf.mxu1 }
 0x301   : > { %v12495_v15 = vadd.f32 %v3979_v16, %v3786_v59  ;;  %v8950_v59 = vld [vmem:[%s10668_s13 + $0x5e8] sm:$0xff] }
 0x302   : > { %v3808_v48 = vpop.f32.mrf.mxu0  ;;  %v3981_v5 = vpop.f32.mrf.mxu1 }
 0x303   : > { %v12497_v10 = vadd.f32 %v3981_v5, %v3788_v46 }
 0x304   : > { %v3812_v18 = vpop.f32.mrf.mxu0  ;;  %v3985_v30 = vpop.f32.mrf.mxu1  ;;  %9183 = vmatmul.mubr.msk.bf16.gmra.mxu0 %vm1770_vm1, %v12493_v47  ;;  %9198 = vmatmul.mubr.msk.bf16.gmra.mxu1 %vm1770_vm1, %v4798_v37  ;;  %v12512_v37 = vpack.c.bf16 %v8950_v59, %v8949_v25  ;;  %v8979_v25 = vld [vmem:[%s10668_s13 + $0x6d0] sm:$0xff]  ;;  %v8980_v59 = vld [vmem:[%s10668_s13 + $0x6d8] sm:$0xff] }
 0x305   : > { %v12503_v2 = vadd.f32 %v3985_v30, %v3792_v29  ;;  %4350 = vmatprep.mubr.bf16.mxu0 %v15589_v62  ;;  %5003 = vmatprep.mubr.bf16.mxu1 %v15589_v62  ;;  %v4799_v30 = vpack.c.bf16 %v8978_v13, %v8977_v20 }
 0x306   : > { %v3814_v5 = vpop.f32.mrf.mxu0  ;;  %v3987_v46 = vpop.f32.mrf.mxu1 }
 0x307   : > { %v12510_v19 = vadd.f32 %v3987_v46, %v3794_v4  ;;  %v8951_v4 = vld [vmem:[%s10668_s13 + $0x5f0] sm:$0xff] }
 0x308   : > { %v3816_v40 = vpop.f32.mrf.mxu0  ;;  %v3989_v16 = vpop.f32.mrf.mxu1 }
 0x309   : > { %v12514_v29 = vadd.f32 %v3989_v16, %v3796_v26  ;;  %v8952_v26 = vld [vmem:[%s10668_s13 + $0x5f8] sm:$0xff] }
 0x30a   : > { %v3818_v6 = vpop.f32.mrf.mxu0  ;;  %v3991_v39 = vpop.f32.mrf.mxu1  ;;  %v12531_v23 = vpack.c.bf16 %v8952_v26, %v8951_v4  ;;  %v8981_v4 = vld [vmem:[%s10668_s13 + $0x6e0] sm:$0xff] }
 0x30b   : > { %v12516_v55 = vadd.f32 %v3991_v39, %v3798_v34 }
 0x30c   : > { %v3822_v52 = vpop.f32.mrf.mxu0  ;;  %v3995_v0 = vpop.f32.mrf.mxu1  ;;  %9184 = vmatmul.mubr.msk.bf16.gmra.mxu0 %vm1770_vm1, %v12512_v37  ;;  %9199 = vmatmul.mubr.msk.bf16.gmra.mxu1 %vm1770_vm1, %v4799_v30  ;;  %15790 = vst [vmem:[#allocation47_spill] sm:$0xff] %v12531_v23  ;;  %v4800_v30 = vpack.c.bf16 %v8980_v59, %v8979_v25 }
 0x30d   : > { %v12522_v46 = vadd.f32 %v3995_v0, %v3802_v3  ;;  %4360 = vmatprep.mubr.bf16.mxu0 %v15589_v62  ;;  %5013 = vmatprep.mubr.bf16.mxu1 %v15589_v62 }
 0x30e   : > { %v3824_v20 = vpop.f32.mrf.mxu0  ;;  %v3997_v39 = vpop.f32.mrf.mxu1 }
 0x30f   : > { %v12529_v34 = vadd.f32 %v3997_v39, %v3804_v51 }
 0x310   : > { %v3826_v13 = vpop.f32.mrf.mxu0  ;;  %v3999_v16 = vpop.f32.mrf.mxu1 }
 0x311   : > { %v12533_v0 = vadd.f32 %v3999_v16, %v3806_v53  ;;  %v8982_v53 = vld [vmem:[%s10668_s13 + $0x6e8] sm:$0xff] }
 0x312   : > { %v3828_v3 = vpop.f32.mrf.mxu0  ;;  %v4001_v44 = vpop.f32.mrf.mxu1  ;;  %v4801_v39 = vpack.c.bf16 %v8982_v53, %v8981_v4  ;;  %v8984_v4 = vld [vmem:[%s10668_s13 + $0x6f8] sm:$0xff] }
 0x313   : > { %v12535_v32 = vadd.f32 %v4001_v44, %v3808_v48 }
 0x314   : > { %v3832_v31 = vpop.f32.mrf.mxu0  ;;  %v4005_v41 = vpop.f32.mrf.mxu1  ;;  %9185 = vmatmul.mubr.msk.bf16.gmra.mxu0 %vm1770_vm1, %v12531_v23  ;;  %9200 = vmatmul.mubr.msk.bf16.gmra.mxu1 %vm1770_vm1, %v4800_v30 }
 0x315   : > { %v12540_v51 = vadd.f32 %v4005_v41, %v3812_v18  ;;  %5023 = vmatprep.mubr.bf16.mxu1 %v15589_v62  ;;  %5076 = vmatprep.mubr.bf16.mxu0 %v15589_v62  ;;  %v9873_v18 = vld [vmem:[%s15321_s3 + $0xa8] sm:$0xff]  }
 0x316   : > { %v3834_v26 = vpop.f32.mrf.mxu0  ;;  %v4007_v25 = vpop.f32.mrf.mxu1 }
 0x317   : > { %v12546_v59 = vadd.f32 %v4007_v25, %v3814_v5 }
 0x318   : > { %v3836_v44 = vpop.f32.mrf.mxu0  ;;  %v4009_v48 = vpop.f32.mrf.mxu1 }
 0x319   : > { %v12548_v16 = vadd.f32 %v4009_v48, %v3816_v40  ;;  %v8983_v40 = vld [vmem:[%s10668_s13 + $0x6f0] sm:$0xff] }
 0x31a   : > { %v3838_v30 = vpop.f32.mrf.mxu0  ;;  %v4011_v41 = vpop.f32.mrf.mxu1 }
 0x31b   : > { %v12553_v28 = vadd.f32 %v4011_v41, %v3818_v6  ;;  %v9874_v6 = vld [vmem:[%s15321_s3 + $0xa0] sm:$0xff]  }
 0x31c   : > { %v3842_v11 = vpop.f32.mrf.mxu0  ;;  %v4015_v49 = vpop.f32.mrf.mxu1  ;;  %9201 = vmatmul.mubr.msk.bf16.gmra.mxu1 %vm1770_vm1, %v4801_v39  ;;  %9204 = vmatmul.mubr.msk.bf16.vlgmr.msra.gmra.mxu0 %vm1770_vm1, %v12004_v54 }
 0x31d   : > { %v12558_v5 = vadd.f32 %v4015_v49, %v3822_v52  ;;  %5033 = vmatprep.mubr.bf16.mxu1 %v15589_v62  ;;  %5086 = vmatprep.mubr.bf16.mxu0 %v15589_v62  ;;  %v4802_v52 = vpack.c.bf16 %v8984_v4, %v8983_v40 }
 0x31e   : > { %v3844_v53 = vpop.f32.mrf.mxu0  ;;  %v4017_v25 = vpop.f32.mrf.mxu1  ;;  %5949 = vmatpush1.bf16.msra.mxu0 %v9873_v18  ;;  %v9875_v18 = vld [vmem:[%s15321_s3 + $0x98] sm:$0xff]  }
 0x31f   : > { %v12567_v48 = vadd.f32 %v4017_v25, %v3824_v20  ;;  %5950 = vmatprep.subr.bf16.mxu0 %v15589_v62 }
 0x320   : > { %v3846_v54 = vpop.f32.mrf.mxu0  ;;  %v4019_v49 = vpop.f32.mrf.mxu1 }
 0x321   : > { %v12570_v39 = vadd.f32 %v4019_v49, %v3826_v13 }
 0x322   : > { %v3848_v41 = vpop.f32.mrf.mxu0  ;;  %v4021_v35 = vpop.f32.mrf.mxu1  ;;  %5951 = vmatpush1.bf16.msra.mxu0 %v9874_v6 }
 0x323   : > { %v12575_v23 = vadd.f32 %v4021_v35, %v3828_v3  ;;  %5952 = vmatprep.subr.bf16.mxu0 %v15589_v62  ;;  %v9876_v35 = vld [vmem:[%s15321_s3 + $0x90] sm:$0xff]  }
 0x324   : > { %v3852_v20 = vpop.f32.mrf.mxu0  ;;  %v4025_v25 = vpop.f32.mrf.mxu1  ;;  %9202 = vmatmul.mubr.msk.bf16.gmra.mxu1 %vm1770_vm1, %v4802_v52  ;;  %9205 = vmatmul.mubr.msk.bf16.gmra.mxu0 %vm1770_vm1, %v12048_v24 }
 0x325   : > { %v12581_v13 = vadd.f32 %v4025_v25, %v3832_v31  ;;  %5096 = vmatprep.mubr.bf16.mxu0 %v15589_v62  ;;  %5285 = vmatprep.mubr.bf16.mxu1 %v15589_v62  ;;  %v9877_v25 = vld [vmem:[%s15321_s3 + $0x88] sm:$0xff]  }
 0x326   : > { %v3854_v40 = vpop.f32.mrf.mxu0  ;;  %v4027_v4 = vpop.f32.mrf.mxu1  ;;  %5953 = vmatpush1.bf16.msra.mxu0 %v9875_v18  ;;  %v9878_v18 = vld [vmem:[%s15321_s3 + $0x38] sm:$0xff]  }
 0x327   : > { %15791 = vst [vmem:[#allocation49_spill] sm:$0xff] %v12581_v13  ;;  %v12588_v3 = vadd.f32 %v4027_v4, %v3834_v26  ;;  %5954 = vmatprep.subr.bf16.mxu0 %v15589_v62 }
 0x328   : > { %v3856_v6 = vpop.f32.mrf.mxu0  ;;  %v4029_v49 = vpop.f32.mrf.mxu1 }
 0x329   : > { %v12591_v24 = vadd.f32 %v4029_v49, %v3836_v44  ;;  %v15793_v44 = vld [vmem:[#allocation6_spill] sm:$0xff] }
 0x32a   : > { %v3858_v31 = vpop.f32.mrf.mxu0  ;;  %v4031_v52 = vpop.f32.mrf.mxu1  ;;  %5955 = vmatpush1.bf16.msra.mxu0 %v9876_v35 }
 0x32b   : > { %15792 = vst [vmem:[#allocation51_spill] sm:$0xff] %v12591_v24  ;;  %v12599_v13 = vadd.f32 %v4031_v52, %v3838_v30  ;;  %5956 = vmatprep.subr.bf16.mxu0 %v15589_v62  ;;  %v9879_v30 = vld [vmem:[%s15321_s3 + $0x80] sm:$0xff]  }
 0x32c   : > { %v3862_v26 = vpop.f32.mrf.mxu0  ;;  %v4035_v4 = vpop.f32.mrf.mxu1  ;;  %9206 = vmatmul.mubr.msk.bf16.gmra.mxu0 %vm1770_vm1, %v12094_v43  ;;  %9221 = vmatmul.mubr.msk.bf16.vlgmr.msra.gmra.mxu1 %vm1770_vm1, %v15793_v44  ;;  %v9880_v43 = vld [vmem:[%s15321_s3 + $0x30] sm:$0xff]  }
 0x32d   : > { %v12606_v35 = vadd.f32 %v4035_v4, %v3842_v11  ;;  %5106 = vmatprep.mubr.bf16.mxu0 %v15589_v62  ;;  %5295 = vmatprep.mubr.bf16.mxu1 %v15589_v62 }
 0x32e   : > { %v3864_v49 = vpop.f32.mrf.mxu0  ;;  %v4037_v24 = vpop.f32.mrf.mxu1  ;;  %5957 = vmatpush1.bf16.msra.mxu0 %v9877_v25  ;;  %6232 = vmatpush1.bf16.msra.mxu1 %v9878_v18 }
 0x32f   : > { %15794 = vst [vmem:[#allocation52_spill] sm:$0xff] %v12606_v35  ;;  %v12616_v52 = vadd.f32 %v4037_v24, %v3844_v53  ;;  %5958 = vmatprep.subr.bf16.mxu0 %v15589_v62  ;;  %6233 = vmatprep.subr.bf16.mxu1 %v15589_v62  ;;  %v9881_v35 = vld [vmem:[%s15321_s3 + $0x78] sm:$0xff]   ;;  %v9882_v53 = vld [vmem:[%s15321_s3 + $0x28] sm:$0xff]  }
 0x330   : > { %v3866_v11 = vpop.f32.mrf.mxu0  ;;  %v4039_v4 = vpop.f32.mrf.mxu1 }
 0x331   : > { %v12620_v44 = vadd.f32 %v4039_v4, %v3846_v54 }
 0x332   : > { %v3868_v25 = vpop.f32.mrf.mxu0  ;;  %v4041_v18 = vpop.f32.mrf.mxu1  ;;  %5959 = vmatpush1.bf16.msra.mxu0 %v9879_v30  ;;  %6234 = vmatpush1.bf16.msra.mxu1 %v9880_v43  ;;  %v15797_v30 = vld [vmem:[#allocation7_spill] sm:$0xff] }
 0x333   : > { %15795 = vst [vmem:[#allocation20_spill] sm:$0xff] %v12620_v44  ;;  %v12628_v24 = vadd.f32 %v4041_v18, %v3848_v41  ;;  %5960 = vmatprep.subr.bf16.mxu0 %v15589_v62  ;;  %6235 = vmatprep.subr.bf16.mxu1 %v15589_v62 }
 0x334   : > { %v3872_v54 = vpop.f32.mrf.mxu0  ;;  %v4045_v4 = vpop.f32.mrf.mxu1  ;;  %9207 = vmatmul.mubr.msk.bf16.gmra.mxu0 %vm1770_vm1, %v12139_v22  ;;  %9222 = vmatmul.mubr.msk.bf16.gmra.mxu1 %vm1770_vm1, %v15797_v30  ;;  %v9884_v22 = vld [vmem:[%s15321_s3 + $0x20] sm:$0xff]  }
 0x335   : > { %15796 = vst [vmem:[#allocation50_spill] sm:$0xff] %v12628_v24  ;;  %v12636_v43 = vadd.f32 %v4045_v4, %v3852_v20  ;;  %5116 = vmatprep.mubr.bf16.mxu0 %v15589_v62  ;;  %5305 = vmatprep.mubr.bf16.mxu1 %v15589_v62  ;;  %v9883_v24 = vld [vmem:[%s15321_s3 + $0x70] sm:$0xff]  }
 0x336   : > { %v3874_v41 = vpop.f32.mrf.mxu0  ;;  %v4047_v18 = vpop.f32.mrf.mxu1  ;;  %5961 = vmatpush1.bf16.msra.mxu0 %v9881_v35  ;;  %6236 = vmatpush1.bf16.msra.mxu1 %v9882_v53 }
 0x337   : > { %15798 = vst [vmem:[#allocation77_spill] sm:$0xff] %v12636_v43  ;;  %v12646_v44 = vadd.f32 %v4047_v18, %v3854_v40  ;;  %5962 = vmatprep.subr.bf16.mxu0 %v15589_v62  ;;  %6237 = vmatprep.subr.bf16.mxu1 %v15589_v62  ;;  %v9885_v43 = vld [vmem:[%s15321_s3 + $0xd8] sm:$0xff]  }
 0x338   : > { %v3876_v20 = vpop.f32.mrf.mxu0  ;;  %v4049_v4 = vpop.f32.mrf.mxu1  ;;  %v9886_v40 = vld [vmem:[%s15321_s3 + $0x18] sm:$0xff]  }
 0x339   : > { %v12650_v30 = vadd.f32 %v4049_v4, %v3856_v6 }
 0x33a   : > { %v3878_v35 = vpop.f32.mrf.mxu0  ;;  %v4051_v53 = vpop.f32.mrf.mxu1  ;;  %5963 = vmatpush1.bf16.msra.mxu0 %v9883_v24  ;;  %6238 = vmatpush1.bf16.msra.mxu1 %v9884_v22  ;;  %v15801_v24 = vld [vmem:[#allocation8_spill] sm:$0xff] }
 0x33b   : > { %15799 = vst [vmem:[#allocation78_spill] sm:$0xff] %v12650_v30  ;;  %v12658_v18 = vadd.f32 %v4051_v53, %v3858_v31  ;;  %5968 = vmatprep.subr.bf16.mxu0 %v15589_v62  ;;  %6239 = vmatprep.subr.bf16.mxu1 %v15589_v62 }
 0x33c   : > { %v3882_v6 = vpop.f32.mrf.mxu0  ;;  %v4055_v4 = vpop.f32.mrf.mxu1  ;;  %9208 = vmatmul.mubr.msk.bf16.gmra.mxu0 %vm1770_vm1, %v12184_v50  ;;  %9223 = vmatmul.mubr.msk.bf16.gmra.mxu1 %vm1770_vm1, %v15801_v24  ;;  %v9888_v50 = vld [vmem:[%s15321_s3 + $0x10] sm:$0xff]  }
 0x33d   : > { %15800 = vst [vmem:[#allocation79_spill] sm:$0xff] %v12658_v18  ;;  %v12666_v22 = vadd.f32 %v4055_v4, %v3862_v26  ;;  %5126 = vmatprep.mubr.bf16.mxu0 %v15589_v62  ;;  %5315 = vmatprep.mubr.bf16.mxu1 %v15589_v62  ;;  %v9887_v18 = vld [vmem:[%s15321_s3 + $0xd0] sm:$0xff]  }
 0x33e   : > { %v3884_v31 = vpop.f32.mrf.mxu0  ;;  %v4057_v53 = vpop.f32.mrf.mxu1  ;;  %5969 = vmatpush2.bf16.msra.mxu0 %v9885_v43  ;;  %6240 = vmatpush1.bf16.msra.mxu1 %v9886_v40 }
 0x33f   : > { %15802 = vst [vmem:[#allocation80_spill] sm:$0xff] %v12666_v22  ;;  %v12676_v30 = vadd.f32 %v4057_v53, %v3864_v49  ;;  %5970 = vmatprep.subr.bf16.mxu0 %v15589_v62  ;;  %6241 = vmatprep.subr.bf16.mxu1 %v15589_v62  ;;  %v9889_v22 = vld [vmem:[%s15321_s3 + $0xc8] sm:$0xff]  }
 0x340   : > { %v3886_v26 = vpop.f32.mrf.mxu0  ;;  %v4059_v4 = vpop.f32.mrf.mxu1  ;;  %v9890_v49 = vld [vmem:[%s15321_s3 + $0x8] sm:$0xff]  }
 0x341   : > { %v12680_v24 = vadd.f32 %v4059_v4, %v3866_v11 }
 0x342   : > { %v3888_v43 = vpop.f32.mrf.mxu0  ;;  %v4061_v40 = vpop.f32.mrf.mxu1  ;;  %5971 = vmatpush2.bf16.msra.mxu0 %v9887_v18  ;;  %6242 = vmatpush1.bf16.msra.mxu1 %v9888_v50  ;;  %v15805_v18 = vld [vmem:[#allocation9_spill] sm:$0xff] }
 0x343   : > { %15803 = vst [vmem:[#allocation6_spill] sm:$0xff] %v12680_v24  ;;  %v12688_v53 = vadd.f32 %v4061_v40, %v3868_v25  ;;  %5972 = vmatprep.subr.bf16.mxu0 %v15589_v62  ;;  %6243 = vmatprep.subr.bf16.mxu1 %v15589_v62 }
 0x344   : > { %v3892_v11 = vpop.f32.mrf.mxu0  ;;  %v4065_v4 = vpop.f32.mrf.mxu1  ;;  %9209 = vmatmul.mubr.msk.bf16.gmra.mxu0 %vm1770_vm1, %v12225_v56  ;;  %9224 = vmatmul.mubr.msk.bf16.gmra.mxu1 %vm1770_vm1, %v15805_v18  ;;  %v9892_v56 = vld [vmem:[%s15321_s3] sm:$0xff]  }
 0x345   : > { %15804 = vst [vmem:[#allocation7_spill] sm:$0xff] %v12688_v53  ;;  %v12696_v50 = vadd.f32 %v4065_v4, %v3872_v54  ;;  %5136 = vmatprep.mubr.bf16.mxu0 %v15589_v62  ;;  %5325 = vmatprep.mubr.bf16.mxu1 %v15589_v62  ;;  %v9891_v53 = vld [vmem:[%s15321_s3 + $0xc0] sm:$0xff]  }
 0x346   : > { %v3894_v25 = vpop.f32.mrf.mxu0  ;;  %v4067_v40 = vpop.f32.mrf.mxu1  ;;  %5973 = vmatpush2.bf16.msra.mxu0 %v9889_v22  ;;  %6244 = vmatpush1.bf16.msra.mxu1 %v9890_v49 }
 0x347   : > { %15806 = vst [vmem:[#allocation8_spill] sm:$0xff] %v12696_v50  ;;  %v12706_v24 = vadd.f32 %v4067_v40, %v3874_v41  ;;  %5974 = vmatprep.subr.bf16.mxu0 %v15589_v62  ;;  %6245 = vmatprep.subr.bf16.mxu1 %v15589_v62  ;;  %v9893_v50 = vld [vmem:[%s15321_s3 + $0xb8] sm:$0xff]   ;;  %v9894_v41 = vld [vmem:[%s15321_s3 + $0x68] sm:$0xff]  }
 0x348   : > { %v3896_v54 = vpop.f32.mrf.mxu0  ;;  %v4069_v4 = vpop.f32.mrf.mxu1 }
 0x349   : > { %15807 = vst [vmem:[#allocation9_spill] sm:$0xff] %v12706_v24  ;;  %v12710_v18 = vadd.f32 %v4069_v4, %v3876_v20 }
 0x34a   : > { %v3898_v22 = vpop.f32.mrf.mxu0  ;;  %v4071_v49 = vpop.f32.mrf.mxu1  ;;  %5975 = vmatpush2.bf16.msra.mxu0 %v9891_v53  ;;  %6246 = vmatpush1.bf16.msra.mxu1 %v9892_v56  ;;  %v15810_v53 = vld [vmem:[#allocation10_spill] sm:$0xff] }
 0x34b   : > { %15808 = vst [vmem:[#allocation89_spill] sm:$0xff] %v12710_v18  ;;  %v12718_v40 = vadd.f32 %v4071_v49, %v3878_v35  ;;  %5976 = vmatprep.subr.bf16.mxu0 %v15589_v62  ;;  %6251 = vmatprep.subr.bf16.mxu1 %v15589_v62 }
 0x34c   : > { %v3902_v20 = vpop.f32.mrf.mxu0  ;;  %v4075_v4 = vpop.f32.mrf.mxu1  ;;  %9210 = vmatmul.mubr.msk.bf16.gmra.mxu0 %vm1770_vm1, %v12266_v21  ;;  %9225 = vmatmul.mubr.msk.bf16.gmra.mxu1 %vm1770_vm1, %v15810_v53  ;;  %v9896_v21 = vld [vmem:[%s15321_s3 + $0x60] sm:$0xff]  }
 0x34d   : > { %15809 = vst [vmem:[#allocation90_spill] sm:$0xff] %v12718_v40  ;;  %v12726_v56 = vadd.f32 %v4075_v4, %v3882_v6  ;;  %5146 = vmatprep.mubr.bf16.mxu0 %v15589_v62  ;;  %5335 = vmatprep.mubr.bf16.mxu1 %v15589_v62  ;;  %v9895_v40 = vld [vmem:[%s15321_s3 + $0xb0] sm:$0xff]  }
 0x34e   : > { %v3904_v35 = vpop.f32.mrf.mxu0  ;;  %v4077_v49 = vpop.f32.mrf.mxu1  ;;  %5977 = vmatpush2.bf16.msra.mxu0 %v9893_v50  ;;  %6252 = vmatpush2.bf16.msra.mxu1 %v9894_v41 }
 0x34f   : > { %15811 = vst [vmem:[#allocation10_spill] sm:$0xff] %v12726_v56  ;;  %v12736_v18 = vadd.f32 %v4077_v49, %v3884_v31  ;;  %5978 = vmatprep.subr.bf16.mxu0 %v15589_v62  ;;  %6253 = vmatprep.subr.bf16.mxu1 %v15589_v62  ;;  %v9897_v56 = vld [vmem:[%s15321_s3 + $0x58] sm:$0xff]  }
 0x350   : > { %v3906_v6 = vpop.f32.mrf.mxu0  ;;  %v4079_v4 = vpop.f32.mrf.mxu1 }
 0x351   : > { %15812 = vst [vmem:[#allocation91_spill] sm:$0xff] %v12736_v18  ;;  %v12740_v53 = vadd.f32 %v4079_v4, %v3886_v26  ;;  %v15815_v26 = vld [vmem:[#allocation11_spill] sm:$0xff]  ;;  %v9898_v4 = vld [vmem:[%s15321_s3 + $0x50] sm:$0xff]  }
 0x352   : > { %v3908_v50 = vpop.f32.mrf.mxu0  ;;  %v4081_v41 = vpop.f32.mrf.mxu1  ;;  %5979 = vmatpush2.bf16.msra.mxu0 %v9895_v40  ;;  %6254 = vmatpush2.bf16.msra.mxu1 %v9896_v21 }
 0x353   : > { %15813 = vst [vmem:[#allocation92_spill] sm:$0xff] %v12740_v53  ;;  %v12745_v24 = vadd.f32 %v4081_v41, %v3888_v43  ;;  %6255 = vmatprep.subr.bf16.mxu1 %v15589_v62  ;;  %6585 = vmatprep.subr.bf16.mxu0 %v15589_v62 }
 0x354   : > { %v3912_v31 = vpop.f32.mrf.mxu0  ;;  %v4085_v49 = vpop.f32.mrf.mxu1  ;;  %9211 = vmatmul.mubr.msk.bf16.gmra.mxu0 %vm1770_vm1, %v12307_v63  ;;  %9226 = vmatmul.mubr.msk.bf16.gmra.mxu1 %vm1770_vm1, %v15815_v26 }
 0x355   : > { %15814 = vst [vmem:[#allocation93_spill] sm:$0xff] %v12745_v24  ;;  %v12753_v40 = vadd.f32 %v4085_v49, %v3892_v11  ;;  %5156 = vmatprep.mubr.bf16.mxu0 %v15589_v62  ;;  %5345 = vmatprep.mubr.bf16.mxu1 %v15589_v62 }
 0x356   : > { %v3914_v43 = vpop.f32.mrf.mxu0  ;;  %v4087_v21 = vpop.f32.mrf.mxu1  ;;  %6256 = vmatpush2.bf16.msra.mxu1 %v9897_v56  ;;  %v9899_v56 = vld [vmem:[%s15321_s3 + $0x48] sm:$0xff]  }
 0x357   : > { %15816 = vst [vmem:[#allocation11_spill] sm:$0xff] %v12753_v40  ;;  %v12760_v41 = vadd.f32 %v4087_v21, %v3894_v25  ;;  %6257 = vmatprep.subr.bf16.mxu1 %v15589_v62 }
 0x358   : > { %v12763_v63 = vpop.f32.mrf.mxu0  ;;  %v4089_v26 = vpop.f32.mrf.mxu1 }
 0x359   : > { %15817 = vst [vmem:[#allocation94_spill] sm:$0xff] %v12760_v41  ;;  %v12765_v11 = vadd.f32 %v4089_v26, %v3896_v54  ;;  %v15820_v41 = vld [vmem:[#allocation12_spill] sm:$0xff]  ;;  %v12782_v26 = vpop.permute.xlu0 %4565 }
 0x35a   : > { %v12767_v49 = vpop.f32.mrf.mxu0  ;;  %v4091_v40 = vpop.f32.mrf.mxu1  ;;  %6258 = vmatpush2.bf16.msra.mxu1 %v9898_v4  ;;  %15822 = vst [vmem:[#allocation97_spill] sm:$0xff] %v12782_v26 }
 0x35b   : > { %15818 = vst [vmem:[#allocation95_spill] sm:$0xff] %v12765_v11  ;;  %v12772_v24 = vadd.f32 %v4091_v40, %v3898_v22  ;;  %6259 = vmatprep.subr.bf16.mxu1 %v15589_v62 }
 0x35c   : > { %v4095_v25 = vpop.f32.mrf.mxu1  ;;  %v4212_v21 = vpop.f32.mrf.mxu0  ;;  %9212 = vmatmul.mubr.msk.bf16.gmra.mxu0 %vm1770_vm1, %v12348_v60  ;;  %9227 = vmatmul.mubr.msk.bf16.gmra.mxu1 %vm1770_vm1, %v15820_v41  ;;  %v9900_v60 = vld [vmem:[%s15321_s3 + $0x40] sm:$0xff]  }
 0x35d   : > { %15819 = vst [vmem:[#allocation96_spill] sm:$0xff] %v12772_v24  ;;  %v12779_v54 = vadd.f32 %v4095_v25, %v3902_v20  ;;  %v4371_v4 = vadd.f32 %v4212_v21, %v12438_v12  ;;  %5166 = vmatprep.mubr.bf16.mxu0 %v15589_v62  ;;  %5355 = vmatprep.mubr.bf16.mxu1 %v15589_v62 }
 0x35e   : > { %v4097_v22 = vpop.f32.mrf.mxu1  ;;  %v4214_v40 = vpop.f32.mrf.mxu0  ;;  %6260 = vmatpush2.bf16.msra.mxu1 %v9899_v56 }
 0x35f   : > { %15821 = vst [vmem:[#allocation12_spill] sm:$0xff] %v12779_v54  ;;  %v4435_v24 = vadd.f32 %v4371_v4, %v11295_v58  ;;  %v12790_v41 = vadd.f32 %v4097_v22, %v3904_v35  ;;  %v4372_v20 = vadd.f32 %v4214_v40, %v12448_v14  ;;  %6261 = vmatprep.subr.bf16.mxu1 %v15589_v62  ;;  %v12801_v22 = vpop.permute.xlu0 %4570 }
 0x360   : > { %v4099_v12 = vpop.f32.mrf.mxu1  ;;  %v4216_v25 = vpop.f32.mrf.mxu0  ;;  %15823 = vst [vmem:[#allocation98_spill] sm:$0xff] %v12801_v22 }
 0x361   : > { %v12794_v21 = vadd.f32 %v4099_v12, %v3906_v6  ;;  %v4373_v54 = vadd.f32 %v4216_v25, %v12455_v61  ;;  %v4436_v56 = vadd.f32 %v4372_v20, %v11304_v38  ;;  %v4499_v18 = vmax.f32 %v4435_v24, 0.0  ;;  %v15824_v61 = vld [vmem:[#allocation13_spill] sm:$0xff] }
 0x362   : > { %v4101_v11 = vpop.f32.mrf.mxu1  ;;  %v4218_v53 = vpop.f32.mrf.mxu0  ;;  %6262 = vmatpush2.bf16.msra.mxu1 %v9900_v60 }
 0x363   : > { %v4437_v4 = vadd.f32 %v4373_v54, %v11295_v58  ;;  %v12799_v35 = vadd.f32 %v4101_v11, %v3908_v50  ;;  %6929 = vmatprep.subr.bf16.mxu1 %v15589_v62  ;;  %v4374_v14 = vadd.f32 %v4218_v53, %v12458_v57  ;;  %v4500_v11 = vmax.f32 %v4436_v56, 0.0 }
 0x364   : > { %v4105_v6 = vpop.f32.mrf.mxu1  ;;  %v4222_v40 = vpop.f32.mrf.mxu0  ;;  %9213 = vmatmul.mubr.msk.bf16.gmra.mxu0 %vm1770_vm1, %v12389_v27  ;;  %9228 = vmatmul.mubr.msk.bf16.gmra.mxu1 %vm1770_vm1, %v15824_v61  ;;  %v12816_v20 = vmul.f32 %v12782_v26, %v4499_v18 }
 0x365   : > { %v4501_v60 = vmax.f32 %v4437_v4, 0.0  ;;  %v12809_v24 = vadd.f32 %v4105_v6, %v3912_v31  ;;  %v4375_v50 = vadd.f32 %v4222_v40, %v12465_v1  ;;  %5176 = vmatprep.mubr.bf16.mxu0 %v15589_v62  ;;  %5365 = vmatprep.mubr.bf16.mxu1 %v15589_v62  ;;  %v4438_v57 = vadd.f32 %v4374_v14, %v11304_v38  ;;  %v12824_v1 = vpop.permute.xlu1 %4575 }
 0x366   : > { %v4107_v53 = vpop.f32.mrf.mxu1  ;;  %v4224_v54 = vpop.f32.mrf.mxu0  ;;  %15825 = vst [vmem:[#allocation13_spill] sm:$0xff] %v12816_v20  ;;  %15827 = vst [vmem:[#allocation100_spill] sm:$0xff] %v12824_v1  ;;  %v12833_v40 = vmul.f32 %v12782_v26, %v4500_v11 }
 0x367   : > { %v12819_v27 = vmul.f32 %v12801_v22, %v4501_v60  ;;  %v12821_v12 = vadd.f32 %v4107_v53, %v3914_v43  ;;  %v4376_v31 = vadd.f32 %v4224_v54, %v12472_v7  ;;  %v4502_v25 = vmax.f32 %v4438_v57, 0.0 }
 0x368   : > { %v4439_v4 = vadd.f32 %v4375_v50, %v11295_v58  ;;  %v4109_v56 = vpop.f32.mrf.mxu1  ;;  %v4226_v6 = vpop.f32.mrf.mxu0  ;;  %15828 = vst [vmem:[#allocation101_spill] sm:$0xff] %v12833_v40 }
 0x369   : > { %15826 = vst [vmem:[#allocation99_spill] sm:$0xff] %v12819_v27  ;;  %v12830_v18 = vadd.f32 %v4109_v56, %v12763_v63  ;;  %v12836_v43 = vmul.f32 %v12801_v22, %v4502_v25  ;;  %v4440_v7 = vadd.f32 %v4376_v31, %v11304_v38  ;;  %v4377_v61 = vadd.f32 %v4226_v6, %v12476_v17  ;;  %v15830_v25 = vld [vmem:[#allocation14_spill] sm:$0xff] }
 0x36a   : > { %v4111_v60 = vpop.f32.mrf.mxu1  ;;  %v4228_v50 = vpop.f32.mrf.mxu0  ;;  %v4503_v54 = vmax.f32 %v4439_v4, 0.0 }
 0x36b   : > { %15829 = vst [vmem:[#allocation102_spill] sm:$0xff] %v12836_v43  ;;  %v12841_v57 = vadd.f32 %v4111_v60, %v12767_v49  ;;  %v4378_v53 = vadd.f32 %v4228_v50, %v12478_v9  ;;  %v4441_v63 = vadd.f32 %v4377_v61, %v11295_v58  ;;  %v12855_v9 = vpop.permute.xlu1 %4580  ;;  %v4504_v4 = vmax.f32 %v4440_v7, 0.0 }
 0x36c   : > { %v4232_v56 = vpop.f32.mrf.mxu0  ;;  %v12845_v11 = vpop.f32.mrf.mxu1  ;;  %9214 = vmatmul.mubr.msk.bf16.gmra.mxu0 %vm1770_vm1, %v12423_v36  ;;  %9229 = vmatmul.mubr.msk.bf16.gmra.mxu1 %vm1770_vm1, %v15830_v25  ;;  %15831 = vst [vmem:[#allocation14_spill] sm:$0xff] %v12855_v9  ;;  %v12863_v25 = vmul.f32 %v12824_v1, %v4503_v54 }
 0x36d   : > { %v4442_v49 = vadd.f32 %v4378_v53, %v11304_v38  ;;  %v4379_v31 = vadd.f32 %v4232_v56, %v12484_v33  ;;  %5186 = vmatprep.mubr.bf16.mxu0 %v15589_v62  ;;  %5375 = vmatprep.mubr.bf16.mxu1 %v15589_v62  ;;  %v4505_v6 = vmax.f32 %v4441_v63, 0.0 }
 0x36e   : > { %v4234_v61 = vpop.f32.mrf.mxu0  ;;  %v12859_v36 = vpop.f32.mrf.mxu1  ;;  %15832 = vst [vmem:[#allocation103_spill] sm:$0xff] %v12863_v25 }
 0x36f   : > { %v4506_v60 = vmax.f32 %v4442_v49, 0.0  ;;  %v4380_v50 = vadd.f32 %v4234_v61, %v12491_v45  ;;  %v4443_v53 = vadd.f32 %v4379_v31, %v11295_v58  ;;  %v12867_v33 = vmul.f32 %v12855_v9, %v4505_v6  ;;  %v12885_v20 = vpop.permute.xlu1 %4590  ;;  %v12895_v31 = vpop.permute.xlu0 %4585 }
 0x370   : > { %v4236_v56 = vpop.f32.mrf.mxu0  ;;  %v12869_v14 = vpop.f32.mrf.mxu1  ;;  %v12876_v49 = vmul.f32 %v12824_v1, %v4504_v4  ;;  %15836 = vst [vmem:[#allocation107_spill] sm:$0xff] %v12885_v20  ;;  %v15837_v4 = vld [vmem:[#allocation15_spill] sm:$0xff] }
 0x371   : > { %15833 = vst [vmem:[#allocation104_spill] sm:$0xff] %v12867_v33  ;;  %v12872_v7 = vmul.f32 %v12855_v9, %v4506_v60  ;;  %v4381_v63 = vadd.f32 %v4236_v56, %v12495_v15  ;;  %v4444_v45 = vadd.f32 %v4380_v50, %v11304_v38  ;;  %v4507_v60 = vmax.f32 %v4443_v53, 0.0  ;;  %15838 = vst [vmem:[#allocation15_spill] sm:$0xff] %v12895_v31 }
 0x372   : > { %15835 = vst [vmem:[#allocation106_spill] sm:$0xff] %v12876_v49  ;;  %v4238_v54 = vpop.f32.mrf.mxu0  ;;  %v12879_v61 = vpop.f32.mrf.mxu1 }
 0x373   : > { %15834 = vst [vmem:[#allocation105_spill] sm:$0xff] %v12872_v7  ;;  %v4445_v6 = vadd.f32 %v4381_v63, %v11295_v58  ;;  %v4382_v17 = vadd.f32 %v4238_v54, %v12497_v10  ;;  %v4508_v53 = vmax.f32 %v4444_v45, 0.0  ;;  %v12908_v50 = vmul.f32 %v12895_v31, %v4507_v60  ;;  %v12927_v7 = vpop.permute.xlu1 %4600  ;;  %v12937_v60 = vpop.permute.xlu0 %4595 }
 0x374   : > { %v4242_v27 = vpop.f32.mrf.mxu0  ;;  %v12887_v15 = vpop.f32.mrf.mxu1  ;;  %9215 = vmatmul.mubr.msk.bf16.gmra.mxu0 %vm1770_vm1, %v12450_v8  ;;  %9230 = vmatmul.mubr.msk.bf16.gmra.mxu1 %vm1770_vm1, %v15837_v4  ;;  %15843 = vst [vmem:[#allocation112_spill] sm:$0xff] %v12927_v7 }
 0x375   : > { %v4509_v56 = vmax.f32 %v4445_v6, 0.0  ;;  %v4446_v10 = vadd.f32 %v4382_v17, %v11304_v38  ;;  %v4383_v63 = vadd.f32 %v4242_v27, %v12503_v2  ;;  %5196 = vmatprep.mubr.bf16.mxu0 %v15589_v62  ;;  %5385 = vmatprep.mubr.bf16.mxu1 %v15589_v62  ;;  %15840 = vst [vmem:[#allocation109_spill] sm:$0xff] %v12908_v50 }
 0x376   : > { %v4244_v54 = vpop.f32.mrf.mxu0  ;;  %v12901_v8 = vpop.f32.mrf.mxu1 }
 0x377   : > { %v4510_v25 = vmax.f32 %v4446_v10, 0.0  ;;  %v12904_v4 = vmul.f32 %v12885_v20, %v4509_v56  ;;  %v4384_v6 = vadd.f32 %v4244_v54, %v12510_v19  ;;  %v4447_v17 = vadd.f32 %v4383_v63, %v11295_v58 }
 0x378   : > { %v4246_v2 = vpop.f32.mrf.mxu0  ;;  %v12911_v27 = vpop.f32.mrf.mxu1  ;;  %v12918_v10 = vmul.f32 %v12895_v31, %v4508_v53  ;;  %v15844_v53 = vld [vmem:[#allocation16_spill] sm:$0xff] }
 0x379   : > { %15839 = vst [vmem:[#allocation108_spill] sm:$0xff] %v12904_v4  ;;  %v12914_v33 = vmul.f32 %v12885_v20, %v4510_v25  ;;  %v4385_v45 = vadd.f32 %v4246_v2, %v12514_v29  ;;  %v4448_v56 = vadd.f32 %v4384_v6, %v11304_v38  ;;  %v4511_v25 = vmax.f32 %v4447_v17, 0.0  ;;  %15845 = vst [vmem:[#allocation16_spill] sm:$0xff] %v12937_v60 }
 0x37a   : > { %15842 = vst [vmem:[#allocation111_spill] sm:$0xff] %v12918_v10  ;;  %v4248_v49 = vpop.f32.mrf.mxu0  ;;  %v12921_v19 = vpop.f32.mrf.mxu1 }
 0x37b   : > { %15841 = vst [vmem:[#allocation110_spill] sm:$0xff] %v12914_v33  ;;  %v4449_v63 = vadd.f32 %v4385_v45, %v11295_v58  ;;  %v4386_v54 = vadd.f32 %v4248_v49, %v12516_v55  ;;  %v4512_v17 = vmax.f32 %v4448_v56, 0.0  ;;  %v12950_v6 = vmul.f32 %v12937_v60, %v4511_v25 }
 0x37c   : > { %v4252_v40 = vpop.f32.mrf.mxu0  ;;  %v12929_v29 = vpop.f32.mrf.mxu1  ;;  %9216 = vmatmul.mubr.msk.bf16.gmra.mxu0 %vm1770_vm1, %v12474_v42  ;;  %9231 = vmatmul.mubr.msk.bf16.gmra.mxu1 %vm1770_vm1, %v15844_v53 }
 0x37d   : > { %v4513_v2 = vmax.f32 %v4449_v63, 0.0  ;;  %v4450_v55 = vadd.f32 %v4386_v54, %v11304_v38  ;;  %v4387_v49 = vadd.f32 %v4252_v40, %v12522_v46  ;;  %5206 = vmatprep.mubr.bf16.mxu0 %v15589_v62  ;;  %5395 = vmatprep.mubr.bf16.mxu1 %v15589_v62  ;;  %15847 = vst [vmem:[#allocation114_spill] sm:$0xff] %v12950_v6 }
 0x37e   : > { %v4254_v45 = vpop.f32.mrf.mxu0  ;;  %v12943_v42 = vpop.f32.mrf.mxu1 }
 0x37f   : > { %v4514_v50 = vmax.f32 %v4450_v55, 0.0  ;;  %v12946_v53 = vmul.f32 %v12927_v7, %v4513_v2  ;;  %v4388_v63 = vadd.f32 %v4254_v45, %v12529_v34  ;;  %v4451_v54 = vadd.f32 %v4387_v49, %v11295_v58  ;;  %v12969_v45 = vpop.permute.xlu1 %4610 }
 0x380   : > { %v4256_v46 = vpop.f32.mrf.mxu0  ;;  %v12953_v40 = vpop.f32.mrf.mxu1  ;;  %v12960_v55 = vmul.f32 %v12937_v60, %v4512_v17  ;;  %15850 = vst [vmem:[#allocation117_spill] sm:$0xff] %v12969_v45 }
 0x381   : > { %15846 = vst [vmem:[#allocation113_spill] sm:$0xff] %v12946_v53  ;;  %v12956_v4 = vmul.f32 %v12927_v7, %v4514_v50  ;;  %v4389_v56 = vadd.f32 %v4256_v46, %v12533_v0  ;;  %v4452_v2 = vadd.f32 %v4388_v63, %v11304_v38  ;;  %v4515_v0 = vmax.f32 %v4451_v54, 0.0  ;;  %v15851_v63 = vld [vmem:[#allocation17_spill] sm:$0xff]  ;;  %v9009_v54 = vld [vmem:[%s10668_s13 + $0x7c0] sm:$0xff]  ;;  %v9010_v53 = vld [vmem:[%s10668_s13 + $0x7c8] sm:$0xff] }
 0x382   : > { %15849 = vst [vmem:[#allocation116_spill] sm:$0xff] %v12960_v55  ;;  %v4258_v10 = vpop.f32.mrf.mxu0  ;;  %v12963_v34 = vpop.f32.mrf.mxu1 }
 0x383   : > { %15848 = vst [vmem:[#allocation115_spill] sm:$0xff] %v12956_v4  ;;  %v4453_v49 = vadd.f32 %v4389_v56, %v11295_v58  ;;  %v4390_v50 = vadd.f32 %v4258_v10, %v12535_v32  ;;  %v12979_v56 = vpop.permute.xlu0 %4605  ;;  %v5237_v4 = vpack.c.bf16 %v9010_v53, %v9009_v54  ;;  %v13013_v54 = vpop.permute.xlu1 %4620 }
 0x384   : > { %v4262_v46 = vpop.f32.mrf.mxu0  ;;  %v12971_v17 = vpop.f32.mrf.mxu1  ;;  %9217 = vmatmul.mubr.msk.bf16.gmra.mxu0 %vm1770_vm1, %v12493_v47  ;;  %9232 = vmatmul.mubr.msk.bf16.gmra.mxu1 %vm1770_vm1, %v15851_v63  ;;  %15852 = vst [vmem:[#allocation17_spill] sm:$0xff] %v12979_v56  ;;  %v4516_v47 = vmax.f32 %v4452_v2, 0.0  ;;  %15857 = vst [vmem:[#allocation122_spill] sm:$0xff] %v13013_v54 }
 0x385   : > { %v4517_v6 = vmax.f32 %v4453_v49, 0.0  ;;  %v4454_v32 = vadd.f32 %v4390_v50, %v11304_v38  ;;  %v4391_v10 = vadd.f32 %v4262_v46, %v12540_v51  ;;  %5216 = vmatprep.mubr.bf16.mxu0 %v15589_v62  ;;  %5405 = vmatprep.mubr.bf16.mxu1 %v15589_v62  ;;  %v12994_v50 = vmul.f32 %v12979_v56, %v4515_v0 }
 0x386   : > { %v4264_v33 = vpop.f32.mrf.mxu0  ;;  %v12987_v43 = vpop.f32.mrf.mxu1 }
 0x387   : > { %v4518_v63 = vmax.f32 %v4454_v32, 0.0  ;;  %v12990_v25 = vmul.f32 %v12969_v45, %v4517_v6  ;;  %v4392_v49 = vadd.f32 %v4264_v33, %v12546_v59  ;;  %15854 = vst [vmem:[#allocation119_spill] sm:$0xff] %v12994_v50  ;;  %v4455_v51 = vadd.f32 %v4391_v10, %v11295_v58  ;;  %v13022_v0 = vpop.permute.xlu0 %4615 }
 0x388   : > { %v4266_v46 = vpop.f32.mrf.mxu0  ;;  %v12997_v55 = vpop.f32.mrf.mxu1  ;;  %v13004_v32 = vmul.f32 %v12979_v56, %v4516_v47  ;;  %15858 = vst [vmem:[#allocation123_spill] sm:$0xff] %v13022_v0 }
 0x389   : > { %15853 = vst [vmem:[#allocation118_spill] sm:$0xff] %v12990_v25  ;;  %v13000_v2 = vmul.f32 %v12969_v45, %v4518_v63  ;;  %v4393_v60 = vadd.f32 %v4266_v46, %v12548_v16  ;;  %v4456_v6 = vadd.f32 %v4392_v49, %v11304_v38  ;;  %v4519_v16 = vmax.f32 %v4455_v51, 0.0  ;;  %v9011_v51 = vld [vmem:[%s10668_s13 + $0x7d0] sm:$0xff] }
 0x38a   : > { %15856 = vst [vmem:[#allocation121_spill] sm:$0xff] %v13004_v32  ;;  %v4268_v59 = vpop.f32.mrf.mxu0  ;;  %v13007_v33 = vpop.f32.mrf.mxu1 }
 0x38b   : > { %15855 = vst [vmem:[#allocation120_spill] sm:$0xff] %v13000_v2  ;;  %v4457_v10 = vadd.f32 %v4393_v60, %v11295_v58  ;;  %v4394_v53 = vadd.f32 %v4268_v59, %v12553_v28  ;;  %v9012_v59 = vld [vmem:[%s10668_s13 + $0x7d8] sm:$0xff]  ;;  %v4520_v50 = vmax.f32 %v4456_v6, 0.0 }
 0x38c   : > { %v4272_v63 = vpop.f32.mrf.mxu0  ;;  %v13015_v47 = vpop.f32.mrf.mxu1  ;;  %9218 = vmatmul.mubr.msk.bf16.gmra.mxu0 %vm1770_vm1, %v12512_v37  ;;  %9233 = vmatmul.mubr.msk.bf16.gmra.mxu1 %vm1770_vm1, %v5237_v4  ;;  %v5238_v2 = vpack.c.bf16 %v9012_v59, %v9011_v51 }
 0x38d   : > { %v4521_v46 = vmax.f32 %v4457_v10, 0.0  ;;  %v4458_v60 = vadd.f32 %v4394_v53, %v11304_v38  ;;  %v4395_v28 = vadd.f32 %v4272_v63, %v12558_v5  ;;  %5226 = vmatprep.mubr.bf16.mxu0 %v15589_v62  ;;  %5415 = vmatprep.mubr.bf16.mxu1 %v15589_v62  ;;  %v13037_v53 = vmul.f32 %v13022_v0, %v4519_v16  ;;  %v13056_v59 = vpop.permute.xlu1 %4630 }
 0x38e   : > { %v4274_v37 = vpop.f32.mrf.mxu0  ;;  %v13030_v25 = vpop.f32.mrf.mxu1  ;;  %15863 = vst [vmem:[#allocation128_spill] sm:$0xff] %v13056_v59 }
 0x38f   : > { %v4522_v4 = vmax.f32 %v4458_v60, 0.0  ;;  %v13033_v49 = vmul.f32 %v13013_v54, %v4521_v46  ;;  %v4396_v10 = vadd.f32 %v4274_v37, %v12567_v48  ;;  %15860 = vst [vmem:[#allocation125_spill] sm:$0xff] %v13037_v53  ;;  %v4459_v5 = vadd.f32 %v4395_v28, %v11295_v58  ;;  %v13065_v53 = vpop.permute.xlu0 %4625 }
 0x390   : > { %v4276_v63 = vpop.f32.mrf.mxu0  ;;  %v13040_v32 = vpop.f32.mrf.mxu1  ;;  %v13047_v60 = vmul.f32 %v13022_v0, %v4520_v50  ;;  %v9014_v0 = vld [vmem:[%s10668_s13 + $0x7e8] sm:$0xff] }
 0x391   : > { %15859 = vst [vmem:[#allocation124_spill] sm:$0xff] %v13033_v49  ;;  %v13043_v6 = vmul.f32 %v13013_v54, %v4522_v4  ;;  %v4397_v56 = vadd.f32 %v4276_v63, %v12570_v39  ;;  %v4460_v46 = vadd.f32 %v4396_v10, %v11304_v38  ;;  %v4523_v39 = vmax.f32 %v4459_v5, 0.0  ;;  %v15864_v10 = vld [vmem:[#allocation47_spill] sm:$0xff] }
 0x392   : > { %15862 = vst [vmem:[#allocation127_spill] sm:$0xff] %v13047_v60  ;;  %v4278_v48 = vpop.f32.mrf.mxu0  ;;  %v13050_v37 = vpop.f32.mrf.mxu1  ;;  %15865 = vst [vmem:[#allocation47_spill] sm:$0xff] %v13065_v53  ;;  %v15867_v49 = vld [vmem:[#allocation55_spill] sm:$0xff] }
 0x393   : > { %15861 = vst [vmem:[#allocation126_spill] sm:$0xff] %v13043_v6  ;;  %v4461_v28 = vadd.f32 %v4397_v56, %v11295_v58  ;;  %v4398_v51 = vadd.f32 %v4278_v48, %v12575_v23  ;;  %v15866_v23 = vld [vmem:[#allocation49_spill] sm:$0xff]  ;;  %v9013_v5 = vld [vmem:[%s10668_s13 + $0x7e0] sm:$0xff] }
 0x394   : > { %v4282_v50 = vpop.f32.mrf.mxu0  ;;  %v13058_v4 = vpop.f32.mrf.mxu1  ;;  %9219 = vmatmul.mubr.msk.bf16.gmra.mxu0 %vm1770_vm1, %v15864_v10  ;;  %9234 = vmatmul.mubr.msk.bf16.gmra.mxu1 %vm1770_vm1, %v5238_v2  ;;  %v4524_v10 = vmax.f32 %v4460_v46, 0.0  ;;  %v5239_v60 = vpack.c.bf16 %v9014_v0, %v9013_v5  ;;  %v15872_v6 = vld [vmem:[#allocation51_spill] sm:$0xff] }
 0x395   : > { %v4525_v16 = vmax.f32 %v4461_v28, 0.0  ;;  %v4462_v56 = vadd.f32 %v4398_v51, %v11304_v38  ;;  %v4399_v48 = vadd.f32 %v4282_v50, %v15866_v23  ;;  %9279 = vmatprep.mubr.msk.bf16.mxu0 %vm5899_vm2, %v15867_v49  ;;  %5425 = vmatprep.mubr.bf16.mxu1 %v15589_v62  ;;  %v13081_v51 = vmul.f32 %v13065_v53, %v4523_v39  ;;  %v9901_v39 = vld [vmem:[%s15321_s3 + $0x118] sm:$0xff]  }
 0x396   : > { %v4284_v54 = vpop.f32.mrf.mxu0  ;;  %v13074_v2 = vpop.f32.mrf.mxu1 }
 0x397   : > { %15868 = vst [vmem:[#allocation49_spill] sm:$0xff] %v13074_v2  ;;  %v4526_v45 = vmax.f32 %v4462_v56, 0.0  ;;  %v13077_v28 = vmul.f32 %v13056_v59, %v4525_v16  ;;  %v4400_v63 = vadd.f32 %v4284_v54, %v12588_v3  ;;  %15870 = vst [vmem:[#allocation129_spill] sm:$0xff] %v13081_v51  ;;  %v4463_v50 = vadd.f32 %v4399_v48, %v11295_v58  ;;  %v13103_v48 = vpop.permute.xlu1 %4640  ;;  %v13111_v51 = vpop.permute.xlu0 %4635 }
 0x398   : > { %v4286_v49 = vpop.f32.mrf.mxu0  ;;  %v13084_v23 = vpop.f32.mrf.mxu1  ;;  %v13091_v56 = vmul.f32 %v13065_v53, %v4524_v10  ;;  %15875 = vst [vmem:[#allocation132_spill] sm:$0xff] %v13103_v48 }
 0x399   : > { %15869 = vst [vmem:[#allocation55_spill] sm:$0xff] %v13077_v28  ;;  %v13087_v46 = vmul.f32 %v13056_v59, %v4526_v45  ;;  %v4401_v2 = vadd.f32 %v4286_v49, %v15872_v6  ;;  %v4464_v16 = vadd.f32 %v4400_v63, %v11304_v38  ;;  %v4527_v5 = vmax.f32 %v4463_v50, 0.0  ;;  %v15877_v49 = vld [vmem:[#allocation54_spill] sm:$0xff]  ;;  %v15879_v28 = vld [vmem:[#allocation52_spill] sm:$0xff]  ;;  %v9015_v50 = vld [vmem:[%s10668_s13 + $0x7f0] sm:$0xff] }
 0x39a   : > { %15873 = vst [vmem:[#allocation51_spill] sm:$0xff] %v13091_v56  ;;  %v4288_v3 = vpop.f32.mrf.mxu0  ;;  %v13094_v54 = vpop.f32.mrf.mxu1  ;;  %15878 = vst [vmem:[#allocation54_spill] sm:$0xff] %v13111_v51  ;;  %v9016_v59 = vld [vmem:[%s10668_s13 + $0x7f8] sm:$0xff] }
 0x39b   : > { %15871 = vst [vmem:[#allocation130_spill] sm:$0xff] %v13087_v46  ;;  %15874 = vst [vmem:[#allocation131_spill] sm:$0xff] %v13094_v54  ;;  %v4465_v45 = vadd.f32 %v4401_v2, %v11295_v58  ;;  %v4402_v6 = vadd.f32 %v4288_v3, %v12599_v13  ;;  %v15880_v3 = vld [vmem:[#allocation57_spill] sm:$0xff] }
 0x39c   : > { %v4292_v63 = vpop.f32.mrf.mxu0  ;;  %v13105_v10 = vpop.f32.mrf.mxu1  ;;  %9235 = vmatmul.mubr.msk.bf16.gmra.mxu1 %vm1770_vm1, %v5239_v60  ;;  %5981 = vmatmul.mubr.bf16.vlgmr.msra.gmra.mxu0 %v15877_v49  ;;  %v4528_v60 = vmax.f32 %v4464_v16, 0.0 }
 0x39d   : > { %15876 = vst [vmem:[#allocation133_spill] sm:$0xff] %v13105_v10  ;;  %v4529_v0 = vmax.f32 %v4465_v45, 0.0  ;;  %v4466_v2 = vadd.f32 %v4402_v6, %v11304_v38  ;;  %v4403_v13 = vadd.f32 %v4292_v63, %v15879_v28  ;;  %9280 = vmatprep.mubr.msk.bf16.mxu0 %vm5899_vm2, %v15880_v3  ;;  %5435 = vmatprep.mubr.bf16.mxu1 %v15589_v62  ;;  %v9902_v45 = vld [vmem:[%s15321_s3 + $0x110] sm:$0xff]  }
 0x39e   : > { %v4294_v10 = vpop.f32.mrf.mxu0  ;;  %v13120_v49 = vpop.f32.mrf.mxu1  ;;  %6586 = vmatpush1.bf16.msra.mxu0 %v9901_v39  ;;  %v13131_v63 = vmul.f32 %v13111_v51, %v4527_v5  ;;  %v5240_v39 = vpack.c.bf16 %v9016_v59, %v9015_v50  ;;  %v9903_v5 = vld [vmem:[%s15321_s3 + $0x108] sm:$0xff]  }
 0x39f   : > { %15881 = vst [vmem:[#allocation52_spill] sm:$0xff] %v13120_v49  ;;  %v4530_v53 = vmax.f32 %v4466_v2, 0.0  ;;  %v13126_v6 = vmul.f32 %v13103_v48, %v4529_v0  ;;  %v4404_v28 = vadd.f32 %v4294_v10, %v12616_v52  ;;  %6587 = vmatprep.subr.bf16.mxu0 %v15589_v62  ;;  %v4467_v16 = vadd.f32 %v4403_v13, %v11295_v58  ;;  %v15885_v2 = vld [vmem:[#allocation20_spill] sm:$0xff]  ;;  %v15887_v13 = vld [vmem:[#allocation50_spill] sm:$0xff] }
 0x3a0   : > { %15883 = vst [vmem:[#allocation134_spill] sm:$0xff] %v13131_v63  ;;  %v4296_v3 = vpop.f32.mrf.mxu0  ;;  %v13134_v56 = vpop.f32.mrf.mxu1  ;;  %v13141_v0 = vmul.f32 %v13111_v51, %v4528_v60 }
 0x3a1   : > { %15882 = vst [vmem:[#allocation57_spill] sm:$0xff] %v13126_v6  ;;  %v13137_v46 = vmul.f32 %v13103_v48, %v4530_v53  ;;  %v4405_v49 = vadd.f32 %v4296_v3, %v15885_v2  ;;  %v4468_v52 = vadd.f32 %v4404_v28, %v11304_v38  ;;  %v13153_v3 = vpop.permute.xlu1 %4650  ;;  %v4531_v60 = vmax.f32 %v4467_v16, 0.0  ;;  %v13162_v63 = vpop.permute.xlu0 %4645  ;;  %v15893_v6 = vld [vmem:[#allocation59_spill] sm:$0xff] }
 0x3a2   : > { %15886 = vst [vmem:[#allocation20_spill] sm:$0xff] %v13141_v0  ;;  %v4298_v10 = vpop.f32.mrf.mxu0  ;;  %v13144_v54 = vpop.f32.mrf.mxu1  ;;  %6588 = vmatpush1.bf16.msra.mxu0 %v9902_v45  ;;  %15888 = vst [vmem:[#allocation50_spill] sm:$0xff] %v13153_v3  ;;  %v15890_v45 = vld [vmem:[#allocation56_spill] sm:$0xff]  ;;  %v15894_v16 = vmov 0.0|0.0   ;;  %v15898_v0 = vld [vmem:[#allocation78_spill] sm:$0xff] }
 0x3a3   : > { %15884 = vst [vmem:[#allocation135_spill] sm:$0xff] %v13137_v46  ;;  %v4469_v53 = vadd.f32 %v4405_v49, %v11295_v58  ;;  %v4406_v50 = vadd.f32 %v4298_v10, %v15887_v13  ;;  %6589 = vmatprep.subr.bf16.mxu0 %v15589_v62  ;;  %15891 = vst [vmem:[#allocation56_spill] sm:$0xff] %v13162_v63  ;;  %v15892_v10 = vld [vmem:[#allocation77_spill] sm:$0xff]  ;;  %v4532_v48 = vmax.f32 %v4468_v52, 0.0 }
 0x3a4   : > { %v4302_v28 = vpop.f32.mrf.mxu0  ;;  %v13156_v2 = vpop.f32.mrf.mxu1  ;;  %9236 = vmatmul.mubr.msk.bf16.gmra.mxu1 %vm1770_vm1, %v5240_v39  ;;  %5989 = vmatmul.mubr.bf16.gmra.mxu0 %v15890_v45 }
 0x3a5   : > { %15889 = vst [vmem:[#allocation136_spill] sm:$0xff] %v13156_v2  ;;  %v4533_v59 = vmax.f32 %v4469_v53, 0.0  ;;  %v4470_v49 = vadd.f32 %v4406_v50, %v11304_v38  ;;  %v4407_v13 = vadd.f32 %v4302_v28, %v15892_v10  ;;  %9281 = vmatprep.mubr.msk.bf16.mxu0 %vm5899_vm2, %v15893_v6  ;;  %6263 = vmatprep.mubr.bf16.mxu1 %v15894_v16  ;;  %v9904_v53 = vld [vmem:[%s15321_s3 + $0x100] sm:$0xff]  }
 0x3a6   : > { %v4304_v2 = vpop.f32.mrf.mxu0  ;;  %v13169_v39 = vpop.f32.mrf.mxu1  ;;  %6590 = vmatpush1.bf16.msra.mxu0 %v9903_v5  ;;  %v13180_v6 = vmul.f32 %v13162_v63, %v4531_v60  ;;  %v9905_v60 = vld [vmem:[%s15321_s3 + $0xf8] sm:$0xff]  }
 0x3a7   : > { %v4534_v45 = vmax.f32 %v4470_v49, 0.0  ;;  %v13175_v51 = vmul.f32 %v13153_v3, %v4533_v59  ;;  %v4408_v50 = vadd.f32 %v4304_v2, %v12646_v44  ;;  %6591 = vmatprep.subr.bf16.mxu0 %v15589_v62  ;;  %v4471_v52 = vadd.f32 %v4407_v13, %v11295_v58 }
 0x3a8   : > { %15896 = vst [vmem:[#allocation59_spill] sm:$0xff] %v13180_v6  ;;  %v4306_v28 = vpop.f32.mrf.mxu0  ;;  %v13183_v10 = vpop.f32.mrf.mxu1  ;;  %v13190_v59 = vmul.f32 %v13162_v63, %v4532_v48 }
 0x3a9   : > { %15895 = vst [vmem:[#allocation77_spill] sm:$0xff] %v13175_v51  ;;  %v13186_v5 = vmul.f32 %v13153_v3, %v4534_v45  ;;  %v4409_v49 = vadd.f32 %v4306_v28, %v15898_v0  ;;  %v4472_v44 = vadd.f32 %v4408_v50, %v11304_v38  ;;  %v15901_v3 = vld [vmem:[#allocation79_spill] sm:$0xff]  ;;  %v13202_v28 = vpop.permute.xlu1 %4660  ;;  %v4535_v48 = vmax.f32 %v4471_v52, 0.0  ;;  %v13211_v6 = vpop.permute.xlu0 %4655  ;;  %v15907_v51 = vld [vmem:[#allocation61_spill] sm:$0xff] }
 0x3aa   : > { %15899 = vst [vmem:[#allocation78_spill] sm:$0xff] %v13190_v59  ;;  %v4308_v2 = vpop.f32.mrf.mxu0  ;;  %v13193_v46 = vpop.f32.mrf.mxu1  ;;  %6592 = vmatpush1.bf16.msra.mxu0 %v9904_v53  ;;  %15902 = vst [vmem:[#allocation79_spill] sm:$0xff] %v13202_v28  ;;  %v15904_v53 = vld [vmem:[#allocation58_spill] sm:$0xff] }
 0x3ab   : > { %15897 = vst [vmem:[#allocation137_spill] sm:$0xff] %v13186_v5  ;;  %15900 = vst [vmem:[#allocation138_spill] sm:$0xff] %v13193_v46  ;;  %v4473_v45 = vadd.f32 %v4409_v49, %v11295_v58  ;;  %v4410_v0 = vadd.f32 %v4308_v2, %v15901_v3  ;;  %6593 = vmatprep.subr.bf16.mxu0 %v15589_v62  ;;  %v15906_v49 = vld [vmem:[#allocation80_spill] sm:$0xff]  ;;  %v4536_v52 = vmax.f32 %v4472_v44, 0.0 }
 0x3ac   : > { %v4312_v50 = vpop.f32.mrf.mxu0  ;;  %v13205_v63 = vpop.f32.mrf.mxu1  ;;  %5997 = vmatmul.mubr.bf16.gmra.mxu0 %v15904_v53  ;;  %6264 = vmatmul.mubr.bf16.vlgmr.msra.gmra.mxu1 %v15894_v16  ;;  %15905 = vst [vmem:[#allocation58_spill] sm:$0xff] %v13211_v6  ;;  %v13233_v44 = vmul.f32 %v13211_v6, %v4535_v48  ;;  %v9907_v48 = vld [vmem:[%s15321_s3 + $0xe8] sm:$0xff]  }
 0x3ad   : > { %15903 = vst [vmem:[#allocation139_spill] sm:$0xff] %v13205_v63  ;;  %v4537_v13 = vmax.f32 %v4473_v45, 0.0  ;;  %v4474_v3 = vadd.f32 %v4410_v0, %v11304_v38  ;;  %v4411_v2 = vadd.f32 %v4312_v50, %v15906_v49  ;;  %9282 = vmatprep.mubr.msk.bf16.mxu0 %vm5899_vm2, %v15907_v51  ;;  %6271 = vmatprep.mubr.bf16.mxu1 %v15894_v16  ;;  %v9906_v45 = vld [vmem:[%s15321_s3 + $0xf0] sm:$0xff]   ;;  %v9961_v0 = vld [vmem:[%s15321_s3 + $0xa8] sm:$0xff]  }
 0x3ae   : > { %v4314_v63 = vpop.f32.mrf.mxu0  ;;  %v13218_v53 = vpop.f32.mrf.mxu1  ;;  %6594 = vmatpush1.bf16.msra.mxu0 %v9905_v60  ;;  %6930 = vmatpush1.bf16.msra.mxu1 %v9961_v0  ;;  %15910 = vst [vmem:[#allocation140_spill] sm:$0xff] %v13233_v44  ;;  %v13243_v5 = vmul.f32 %v13211_v6, %v4536_v52 }
 0x3af   : > { %15908 = vst [vmem:[#allocation80_spill] sm:$0xff] %v13218_v53  ;;  %v4538_v50 = vmax.f32 %v4474_v3, 0.0  ;;  %v13227_v49 = vmul.f32 %v13202_v28, %v4537_v13  ;;  %v4412_v51 = vadd.f32 %v4314_v63, %v12676_v30  ;;  %6595 = vmatprep.subr.bf16.mxu0 %v15589_v62  ;;  %6931 = vmatprep.subr.bf16.mxu1 %v15589_v62  ;;  %v15913_v3 = vld [vmem:[#allocation6_spill] sm:$0xff] }
 0x3b0   : > { %v4475_v60 = vadd.f32 %v4411_v2, %v11295_v58  ;;  %v4316_v46 = vpop.f32.mrf.mxu0  ;;  %v13236_v59 = vpop.f32.mrf.mxu1  ;;  %15914 = vst [vmem:[#allocation6_spill] sm:$0xff] %v13243_v5  ;;  %v9962_v2 = vld [vmem:[%s15321_s3 + $0xa0] sm:$0xff]  }
 0x3b1   : > { %15909 = vst [vmem:[#allocation61_spill] sm:$0xff] %v13227_v49  ;;  %15911 = vst [vmem:[#allocation141_spill] sm:$0xff] %v13236_v59  ;;  %v13239_v0 = vmul.f32 %v13202_v28, %v4538_v50  ;;  %v4413_v13 = vadd.f32 %v4316_v46, %v15913_v3  ;;  %v4476_v30 = vadd.f32 %v4412_v51, %v11304_v38  ;;  %v15916_v50 = vld [vmem:[#allocation7_spill] sm:$0xff]  ;;  %v13258_v3 = vpop.permute.xlu1 %4670  ;;  %v13268_v46 = vpop.permute.xlu0 %4665 }
 0x3b2   : > { %v4318_v63 = vpop.f32.mrf.mxu0  ;;  %v13246_v53 = vpop.f32.mrf.mxu1  ;;  %6596 = vmatpush1.bf16.msra.mxu0 %v9906_v45  ;;  %6932 = vmatpush1.bf16.msra.mxu1 %v9962_v2  ;;  %15917 = vst [vmem:[#allocation7_spill] sm:$0xff] %v13258_v3  ;;  %v4539_v45 = vmax.f32 %v4475_v60, 0.0  ;;  %v15922_v49 = vld [vmem:[#allocation63_spill] sm:$0xff] }
 0x3b3   : > { %15912 = vst [vmem:[#allocation142_spill] sm:$0xff] %v13239_v0  ;;  %15915 = vst [vmem:[#allocation143_spill] sm:$0xff] %v13246_v53  ;;  %v4477_v52 = vadd.f32 %v4413_v13, %v11295_v58  ;;  %v4414_v51 = vadd.f32 %v4318_v63, %v15916_v50  ;;  %6597 = vmatprep.subr.bf16.mxu0 %v15589_v62  ;;  %6933 = vmatprep.subr.bf16.mxu1 %v15589_v62  ;;  %v15919_v53 = vld [vmem:[#allocation60_spill] sm:$0xff]  ;;  %v4540_v60 = vmax.f32 %v4476_v30, 0.0 }
 0x3b4   : > { %v4322_v6 = vpop.f32.mrf.mxu0  ;;  %v13262_v28 = vpop.f32.mrf.mxu1  ;;  %6005 = vmatmul.mubr.bf16.gmra.mxu0 %v15919_v53  ;;  %6272 = vmatmul.mubr.bf16.gmra.mxu1 %v15894_v16  ;;  %15920 = vst [vmem:[#allocation60_spill] sm:$0xff] %v13268_v46  ;;  %v15921_v50 = vld [vmem:[#allocation8_spill] sm:$0xff]  ;;  %v13290_v30 = vmul.f32 %v13268_v46, %v4539_v45  ;;  %v9964_v45 = vld [vmem:[%s15321_s3 + $0x90] sm:$0xff]  }
 0x3b5   : > { %15918 = vst [vmem:[#allocation144_spill] sm:$0xff] %v13262_v28  ;;  %v4541_v13 = vmax.f32 %v4477_v52, 0.0  ;;  %v4478_v63 = vadd.f32 %v4414_v51, %v11304_v38  ;;  %v4415_v44 = vadd.f32 %v4322_v6, %v15921_v50  ;;  %9283 = vmatprep.mubr.msk.bf16.mxu0 %vm5899_vm2, %v15922_v49  ;;  %6279 = vmatprep.mubr.bf16.mxu1 %v15894_v16  ;;  %v9908_v52 = vld [vmem:[%s15321_s3 + $0xe0] sm:$0xff]   ;;  %v9963_v51 = vld [vmem:[%s15321_s3 + $0x98] sm:$0xff]   ;;  %v15925_v49 = vld [vmem:[#allocation9_spill] sm:$0xff] }
 0x3b6   : > { %v4324_v28 = vpop.f32.mrf.mxu0  ;;  %v13275_v53 = vpop.f32.mrf.mxu1  ;;  %6598 = vmatpush1.bf16.msra.mxu0 %v9907_v48  ;;  %6934 = vmatpush1.bf16.msra.mxu1 %v9963_v51  ;;  %15926 = vst [vmem:[#allocation9_spill] sm:$0xff] %v13290_v30 }
 0x3b7   : > { %15923 = vst [vmem:[#allocation8_spill] sm:$0xff] %v13275_v53  ;;  %v4542_v6 = vmax.f32 %v4478_v63, 0.0  ;;  %v13284_v50 = vmul.f32 %v13258_v3, %v4541_v13  ;;  %v4416_v2 = vadd.f32 %v4324_v28, %v15925_v49  ;;  %6599 = vmatprep.subr.bf16.mxu0 %v15589_v62  ;;  %6935 = vmatprep.subr.bf16.mxu1 %v15589_v62  ;;  %v15929_v63 = vld [vmem:[#allocation89_spill] sm:$0xff] }
 0x3b8   : > { %v4479_v48 = vadd.f32 %v4415_v44, %v11295_v58  ;;  %v4326_v5 = vpop.f32.mrf.mxu0  ;;  %v13293_v0 = vpop.f32.mrf.mxu1  ;;  %v13300_v53 = vmul.f32 %v13268_v46, %v4540_v60  ;;  %v9909_v44 = vld [vmem:[%s15321_s3 + $0x148] sm:$0xff]  }
 0x3b9   : > { %15924 = vst [vmem:[#allocation63_spill] sm:$0xff] %v13284_v50  ;;  %15927 = vst [vmem:[#allocation145_spill] sm:$0xff] %v13293_v0  ;;  %v13296_v51 = vmul.f32 %v13258_v3, %v4542_v6  ;;  %v4417_v13 = vadd.f32 %v4326_v5, %v15929_v63  ;;  %v4480_v28 = vadd.f32 %v4416_v2, %v11304_v38  ;;  %v15932_v6 = vld [vmem:[#allocation90_spill] sm:$0xff]  ;;  %v13315_v63 = vpop.permute.xlu1 %4680  ;;  %v13325_v5 = vpop.permute.xlu0 %4675 }
 0x3ba   : > { %15930 = vst [vmem:[#allocation89_spill] sm:$0xff] %v13300_v53  ;;  %v4328_v49 = vpop.f32.mrf.mxu0  ;;  %v13303_v59 = vpop.f32.mrf.mxu1  ;;  %6600 = vmatpush1.bf16.msra.mxu0 %v9908_v52  ;;  %6936 = vmatpush1.bf16.msra.mxu1 %v9964_v45  ;;  %15933 = vst [vmem:[#allocation90_spill] sm:$0xff] %v13315_v63  ;;  %v4543_v52 = vmax.f32 %v4479_v48, 0.0  ;;  %v15938_v50 = vld [vmem:[#allocation66_spill] sm:$0xff] }
 0x3bb   : > { %15928 = vst [vmem:[#allocation146_spill] sm:$0xff] %v13296_v51  ;;  %15931 = vst [vmem:[#allocation147_spill] sm:$0xff] %v13303_v59  ;;  %v4481_v60 = vadd.f32 %v4417_v13, %v11295_v58  ;;  %v4418_v2 = vadd.f32 %v4328_v49, %v15932_v6  ;;  %6605 = vmatprep.subr.bf16.mxu0 %v15589_v62  ;;  %6937 = vmatprep.subr.bf16.mxu1 %v15589_v62  ;;  %v15935_v59 = vld [vmem:[#allocation62_spill] sm:$0xff]  ;;  %v4544_v48 = vmax.f32 %v4480_v28, 0.0 }
 0x3bc   : > { %v4332_v46 = vpop.f32.mrf.mxu0  ;;  %v13319_v3 = vpop.f32.mrf.mxu1  ;;  %6013 = vmatmul.mubr.bf16.gmra.mxu0 %v15935_v59  ;;  %6280 = vmatmul.mubr.bf16.gmra.mxu1 %v15894_v16  ;;  %15936 = vst [vmem:[#allocation62_spill] sm:$0xff] %v13325_v5  ;;  %v15937_v6 = vld [vmem:[#allocation10_spill] sm:$0xff]  ;;  %v13347_v28 = vmul.f32 %v13325_v5, %v4543_v52  ;;  %v9966_v52 = vld [vmem:[%s15321_s3 + $0x80] sm:$0xff]  }
 0x3bd   : > { %15934 = vst [vmem:[#allocation148_spill] sm:$0xff] %v13319_v3  ;;  %v4545_v13 = vmax.f32 %v4481_v60, 0.0  ;;  %v4482_v49 = vadd.f32 %v4418_v2, %v11304_v38  ;;  %v4419_v30 = vadd.f32 %v4332_v46, %v15937_v6  ;;  %9284 = vmatprep.mubr.msk.bf16.mxu0 %vm5899_vm2, %v15938_v50  ;;  %6287 = vmatprep.mubr.bf16.mxu1 %v15894_v16  ;;  %v9910_v60 = vld [vmem:[%s15321_s3 + $0x140] sm:$0xff]   ;;  %v9965_v2 = vld [vmem:[%s15321_s3 + $0x88] sm:$0xff]  }
 0x3be   : > { %v4334_v3 = vpop.f32.mrf.mxu0  ;;  %v13332_v59 = vpop.f32.mrf.mxu1  ;;  %6606 = vmatpush2.bf16.msra.mxu0 %v9909_v44  ;;  %6938 = vmatpush1.bf16.msra.mxu1 %v9965_v2  ;;  %v15941_v50 = vld [vmem:[#allocation91_spill] sm:$0xff] }
 0x3bf   : > { %15939 = vst [vmem:[#allocation10_spill] sm:$0xff] %v13332_v59  ;;  %v4546_v46 = vmax.f32 %v4482_v49, 0.0  ;;  %v13341_v6 = vmul.f32 %v13315_v63, %v4545_v13  ;;  %v4420_v45 = vadd.f32 %v4334_v3, %v15941_v50  ;;  %6607 = vmatprep.subr.bf16.mxu0 %v15589_v62  ;;  %6939 = vmatprep.subr.bf16.mxu1 %v15589_v62  ;;  %15942 = vst [vmem:[#allocation91_spill] sm:$0xff] %v13347_v28  ;;  %v15945_v49 = vld [vmem:[#allocation92_spill] sm:$0xff] }
 0x3c0   : > { %v4483_v44 = vadd.f32 %v4419_v30, %v11295_v58  ;;  %v4336_v53 = vpop.f32.mrf.mxu0  ;;  %v13350_v51 = vpop.f32.mrf.mxu1  ;;  %v13357_v59 = vmul.f32 %v13325_v5, %v4544_v48  ;;  %v9911_v30 = vld [vmem:[%s15321_s3 + $0x138] sm:$0xff]  }
 0x3c1   : > { %15940 = vst [vmem:[#allocation66_spill] sm:$0xff] %v13341_v6  ;;  %15943 = vst [vmem:[#allocation149_spill] sm:$0xff] %v13350_v51  ;;  %v13353_v2 = vmul.f32 %v13315_v63, %v4546_v46  ;;  %v4421_v13 = vadd.f32 %v4336_v53, %v15945_v49  ;;  %v4484_v3 = vadd.f32 %v4420_v45, %v11304_v38  ;;  %v15948_v46 = vld [vmem:[#allocation93_spill] sm:$0xff]  ;;  %v13372_v49 = vpop.permute.xlu1 %4690  ;;  %v13382_v53 = vpop.permute.xlu0 %4685  ;;  %v15954_v6 = vld [vmem:[#allocation70_spill] sm:$0xff] }
 0x3c2   : > { %15946 = vst [vmem:[#allocation92_spill] sm:$0xff] %v13357_v59  ;;  %v4338_v50 = vpop.f32.mrf.mxu0  ;;  %v13360_v0 = vpop.f32.mrf.mxu1  ;;  %6608 = vmatpush2.bf16.msra.mxu0 %v9910_v60  ;;  %6940 = vmatpush1.bf16.msra.mxu1 %v9966_v52  ;;  %15949 = vst [vmem:[#allocation93_spill] sm:$0xff] %v13372_v49  ;;  %v4547_v60 = vmax.f32 %v4483_v44, 0.0 }
 0x3c3   : > { %15944 = vst [vmem:[#allocation150_spill] sm:$0xff] %v13353_v2  ;;  %15947 = vst [vmem:[#allocation151_spill] sm:$0xff] %v13360_v0  ;;  %v4485_v48 = vadd.f32 %v4421_v13, %v11295_v58  ;;  %v4422_v45 = vadd.f32 %v4338_v50, %v15948_v46  ;;  %6609 = vmatprep.subr.bf16.mxu0 %v15589_v62  ;;  %6941 = vmatprep.subr.bf16.mxu1 %v15589_v62  ;;  %v15951_v0 = vld [vmem:[#allocation64_spill] sm:$0xff]  ;;  %v15953_v46 = vld [vmem:[#allocation11_spill] sm:$0xff]  ;;  %v4548_v44 = vmax.f32 %v4484_v3, 0.0 }
 0x3c4   : > { %v4342_v5 = vpop.f32.mrf.mxu0  ;;  %v13376_v63 = vpop.f32.mrf.mxu1  ;;  %6021 = vmatmul.mubr.bf16.gmra.mxu0 %v15951_v0  ;;  %6288 = vmatmul.mubr.bf16.gmra.mxu1 %v15894_v16  ;;  %15952 = vst [vmem:[#allocation64_spill] sm:$0xff] %v13382_v53  ;;  %v9912_v0 = vld [vmem:[%s15321_s3 + $0x130] sm:$0xff]   ;;  %v13403_v3 = vmul.f32 %v13382_v53, %v4547_v60 }
 0x3c5   : > { %15950 = vst [vmem:[#allocation152_spill] sm:$0xff] %v13376_v63  ;;  %v4549_v13 = vmax.f32 %v4485_v48, 0.0  ;;  %v4486_v50 = vadd.f32 %v4422_v45, %v11304_v38  ;;  %v4423_v28 = vadd.f32 %v4342_v5, %v15953_v46  ;;  %9285 = vmatprep.mubr.msk.bf16.mxu0 %vm5899_vm2, %v15954_v6  ;;  %v9967_v48 = vld [vmem:[%s15321_s3 + $0x78] sm:$0xff]   ;;  %v13413_v59 = vmul.f32 %v13382_v53, %v4548_v44  ;;  %v9968_v60 = vld [vmem:[%s15321_s3 + $0x70] sm:$0xff]  }
 0x3c6   : > { %v4344_v51 = vpop.f32.mrf.mxu0  ;;  %v13388_v63 = vpop.f32.mrf.mxu1  ;;  %6610 = vmatpush2.bf16.msra.mxu0 %v9911_v30  ;;  %6942 = vmatpush1.bf16.msra.mxu1 %v9967_v48  ;;  %v15957_v46 = vld [vmem:[#allocation94_spill] sm:$0xff] }
 0x3c7   : > { %15955 = vst [vmem:[#allocation11_spill] sm:$0xff] %v13388_v63  ;;  %v4550_v45 = vmax.f32 %v4486_v50, 0.0  ;;  %v13397_v5 = vmul.f32 %v13372_v49, %v4549_v13  ;;  %v4424_v6 = vadd.f32 %v4344_v51, %v15957_v46  ;;  %6611 = vmatprep.subr.bf16.mxu0 %v15589_v62  ;;  %6943 = vmatprep.subr.bf16.mxu1 %v15589_v62  ;;  %15958 = vst [vmem:[#allocation94_spill] sm:$0xff] %v13403_v3  ;;  %v15961_v50 = vld [vmem:[#allocation95_spill] sm:$0xff]  ;;  %v13437_v3 = vpop.permute.xlu0 %4695 }
 0x3c8   : > { %v4487_v30 = vadd.f32 %v4423_v28, %v11295_v58  ;;  %v4346_v52 = vpop.f32.mrf.mxu0  ;;  %v13406_v16 = vpop.f32.mrf.mxu1  ;;  %15962 = vst [vmem:[#allocation95_spill] sm:$0xff] %v13413_v59  ;;  %v9913_v28 = vld [vmem:[%s15321_s3 + $0x128] sm:$0xff]  }
 0x3c9   : > { %15956 = vst [vmem:[#allocation70_spill] sm:$0xff] %v13397_v5  ;;  %15959 = vst [vmem:[#allocation153_spill] sm:$0xff] %v13406_v16  ;;  %v13409_v48 = vmul.f32 %v13372_v49, %v4550_v45  ;;  %v4425_v13 = vadd.f32 %v4346_v52, %v15961_v50  ;;  %v4488_v51 = vadd.f32 %v4424_v6, %v11304_v38  ;;  %v15964_v45 = vld [vmem:[#allocation96_spill] sm:$0xff]  ;;  %v13428_v50 = vpop.permute.xlu1 %4700  ;;  %v15969_v5 = vld [vmem:[#allocation73_spill] sm:$0xff] }
 0x3ca   : > { %v4348_v46 = vpop.f32.mrf.mxu0  ;;  %v13416_v2 = vpop.f32.mrf.mxu1  ;;  %6612 = vmatpush2.bf16.msra.mxu0 %v9912_v0  ;;  %6944 = vmatpush1.bf16.msra.mxu1 %v9968_v60  ;;  %15965 = vst [vmem:[#allocation96_spill] sm:$0xff] %v13428_v50  ;;  %v4551_v0 = vmax.f32 %v4487_v30, 0.0 }
 0x3cb   : > { %15960 = vst [vmem:[#allocation154_spill] sm:$0xff] %v13409_v48  ;;  %15963 = vst [vmem:[#allocation155_spill] sm:$0xff] %v13416_v2  ;;  %v4489_v44 = vadd.f32 %v4425_v13, %v11295_v58  ;;  %v4426_v6 = vadd.f32 %v4348_v46, %v15964_v45  ;;  %6613 = vmatprep.subr.bf16.mxu0 %v15589_v62  ;;  %6949 = vmatprep.subr.bf16.mxu1 %v15589_v62  ;;  %v15966_v2 = vld [vmem:[#allocation69_spill] sm:$0xff]  ;;  %v15968_v46 = vld [vmem:[#allocation12_spill] sm:$0xff]  ;;  %v4552_v16 = vmax.f32 %v4488_v51, 0.0 }
 0x3cc   : > { %v4352_v49 = vpop.f32.mrf.mxu0  ;;  %v13432_v53 = vpop.f32.mrf.mxu1  ;;  %6029 = vmatmul.mubr.bf16.gmra.mxu0 %v15966_v2  ;;  %15967 = vst [vmem:[#allocation69_spill] sm:$0xff] %v13437_v3  ;;  %v9914_v2 = vld [vmem:[%s15321_s3 + $0x120] sm:$0xff]   ;;  %v13458_v51 = vmul.f32 %v13437_v3, %v4551_v0  ;;  %v9970_v0 = vld [vmem:[%s15321_s3 + $0xd0] sm:$0xff]   ;;  %v15977_v48 = vld [vmem:[#allocation72_spill] sm:$0xff] }
 0x3cd   : > { %v4553_v52 = vmax.f32 %v4489_v44, 0.0  ;;  %v4490_v13 = vadd.f32 %v4426_v6, %v11304_v38  ;;  %v4427_v45 = vadd.f32 %v4352_v49, %v15968_v46  ;;  %9286 = vmatprep.mubr.msk.bf16.mxu0 %vm5899_vm2, %v15969_v5  ;;  %v9969_v44 = vld [vmem:[%s15321_s3 + $0xd8] sm:$0xff]  }
 0x3ce   : > { %v4354_v30 = vpop.f32.mrf.mxu0  ;;  %v13443_v63 = vpop.f32.mrf.mxu1  ;;  %6614 = vmatpush2.bf16.msra.mxu0 %v9913_v28  ;;  %6950 = vmatpush2.bf16.msra.mxu1 %v9969_v44  ;;  %15971 = vst [vmem:[#allocation73_spill] sm:$0xff] %v13458_v51 }
 0x3cf   : > { %v4554_v6 = vmax.f32 %v4490_v13, 0.0  ;;  %v13452_v49 = vmul.f32 %v13428_v50, %v4553_v52  ;;  %v4428_v5 = vadd.f32 %v4354_v30, %v12790_v41  ;;  %6615 = vmatprep.subr.bf16.mxu0 %v15589_v62  ;;  %6951 = vmatprep.subr.bf16.mxu1 %v15589_v62  ;;  %v4491_v28 = vadd.f32 %v4427_v45, %v11295_v58  ;;  %v13489_v51 = vpop.permute.xlu0 %4705 }
 0x3d0   : > { %v4356_v46 = vpop.f32.mrf.mxu0  ;;  %v13461_v60 = vpop.f32.mrf.mxu1  ;;  %v13468_v13 = vmul.f32 %v13437_v3, %v4552_v16  ;;  %15978 = vst [vmem:[#allocation72_spill] sm:$0xff] %v13489_v51 }
 0x3d1   : > { %15970 = vst [vmem:[#allocation12_spill] sm:$0xff] %v13452_v49  ;;  %v13464_v44 = vmul.f32 %v13428_v50, %v4554_v6  ;;  %v4429_v52 = vadd.f32 %v4356_v46, %v12794_v21  ;;  %v4492_v41 = vadd.f32 %v4428_v5, %v11304_v38  ;;  %v13480_v16 = vpop.permute.xlu1 %4710  ;;  %v4555_v5 = vmax.f32 %v4491_v28, 0.0 }
 0x3d2   : > { %15973 = vst [vmem:[#allocation157_spill] sm:$0xff] %v13468_v13  ;;  %v4358_v30 = vpop.f32.mrf.mxu0  ;;  %v13471_v59 = vpop.f32.mrf.mxu1  ;;  %6616 = vmatpush2.bf16.msra.mxu0 %v9914_v2  ;;  %6952 = vmatpush2.bf16.msra.mxu1 %v9970_v0  ;;  %15975 = vst [vmem:[#allocation159_spill] sm:$0xff] %v13480_v16 }
 0x3d3   : > { %15972 = vst [vmem:[#allocation156_spill] sm:$0xff] %v13464_v44  ;;  %15974 = vst [vmem:[#allocation158_spill] sm:$0xff] %v13471_v59  ;;  %v4493_v6 = vadd.f32 %v4429_v52, %v11295_v58  ;;  %v4430_v21 = vadd.f32 %v4358_v30, %v12799_v35  ;;  %6953 = vmatprep.subr.bf16.mxu1 %v15589_v62  ;;  %7090 = vmatprep.subr.bf16.mxu0 %v15589_v62  ;;  %v15979_v30 = vld [vmem:[#allocation76_spill] sm:$0xff]  ;;  %v4556_v49 = vmax.f32 %v4492_v41, 0.0 }
 0x3d4   : > { %v4362_v2 = vpop.f32.mrf.mxu0  ;;  %v13484_v46 = vpop.f32.mrf.mxu1  ;;  %6037 = vmatmul.mubr.bf16.gmra.mxu0 %v15977_v48  ;;  %v9971_v48 = vld [vmem:[%s15321_s3 + $0xc8] sm:$0xff]   ;;  %v13507_v41 = vmul.f32 %v13489_v51, %v4555_v5  ;;  %v9972_v5 = vld [vmem:[%s15321_s3 + $0xc0] sm:$0xff]  }
 0x3d5   : > { %15976 = vst [vmem:[#allocation160_spill] sm:$0xff] %v13484_v46  ;;  %v4557_v45 = vmax.f32 %v4493_v6, 0.0  ;;  %v4494_v35 = vadd.f32 %v4430_v21, %v11304_v38  ;;  %v4431_v52 = vadd.f32 %v4362_v2, %v12809_v24  ;;  %9287 = vmatprep.mubr.msk.bf16.mxu0 %vm5899_vm2, %v15979_v30 }
 0x3d6   : > { %v4364_v28 = vpop.f32.mrf.mxu0  ;;  %v13495_v50 = vpop.f32.mrf.mxu1  ;;  %6954 = vmatpush2.bf16.msra.mxu1 %v9971_v48  ;;  %15982 = vst [vmem:[#allocation162_spill] sm:$0xff] %v13507_v41  ;;  %v15991_v41 = vld [vmem:[#allocation3_spill] sm:$0xff] }
 0x3d7   : > { %15980 = vst [vmem:[#allocation76_spill] sm:$0xff] %v13495_v50  ;;  %v4558_v0 = vmax.f32 %v4494_v35, 0.0  ;;  %v4495_v6 = vadd.f32 %v4431_v52, %v11295_v58  ;;  %v13502_v13 = vmul.f32 %v13480_v16, %v4557_v45  ;;  %v4432_v24 = vadd.f32 %v4364_v28, %v12821_v12  ;;  %6955 = vmatprep.subr.bf16.mxu1 %v15589_v62 }
 0x3d8   : > { %v4366_v21 = vpop.f32.mrf.mxu0  ;;  %v13509_v2 = vpop.f32.mrf.mxu1  ;;  %v13517_v45 = vmul.f32 %v13489_v51, %v4556_v49  ;;  %v15990_v51 = vld [vmem:[#allocation74_spill] sm:$0xff] }
 0x3d9   : > { %15981 = vst [vmem:[#allocation161_spill] sm:$0xff] %v13502_v13  ;;  %15983 = vst [vmem:[#allocation163_spill] sm:$0xff] %v13509_v2  ;;  %v13512_v30 = vmul.f32 %v13480_v16, %v4558_v0  ;;  %v4496_v35 = vadd.f32 %v4432_v24, %v11304_v38  ;;  %v4433_v52 = vadd.f32 %v4366_v21, %v12830_v18  ;;  %v4559_v0 = vmax.f32 %v4495_v6, 0.0  ;;  %v13527_v24 = vpop.permute.xlu0 %4715  ;;  %v13530_v49 = vpop.permute.xlu1 %4720  ;;  %v9973_v13 = vld [vmem:[%s15321_s3 + $0xb8] sm:$0xff]  }
 0x3da   : > { %15985 = vst [vmem:[#allocation165_spill] sm:$0xff] %v13517_v45  ;;  %v4368_v48 = vpop.f32.mrf.mxu0  ;;  %v13519_v12 = vpop.f32.mrf.mxu1  ;;  %6956 = vmatpush2.bf16.msra.mxu1 %v9972_v5  ;;  %15987 = vst [vmem:[#allocation167_spill] sm:$0xff] %v13527_v24 }
 0x3db   : > { %15984 = vst [vmem:[#allocation164_spill] sm:$0xff] %v13512_v30  ;;  %15986 = vst [vmem:[#allocation166_spill] sm:$0xff] %v13519_v12  ;;  %v4497_v44 = vadd.f32 %v4433_v52, %v11295_v58  ;;  %v4434_v18 = vadd.f32 %v4368_v48, %v12841_v57  ;;  %6957 = vmatprep.subr.bf16.mxu1 %v15589_v62  ;;  %v4560_v28 = vmax.f32 %v4496_v35, 0.0  ;;  %v16000_v30 = vld [vmem:[#allocation34_spill] sm:$0xff] }
 0x3dc   : > { %15988 = vst [vmem:[#allocation168_spill] sm:$0xff] %v13530_v49  ;;  %v13533_v21 = vpop.f32.mrf.mxu1  ;;  %v5078_v16 = vpop.f32.mrf.mxu0  ;;  %6045 = vmatmul.mubr.bf16.gmra.mxu0 %v15990_v51  ;;  %v13547_v51 = vmul.f32 %v13527_v24, %v4559_v0 }
 0x3dd   : > { %15989 = vst [vmem:[#allocation169_spill] sm:$0xff] %v13533_v21  ;;  %v4561_v6 = vmax.f32 %v4497_v44, 0.0  ;;  %v4498_v52 = vadd.f32 %v4434_v18, %v11304_v38  ;;  %9288 = vmatprep.mubr.msk.bf16.mxu0 %vm5899_vm2, %v15991_v41  ;;  %v13556_v18 = vmul.f32 %v13527_v24, %v4560_v28  ;;  %v16005_v28 = vld [vmem:[#allocation37_spill] sm:$0xff] }
 0x3de   : > { %v13541_v57 = vpop.f32.mrf.mxu1  ;;  %v5080_v48 = vpop.f32.mrf.mxu0  ;;  %6958 = vmatpush2.bf16.msra.mxu1 %v9973_v13  ;;  %15993 = vst [vmem:[#allocation3_spill] sm:$0xff] %v13547_v51 }
 0x3df   : > { %15992 = vst [vmem:[#allocation74_spill] sm:$0xff] %v13541_v57  ;;  %v4562_v3 = vmax.f32 %v4498_v52, 0.0  ;;  %v13550_v35 = vmul.f32 %v13530_v49, %v4561_v6  ;;  %6959 = vmatprep.subr.bf16.mxu1 %v15589_v62  ;;  %15996 = vst [vmem:[#allocation172_spill] sm:$0xff] %v13556_v18  ;;  %v9974_v6 = vld [vmem:[%s15321_s3 + $0xb0] sm:$0xff]   ;;  %v5079_v18 = vadd.f32 %v5078_v16, %v12845_v11 }
 0x3e0   : > { %v13553_v44 = vpop.f32.mrf.mxu1  ;;  %v5082_v41 = vpop.f32.mrf.mxu0 }
 0x3e1   : > { %15994 = vst [vmem:[#allocation170_spill] sm:$0xff] %v13550_v35  ;;  %15995 = vst [vmem:[#allocation171_spill] sm:$0xff] %v13553_v44  ;;  %v13559_v5 = vmul.f32 %v13530_v49, %v4562_v3  ;;  %v16001_v49 = vld [vmem:[#allocation27_spill] sm:$0xff] }
 0x3e2   : > { %v13563_v0 = vpop.f32.mrf.mxu1  ;;  %v5084_v52 = vpop.f32.mrf.mxu0  ;;  %6960 = vmatpush2.bf16.msra.mxu1 %v9974_v6 }
 0x3e3   : > { %15997 = vst [vmem:[#allocation173_spill] sm:$0xff] %v13559_v5  ;;  %15998 = vst [vmem:[#allocation174_spill] sm:$0xff] %v13563_v0  ;;  %7271 = vmatprep.subr.bf16.mxu1 %v15589_v62  ;;  %v16006_v5 = vld [vmem:[#allocation43_spill] sm:$0xff]  ;;  %v5085_v50 = vadd.f32 %v5084_v52, %v12879_v61  ;;  %v16008_v61 = vld [vmem:[#allocation48_spill] sm:$0xff] }
 0x3e4   : > { %v13571_v45 = vpop.f32.mrf.mxu1  ;;  %v5088_v3 = vpop.f32.mrf.mxu0  ;;  %6053 = vmatmul.mubr.bf16.gmra.mxu0 %v16000_v30  ;;  %v5081_v30 = vadd.f32 %v5080_v48, %v12859_v36 }
 0x3e5   : > { %15999 = vst [vmem:[#allocation175_spill] sm:$0xff] %v13571_v45  ;;  %9289 = vmatprep.mubr.msk.bf16.mxu0 %vm5899_vm2, %v16001_v49  ;;  %v5083_v45 = vadd.f32 %v5082_v41, %v12869_v14  ;;  %v16007_v14 = vld [vmem:[#allocation42_spill] sm:$0xff] }
 0x3e6   : > { %v13576_v13 = vpop.f32.mrf.mxu1  ;;  %v5090_v51 = vpop.f32.mrf.mxu0 }
 0x3e7   : > { %16002 = vst [vmem:[#allocation34_spill] sm:$0xff] %v13576_v13 }
 0x3e8   : > { %v13578_v35 = vpop.f32.mrf.mxu1  ;;  %v5092_v24 = vpop.f32.mrf.mxu0 }
 0x3e9   : > { %16003 = vst [vmem:[#allocation27_spill] sm:$0xff] %v13578_v35 }
 0x3ea   : > { %v13580_v6 = vpop.f32.mrf.mxu1  ;;  %v5094_v0 = vpop.f32.mrf.mxu0 }
 0x3eb   : > { %16004 = vst [vmem:[#allocation176_spill] sm:$0xff] %v13580_v6 }
 0x3ec   : > { %v5098_v44 = vpop.f32.mrf.mxu0  ;;  %v5287_v57 = vpop.f32.mrf.mxu1  ;;  %6061 = vmatmul.mubr.bf16.gmra.mxu0 %v16005_v28 }
 0x3ed   : > { %9290 = vmatprep.mubr.msk.bf16.mxu0 %vm5899_vm2, %v16006_v5  ;;  %v5446_v35 = vadd.f32 %v5287_v57, %v5079_v18  ;;  %v5089_v57 = vadd.f32 %v5088_v3, %v12887_v15 }
 0x3ee   : > { %v5100_v49 = vpop.f32.mrf.mxu0  ;;  %v5289_v13 = vpop.f32.mrf.mxu1 }
 0x3ef   : > { %v5447_v21 = vadd.f32 %v5289_v13, %v5081_v30  ;;  %v5510_v36 = vadd.f32 %v5446_v35, %v11295_v58 }
 0x3f0   : > { %v5102_v12 = vpop.f32.mrf.mxu0  ;;  %v5291_v6 = vpop.f32.mrf.mxu1 }
 0x3f1   : > { %v5448_v2 = vadd.f32 %v5291_v6, %v5083_v45  ;;  %v5511_v28 = vadd.f32 %v5447_v21, %v11304_v38  ;;  %v5091_v45 = vadd.f32 %v5090_v51, %v12901_v8  ;;  %v5093_v6 = vadd.f32 %v5092_v24, %v12911_v27 }
 0x3f2   : > { %v5104_v46 = vpop.f32.mrf.mxu0  ;;  %v5293_v11 = vpop.f32.mrf.mxu1  ;;  %v5095_v8 = vadd.f32 %v5094_v0, %v12921_v19  ;;  %v16009_v0 = vld [vmem:[#allocation35_spill] sm:$0xff] }
 0x3f3   : > { %v5512_v16 = vadd.f32 %v5448_v2, %v11295_v58  ;;  %v5449_v5 = vadd.f32 %v5293_v11, %v5085_v50  ;;  %v5575_v21 = vmax.f32 %v5511_v28, 0.0  ;;  %v5574_v2 = vmax.f32 %v5510_v36, 0.0 }
 0x3f4   : > { %v13592_v48 = vpop.f32.mrf.mxu0  ;;  %v5297_v59 = vpop.f32.mrf.mxu1  ;;  %6069 = vmatmul.mubr.bf16.gmra.mxu0 %v16007_v14 }
 0x3f5   : > { %v5576_v41 = vmax.f32 %v5512_v16, 0.0  ;;  %9291 = vmatprep.mubr.msk.bf16.mxu0 %vm5899_vm2, %v16008_v61  ;;  %v5513_v18 = vadd.f32 %v5449_v5, %v11304_v38  ;;  %v5450_v50 = vadd.f32 %v5297_v59, %v5089_v57  ;;  %v5639_v3 = vmul.f32 %v5575_v21, %v12782_v26 }
 0x3f6   : > { %v5110_v35 = vpop.f32.mrf.mxu0  ;;  %v5299_v13 = vpop.f32.mrf.mxu1  ;;  %v5638_v14 = vmul.f32 %v5574_v2, %v12782_v26  ;;  %v5099_v61 = vadd.f32 %v5098_v44, %v12929_v29  ;;  %v5101_v21 = vadd.f32 %v5100_v49, %v12943_v42  ;;  %v16010_v2 = vld [vmem:[#allocation53_spill] sm:$0xff]  ;;  %v5103_v42 = vadd.f32 %v5102_v12, %v12953_v40 }
 0x3f7   : > { %v5451_v52 = vadd.f32 %v5299_v13, %v5091_v45  ;;  %v5577_v30 = vmax.f32 %v5513_v18, 0.0  ;;  %v5640_v51 = vmul.f32 %v5576_v41, %v12801_v22  ;;  %v5514_v27 = vadd.f32 %v5450_v50, %v11295_v58 }
 0x3f8   : > { %v13601_v11 = vpop.f32.mrf.mxu0  ;;  %v5301_v15 = vpop.f32.mrf.mxu1 }
 0x3f9   : > { %v5641_v28 = vmul.f32 %v5577_v30, %v12801_v22  ;;  %v5515_v16 = vadd.f32 %v5451_v52, %v11304_v38  ;;  %v5452_v5 = vadd.f32 %v5301_v15, %v5093_v6  ;;  %v13618_v18 = vpack.c.bf16 %v5640_v51, %v5638_v14  ;;  %v16063_v22 = vld [vmem:[#allocation79_spill] sm:$0xff] }
 0x3fa   : > { %v5114_v36 = vpop.f32.mrf.mxu0  ;;  %v5303_v59 = vpop.f32.mrf.mxu1  ;;  %v5578_v15 = vmax.f32 %v5514_v27, 0.0  ;;  %v5105_v51 = vadd.f32 %v5104_v46, %v12963_v34  ;;  %v16011_v46 = vld [vmem:[#allocation40_spill] sm:$0xff] }
 0x3fb   : > { %v5453_v24 = vadd.f32 %v5303_v59, %v5095_v8  ;;  %v5516_v57 = vadd.f32 %v5452_v5, %v11295_v58  ;;  %v13614_v41 = vpack.c.bf16 %v5641_v28, %v5639_v3  ;;  %v5579_v50 = vmax.f32 %v5515_v16, 0.0 }
 0x3fc   : > { %v13611_v45 = vpop.f32.mrf.mxu0  ;;  %v5307_v19 = vpop.f32.mrf.mxu1  ;;  %6077 = vmatmul.mubr.bf16.gmra.mxu0 %v16009_v0 }
 0x3fd   : > { %v5517_v13 = vadd.f32 %v5453_v24, %v11304_v38  ;;  %9292 = vmatprep.mubr.msk.bf16.mxu0 %vm5899_vm2, %v16010_v2  ;;  %v5580_v52 = vmax.f32 %v5516_v57, 0.0  ;;  %9309 = vmatprep.mubr.msk.bf16.mxu1 %vm5899_vm2, %v13614_v41  ;;  %v5454_v3 = vadd.f32 %v5307_v19, %v5099_v61  ;;  %v5643_v5 = vmul.f32 %v5579_v50, %v12824_v1 }
 0x3fe   : > { %v5120_v6 = vpop.f32.mrf.mxu0  ;;  %v5309_v30 = vpop.f32.mrf.mxu1  ;;  %6296 = vmatmul.mubr.bf16.gmra.mxu1 %v13618_v18  ;;  %v5642_v57 = vmul.f32 %v5578_v15, %v12824_v1 }
 0x3ff   : > { %v5581_v8 = vmax.f32 %v5517_v13, 0.0  ;;  %v5455_v29 = vadd.f32 %v5309_v30, %v5101_v21  ;;  %v5644_v28 = vmul.f32 %v5580_v52, %v12855_v9  ;;  %v5518_v40 = vadd.f32 %v5454_v3, %v11295_v58  ;;  %v16012_v52 = vld [vmem:[#allocation19_spill] sm:$0xff] }
 0x400   : > { %v13627_v44 = vpop.f32.mrf.mxu0  ;;  %v5311_v49 = vpop.f32.mrf.mxu1  ;;  %v5109_v21 = vadd.f32 %v13592_v48, %v12971_v17  ;;  %v5111_v13 = vadd.f32 %v5110_v35, %v12987_v43  ;;  %v5113_v43 = vadd.f32 %v13601_v11, %v12997_v55 }
 0x401   : > { %v5645_v16 = vmul.f32 %v5581_v8, %v12855_v9  ;;  %v5519_v59 = vadd.f32 %v5455_v29, %v11304_v38  ;;  %v5456_v14 = vadd.f32 %v5311_v49, %v5103_v42  ;;  %v13645_v2 = vpack.c.bf16 %v5644_v28, %v5642_v57  ;;  %v16062_v9 = vld [vmem:[#allocation151_spill] sm:$0xff] }
 0x402   : > { %v5124_v27 = vpop.f32.mrf.mxu0  ;;  %v5313_v24 = vpop.f32.mrf.mxu1  ;;  %v5582_v29 = vmax.f32 %v5518_v40, 0.0 }
 0x403   : > { %v5457_v12 = vadd.f32 %v5313_v24, %v5105_v51  ;;  %v5520_v19 = vadd.f32 %v5456_v14, %v11295_v58  ;;  %v13640_v61 = vpack.c.bf16 %v5645_v16, %v5643_v5  ;;  %v5583_v30 = vmax.f32 %v5519_v59, 0.0 }
 0x404   : > { %v13637_v0 = vpop.f32.mrf.mxu0  ;;  %v5317_v34 = vpop.f32.mrf.mxu1  ;;  %6085 = vmatmul.mubr.bf16.gmra.mxu0 %v16011_v46  ;;  %v5115_v51 = vadd.f32 %v5114_v36, %v13007_v33  ;;  %v5646_v40 = vmul.f32 %v5582_v29, %v12895_v31  ;;  %v16013_v36 = vld [vmem:[#allocation18_spill] sm:$0xff]  ;;  %v5119_v46 = vadd.f32 %v13611_v45, %v13015_v47 }
 0x405   : > { %v5521_v50 = vadd.f32 %v5457_v12, %v11304_v38  ;;  %9293 = vmatprep.mubr.msk.bf16.mxu0 %vm5899_vm2, %v16012_v52  ;;  %v5584_v15 = vmax.f32 %v5520_v19, 0.0  ;;  %9310 = vmatprep.mubr.msk.bf16.mxu1 %vm5899_vm2, %v13640_v61  ;;  %v5458_v49 = vadd.f32 %v5317_v34, %v5109_v21  ;;  %v5647_v5 = vmul.f32 %v5583_v30, %v12895_v31  ;;  %v16014_v52 = vld [vmem:[#allocation21_spill] sm:$0xff] }
 0x406   : > { %v5130_v8 = vpop.f32.mrf.mxu0  ;;  %v5319_v3 = vpop.f32.mrf.mxu1  ;;  %6304 = vmatmul.mubr.bf16.gmra.mxu1 %v13645_v2  ;;  %v5121_v21 = vadd.f32 %v5120_v6, %v13030_v25  ;;  %v5123_v25 = vadd.f32 %v13627_v44, %v13040_v32 }
 0x407   : > { %v5585_v42 = vmax.f32 %v5521_v50, 0.0  ;;  %v5459_v17 = vadd.f32 %v5319_v3, %v5111_v13  ;;  %v5648_v28 = vmul.f32 %v5584_v15, %v12885_v20  ;;  %v5522_v55 = vadd.f32 %v5458_v49, %v11295_v58 }
 0x408   : > { %v13655_v48 = vpop.f32.mrf.mxu0  ;;  %v5321_v35 = vpop.f32.mrf.mxu1 }
 0x409   : > { %v5649_v16 = vmul.f32 %v5585_v42, %v12885_v20  ;;  %v5523_v59 = vadd.f32 %v5459_v17, %v11304_v38  ;;  %v5460_v14 = vadd.f32 %v5321_v35, %v5113_v43  ;;  %v13673_v13 = vpack.c.bf16 %v5648_v28, %v5646_v40  ;;  %v16015_v28 = vld [vmem:[#allocation16_spill] sm:$0xff]  ;;  %v16053_v20 = vld [vmem:[#allocation50_spill] sm:$0xff] }
 0x40a   : > { %v5134_v24 = vpop.f32.mrf.mxu0  ;;  %v5323_v57 = vpop.f32.mrf.mxu1  ;;  %v5586_v42 = vmax.f32 %v5522_v55, 0.0  ;;  %v5125_v43 = vadd.f32 %v5124_v27, %v13050_v37 }
 0x40b   : > { %v5461_v11 = vadd.f32 %v5323_v57, %v5115_v51  ;;  %v5524_v12 = vadd.f32 %v5460_v14, %v11295_v58  ;;  %v13668_v34 = vpack.c.bf16 %v5649_v16, %v5647_v5  ;;  %v5587_v30 = vmax.f32 %v5523_v59, 0.0 }
 0x40c   : > { %v13665_v19 = vpop.f32.mrf.mxu0  ;;  %v5327_v33 = vpop.f32.mrf.mxu1  ;;  %6093 = vmatmul.mubr.bf16.gmra.mxu0 %v16013_v36  ;;  %v5650_v40 = vmul.f32 %v5586_v42, %v16015_v28  ;;  %v16017_v36 = vld [vmem:[#allocation49_spill] sm:$0xff] }
 0x40d   : > { %v5525_v50 = vadd.f32 %v5461_v11, %v11304_v38  ;;  %9294 = vmatprep.mubr.msk.bf16.mxu0 %vm5899_vm2, %v16014_v52  ;;  %v5588_v15 = vmax.f32 %v5524_v12, 0.0  ;;  %9311 = vmatprep.mubr.msk.bf16.mxu1 %vm5899_vm2, %v13668_v34  ;;  %v5462_v17 = vadd.f32 %v5327_v33, %v5119_v46  ;;  %v5651_v16 = vmul.f32 %v5587_v30, %v16015_v28  ;;  %v16016_v11 = vld [vmem:[#allocation45_spill] sm:$0xff]  ;;  %v16018_v52 = vld [vmem:[#allocation82_spill] sm:$0xff] }
 0x40e   : > { %v5140_v3 = vpop.f32.mrf.mxu0  ;;  %v5329_v29 = vpop.f32.mrf.mxu1  ;;  %6312 = vmatmul.mubr.bf16.gmra.mxu1 %v13673_v13  ;;  %v5129_v33 = vadd.f32 %v13637_v0, %v13058_v4  ;;  %v5131_v46 = vadd.f32 %v5130_v8, %v16017_v36  ;;  %v5133_v8 = vadd.f32 %v13655_v48, %v13084_v23 }
 0x40f   : > { %v5589_v49 = vmax.f32 %v5525_v50, 0.0  ;;  %v5463_v47 = vadd.f32 %v5329_v29, %v5121_v21  ;;  %v5652_v35 = vmul.f32 %v5588_v15, %v12927_v7  ;;  %v5526_v32 = vadd.f32 %v5462_v17, %v11295_v58 }
 0x410   : > { %v13683_v45 = vpop.f32.mrf.mxu0  ;;  %v5331_v6 = vpop.f32.mrf.mxu1 }
 0x411   : > { %v5653_v51 = vmul.f32 %v5589_v49, %v12927_v7  ;;  %v5527_v5 = vadd.f32 %v5463_v47, %v11304_v38  ;;  %v5464_v59 = vadd.f32 %v5331_v6, %v5123_v25  ;;  %v13703_v21 = vpack.c.bf16 %v5652_v35, %v5650_v40  ;;  %v16019_v6 = vld [vmem:[#allocation131_spill] sm:$0xff]  ;;  %v16020_v35 = vld [vmem:[#allocation117_spill] sm:$0xff] }
 0x412   : > { %v13690_v14 = vpop.f32.mrf.mxu0  ;;  %v5333_v57 = vpop.f32.mrf.mxu1  ;;  %v5590_v49 = vmax.f32 %v5526_v32, 0.0  ;;  %v16052_v7 = vld [vmem:[#allocation147_spill] sm:$0xff] }
 0x413   : > { %v5465_v44 = vadd.f32 %v5333_v57, %v5125_v43  ;;  %v5528_v55 = vadd.f32 %v5464_v59, %v11295_v58  ;;  %v13698_v12 = vpack.c.bf16 %v5653_v51, %v5651_v16  ;;  %v5591_v30 = vmax.f32 %v5527_v5, 0.0  ;;  %v16021_v5 = vld [vmem:[#allocation17_spill] sm:$0xff] }
 0x414   : > { %v13695_v37 = vpop.f32.mrf.mxu0  ;;  %v5337_v27 = vpop.f32.mrf.mxu1  ;;  %6101 = vmatmul.mubr.bf16.gmra.mxu0 %v16016_v11  ;;  %v5135_v43 = vadd.f32 %v5134_v24, %v16019_v6 }
 0x415   : > { %v5529_v50 = vadd.f32 %v5465_v44, %v11304_v38  ;;  %9363 = vmatprep.mubr.msk.bf16.mxu0 %vm5899_vm2, %v16018_v52  ;;  %v5592_v15 = vmax.f32 %v5528_v55, 0.0  ;;  %9312 = vmatprep.mubr.msk.bf16.mxu1 %vm5899_vm2, %v13698_v12  ;;  %v5466_v4 = vadd.f32 %v5337_v27, %v5129_v33  ;;  %v5655_v59 = vmul.f32 %v5591_v30, %v16021_v5  ;;  %v16022_v33 = vld [vmem:[#allocation81_spill] sm:$0xff]  ;;  %v16024_v30 = vld [vmem:[#allocation52_spill] sm:$0xff] }
 0x416   : > { %v13710_v29 = vpop.f32.mrf.mxu0  ;;  %v5339_v42 = vpop.f32.mrf.mxu1  ;;  %6320 = vmatmul.mubr.bf16.gmra.mxu1 %v13703_v21  ;;  %v5654_v55 = vmul.f32 %v5590_v49, %v16021_v5 }
 0x417   : > { %v5593_v17 = vmax.f32 %v5529_v50, 0.0  ;;  %v5467_v0 = vadd.f32 %v5339_v42, %v5131_v46  ;;  %v5656_v51 = vmul.f32 %v5592_v15, %v16020_v35  ;;  %v5530_v23 = vadd.f32 %v5466_v4, %v11295_v58  ;;  %v16023_v46 = vld [vmem:[#allocation133_spill] sm:$0xff] }
 0x418   : > { %v13715_v47 = vpop.f32.mrf.mxu0  ;;  %v5341_v25 = vpop.f32.mrf.mxu1  ;;  %v5139_v50 = vadd.f32 %v13665_v19, %v16023_v46  ;;  %v5141_v15 = vadd.f32 %v5140_v3, %v16024_v30  ;;  %v9975_v19 = vld [vmem:[%s15321_s3 + $0x38] sm:$0xff]  }
 0x419   : > { %v5657_v16 = vmul.f32 %v5593_v17, %v16020_v35  ;;  %v5531_v57 = vadd.f32 %v5467_v0, %v11304_v38  ;;  %v5468_v40 = vadd.f32 %v5341_v25, %v5133_v8  ;;  %v13735_v42 = vpack.c.bf16 %v5656_v51, %v5654_v55  ;;  %v16025_v17 = vld [vmem:[#allocation84_spill] sm:$0xff] }
 0x41a   : > { %v13722_v32 = vpop.f32.mrf.mxu0  ;;  %v5343_v44 = vpop.f32.mrf.mxu1  ;;  %v5594_v3 = vmax.f32 %v5530_v23, 0.0  ;;  %v16043_v35 = vld [vmem:[#allocation132_spill] sm:$0xff] }
 0x41b   : > { %v5469_v48 = vadd.f32 %v5343_v44, %v5135_v43  ;;  %v5532_v27 = vadd.f32 %v5468_v40, %v11295_v58  ;;  %v13730_v36 = vpack.c.bf16 %v5657_v16, %v5655_v59  ;;  %v5595_v4 = vmax.f32 %v5531_v57, 0.0  ;;  %v16026_v44 = vld [vmem:[#allocation122_spill] sm:$0xff] }
 0x41c   : > { %v13727_v24 = vpop.f32.mrf.mxu0  ;;  %v5347_v11 = vpop.f32.mrf.mxu1  ;;  %6618 = vmatmul.mubr.bf16.vlgmr.msra.gmra.mxu0 %v16022_v33  ;;  %v5143_v16 = vadd.f32 %v13683_v45, %v13134_v56  ;;  %v5145_v40 = vadd.f32 %v13690_v14, %v13144_v54  ;;  %v9976_v56 = vld [vmem:[%s15321_s3 + $0x30] sm:$0xff]  }
 0x41d   : > { %v5533_v49 = vadd.f32 %v5469_v48, %v11304_v38  ;;  %9364 = vmatprep.mubr.msk.bf16.mxu0 %vm5899_vm2, %v16025_v17  ;;  %v5596_v0 = vmax.f32 %v5532_v27, 0.0  ;;  %9313 = vmatprep.mubr.msk.bf16.mxu1 %vm5899_vm2, %v13730_v36  ;;  %v5470_v43 = vadd.f32 %v5347_v11, %v5139_v50  ;;  %v16027_v48 = vld [vmem:[#allocation123_spill] sm:$0xff] }
 0x41e   : > { %v13742_v8 = vpop.f32.mrf.mxu0  ;;  %v5349_v25 = vpop.f32.mrf.mxu1  ;;  %7091 = vmatpush1.bf16.msra.mxu0 %v9975_v19  ;;  %6328 = vmatmul.mubr.bf16.gmra.mxu1 %v13735_v42  ;;  %v5659_v27 = vmul.f32 %v5595_v4, %v16027_v48  ;;  %v5658_v45 = vmul.f32 %v5594_v3, %v16027_v48  ;;  %v16029_v19 = vld [vmem:[#allocation136_spill] sm:$0xff]  ;;  %v5151_v3 = vadd.f32 %v13710_v29, %v13169_v39 }
 0x41f   : > { %v5597_v6 = vmax.f32 %v5533_v49, 0.0  ;;  %v5471_v51 = vadd.f32 %v5349_v25, %v5141_v15  ;;  %7092 = vmatprep.subr.bf16.mxu0 %v15589_v62  ;;  %v5660_v55 = vmul.f32 %v5596_v0, %v16026_v44  ;;  %v5534_v54 = vadd.f32 %v5470_v43, %v11295_v58  ;;  %v16028_v0 = vld [vmem:[#allocation83_spill] sm:$0xff] }
 0x420   : > { %v13751_v59 = vpop.f32.mrf.mxu0  ;;  %v5351_v57 = vpop.f32.mrf.mxu1 }
 0x421   : > { %v5661_v23 = vmul.f32 %v5597_v6, %v16026_v44  ;;  %v5535_v11 = vadd.f32 %v5471_v51, %v11304_v38  ;;  %v5472_v46 = vadd.f32 %v5351_v57, %v5143_v16  ;;  %v5149_v6 = vadd.f32 %v13695_v37, %v16029_v19  ;;  %v16031_v16 = vld [vmem:[#allocation86_spill] sm:$0xff]  ;;  %v9977_v37 = vld [vmem:[%s15321_s3 + $0x28] sm:$0xff]   ;;  %v16042_v44 = vld [vmem:[#allocation143_spill] sm:$0xff] }
 0x422   : > { %v13759_v50 = vpop.f32.mrf.mxu0  ;;  %v5353_v30 = vpop.f32.mrf.mxu1  ;;  %7093 = vmatpush1.bf16.msra.mxu0 %v9976_v56  ;;  %v13777_v51 = vpack.c.bf16 %v5660_v55, %v5658_v45  ;;  %v5598_v39 = vmax.f32 %v5534_v54, 0.0  ;;  %v16032_v45 = vld [vmem:[#allocation138_spill] sm:$0xff] }
 0x423   : > { %v5473_v14 = vadd.f32 %v5353_v30, %v5145_v40  ;;  %7094 = vmatprep.subr.bf16.mxu0 %v15589_v62  ;;  %v5536_v15 = vadd.f32 %v5472_v46, %v11295_v58  ;;  %v13771_v25 = vpack.c.bf16 %v5661_v23, %v5659_v27  ;;  %v5599_v57 = vmax.f32 %v5535_v11, 0.0 }
 0x424   : > { %v13768_v49 = vpop.f32.mrf.mxu0  ;;  %v5357_v4 = vpop.f32.mrf.mxu1  ;;  %6626 = vmatmul.mubr.bf16.gmra.mxu0 %v16028_v0  ;;  %16030 = vst [vmem:[#allocation37_spill] sm:$0xff] %v13777_v51  ;;  %v5153_v11 = vadd.f32 %v13715_v47, %v13183_v10  ;;  %v9978_v10 = vld [vmem:[%s15321_s3 + $0x20] sm:$0xff]   ;;  %v5165_v48 = vadd.f32 %v13759_v50, %v16042_v44 }
 0x425   : > { %v5537_v43 = vadd.f32 %v5473_v14, %v11304_v38  ;;  %9365 = vmatprep.mubr.msk.bf16.mxu0 %vm5899_vm2, %v16031_v16  ;;  %v5600_v40 = vmax.f32 %v5536_v15, 0.0  ;;  %9314 = vmatprep.mubr.msk.bf16.mxu1 %vm5899_vm2, %v13771_v25  ;;  %v5474_v55 = vadd.f32 %v5357_v4, %v5149_v6  ;;  %v5155_v14 = vadd.f32 %v13722_v32, %v16032_v45  ;;  %v16033_v15 = vld [vmem:[#allocation128_spill] sm:$0xff]  ;;  %v16037_v45 = vld [vmem:[#allocation139_spill] sm:$0xff] }
 0x426   : > { %v13784_v23 = vpop.f32.mrf.mxu0  ;;  %v5359_v27 = vpop.f32.mrf.mxu1  ;;  %7095 = vmatpush1.bf16.msra.mxu0 %v9977_v37  ;;  %6336 = vmatmul.mubr.bf16.gmra.mxu1 %v13777_v51 }
 0x427   : > { %v5601_v29 = vmax.f32 %v5537_v43, 0.0  ;;  %v5475_v46 = vadd.f32 %v5359_v27, %v5151_v3  ;;  %7096 = vmatprep.subr.bf16.mxu0 %v15589_v62  ;;  %v5664_v19 = vmul.f32 %v5600_v40, %v16033_v15  ;;  %v16034_v43 = vld [vmem:[#allocation47_spill] sm:$0xff]  ;;  %v5538_v32 = vadd.f32 %v5474_v55, %v11295_v58 }
 0x428   : > { %v13793_v30 = vpop.f32.mrf.mxu0  ;;  %v5361_v56 = vpop.f32.mrf.mxu1  ;;  %v5663_v4 = vmul.f32 %v5599_v57, %v16034_v43  ;;  %v5662_v47 = vmul.f32 %v5598_v39, %v16034_v43 }
 0x429   : > { %v5665_v54 = vmul.f32 %v5601_v29, %v16033_v15  ;;  %v5539_v6 = vadd.f32 %v5475_v46, %v11304_v38  ;;  %v5476_v3 = vadd.f32 %v5361_v56, %v5153_v11  ;;  %v16035_v11 = vld [vmem:[#allocation85_spill] sm:$0xff]  ;;  %v5159_v15 = vadd.f32 %v13727_v24, %v16037_v45  ;;  %v9979_v24 = vld [vmem:[%s15321_s3 + $0x18] sm:$0xff]  }
 0x42a   : > { %v13801_v27 = vpop.f32.mrf.mxu0  ;;  %v5363_v37 = vpop.f32.mrf.mxu1  ;;  %7097 = vmatpush1.bf16.msra.mxu0 %v9978_v10  ;;  %v16038_v10 = vld [vmem:[#allocation80_spill] sm:$0xff]  ;;  %v13819_v43 = vpack.c.bf16 %v5664_v19, %v5662_v47 }
 0x42b   : > { %v5477_v40 = vadd.f32 %v5363_v37, %v5155_v14  ;;  %7098 = vmatprep.subr.bf16.mxu0 %v15589_v62  ;;  %v5540_v57 = vadd.f32 %v5476_v3, %v11295_v58  ;;  %v13813_v56 = vpack.c.bf16 %v5665_v54, %v5663_v4  ;;  %v5161_v39 = vadd.f32 %v13742_v8, %v16038_v10  ;;  %v16040_v14 = vld [vmem:[#allocation88_spill] sm:$0xff] }
 0x42c   : > { %v13810_v29 = vpop.f32.mrf.mxu0  ;;  %v5367_v46 = vpop.f32.mrf.mxu1  ;;  %6634 = vmatmul.mubr.bf16.gmra.mxu0 %v16035_v11  ;;  %16039 = vst [vmem:[#allocation42_spill] sm:$0xff] %v13819_v43  ;;  %v5603_v3 = vmax.f32 %v5539_v6, 0.0  ;;  %v5602_v8 = vmax.f32 %v5538_v32, 0.0  ;;  %v16041_v6 = vld [vmem:[#allocation141_spill] sm:$0xff]  ;;  %v5175_v28 = vadd.f32 %v13801_v27, %v16052_v7 }
 0x42d   : > { %16036 = vst [vmem:[#allocation43_spill] sm:$0xff] %v13813_v56  ;;  %v5541_v55 = vadd.f32 %v5477_v40, %v11304_v38  ;;  %9366 = vmatprep.mubr.msk.bf16.mxu0 %vm5899_vm2, %v16040_v14  ;;  %v5604_v37 = vmax.f32 %v5540_v57, 0.0  ;;  %9315 = vmatprep.mubr.msk.bf16.mxu1 %vm5899_vm2, %v13813_v56  ;;  %v5478_v47 = vadd.f32 %v5367_v46, %v5159_v15 }
 0x42e   : > { %v13826_v54 = vpop.f32.mrf.mxu0  ;;  %v5369_v4 = vpop.f32.mrf.mxu1  ;;  %7099 = vmatpush1.bf16.msra.mxu0 %v9979_v24  ;;  %6344 = vmatmul.mubr.bf16.gmra.mxu1 %v13819_v43  ;;  %v5163_v57 = vadd.f32 %v13751_v59, %v16041_v6  ;;  %v9980_v59 = vld [vmem:[%s15321_s3 + $0x10] sm:$0xff]  }
 0x42f   : > { %v5605_v19 = vmax.f32 %v5541_v55, 0.0  ;;  %v5479_v40 = vadd.f32 %v5369_v4, %v5161_v39  ;;  %7100 = vmatprep.subr.bf16.mxu0 %v15589_v62  ;;  %v5668_v5 = vmul.f32 %v5604_v37, %v16043_v35  ;;  %v16044_v55 = vld [vmem:[#allocation54_spill] sm:$0xff]  ;;  %v5542_v44 = vadd.f32 %v5478_v47, %v11295_v58  ;;  %v16050_v47 = vld [vmem:[#allocation65_spill] sm:$0xff] }
 0x430   : > { %v13835_v45 = vpop.f32.mrf.mxu0  ;;  %v5371_v10 = vpop.f32.mrf.mxu1  ;;  %v5667_v15 = vmul.f32 %v5603_v3, %v16044_v55  ;;  %v5666_v6 = vmul.f32 %v5602_v8, %v16044_v55 }
 0x431   : > { %v5669_v32 = vmul.f32 %v5605_v19, %v16043_v35  ;;  %v5543_v46 = vadd.f32 %v5479_v40, %v11304_v38  ;;  %v5480_v39 = vadd.f32 %v5371_v10, %v5163_v57  ;;  %v16045_v40 = vld [vmem:[#allocation87_spill] sm:$0xff]  ;;  %v16047_v10 = vld [vmem:[#allocation144_spill] sm:$0xff] }
 0x432   : > { %v13843_v4 = vpop.f32.mrf.mxu0  ;;  %v5373_v24 = vpop.f32.mrf.mxu1  ;;  %7101 = vmatpush1.bf16.msra.mxu0 %v9980_v59  ;;  %v5169_v35 = vadd.f32 %v13768_v49, %v16047_v10  ;;  %v16048_v59 = vld [vmem:[#allocation8_spill] sm:$0xff]  ;;  %v13861_v55 = vpack.c.bf16 %v5668_v5, %v5666_v6  ;;  %v5606_v5 = vmax.f32 %v5542_v44, 0.0 }
 0x433   : > { %v5481_v50 = vadd.f32 %v5373_v24, %v5165_v48  ;;  %7102 = vmatprep.subr.bf16.mxu0 %v15589_v62  ;;  %v5544_v3 = vadd.f32 %v5480_v39, %v11295_v58  ;;  %v13855_v57 = vpack.c.bf16 %v5669_v32, %v5667_v15  ;;  %v5171_v8 = vadd.f32 %v13784_v23, %v16048_v59  ;;  %v9981_v49 = vld [vmem:[%s15321_s3 + $0x8] sm:$0xff]  }
 0x434   : > { %v13852_v37 = vpop.f32.mrf.mxu0  ;;  %v5377_v19 = vpop.f32.mrf.mxu1  ;;  %6642 = vmatmul.mubr.bf16.gmra.mxu0 %v16045_v40  ;;  %16049 = vst [vmem:[#allocation35_spill] sm:$0xff] %v13861_v55  ;;  %v5607_v39 = vmax.f32 %v5543_v46, 0.0  ;;  %v16051_v46 = vld [vmem:[#allocation145_spill] sm:$0xff]  ;;  %v5185_v1 = vadd.f32 %v13843_v4, %v16062_v9 }
 0x435   : > { %16046 = vst [vmem:[#allocation48_spill] sm:$0xff] %v13855_v57  ;;  %v5545_v48 = vadd.f32 %v5481_v50, %v11304_v38  ;;  %9367 = vmatprep.mubr.msk.bf16.mxu0 %vm5899_vm2, %v16050_v47  ;;  %v5608_v24 = vmax.f32 %v5544_v3, 0.0  ;;  %9316 = vmatprep.mubr.msk.bf16.mxu1 %vm5899_vm2, %v13855_v57  ;;  %v5482_v6 = vadd.f32 %v5377_v19, %v5169_v35 }
 0x436   : > { %v13868_v32 = vpop.f32.mrf.mxu0  ;;  %v5379_v15 = vpop.f32.mrf.mxu1  ;;  %7103 = vmatpush1.bf16.msra.mxu0 %v9981_v49  ;;  %6352 = vmatmul.mubr.bf16.gmra.mxu1 %v13861_v55  ;;  %v5173_v3 = vadd.f32 %v13793_v30, %v16051_v46  ;;  %v9982_v30 = vld [vmem:[%s15321_s3] sm:$0xff]  }
 0x437   : > { %v5609_v23 = vmax.f32 %v5545_v48, 0.0  ;;  %v5483_v50 = vadd.f32 %v5379_v15, %v5171_v8  ;;  %7104 = vmatprep.subr.bf16.mxu0 %v15589_v62  ;;  %v5672_v31 = vmul.f32 %v5608_v24, %v16053_v20  ;;  %v16054_v48 = vld [vmem:[#allocation56_spill] sm:$0xff]  ;;  %v5546_v7 = vadd.f32 %v5482_v6, %v11295_v58  ;;  %v16060_v6 = vld [vmem:[#allocation71_spill] sm:$0xff] }
 0x438   : > { %v13877_v10 = vpop.f32.mrf.mxu0  ;;  %v5381_v59 = vpop.f32.mrf.mxu1  ;;  %v5671_v35 = vmul.f32 %v5607_v39, %v16054_v48  ;;  %v5670_v46 = vmul.f32 %v5606_v5, %v16054_v48 }
 0x439   : > { %v5673_v44 = vmul.f32 %v5609_v23, %v16053_v20  ;;  %v5547_v19 = vadd.f32 %v5483_v50, %v11304_v38  ;;  %v5484_v8 = vadd.f32 %v5381_v59, %v5173_v3  ;;  %v16055_v50 = vld [vmem:[#allocation67_spill] sm:$0xff]  ;;  %v16057_v59 = vld [vmem:[#allocation148_spill] sm:$0xff] }
 0x43a   : > { %v13885_v15 = vpop.f32.mrf.mxu0  ;;  %v5383_v49 = vpop.f32.mrf.mxu1  ;;  %7105 = vmatpush1.bf16.msra.mxu0 %v9982_v30  ;;  %v5179_v20 = vadd.f32 %v13810_v29, %v16057_v59  ;;  %v16058_v30 = vld [vmem:[#allocation10_spill] sm:$0xff]  ;;  %v13903_v48 = vpack.c.bf16 %v5672_v31, %v5670_v46  ;;  %v9983_v29 = vld [vmem:[%s15321_s3 + $0x68] sm:$0xff]   ;;  %v5610_v31 = vmax.f32 %v5546_v7, 0.0 }
 0x43b   : > { %v5485_v27 = vadd.f32 %v5383_v49, %v5175_v28  ;;  %7110 = vmatprep.subr.bf16.mxu0 %v15589_v62  ;;  %v5548_v39 = vadd.f32 %v5484_v8, %v11295_v58  ;;  %v13897_v3 = vpack.c.bf16 %v5673_v44, %v5671_v35  ;;  %v5181_v5 = vadd.f32 %v13826_v54, %v16058_v30 }
 0x43c   : > { %v13894_v24 = vpop.f32.mrf.mxu0  ;;  %v5387_v23 = vpop.f32.mrf.mxu1  ;;  %6650 = vmatmul.mubr.bf16.gmra.mxu0 %v16055_v50  ;;  %16059 = vst [vmem:[#allocation40_spill] sm:$0xff] %v13903_v48  ;;  %v5611_v8 = vmax.f32 %v5547_v19, 0.0  ;;  %v16061_v19 = vld [vmem:[#allocation149_spill] sm:$0xff] }
 0x43d   : > { %16056 = vst [vmem:[#allocation53_spill] sm:$0xff] %v13897_v3  ;;  %v5549_v28 = vadd.f32 %v5485_v27, %v11304_v38  ;;  %9368 = vmatprep.mubr.msk.bf16.mxu0 %vm5899_vm2, %v16060_v6  ;;  %v5612_v49 = vmax.f32 %v5548_v39, 0.0  ;;  %9317 = vmatprep.mubr.msk.bf16.mxu1 %vm5899_vm2, %v13897_v3  ;;  %v5486_v46 = vadd.f32 %v5387_v23, %v5179_v20  ;;  %v16073_v3 = vld [vmem:[#allocation7_spill] sm:$0xff] }
 0x43e   : > { %v13910_v44 = vpop.f32.mrf.mxu0  ;;  %v5389_v35 = vpop.f32.mrf.mxu1  ;;  %7111 = vmatpush2.bf16.msra.mxu0 %v9983_v29  ;;  %6360 = vmatmul.mubr.bf16.gmra.mxu1 %v13903_v48  ;;  %v5183_v39 = vadd.f32 %v13835_v45, %v16061_v19  ;;  %v9984_v45 = vld [vmem:[%s15321_s3 + $0x60] sm:$0xff]  }
 0x43f   : > { %v5613_v54 = vmax.f32 %v5549_v28, 0.0  ;;  %v5487_v27 = vadd.f32 %v5389_v35, %v5181_v5  ;;  %7112 = vmatprep.subr.bf16.mxu0 %v15589_v62  ;;  %v5676_v26 = vmul.f32 %v5612_v49, %v16063_v22  ;;  %v16064_v28 = vld [vmem:[#allocation58_spill] sm:$0xff]  ;;  %v5550_v9 = vadd.f32 %v5486_v46, %v11295_v58  ;;  %v16070_v46 = vld [vmem:[#allocation28_spill] sm:$0xff] }
 0x440   : > { %v13919_v59 = vpop.f32.mrf.mxu0  ;;  %v5391_v30 = vpop.f32.mrf.mxu1  ;;  %v5675_v20 = vmul.f32 %v5611_v8, %v16064_v28  ;;  %v5674_v19 = vmul.f32 %v5610_v31, %v16064_v28 }
 0x441   : > { %v5677_v7 = vmul.f32 %v5613_v54, %v16063_v22  ;;  %v5551_v23 = vadd.f32 %v5487_v27, %v11304_v38  ;;  %v5488_v5 = vadd.f32 %v5391_v30, %v5183_v39  ;;  %v16065_v27 = vld [vmem:[#allocation68_spill] sm:$0xff] }
 0x442   : > { %v13927_v35 = vpop.f32.mrf.mxu0  ;;  %v5393_v29 = vpop.f32.mrf.mxu1  ;;  %7113 = vmatpush2.bf16.msra.mxu0 %v9984_v45  ;;  %v16067_v30 = vld [vmem:[#allocation152_spill] sm:$0xff]  ;;  %v16068_v45 = vld [vmem:[#allocation11_spill] sm:$0xff]  ;;  %v13945_v28 = vpack.c.bf16 %v5676_v26, %v5674_v19  ;;  %v5614_v26 = vmax.f32 %v5550_v9, 0.0 }
 0x443   : > { %v5489_v4 = vadd.f32 %v5393_v29, %v5185_v1  ;;  %7114 = vmatprep.subr.bf16.mxu0 %v15589_v62  ;;  %v5552_v8 = vadd.f32 %v5488_v5, %v11295_v58  ;;  %v13939_v39 = vpack.c.bf16 %v5677_v7, %v5675_v20  ;;  %v5189_v22 = vadd.f32 %v13852_v37, %v16067_v30  ;;  %v9985_v37 = vld [vmem:[%s15321_s3 + $0x58] sm:$0xff]  }
 0x444   : > { %v13936_v49 = vpop.f32.mrf.mxu0  ;;  %v5397_v54 = vpop.f32.mrf.mxu1  ;;  %6658 = vmatmul.mubr.bf16.gmra.mxu0 %v16065_v27  ;;  %v5191_v31 = vadd.f32 %v13868_v32, %v16068_v45  ;;  %16069 = vst [vmem:[#allocation18_spill] sm:$0xff] %v13945_v28  ;;  %v5615_v5 = vmax.f32 %v5551_v23, 0.0  ;;  %v16071_v23 = vld [vmem:[#allocation153_spill] sm:$0xff] }
 0x445   : > { %16066 = vst [vmem:[#allocation19_spill] sm:$0xff] %v13939_v39  ;;  %v5553_v1 = vadd.f32 %v5489_v4, %v11304_v38  ;;  %9369 = vmatprep.mubr.msk.bf16.mxu0 %vm5899_vm2, %v16070_v46  ;;  %v5616_v29 = vmax.f32 %v5552_v8, 0.0  ;;  %9318 = vmatprep.mubr.msk.bf16.mxu1 %vm5899_vm2, %v13939_v39  ;;  %v5490_v19 = vadd.f32 %v5397_v54, %v5189_v22  ;;  %v16072_v39 = vld [vmem:[#allocation155_spill] sm:$0xff] }
 0x446   : > { %v13952_v7 = vpop.f32.mrf.mxu0  ;;  %v5399_v20 = vpop.f32.mrf.mxu1  ;;  %7115 = vmatpush2.bf16.msra.mxu0 %v9985_v37  ;;  %6368 = vmatmul.mubr.bf16.gmra.mxu1 %v13945_v28  ;;  %v5193_v8 = vadd.f32 %v13877_v10, %v16071_v23  ;;  %v5195_v48 = vadd.f32 %v13885_v15, %v16072_v39  ;;  %v9986_v10 = vld [vmem:[%s15321_s3 + $0x50] sm:$0xff]   ;;  %v5199_v15 = vadd.f32 %v13894_v24, %v13432_v53 }
 0x447   : > { %v5617_v32 = vmax.f32 %v5553_v1, 0.0  ;;  %v5491_v4 = vadd.f32 %v5399_v20, %v5191_v31  ;;  %7116 = vmatprep.subr.bf16.mxu0 %v15589_v62  ;;  %v5680_v55 = vmul.f32 %v5616_v29, %v16073_v3  ;;  %v16074_v1 = vld [vmem:[#allocation60_spill] sm:$0xff]  ;;  %v5554_v29 = vadd.f32 %v5490_v19, %v11295_v58 }
 0x448   : > { %v13961_v30 = vpop.f32.mrf.mxu0  ;;  %v5401_v45 = vpop.f32.mrf.mxu1  ;;  %v5679_v22 = vmul.f32 %v5615_v5, %v16074_v1  ;;  %v5678_v39 = vmul.f32 %v5614_v26, %v16074_v1 }
 0x449   : > { %v5681_v9 = vmul.f32 %v5617_v32, %v16073_v3  ;;  %v5555_v54 = vadd.f32 %v5491_v4, %v11304_v38  ;;  %v5492_v31 = vadd.f32 %v5401_v45, %v5193_v8  ;;  %v16075_v8 = vld [vmem:[#allocation4_spill] sm:$0xff]  ;;  %v16080_v3 = vld [vmem:[#allocation90_spill] sm:$0xff] }
 0x44a   : > { %v13969_v20 = vpop.f32.mrf.mxu0  ;;  %v5403_v37 = vpop.f32.mrf.mxu1  ;;  %7117 = vmatpush2.bf16.msra.mxu0 %v9986_v10  ;;  %v5201_v10 = vadd.f32 %v13910_v44, %v13443_v63  ;;  %v13987_v53 = vpack.c.bf16 %v5680_v55, %v5678_v39  ;;  %v9987_v63 = vld [vmem:[%s15321_s3 + $0x48] sm:$0xff]   ;;  %v5618_v55 = vmax.f32 %v5554_v29, 0.0 }
 0x44b   : > { %v5493_v32 = vadd.f32 %v5403_v37, %v5195_v48  ;;  %7118 = vmatprep.subr.bf16.mxu0 %v15589_v62  ;;  %v5556_v5 = vadd.f32 %v5492_v31, %v11295_v58  ;;  %v13983_v45 = vpack.c.bf16 %v5681_v9, %v5679_v22  ;;  %v16078_v48 = vld [vmem:[#allocation26_spill] sm:$0xff]  ;;  %v5619_v19 = vmax.f32 %v5555_v54, 0.0 }
 0x44c   : > { %v13980_v4 = vpop.f32.mrf.mxu0  ;;  %v5407_v23 = vpop.f32.mrf.mxu1  ;;  %6666 = vmatmul.mubr.bf16.gmra.mxu0 %v16075_v8  ;;  %16077 = vst [vmem:[#allocation45_spill] sm:$0xff] %v13987_v53  ;;  %v5203_v54 = vadd.f32 %v13919_v59, %v13461_v60  ;;  %v9988_v59 = vld [vmem:[%s15321_s3 + $0x40] sm:$0xff]  }
 0x44d   : > { %16076 = vst [vmem:[#allocation21_spill] sm:$0xff] %v13983_v45  ;;  %v5557_v24 = vadd.f32 %v5493_v32, %v11304_v38  ;;  %v5494_v26 = vadd.f32 %v5407_v23, %v5199_v15  ;;  %9370 = vmatprep.mubr.msk.bf16.mxu0 %vm5899_vm2, %v16078_v48  ;;  %v5620_v31 = vmax.f32 %v5556_v5, 0.0  ;;  %9319 = vmatprep.mubr.msk.bf16.mxu1 %vm5899_vm2, %v13983_v45  ;;  %v16079_v5 = vld [vmem:[#allocation158_spill] sm:$0xff]  ;;  %v16085_v45 = vld [vmem:[#allocation76_spill] sm:$0xff] }
 0x44e   : > { %v13994_v37 = vpop.f32.mrf.mxu0  ;;  %v5409_v9 = vpop.f32.mrf.mxu1  ;;  %7119 = vmatpush2.bf16.msra.mxu0 %v9987_v63  ;;  %6376 = vmatmul.mubr.bf16.gmra.mxu1 %v13987_v53  ;;  %v5205_v23 = vadd.f32 %v13927_v35, %v16079_v5  ;;  %v5211_v28 = vadd.f32 %v13952_v7, %v16085_v45  ;;  %v16088_v7 = vld [vmem:[#allocation163_spill] sm:$0xff] }
 0x44f   : > { %v5621_v44 = vmax.f32 %v5557_v24, 0.0  ;;  %v5495_v22 = vadd.f32 %v5409_v9, %v5201_v10  ;;  %7120 = vmatprep.subr.bf16.mxu0 %v15589_v62  ;;  %v5558_v15 = vadd.f32 %v5494_v26, %v11295_v58  ;;  %v5684_v63 = vmul.f32 %v5620_v31, %v16080_v3  ;;  %v16081_v10 = vld [vmem:[#allocation62_spill] sm:$0xff]  ;;  %v16082_v26 = vld [vmem:[#allocation160_spill] sm:$0xff] }
 0x450   : > { %v14004_v39 = vpop.f32.mrf.mxu0  ;;  %v5411_v32 = vpop.f32.mrf.mxu1  ;;  %v5683_v24 = vmul.f32 %v5619_v19, %v16081_v10  ;;  %v5209_v35 = vadd.f32 %v13936_v49, %v16082_v26  ;;  %v5682_v31 = vmul.f32 %v5618_v55, %v16081_v10  ;;  %v16087_v55 = vld [vmem:[#allocation75_spill] sm:$0xff]  ;;  %v5213_v45 = vadd.f32 %v13961_v30, %v16088_v7 }
 0x451   : > { %v5685_v29 = vmul.f32 %v5621_v44, %v16080_v3  ;;  %v5559_v9 = vadd.f32 %v5495_v22, %v11304_v38  ;;  %v5496_v1 = vadd.f32 %v5411_v32, %v5203_v54  ;;  %v5622_v44 = vmax.f32 %v5558_v15, 0.0  ;;  %v16083_v54 = vld [vmem:[#allocation29_spill] sm:$0xff] }
 0x452   : > { %v14012_v53 = vpop.f32.mrf.mxu0  ;;  %v5413_v60 = vpop.f32.mrf.mxu1  ;;  %7121 = vmatpush2.bf16.msra.mxu0 %v9988_v59  ;;  %v14028_v59 = vpack.c.bf16 %v5684_v63, %v5682_v31  ;;  %v16089_v63 = vld [vmem:[#allocation64_spill] sm:$0xff] }
 0x453   : > { %v5497_v5 = vadd.f32 %v5413_v60, %v5205_v23  ;;  %v5560_v19 = vadd.f32 %v5496_v1, %v11295_v58  ;;  %v14024_v32 = vpack.c.bf16 %v5685_v29, %v5683_v24  ;;  %v5623_v15 = vmax.f32 %v5559_v9, 0.0 }
 0x454   : > { %v14021_v3 = vpop.f32.mrf.mxu0  ;;  %v5417_v22 = vpop.f32.mrf.mxu1  ;;  %6674 = vmatmul.mubr.bf16.gmra.mxu0 %v16083_v54  ;;  %16086 = vst [vmem:[#allocation82_spill] sm:$0xff] %v14028_v59  ;;  %v14039_v31 = vmul.f32 %v5622_v44, %v16089_v63 }
 0x455   : > { %16084 = vst [vmem:[#allocation49_spill] sm:$0xff] %v14024_v32  ;;  %v5561_v49 = vadd.f32 %v5497_v5, %v11304_v38  ;;  %v5498_v26 = vadd.f32 %v5417_v22, %v5209_v35  ;;  %9371 = vmatprep.mubr.msk.bf16.mxu0 %vm5899_vm2, %v16087_v55  ;;  %v5624_v1 = vmax.f32 %v5560_v19, 0.0  ;;  %9320 = vmatprep.mubr.msk.bf16.mxu1 %vm5899_vm2, %v14024_v32  ;;  %v16091_v35 = vld [vmem:[#allocation93_spill] sm:$0xff]  ;;  %v16093_v19 = vld [vmem:[#allocation102_spill] sm:$0xff] }
 0x456   : > { %v5230_v23 = vpop.f32.mrf.mxu0  ;;  %v5419_v60 = vpop.f32.mrf.mxu1  ;;  %6384 = vmatmul.mubr.bf16.gmra.mxu1 %v14028_v59  ;;  %16090 = vst [vmem:[#allocation131_spill] sm:$0xff] %v14039_v31  ;;  %v16094_v22 = vld [vmem:[#allocation101_spill] sm:$0xff]  ;;  %v14057_v44 = vmul.f32 %v5623_v15, %v16089_v63  ;;  %v16100_v15 = vld [vmem:[#allocation30_spill] sm:$0xff] }
 0x457   : > { %v5625_v29 = vmax.f32 %v5561_v49, 0.0  ;;  %v5499_v24 = vadd.f32 %v5419_v60, %v5211_v28  ;;  %v14042_v5 = vmul.f32 %v5624_v1, %v16091_v35  ;;  %v5562_v9 = vadd.f32 %v5498_v26, %v11295_v58  ;;  %v16096_v60 = vld [vmem:[#allocation166_spill] sm:$0xff]  ;;  %v16102_v31 = vld [vmem:[#allocation33_spill] sm:$0xff] }
 0x458   : > { %v16095_v10 = vpack.c.bf16 %v16093_v19, %v16094_v22  ;;  %v14049_v49 = vpop.f32.mrf.mxu0  ;;  %v5421_v28 = vpop.f32.mrf.mxu1  ;;  %v5215_v59 = vadd.f32 %v13969_v20, %v16096_v60  ;;  %16098 = vst [vmem:[#allocation52_spill] sm:$0xff] %v14057_v44  ;;  %v16099_v22 = vld [vmem:[#allocation169_spill] sm:$0xff]  ;;  %v16104_v44 = vld [vmem:[#allocation99_spill] sm:$0xff] }
 0x459   : > { %16092 = vst [vmem:[#allocation81_spill] sm:$0xff] %v14042_v5  ;;  %v14054_v30 = vmul.f32 %v5625_v29, %v16091_v35  ;;  %v5563_v1 = vadd.f32 %v5499_v24, %v11304_v38  ;;  %v5500_v7 = vadd.f32 %v5421_v28, %v5213_v45  ;;  %v5219_v32 = vadd.f32 %v13980_v4, %v16099_v22  ;;  %v16101_v24 = vld [vmem:[#allocation74_spill] sm:$0xff] }
 0x45a   : > { %9380 = vmatprep.mubr.msk.bf16.mxu1 %vm5899_vm2, %v16095_v10  ;;  %v14062_v19 = vpop.f32.mrf.mxu0  ;;  %v5423_v10 = vpop.f32.mrf.mxu1  ;;  %v5626_v20 = vmax.f32 %v5562_v9, 0.0  ;;  %v5221_v45 = vadd.f32 %v13994_v37, %v16101_v24 }
 0x45b   : > { %16097 = vst [vmem:[#allocation133_spill] sm:$0xff] %v14054_v30  ;;  %v5501_v57 = vadd.f32 %v5423_v10, %v5215_v59  ;;  %v5564_v29 = vadd.f32 %v5500_v7, %v11295_v58  ;;  %v5627_v4 = vmax.f32 %v5563_v1, 0.0  ;;  %v16103_v10 = vld [vmem:[#allocation171_spill] sm:$0xff]  ;;  %v16105_v30 = vld [vmem:[#allocation13_spill] sm:$0xff] }
 0x45c   : > { %v5427_v60 = vpop.f32.mrf.mxu1  ;;  %v14067_v35 = vpop.f32.mrf.mxu0  ;;  %6682 = vmatmul.mubr.bf16.gmra.mxu0 %v16100_v15  ;;  %v5223_v22 = vadd.f32 %v14004_v39, %v16103_v10  ;;  %v16106_v37 = vpack.c.bf16 %v16104_v44, %v16105_v30  ;;  %v16111_v1 = vld [vmem:[#allocation105_spill] sm:$0xff]  ;;  %v16114_v30 = vld [vmem:[#allocation174_spill] sm:$0xff] }
 0x45d   : > { %v5565_v28 = vadd.f32 %v5501_v57, %v11304_v38  ;;  %v5502_v63 = vadd.f32 %v5427_v60, %v5219_v32  ;;  %9372 = vmatprep.mubr.msk.bf16.mxu0 %vm5899_vm2, %v16102_v31  ;;  %v5628_v59 = vmax.f32 %v5564_v29, 0.0  ;;  %v16107_v57 = vld [vmem:[#allocation69_spill] sm:$0xff]  ;;  %v16109_v60 = vld [vmem:[#allocation96_spill] sm:$0xff]  ;;  %v16112_v29 = vld [vmem:[#allocation106_spill] sm:$0xff]  ;;  %v5225_v44 = vadd.f32 %v14012_v53, %v16114_v30 }
 0x45e   : > { %v5429_v9 = vpop.f32.mrf.mxu1  ;;  %v5984_v7 = vpop.f32.mrf.mxu0  ;;  %6962 = vmatmul.mubr.bf16.vlgmr.msra.gmra.mxu1 %v16106_v37  ;;  %v14084_v32 = vmul.f32 %v5626_v20, %v16107_v57  ;;  %v16118_v30 = vld [vmem:[#allocation34_spill] sm:$0xff] }
 0x45f   : > { %v5629_v5 = vmax.f32 %v5565_v28, 0.0  ;;  %v5566_v43 = vadd.f32 %v5502_v63, %v11295_v58  ;;  %v5503_v26 = vadd.f32 %v5429_v9, %v5221_v45  ;;  %v14087_v24 = vmul.f32 %v5628_v59, %v16109_v60  ;;  %v9989_v63 = vld [vmem:[%s15321_s3 + $0x118] sm:$0xff]  }
 0x460   : > { %16108 = vst [vmem:[#allocation84_spill] sm:$0xff] %v14084_v32  ;;  %v16113_v7 = vpack.c.bf16 %v16111_v1, %v16112_v29  ;;  %v5431_v39 = vpop.f32.mrf.mxu1  ;;  %v14093_v28 = vpop.f32.mrf.mxu0  ;;  %7272 = vmatpush1.bf16.msra.mxu1 %v9989_v63  ;;  %v14106_v9 = vmul.f32 %v5627_v4, %v16107_v57  ;;  %v16117_v29 = vld [vmem:[#allocation175_spill] sm:$0xff]  ;;  %v9990_v4 = vld [vmem:[%s15321_s3 + $0x110] sm:$0xff]  }
 0x461   : > { %16110 = vst [vmem:[#allocation83_spill] sm:$0xff] %v14087_v24  ;;  %v14101_v20 = vmul.f32 %v5629_v5, %v16109_v60  ;;  %v5567_v45 = vadd.f32 %v5503_v26, %v11304_v38  ;;  %v5504_v59 = vadd.f32 %v5431_v39, %v5223_v22  ;;  %7273 = vmatprep.subr.bf16.mxu1 %v15589_v62  ;;  %v5630_v53 = vmax.f32 %v5566_v43, 0.0  ;;  %v16119_v60 = vld [vmem:[#allocation32_spill] sm:$0xff]  ;;  %v16123_v57 = vld [vmem:[#allocation159_spill] sm:$0xff] }
 0x462   : > { %9381 = vmatprep.mubr.msk.bf16.mxu1 %vm5899_vm2, %v16113_v7  ;;  %16116 = vst [vmem:[#allocation86_spill] sm:$0xff] %v14106_v9  ;;  %v5433_v37 = vpop.f32.mrf.mxu1  ;;  %v5987_v1 = vpop.f32.mrf.mxu0  ;;  %v5229_v7 = vadd.f32 %v14021_v3, %v16117_v29  ;;  %v5231_v26 = vadd.f32 %v5230_v23, %v16118_v30  ;;  %v16121_v30 = vld [vmem:[#allocation72_spill] sm:$0xff] }
 0x463   : > { %16115 = vst [vmem:[#allocation136_spill] sm:$0xff] %v14101_v20  ;;  %v5568_v5 = vadd.f32 %v5504_v59, %v11295_v58  ;;  %v5505_v63 = vadd.f32 %v5433_v37, %v5225_v44  ;;  %v5631_v3 = vmax.f32 %v5567_v45, 0.0  ;;  %v16120_v37 = vld [vmem:[#allocation5_spill] sm:$0xff]  ;;  %v14127_v10 = vmul.f32 %v5630_v53, %v16121_v30  ;;  %v16125_v45 = vld [vmem:[#allocation104_spill] sm:$0xff]  ;;  %v16130_v20 = vld [vmem:[#allocation110_spill] sm:$0xff] }
 0x464   : > { %v5437_v22 = vpop.f32.mrf.mxu1  ;;  %v14114_v39 = vpop.f32.mrf.mxu0  ;;  %6690 = vmatmul.mubr.bf16.gmra.mxu0 %v16119_v60  ;;  %7274 = vmatpush1.bf16.msra.mxu1 %v9990_v4  ;;  %v16131_v53 = vld [vmem:[#allocation111_spill] sm:$0xff] }
 0x465   : > { %v5632_v43 = vmax.f32 %v5568_v5, 0.0  ;;  %v5569_v59 = vadd.f32 %v5505_v63, %v11304_v38  ;;  %v5506_v44 = vadd.f32 %v5437_v22, %v5229_v7  ;;  %9373 = vmatprep.mubr.msk.bf16.mxu0 %vm5899_vm2, %v16120_v37  ;;  %7275 = vmatprep.subr.bf16.mxu1 %v15589_v62  ;;  %16122 = vst [vmem:[#allocation138_spill] sm:$0xff] %v14127_v10  ;;  %v16126_v5 = vld [vmem:[#allocation103_spill] sm:$0xff]  ;;  %v16129_v22 = vld [vmem:[#allocation176_spill] sm:$0xff] }
 0x466   : > { %v5439_v23 = vpop.f32.mrf.mxu1  ;;  %v5992_v29 = vpop.f32.mrf.mxu0  ;;  %v16127_v24 = vpack.c.bf16 %v16125_v45, %v16126_v5  ;;  %v16128_v7 = vld [vmem:[#allocation27_spill] sm:$0xff]  ;;  %v5235_v9 = vadd.f32 %v14062_v19, %v16129_v22  ;;  %v16132_v56 = vpack.c.bf16 %v16130_v20, %v16131_v53 }
 0x467   : > { %v14130_v4 = vmul.f32 %v5632_v43, %v16123_v57  ;;  %v5633_v32 = vmax.f32 %v5569_v59, 0.0  ;;  %v5507_v1 = vadd.f32 %v5439_v23, %v5231_v26  ;;  %v5233_v63 = vadd.f32 %v14049_v49, %v16128_v7  ;;  %v9991_v26 = vld [vmem:[%s15321_s3 + $0x108] sm:$0xff]   ;;  %v16138_v49 = vld [vmem:[#allocation109_spill] sm:$0xff] }
 0x468   : > { %6970 = vmatmul.mubr.bf16.gmra.mxu1 %v16127_v24  ;;  %v5570_v29 = vadd.f32 %v5506_v44, %v11295_v58  ;;  %v5441_v43 = vpop.f32.mrf.mxu1  ;;  %v5993_v59 = vpop.f32.mrf.mxu0  ;;  %v14148_v24 = vmul.f32 %v5631_v3, %v16121_v30 }
 0x469   : > { %16124 = vst [vmem:[#allocation85_spill] sm:$0xff] %v14130_v4  ;;  %9382 = vmatprep.mubr.msk.bf16.mxu1 %vm5899_vm2, %v16132_v56  ;;  %7276 = vmatpush1.bf16.msra.mxu1 %v9991_v26  ;;  %v14153_v19 = vmul.f32 %v5633_v32, %v16123_v57  ;;  %v5571_v20 = vadd.f32 %v5507_v1, %v11304_v38  ;;  %v16135_v26 = vld [vmem:[#allocation25_spill] sm:$0xff]  ;;  %v9992_v32 = vld [vmem:[%s15321_s3 + $0x100] sm:$0xff]  }
 0x46a   : > { %16133 = vst [vmem:[#allocation139_spill] sm:$0xff] %v14148_v24  ;;  %7277 = vmatprep.subr.bf16.mxu1 %v15589_v62  ;;  %v5508_v56 = vadd.f32 %v5441_v43, %v5233_v63  ;;  %v5443_v44 = vpop.f32.mrf.mxu1  ;;  %v5995_v23 = vpop.f32.mrf.mxu0  ;;  %v5634_v7 = vmax.f32 %v5570_v29, 0.0  ;;  %v16136_v43 = vld [vmem:[#allocation36_spill] sm:$0xff]  ;;  %v16170_v24 = vld [vmem:[#allocation130_spill] sm:$0xff] }
 0x46b   : > { %16134 = vst [vmem:[#allocation80_spill] sm:$0xff] %v14153_v19  ;;  %v5509_v45 = vadd.f32 %v5443_v44, %v5235_v9  ;;  %v5635_v1 = vmax.f32 %v5571_v20, 0.0  ;;  %v16137_v23 = vld [vmem:[#allocation108_spill] sm:$0xff]  ;;  %v16171_v19 = vld [vmem:[#allocation51_spill] sm:$0xff] }
 0x46c   : > { %v5572_v3 = vadd.f32 %v5508_v56, %v11295_v58  ;;  %v5998_v22 = vpop.f32.mrf.mxu0  ;;  %v6265_v53 = vpop.f32.mrf.mxu1  ;;  %6698 = vmatmul.mubr.bf16.gmra.mxu0 %v16135_v26  ;;  %v16139_v5 = vpack.c.bf16 %v16137_v23, %v16138_v49  ;;  %v16172_v51 = vpack.c.bf16 %v16170_v24, %v16171_v19  ;;  %v16175_v24 = vld [vmem:[#allocation46_spill] sm:$0xff] }
 0x46d   : > { %7278 = vmatpush1.bf16.msra.mxu1 %v9992_v32  ;;  %v5573_v63 = vadd.f32 %v5509_v45, %v11304_v38  ;;  %v14166_v9 = vadd.f32 %v6265_v53, %v14067_v35  ;;  %9374 = vmatprep.mubr.msk.bf16.mxu0 %vm5899_vm2, %v16136_v43  ;;  %v16140_v32 = vld [vmem:[#allocation167_spill] sm:$0xff]  ;;  %v16142_v38 = vld [vmem:[#allocation168_spill] sm:$0xff] }
 0x46e   : > { %7279 = vmatprep.subr.bf16.mxu1 %v15589_v62  ;;  %v5636_v58 = vmax.f32 %v5572_v3, 0.0  ;;  %v6000_v29 = vpop.f32.mrf.mxu0  ;;  %v6267_v56 = vpop.f32.mrf.mxu1  ;;  %v14175_v20 = vmul.f32 %v5634_v7, %v16140_v32  ;;  %v16144_v35 = vld [vmem:[#allocation115_spill] sm:$0xff]  ;;  %v16145_v53 = vld [vmem:[#allocation116_spill] sm:$0xff]  ;;  %v14188_v49 = vmul.f32 %v5635_v1, %v16140_v32  ;;  %v16149_v1 = vld [vmem:[#allocation22_spill] sm:$0xff] }
 0x46f   : > { %v5637_v44 = vmax.f32 %v5573_v63, 0.0  ;;  %v16146_v57 = vpack.c.bf16 %v16144_v35, %v16145_v53  ;;  %v9993_v63 = vld [vmem:[%s15321_s3 + $0xf8] sm:$0xff]   ;;  %v16150_v53 = vld [vmem:[#allocation24_spill] sm:$0xff] }
 0x470   : > { %6978 = vmatmul.mubr.bf16.gmra.mxu1 %v16139_v5  ;;  %16141 = vst [vmem:[#allocation88_spill] sm:$0xff] %v14175_v20  ;;  %v14178_v45 = vmul.f32 %v5636_v58, %v16142_v38  ;;  %v6001_v30 = vpop.f32.mrf.mxu0  ;;  %v6268_v3 = vpop.f32.mrf.mxu1  ;;  %16147 = vst [vmem:[#allocation143_spill] sm:$0xff] %v14188_v49  ;;  %v16154_v56 = vld [vmem:[#allocation120_spill] sm:$0xff]  ;;  %v16162_v49 = vld [vmem:[#allocation126_spill] sm:$0xff] }
 0x471   : > { %9383 = vmatprep.mubr.msk.bf16.mxu1 %vm5899_vm2, %v16146_v57  ;;  %7280 = vmatpush1.bf16.msra.mxu1 %v9993_v63  ;;  %v14191_v5 = vmul.f32 %v5637_v44, %v16142_v38  ;;  %v14194_v7 = vadd.f32 %v6268_v3, %v14093_v28  ;;  %v9994_v44 = vld [vmem:[%s15321_s3 + $0xf0] sm:$0xff]  }
 0x472   : > { %16143 = vst [vmem:[#allocation141_spill] sm:$0xff] %v14178_v45  ;;  %7281 = vmatprep.subr.bf16.mxu1 %v15589_v62  ;;  %v6003_v58 = vpop.f32.mrf.mxu0  ;;  %v6270_v29 = vpop.f32.mrf.mxu1  ;;  %v16155_v38 = vld [vmem:[#allocation121_spill] sm:$0xff]  ;;  %v9915_v45 = vld [vmem:[%s15323_s5 + $0x68] sm:$0xff]  }
 0x473   : > { %16148 = vst [vmem:[#allocation87_spill] sm:$0xff] %v14191_v5  ;;  %v16151_v58 = vld [vmem:[#allocation113_spill] sm:$0xff]  ;;  %v16152_v29 = vld [vmem:[#allocation114_spill] sm:$0xff]  ;;  %v16156_v32 = vpack.c.bf16 %v16154_v56, %v16155_v38  ;;  %v16158_v56 = vld [vmem:[#allocation39_spill] sm:$0xff]  ;;  %9663 = vmatprep.subr.bf16.mxu0 %v9915_v45 }
 0x474   : > { %v6006_v23 = vpop.f32.mrf.mxu0  ;;  %v6273_v35 = vpop.f32.mrf.mxu1  ;;  %6706 = vmatmul.mubr.bf16.gmra.mxu0 %v16149_v1  ;;  %v16153_v57 = vpack.c.bf16 %v16151_v58, %v16152_v29  ;;  %v16157_v29 = vld [vmem:[#allocation23_spill] sm:$0xff] }
 0x475   : > { %7282 = vmatpush1.bf16.msra.mxu1 %v9994_v44  ;;  %v14206_v28 = vadd.f32 %v6273_v35, %v14114_v39  ;;  %9375 = vmatprep.mubr.msk.bf16.mxu0 %vm5899_vm2, %v16150_v53  ;;  %v9995_v39 = vld [vmem:[%s15321_s3 + $0xe8] sm:$0xff]   ;;  %v16163_v5 = vld [vmem:[#allocation127_spill] sm:$0xff] }
 0x476   : > { %7283 = vmatprep.subr.bf16.mxu1 %v15589_v62  ;;  %v6008_v3 = vpop.f32.mrf.mxu0  ;;  %v6275_v63 = vpop.f32.mrf.mxu1 }
 0x478   : > { %6986 = vmatmul.mubr.bf16.gmra.mxu1 %v16153_v57  ;;  %v6009_v44 = vpop.f32.mrf.mxu0  ;;  %v6276_v20 = vpop.f32.mrf.mxu1 }
 0x479   : > { %9384 = vmatprep.mubr.msk.bf16.mxu1 %vm5899_vm2, %v16156_v32  ;;  %7284 = vmatpush1.bf16.msra.mxu1 %v9995_v39  ;;  %v14221_v35 = vadd.f32 %v6276_v20, %v5993_v59  ;;  %v9996_v32 = vld [vmem:[%s15321_s3 + $0xe0] sm:$0xff]   ;;  %v16159_v39 = vld [vmem:[#allocation118_spill] sm:$0xff] }
 0x47a   : > { %7285 = vmatprep.subr.bf16.mxu1 %v15589_v62  ;;  %v6011_v3 = vpop.f32.mrf.mxu0  ;;  %v6278_v63 = vpop.f32.mrf.mxu1 }
 0x47b   : > { %v16160_v3 = vld [vmem:[#allocation119_spill] sm:$0xff] }
 0x47c   : > { %v14224_v58 = vpop.f32.mrf.mxu0  ;;  %v6281_v57 = vpop.f32.mrf.mxu1  ;;  %6714 = vmatmul.mubr.bf16.gmra.mxu0 %v16157_v29  ;;  %v16161_v63 = vpack.c.bf16 %v16159_v39, %v16160_v3 }
 0x47d   : > { %7286 = vmatpush1.bf16.msra.mxu1 %v9996_v32  ;;  %v14230_v38 = vadd.f32 %v6281_v57, %v5998_v22  ;;  %9376 = vmatprep.mubr.msk.bf16.mxu0 %vm5899_vm2, %v16158_v56  ;;  %v16164_v32 = vpack.c.bf16 %v16162_v49, %v16163_v5  ;;  %v16165_v5 = vld [vmem:[#allocation38_spill] sm:$0xff] }
 0x47e   : > { %7291 = vmatprep.subr.bf16.mxu1 %v15589_v62  ;;  %v6016_v59 = vpop.f32.mrf.mxu0  ;;  %v6283_v20 = vpop.f32.mrf.mxu1 }
 0x47f   : > { %v9997_v59 = vld [vmem:[%s15321_s3 + $0x148] sm:$0xff]  }
 0x480   : > { %6994 = vmatmul.mubr.bf16.gmra.mxu1 %v16161_v63  ;;  %v14245_v22 = vpop.f32.mrf.mxu0  ;;  %v6284_v57 = vpop.f32.mrf.mxu1 }
 0x481   : > { %9385 = vmatprep.mubr.msk.bf16.mxu1 %vm5899_vm2, %v16164_v32  ;;  %7292 = vmatpush2.bf16.msra.mxu1 %v9997_v59  ;;  %v14250_v20 = vadd.f32 %v6284_v57, %v6001_v30  ;;  %v9998_v32 = vld [vmem:[%s15321_s3 + $0x140] sm:$0xff]  }
 0x482   : > { %7293 = vmatprep.subr.bf16.mxu1 %v15589_v62  ;;  %v6019_v39 = vpop.f32.mrf.mxu0  ;;  %v6286_v3 = vpop.f32.mrf.mxu1  ;;  %v16166_v59 = vld [vmem:[#allocation31_spill] sm:$0xff] }
 0x483   : > { %v16167_v39 = vld [vmem:[#allocation124_spill] sm:$0xff]  ;;  %v16168_v3 = vld [vmem:[#allocation125_spill] sm:$0xff] }
 0x484   : > { %v14253_v63 = vpop.f32.mrf.mxu0  ;;  %v6289_v49 = vpop.f32.mrf.mxu1  ;;  %6722 = vmatmul.mubr.bf16.gmra.mxu0 %v16165_v5  ;;  %v16169_v4 = vpack.c.bf16 %v16167_v39, %v16168_v3  ;;  %v16174_v39 = vld [vmem:[#allocation41_spill] sm:$0xff] }
 0x485   : > { %7294 = vmatpush2.bf16.msra.mxu1 %v9998_v32  ;;  %v14259_v10 = vadd.f32 %v6289_v49, %v6006_v23  ;;  %9377 = vmatprep.mubr.msk.bf16.mxu0 %vm5899_vm2, %v16166_v59  ;;  %v9999_v49 = vld [vmem:[%s15321_s3 + $0x138] sm:$0xff]   ;;  %v16177_v3 = vld [vmem:[#allocation129_spill] sm:$0xff] }
 0x486   : > { %7295 = vmatprep.subr.bf16.mxu1 %v15589_v62  ;;  %v6024_v30 = vpop.f32.mrf.mxu0  ;;  %v6291_v57 = vpop.f32.mrf.mxu1 }
 0x488   : > { %7002 = vmatmul.mubr.bf16.gmra.mxu1 %v16169_v4  ;;  %v14271_v5 = vpop.f32.mrf.mxu0  ;;  %v6292_v23 = vpop.f32.mrf.mxu1 }
 0x489   : > { %9386 = vmatprep.mubr.msk.bf16.mxu1 %vm5899_vm2, %v16172_v51  ;;  %7296 = vmatpush2.bf16.msra.mxu1 %v9999_v49  ;;  %v14276_v32 = vadd.f32 %v6292_v23, %v6009_v44  ;;  %v10000_v51 = vld [vmem:[%s15321_s3 + $0x130] sm:$0xff]   ;;  %v16176_v44 = vld [vmem:[#allocation55_spill] sm:$0xff] }
 0x48a   : > { %7297 = vmatprep.subr.bf16.mxu1 %v15589_v62  ;;  %v6027_v30 = vpop.f32.mrf.mxu0  ;;  %v6294_v57 = vpop.f32.mrf.mxu1  ;;  %v16178_v23 = vpack.c.bf16 %v16176_v44, %v16177_v3  ;;  %v16179_v49 = vld [vmem:[#allocation135_spill] sm:$0xff] }
 0x48b   : > { %v16180_v30 = vld [vmem:[#allocation20_spill] sm:$0xff]  ;;  %v10002_v44 = vld [vmem:[%s15321_s3 + $0x120] sm:$0xff]  }
 0x48c   : > { %v14279_v4 = vpop.f32.mrf.mxu0  ;;  %6730 = vmatmul.mubr.bf16.gmra.mxu0 %v16174_v39  ;;  %v16181_v57 = vpack.c.bf16 %v16179_v49, %v16180_v30  ;;  %v16185_v49 = vld [vmem:[#allocation134_spill] sm:$0xff] }
 0x48d   : > { %16173 = vst [vmem:[#allocation144_spill] sm:$0xff] %v14279_v4  ;;  %7298 = vmatpush2.bf16.msra.mxu1 %v10000_v51  ;;  %9378 = vmatprep.mubr.msk.bf16.mxu0 %vm5899_vm2, %v16175_v24  ;;  %v10001_v51 = vld [vmem:[%s15321_s3 + $0x128] sm:$0xff]  }
 0x48e   : > { %7299 = vmatprep.subr.bf16.mxu1 %v15589_v62  ;;  %v6032_v19 = vpop.f32.mrf.mxu0  ;;  %v16183_v4 = vld [vmem:[#allocation44_spill] sm:$0xff] }
 0x490   : > { %7010 = vmatmul.mubr.bf16.gmra.mxu1 %v16178_v23  ;;  %v14295_v39 = vpop.f32.mrf.mxu0  ;;  %v16184_v23 = vld [vmem:[#allocation57_spill] sm:$0xff] }
 0x491   : > { %9387 = vmatprep.mubr.msk.bf16.mxu1 %vm5899_vm2, %v16181_v57  ;;  %7300 = vmatpush2.bf16.msra.mxu1 %v10001_v51  ;;  %v16186_v30 = vpack.c.bf16 %v16184_v23, %v16185_v49  ;;  %v16187_v57 = vld [vmem:[#allocation137_spill] sm:$0xff] }
 0x492   : > { %7301 = vmatprep.subr.bf16.mxu1 %v15589_v62  ;;  %v6035_v24 = vpop.f32.mrf.mxu0  ;;  %v16188_v62 = vld [vmem:[#allocation78_spill] sm:$0xff]  ;;  %v16190_v23 = vld [vmem:[#allocation77_spill] sm:$0xff] }
 0x493   : > { %v16189_v24 = vpack.c.bf16 %v16187_v57, %v16188_v62  ;;  %v16194_v57 = vld [vmem:[#allocation6_spill] sm:$0xff] }
 0x494   : > { %v14301_v19 = vpop.f32.mrf.mxu0  ;;  %6738 = vmatmul.mubr.bf16.gmra.mxu0 %v16183_v4 }
 0x495   : > { %16182 = vst [vmem:[#allocation8_spill] sm:$0xff] %v14301_v19  ;;  %7302 = vmatpush2.bf16.msra.mxu1 %v10002_v44  ;;  %9396 = vmatprep.mubr.msk.bf16.mxu0 %vm5899_vm2, %v16018_v52  ;;  %v9916_v44 = vld [vmem:[%s15323_s5 + $0x60] sm:$0xff]  }
 0x496   : > { %v6040_v3 = vpop.f32.mrf.mxu0 }
 0x497   : > { %v9917_v3 = vld [vmem:[%s15323_s5 + $0x58] sm:$0xff]  }
 0x498   : > { %7018 = vmatmul.mubr.bf16.gmra.mxu1 %v16186_v30  ;;  %v14316_v51 = vpop.f32.mrf.mxu0  ;;  %v16193_v30 = vld [vmem:[#allocation142_spill] sm:$0xff] }
 0x499   : > { %9388 = vmatprep.mubr.msk.bf16.mxu1 %vm5899_vm2, %v16189_v24  ;;  %v16195_v62 = vpack.c.bf16 %v16193_v30, %v16194_v57  ;;  %v16199_v30 = vld [vmem:[#allocation146_spill] sm:$0xff]  ;;  %v16200_v57 = vld [vmem:[#allocation89_spill] sm:$0xff] }
 0x49a   : > { %v6043_v4 = vpop.f32.mrf.mxu0 }
 0x49b   : > { %v16191_v4 = vld [vmem:[#allocation59_spill] sm:$0xff] }
 0x49c   : > { %v14321_v19 = vpop.f32.mrf.mxu0  ;;  %7123 = vmatmul.mubr.bf16.vlgmr.msra.gmra.mxu0 %v16022_v33  ;;  %v16192_v49 = vpack.c.bf16 %v16190_v23, %v16191_v4  ;;  %v16196_v23 = vld [vmem:[#allocation61_spill] sm:$0xff]  ;;  %v16197_v4 = vld [vmem:[#allocation140_spill] sm:$0xff] }
 0x49d   : > { %9397 = vmatprep.mubr.msk.bf16.mxu0 %vm5899_vm2, %v16025_v17  ;;  %9664 = vmatpush3.bf16.msra.mxu0 %v9915_v45  ;;  %v9918_v45 = vld [vmem:[%s15323_s5 + $0x50] sm:$0xff]  }
 0x49e   : > { %v6048_v52 = vpop.f32.mrf.mxu0  ;;  %9665 = vmatprep.subr.bf16.mxu0 %v9916_v44 }
 0x4a0   : > { %7026 = vmatmul.mubr.bf16.gmra.mxu1 %v16192_v49  ;;  %v14336_v33 = vpop.f32.mrf.mxu0  ;;  %v16198_v49 = vpack.c.bf16 %v16196_v23, %v16197_v4  ;;  %v16202_v23 = vld [vmem:[#allocation63_spill] sm:$0xff]  ;;  %v16203_v4 = vld [vmem:[#allocation9_spill] sm:$0xff] }
 0x4a1   : > { %9389 = vmatprep.mubr.msk.bf16.mxu1 %vm5899_vm2, %v16195_v62  ;;  %9666 = vmatpush3.bf16.msra.mxu0 %v9916_v44  ;;  %v9919_v44 = vld [vmem:[%s15323_s5 + $0x48] sm:$0xff]   ;;  %v16201_v62 = vpack.c.bf16 %v16199_v30, %v16200_v57  ;;  %v16205_v30 = vld [vmem:[#allocation150_spill] sm:$0xff] }
 0x4a2   : > { %v6051_v17 = vpop.f32.mrf.mxu0  ;;  %9667 = vmatprep.subr.bf16.mxu0 %v9917_v3  ;;  %v16206_v57 = vld [vmem:[#allocation92_spill] sm:$0xff] }
 0x4a4   : > { %v14341_v24 = vpop.f32.mrf.mxu0  ;;  %7131 = vmatmul.mubr.bf16.gmra.mxu0 %v16028_v0 }
 0x4a5   : > { %9398 = vmatprep.mubr.msk.bf16.mxu0 %vm5899_vm2, %v16031_v16  ;;  %9668 = vmatpush3.bf16.msra.mxu0 %v9917_v3  ;;  %v9920_v3 = vld [vmem:[%s15323_s5 + $0x40] sm:$0xff]  }
 0x4a6   : > { %v6056_v52 = vpop.f32.mrf.mxu0  ;;  %9669 = vmatprep.subr.bf16.mxu0 %v9918_v45 }
 0x4a8   : > { %7034 = vmatmul.mubr.bf16.gmra.mxu1 %v16198_v49  ;;  %v14356_v0 = vpop.f32.mrf.mxu0  ;;  %v16204_v49 = vpack.c.bf16 %v16202_v23, %v16203_v4  ;;  %v16209_v23 = vld [vmem:[#allocation91_spill] sm:$0xff] }
 0x4a9   : > { %9390 = vmatprep.mubr.msk.bf16.mxu1 %vm5899_vm2, %v16201_v62  ;;  %9670 = vmatpush3.bf16.msra.mxu0 %v9918_v45  ;;  %v9921_v45 = vld [vmem:[%s15323_s5 + $0x38] sm:$0xff]   ;;  %v16207_v62 = vpack.c.bf16 %v16205_v30, %v16206_v57  ;;  %v16212_v30 = vld [vmem:[#allocation95_spill] sm:$0xff] }
 0x4aa   : > { %v6059_v16 = vpop.f32.mrf.mxu0  ;;  %9671 = vmatprep.subr.bf16.mxu0 %v9919_v44 }
 0x4ac   : > { %v14361_v17 = vpop.f32.mrf.mxu0  ;;  %7139 = vmatmul.mubr.bf16.gmra.mxu0 %v16035_v11 }
 0x4ad   : > { %9399 = vmatprep.mubr.msk.bf16.mxu0 %vm5899_vm2, %v16040_v14  ;;  %9672 = vmatpush3.bf16.msra.mxu0 %v9919_v44 }
 0x4ae   : > { %v6064_v52 = vpop.f32.mrf.mxu0  ;;  %9673 = vmatprep.subr.bf16.mxu0 %v9920_v3 }
 0x4af   : > { %v16208_v52 = vld [vmem:[#allocation66_spill] sm:$0xff] }
 0x4b0   : > { %7042 = vmatmul.mubr.bf16.gmra.mxu1 %v16204_v49  ;;  %v14376_v11 = vpop.f32.mrf.mxu0  ;;  %v16210_v4 = vpack.c.bf16 %v16208_v52, %v16209_v23  ;;  %v16211_v49 = vld [vmem:[#allocation154_spill] sm:$0xff]  ;;  %v16219_v23 = vld [vmem:[#allocation156_spill] sm:$0xff] }
 0x4b1   : > { %9391 = vmatprep.mubr.msk.bf16.mxu1 %vm5899_vm2, %v16207_v62  ;;  %9674 = vmatpush3.bf16.msra.mxu0 %v9920_v3  ;;  %v16213_v57 = vpack.c.bf16 %v16211_v49, %v16212_v30 }
 0x4b2   : > { %v6067_v14 = vpop.f32.mrf.mxu0  ;;  %9675 = vmatprep.subr.bf16.mxu0 %v9921_v45 }
 0x4b4   : > { %v14378_v44 = vpop.f32.mrf.mxu0  ;;  %7147 = vmatmul.mubr.bf16.gmra.mxu0 %v16045_v40 }
 0x4b5   : > { %9400 = vmatprep.mubr.msk.bf16.mxu0 %vm5899_vm2, %v16050_v47  ;;  %9676 = vmatpush3.bf16.msra.mxu0 %v9921_v45  ;;  %v16216_v45 = vld [vmem:[#allocation70_spill] sm:$0xff] }
 0x4b6   : > { %v6072_v16 = vpop.f32.mrf.mxu0 }
 0x4b7   : > { %v16217_v16 = vld [vmem:[#allocation94_spill] sm:$0xff] }
 0x4b8   : > { %7050 = vmatmul.mubr.bf16.gmra.mxu1 %v16210_v4  ;;  %v14390_v3 = vpop.f32.mrf.mxu0  ;;  %v16218_v52 = vpack.c.bf16 %v16216_v45, %v16217_v16  ;;  %v16220_v4 = vld [vmem:[#allocation157_spill] sm:$0xff] }
 0x4b9   : > { %9392 = vmatprep.mubr.msk.bf16.mxu1 %vm5899_vm2, %v16213_v57  ;;  %16214 = vst [vmem:[#allocation65_spill] sm:$0xff] %v14390_v3  ;;  %v16221_v49 = vpack.c.bf16 %v16219_v23, %v16220_v4  ;;  %v16224_v23 = vld [vmem:[#allocation12_spill] sm:$0xff]  ;;  %v16225_v4 = vld [vmem:[#allocation73_spill] sm:$0xff] }
 0x4ba   : > { %v6075_v62 = vpop.f32.mrf.mxu0 }
 0x4bc   : > { %v14392_v14 = vpop.f32.mrf.mxu0  ;;  %7155 = vmatmul.mubr.bf16.gmra.mxu0 %v16055_v50  ;;  %v9922_v50 = vld [vmem:[%s15323_s5 + $0x30] sm:$0xff]  }
 0x4bd   : > { %16215 = vst [vmem:[#allocation145_spill] sm:$0xff] %v14392_v14  ;;  %9401 = vmatprep.mubr.msk.bf16.mxu0 %vm5899_vm2, %v16060_v6  ;;  %9709 = vmatprep.subr.bf16.mxu1 %v9922_v50 }
 0x4be   : > { %v6080_v40 = vpop.f32.mrf.mxu0  ;;  %v14397_v47 = vpop.f32.mrf.mxu1 }
 0x4c0   : > { %7058 = vmatmul.mubr.bf16.gmra.mxu1 %v16218_v52  ;;  %v14406_v30 = vpop.f32.mrf.mxu0  ;;  %v6299_v57 = vpop.f32.mrf.mxu1 }
 0x4c1   : > { %9393 = vmatprep.mubr.msk.bf16.mxu1 %vm5899_vm2, %v16221_v49  ;;  %16222 = vst [vmem:[#allocation147_spill] sm:$0xff] %v14406_v30  ;;  %v16226_v49 = vpack.c.bf16 %v16224_v23, %v16225_v4  ;;  %v16227_v57 = vld [vmem:[#allocation164_spill] sm:$0xff]  ;;  %v16232_v4 = vld [vmem:[#allocation161_spill] sm:$0xff] }
 0x4c2   : > { %v6083_v6 = vpop.f32.mrf.mxu0  ;;  %v14411_v62 = vpop.f32.mrf.mxu1 }
 0x4c3   : > { %v16228_v6 = vld [vmem:[#allocation165_spill] sm:$0xff] }
 0x4c4   : > { %v14413_v40 = vpop.f32.mrf.mxu0  ;;  %7163 = vmatmul.mubr.bf16.gmra.mxu0 %v16065_v27  ;;  %v6302_v45 = vpop.f32.mrf.mxu1  ;;  %v16229_v30 = vpack.c.bf16 %v16227_v57, %v16228_v6  ;;  %v16235_v57 = vld [vmem:[#allocation173_spill] sm:$0xff] }
 0x4c5   : > { %16223 = vst [vmem:[#allocation67_spill] sm:$0xff] %v14413_v40  ;;  %9402 = vmatprep.mubr.msk.bf16.mxu0 %vm5899_vm2, %v16070_v46 }
 0x4c6   : > { %v6088_v16 = vpop.f32.mrf.mxu0  ;;  %v14418_v52 = vpop.f32.mrf.mxu1 }
 0x4c8   : > { %7066 = vmatmul.mubr.bf16.gmra.mxu1 %v16226_v49  ;;  %v14427_v14 = vpop.f32.mrf.mxu0  ;;  %v6307_v40 = vpop.f32.mrf.mxu1  ;;  %v16233_v49 = vld [vmem:[#allocation162_spill] sm:$0xff] }
 0x4c9   : > { %9394 = vmatprep.mubr.msk.bf16.mxu1 %vm5899_vm2, %v16229_v30  ;;  %16230 = vst [vmem:[#allocation148_spill] sm:$0xff] %v14427_v14  ;;  %v16234_v30 = vpack.c.bf16 %v16232_v4, %v16233_v49  ;;  %v16236_v40 = vld [vmem:[#allocation172_spill] sm:$0xff]  ;;  %v16238_v49 = vld [vmem:[#allocation170_spill] sm:$0xff] }
 0x4ca   : > { %v6091_v27 = vpop.f32.mrf.mxu0  ;;  %v14429_v45 = vpop.f32.mrf.mxu1  ;;  %v16237_v6 = vpack.c.bf16 %v16235_v57, %v16236_v40 }
 0x4cc   : > { %v14431_v3 = vpop.f32.mrf.mxu0  ;;  %7171 = vmatmul.mubr.bf16.gmra.mxu0 %v16075_v8  ;;  %v6310_v46 = vpop.f32.mrf.mxu1 }
 0x4cd   : > { %16231 = vst [vmem:[#allocation10_spill] sm:$0xff] %v14431_v3  ;;  %9403 = vmatprep.mubr.msk.bf16.mxu0 %vm5899_vm2, %v16078_v48 }
 0x4ce   : > { %v6096_v16 = vpop.f32.mrf.mxu0  ;;  %v14436_v23 = vpop.f32.mrf.mxu1 }
 0x4d0   : > { %7074 = vmatmul.mubr.bf16.gmra.mxu1 %v16234_v30  ;;  %v14445_v27 = vpop.f32.mrf.mxu0  ;;  %v6315_v3 = vpop.f32.mrf.mxu1  ;;  %v16239_v30 = vld [vmem:[#allocation3_spill] sm:$0xff] }
 0x4d1   : > { %9395 = vmatprep.mubr.msk.bf16.mxu1 %vm5899_vm2, %v16237_v6  ;;  %v16240_v57 = vpack.c.bf16 %v16238_v49, %v16239_v30 }
 0x4d2   : > { %v6099_v8 = vpop.f32.mrf.mxu0  ;;  %v14447_v46 = vpop.f32.mrf.mxu1 }
 0x4d4   : > { %v14449_v14 = vpop.f32.mrf.mxu0  ;;  %7179 = vmatmul.mubr.bf16.gmra.mxu0 %v16083_v54  ;;  %v6318_v48 = vpop.f32.mrf.mxu1 }
 0x4d5   : > { %9404 = vmatprep.mubr.msk.bf16.mxu0 %vm5899_vm2, %v16087_v55 }
 0x4d6   : > { %v6104_v16 = vpop.f32.mrf.mxu0  ;;  %v14454_v4 = vpop.f32.mrf.mxu1 }
 0x4d7   : > { %v9923_v16 = vld [vmem:[%s15323_s5 + $0x28] sm:$0xff]  }
 0x4d8   : > { %7082 = vmatmul.mubr.bf16.gmra.mxu1 %v16240_v57  ;;  %v14461_v3 = vpop.f32.mrf.mxu0  ;;  %v6323_v40 = vpop.f32.mrf.mxu1 }
 0x4d9   : > { %9412 = vmatprep.mubr.msk.bf16.mxu1 %vm5899_vm2, %v13614_v41  ;;  %v14475_v41 = vld [vmem:[%s15322_s4] ss:$0 sm:$0xff] }
 0x4da   : > { %v6107_v6 = vpop.f32.mrf.mxu0  ;;  %v14463_v8 = vpop.f32.mrf.mxu1  ;;  %v9924_v40 = vld [vmem:[%s15323_s5 + $0x20] sm:$0xff]  }
 0x4dc   : > { %v6619_v54 = vpop.f32.mrf.mxu0  ;;  %7187 = vmatmul.mubr.bf16.gmra.mxu0 %v16100_v15  ;;  %v6326_v55 = vpop.f32.mrf.mxu1 }
 0x4dd   : > { %v6746_v48 = vadd.f32 %v6619_v54, %v14166_v9  ;;  %9405 = vmatprep.mubr.msk.bf16.mxu0 %vm5899_vm2, %v16102_v31 }
 0x4de   : > { %v6621_v49 = vpop.f32.mrf.mxu0  ;;  %v14477_v30 = vpop.f32.mrf.mxu1 }
 0x4df   : > { %v6785_v31 = vadd.f32 %v14475_v41, %v6746_v48 }
 0x4e0   : > { %7304 = vmatmul.mubr.bf16.vlgmr.msra.gmra.mxu1 %v13618_v18  ;;  %v6622_v15 = vpop.f32.mrf.mxu0  ;;  %v6331_v9 = vpop.f32.mrf.mxu1 }
 0x4e1   : > { %9413 = vmatprep.mubr.msk.bf16.mxu1 %vm5899_vm2, %v13640_v61  ;;  %9710 = vmatpush3.bf16.msra.mxu1 %v9922_v50  ;;  %v6747_v57 = vadd.f32 %v6622_v15, %v14194_v7  ;;  %v6817_v61 = vmax.f32 %v6785_v31, 0.0  ;;  %v9925_v7 = vld [vmem:[%s15323_s5 + $0x18] sm:$0xff]   ;;  %v9926_v31 = vld [vmem:[%s15323_s5 + $0x10] sm:$0xff]  }
 0x4e2   : > { %9711 = vmatprep.subr.bf16.mxu1 %v9923_v16  ;;  %v6624_v6 = vpop.f32.mrf.mxu0  ;;  %v14488_v55 = vpop.f32.mrf.mxu1 }
 0x4e3   : > { %v6786_v54 = vadd.f32 %v14475_v41, %v6747_v57 }
 0x4e4   : > { %v6627_v18 = vpop.f32.mrf.mxu0  ;;  %7195 = vmatmul.mubr.bf16.gmra.mxu0 %v16119_v60  ;;  %v6334_v48 = vpop.f32.mrf.mxu1 }
 0x4e5   : > { %9712 = vmatpush3.bf16.msra.mxu1 %v9923_v16  ;;  %v6818_v50 = vmax.f32 %v6786_v54, 0.0  ;;  %v6748_v49 = vadd.f32 %v6627_v18, %v14206_v28  ;;  %9406 = vmatprep.mubr.msk.bf16.mxu0 %vm5899_vm2, %v16120_v37 }
 0x4e6   : > { %9713 = vmatprep.subr.bf16.mxu1 %v9924_v40  ;;  %v6629_v15 = vpop.f32.mrf.mxu0  ;;  %v14499_v57 = vpop.f32.mrf.mxu1 }
 0x4e7   : > { %v14497_v9 = vpack.c.bf16 %v6818_v50, %v6817_v61  ;;  %v6787_v28 = vadd.f32 %v14475_v41, %v6748_v49 }
 0x4e8   : > { %7312 = vmatmul.mubr.bf16.gmra.mxu1 %v13645_v2  ;;  %v6630_v60 = vpop.f32.mrf.mxu0  ;;  %v6339_v37 = vpop.f32.mrf.mxu1 }
 0x4e9   : > { %9414 = vmatprep.mubr.msk.bf16.mxu1 %vm5899_vm2, %v13668_v34  ;;  %9714 = vmatpush3.bf16.msra.mxu1 %v9924_v40  ;;  %v6749_v16 = vadd.f32 %v6630_v60, %v14221_v35  ;;  %v6819_v34 = vmax.f32 %v6787_v28, 0.0  ;;  %v9927_v35 = vld [vmem:[%s15323_s5 + $0x8] sm:$0xff]   ;;  %v9928_v60 = vld [vmem:[%s15323_s5] sm:$0xff]  }
 0x4ea   : > { %9715 = vmatprep.subr.bf16.mxu1 %v9925_v7  ;;  %v6632_v6 = vpop.f32.mrf.mxu0  ;;  %v14510_v18 = vpop.f32.mrf.mxu1 }
 0x4eb   : > { %v6788_v54 = vadd.f32 %v14475_v41, %v6749_v16 }
 0x4ec   : > { %v6635_v2 = vpop.f32.mrf.mxu0  ;;  %7203 = vmatmul.mubr.bf16.gmra.mxu0 %v16135_v26  ;;  %v6342_v61 = vpop.f32.mrf.mxu1 }
 0x4ed   : > { %9716 = vmatpush3.bf16.msra.mxu1 %v9925_v7  ;;  %v6820_v40 = vmax.f32 %v6788_v54, 0.0  ;;  %v6750_v50 = vadd.f32 %v6635_v2, %v14230_v38  ;;  %9407 = vmatprep.mubr.msk.bf16.mxu0 %vm5899_vm2, %v16136_v43 }
 0x4ee   : > { %9717 = vmatprep.subr.bf16.mxu1 %v9926_v31  ;;  %v6637_v48 = vpop.f32.mrf.mxu0  ;;  %v14521_v15 = vpop.f32.mrf.mxu1 }
 0x4ef   : > { %v14519_v49 = vpack.c.bf16 %v6820_v40, %v6819_v34  ;;  %v6789_v38 = vadd.f32 %v14475_v41, %v6750_v50 }
 0x4f0   : > { %7320 = vmatmul.mubr.bf16.gmra.mxu1 %v13673_v13  ;;  %v6638_v26 = vpop.f32.mrf.mxu0  ;;  %v6347_v43 = vpop.f32.mrf.mxu1 }
 0x4f1   : > { %9415 = vmatprep.mubr.msk.bf16.mxu1 %vm5899_vm2, %v13698_v12  ;;  %9718 = vmatpush3.bf16.msra.mxu1 %v9926_v31  ;;  %v6751_v7 = vadd.f32 %v6638_v26, %v14250_v20  ;;  %v6821_v12 = vmax.f32 %v6789_v38, 0.0 }
 0x4f2   : > { %9719 = vmatprep.subr.bf16.mxu1 %v9927_v35  ;;  %v6640_v28 = vpop.f32.mrf.mxu0  ;;  %v14532_v16 = vpop.f32.mrf.mxu1 }
 0x4f3   : > { %v6790_v37 = vadd.f32 %v14475_v41, %v6751_v7 }
 0x4f4   : > { %v6643_v13 = vpop.f32.mrf.mxu0  ;;  %7211 = vmatmul.mubr.bf16.gmra.mxu0 %v16149_v1  ;;  %v6350_v6 = vpop.f32.mrf.mxu1 }
 0x4f5   : > { %9720 = vmatpush3.bf16.msra.mxu1 %v9927_v35  ;;  %v6822_v31 = vmax.f32 %v6790_v37, 0.0  ;;  %v6752_v54 = vadd.f32 %v6643_v13, %v14259_v10  ;;  %9408 = vmatprep.mubr.msk.bf16.mxu0 %vm5899_vm2, %v16150_v53  ;;  %v6298_v53 = vadd.f32 %v14397_v47, %v14224_v58 }
 0x4f6   : > { %9721 = vmatprep.subr.bf16.mxu1 %v9928_v60  ;;  %v6645_v20 = vpop.f32.mrf.mxu0  ;;  %v14540_v34 = vpop.f32.mrf.mxu1 }
 0x4f7   : > { %v14538_v2 = vpack.c.bf16 %v6822_v31, %v6821_v12  ;;  %v6791_v40 = vadd.f32 %v14475_v41, %v6752_v54  ;;  %v16241_v31 = vld [vmem:[#allocation38_spill] sm:$0xff] }
 0x4f8   : > { %7328 = vmatmul.mubr.bf16.gmra.mxu1 %v13703_v21  ;;  %v6646_v1 = vpop.f32.mrf.mxu0  ;;  %v6355_v61 = vpop.f32.mrf.mxu1 }
 0x4f9   : > { %9416 = vmatprep.mubr.msk.bf16.mxu1 %vm5899_vm2, %v13730_v36  ;;  %9722 = vmatpush3.bf16.msra.mxu1 %v9928_v60  ;;  %v6753_v10 = vadd.f32 %v6646_v1, %v14276_v32  ;;  %v6823_v21 = vmax.f32 %v6791_v40, 0.0  ;;  %v6301_v32 = vadd.f32 %v14411_v62, %v14245_v22  ;;  %v6309_v1 = vadd.f32 %v14429_v45, %v14271_v5  ;;  %v16243_v61 = vld [vmem:[#allocation43_spill] sm:$0xff] }
 0x4fa   : > { %v6648_v50 = vpop.f32.mrf.mxu0  ;;  %v14550_v48 = vpop.f32.mrf.mxu1 }
 0x4fb   : > { %v6792_v35 = vadd.f32 %v14475_v41, %v6753_v10 }
 0x4fc   : > { %v6651_v26 = vpop.f32.mrf.mxu0  ;;  %7219 = vmatmul.mubr.bf16.gmra.mxu0 %v16157_v29  ;;  %v6358_v38 = vpop.f32.mrf.mxu1 }
 0x4fd   : > { %v6824_v36 = vmax.f32 %v6792_v35, 0.0  ;;  %v6754_v43 = vadd.f32 %v6651_v26, %v6298_v53  ;;  %9409 = vmatprep.mubr.msk.bf16.mxu0 %vm5899_vm2, %v16158_v56  ;;  %v6306_v56 = vadd.f32 %v14418_v52, %v14253_v63  ;;  %v16242_v52 = vld [vmem:[#allocation37_spill] sm:$0xff] }
 0x4fe   : > { %v6653_v7 = vpop.f32.mrf.mxu0  ;;  %v14559_v58 = vpop.f32.mrf.mxu1  ;;  %v16245_v38 = vld [vmem:[#allocation41_spill] sm:$0xff] }
 0x4ff   : > { %v14557_v60 = vpack.c.bf16 %v6824_v36, %v6823_v21  ;;  %v6793_v47 = vadd.f32 %v14475_v41, %v6754_v43 }
 0x500   : > { %7336 = vmatmul.mubr.bf16.gmra.mxu1 %v13735_v42  ;;  %v6654_v29 = vpop.f32.mrf.mxu0  ;;  %v6363_v28 = vpop.f32.mrf.mxu1 }
 0x501   : > { %9417 = vmatprep.mubr.msk.bf16.mxu1 %vm5899_vm2, %v13771_v25  ;;  %v6755_v37 = vadd.f32 %v6654_v29, %v6301_v32  ;;  %v6825_v42 = vmax.f32 %v6793_v47, 0.0  ;;  %v16246_v47 = vld [vmem:[#allocation46_spill] sm:$0xff] }
 0x502   : > { %v6656_v13 = vpop.f32.mrf.mxu0  ;;  %v14568_v62 = vpop.f32.mrf.mxu1 }
 0x503   : > { %v6794_v22 = vadd.f32 %v14475_v41, %v6755_v37  ;;  %v6317_v37 = vadd.f32 %v14447_v46, %v14295_v39 }
 0x504   : > { %v6659_v12 = vpop.f32.mrf.mxu0  ;;  %7227 = vmatmul.mubr.bf16.gmra.mxu0 %v16241_v31  ;;  %v6366_v54 = vpop.f32.mrf.mxu1 }
 0x505   : > { %v6826_v6 = vmax.f32 %v6794_v22, 0.0  ;;  %v6756_v25 = vadd.f32 %v6659_v12, %v6306_v56  ;;  %9410 = vmatprep.mubr.msk.bf16.mxu0 %vm5899_vm2, %v16166_v59  ;;  %v16244_v59 = vld [vmem:[#allocation144_spill] sm:$0xff]  ;;  %v16247_v56 = vld [vmem:[#allocation42_spill] sm:$0xff] }
 0x506   : > { %v6661_v20 = vpop.f32.mrf.mxu0  ;;  %v14577_v63 = vpop.f32.mrf.mxu1  ;;  %v6314_v21 = vadd.f32 %v14436_v23, %v16244_v59  ;;  %v16248_v22 = vld [vmem:[#allocation48_spill] sm:$0xff] }
 0x507   : > { %v14575_v40 = vpack.c.bf16 %v6826_v6, %v6825_v42  ;;  %v6795_v50 = vadd.f32 %v14475_v41, %v6756_v25  ;;  %v16249_v25 = vld [vmem:[#allocation8_spill] sm:$0xff] }
 0x508   : > { %7344 = vmatmul.mubr.bf16.gmra.mxu1 %v16242_v52  ;;  %v6662_v10 = vpop.f32.mrf.mxu0  ;;  %v6371_v53 = vpop.f32.mrf.mxu1  ;;  %v6322_v20 = vadd.f32 %v14454_v4, %v16249_v25  ;;  %v16250_v52 = vld [vmem:[#allocation44_spill] sm:$0xff] }
 0x509   : > { %9418 = vmatprep.mubr.msk.bf16.mxu1 %vm5899_vm2, %v16243_v61  ;;  %v6757_v35 = vadd.f32 %v6662_v10, %v6309_v1  ;;  %v6827_v43 = vmax.f32 %v6795_v50, 0.0 }
 0x50a   : > { %v6664_v26 = vpop.f32.mrf.mxu0  ;;  %v14586_v45 = vpop.f32.mrf.mxu1 }
 0x50b   : > { %v6796_v5 = vadd.f32 %v14475_v41, %v6757_v35  ;;  %v6325_v26 = vadd.f32 %v14463_v8, %v14316_v51  ;;  %v6330_v51 = vadd.f32 %v14477_v30, %v14321_v19  ;;  %v6333_v30 = vadd.f32 %v14488_v55, %v14336_v33 }
 0x50c   : > { %v6667_v36 = vpop.f32.mrf.mxu0  ;;  %7235 = vmatmul.mubr.bf16.gmra.mxu0 %v16245_v38  ;;  %v6374_v32 = vpop.f32.mrf.mxu1  ;;  %v9929_v38 = vld [vmem:[%s15323_s5 + $0xa0] sm:$0xff]   ;;  %v6338_v55 = vadd.f32 %v14499_v57, %v14341_v24  ;;  %v6341_v57 = vadd.f32 %v14510_v18, %v14356_v0 }
 0x50d   : > { %v6828_v7 = vmax.f32 %v6796_v5, 0.0  ;;  %v6758_v29 = vadd.f32 %v6667_v36, %v6314_v21  ;;  %9411 = vmatprep.mubr.msk.bf16.mxu0 %vm5899_vm2, %v16246_v47  ;;  %v16251_v21 = vld [vmem:[#allocation35_spill] sm:$0xff]  ;;  %v16252_v5 = vld [vmem:[#allocation53_spill] sm:$0xff]  ;;  %9755 = vmatprep.subr.bf16.mxu0 %v9929_v38 }
 0x50e   : > { %v6669_v28 = vpop.f32.mrf.mxu0  ;;  %v14595_v23 = vpop.f32.mrf.mxu1 }
 0x50f   : > { %v14593_v13 = vpack.c.bf16 %v6828_v7, %v6827_v43  ;;  %v6797_v31 = vadd.f32 %v14475_v41, %v6758_v29  ;;  %v9930_v28 = vld [vmem:[%s15323_s5 + $0x98] sm:$0xff]  }
 0x510   : > { %7352 = vmatmul.mubr.bf16.gmra.mxu1 %v16247_v56  ;;  %v6670_v12 = vpop.f32.mrf.mxu0  ;;  %v6379_v42 = vpop.f32.mrf.mxu1 }
 0x511   : > { %9419 = vmatprep.mubr.msk.bf16.mxu1 %vm5899_vm2, %v16248_v22  ;;  %v6759_v6 = vadd.f32 %v6670_v12, %v6317_v37  ;;  %v6829_v61 = vmax.f32 %v6797_v31, 0.0  ;;  %v16253_v42 = vld [vmem:[#allocation40_spill] sm:$0xff] }
 0x512   : > { %v6672_v54 = vpop.f32.mrf.mxu0  ;;  %v14604_v46 = vpop.f32.mrf.mxu1 }
 0x513   : > { %v6798_v39 = vadd.f32 %v14475_v41, %v6759_v6  ;;  %v16254_v6 = vld [vmem:[#allocation19_spill] sm:$0xff] }
 0x514   : > { %v6675_v1 = vpop.f32.mrf.mxu0  ;;  %7243 = vmatmul.mubr.bf16.gmra.mxu0 %v16250_v52  ;;  %v6382_v50 = vpop.f32.mrf.mxu1 }
 0x515   : > { %v6830_v10 = vmax.f32 %v6798_v39, 0.0  ;;  %v6760_v53 = vadd.f32 %v6675_v1, %v6322_v20  ;;  %9677 = vmatprep.mubr.msk.bf16.mxu0 %vm7659_vm3, %v14497_v9 }
 0x516   : > { %v6677_v35 = vpop.f32.mrf.mxu0  ;;  %v14613_v4 = vpop.f32.mrf.mxu1 }
 0x517   : > { %v14611_v59 = vpack.c.bf16 %v6830_v10, %v6829_v61  ;;  %v6799_v9 = vadd.f32 %v14475_v41, %v6760_v53  ;;  %v9932_v10 = vld [vmem:[%s15323_s5 + $0x88] sm:$0xff]  }
 0x518   : > { %7360 = vmatmul.mubr.bf16.gmra.mxu1 %v16251_v21  ;;  %v6678_v36 = vpop.f32.mrf.mxu0  ;;  %v6387_v43 = vpop.f32.mrf.mxu1 }
 0x519   : > { %9420 = vmatprep.mubr.msk.bf16.mxu1 %vm5899_vm2, %v16252_v5  ;;  %v6761_v7 = vadd.f32 %v6678_v36, %v6325_v26  ;;  %v6831_v37 = vmax.f32 %v6799_v9, 0.0  ;;  %v16256_v36 = vld [vmem:[#allocation21_spill] sm:$0xff]  ;;  %v9933_v9 = vld [vmem:[%s15323_s5 + $0x80] sm:$0xff]  }
 0x51a   : > { %v6680_v32 = vpop.f32.mrf.mxu0  ;;  %v14625_v29 = vpop.f32.mrf.mxu1 }
 0x51b   : > { %v6800_v8 = vadd.f32 %v14475_v41, %v6761_v7 }
 0x51c   : > { %v6683_v47 = vpop.f32.mrf.mxu0  ;;  %9678 = vmatmul.mubr.msk.bf16.vlgmr.msra.gmra.mxu0 %vm7659_vm3, %v14519_v49  ;;  %v6390_v22 = vpop.f32.mrf.mxu1 }
 0x51d   : > { %v6832_v56 = vmax.f32 %v6800_v8, 0.0  ;;  %v6762_v12 = vadd.f32 %v6683_v47, %v6330_v51  ;;  %9681 = vmatprep.mubr.msk.bf16.mxu0 %vm7659_vm3, %v14538_v2  ;;  %9756 = vmatpush3.bf16.msra.mxu0 %v9929_v38  ;;  %v9931_v2 = vld [vmem:[%s15323_s5 + $0x90] sm:$0xff]   ;;  %v9934_v8 = vld [vmem:[%s15323_s5 + $0x78] sm:$0xff]   ;;  %v6346_v22 = vadd.f32 %v14521_v15, %v14361_v17 }
 0x51e   : > { %v6685_v19 = vpop.f32.mrf.mxu0  ;;  %9757 = vmatprep.subr.bf16.mxu0 %v9930_v28  ;;  %v14638_v49 = vpop.f32.mrf.mxu1 }
 0x51f   : > { %v14636_v31 = vpack.c.bf16 %v6832_v56, %v6831_v37  ;;  %v6801_v25 = vadd.f32 %v14475_v41, %v6762_v12  ;;  %v6349_v12 = vadd.f32 %v14532_v16, %v14376_v11 }
 0x520   : > { %7368 = vmatmul.mubr.bf16.gmra.mxu1 %v16253_v42  ;;  %v6686_v54 = vpop.f32.mrf.mxu0  ;;  %v6965_v39 = vpop.f32.mrf.mxu1  ;;  %v16258_v42 = vld [vmem:[#allocation49_spill] sm:$0xff] }
 0x521   : > { %9421 = vmatprep.mubr.msk.bf16.mxu1 %vm5899_vm2, %v16254_v6  ;;  %v6763_v20 = vadd.f32 %v6686_v54, %v6333_v30  ;;  %9758 = vmatpush3.bf16.msra.mxu0 %v9930_v28  ;;  %v6833_v50 = vmax.f32 %v6801_v25, 0.0  ;;  %v16257_v30 = vld [vmem:[#allocation45_spill] sm:$0xff] }
 0x522   : > { %v6688_v33 = vpop.f32.mrf.mxu0  ;;  %9759 = vmatprep.subr.bf16.mxu0 %v9931_v2  ;;  %v14650_v52 = vpop.f32.mrf.mxu1 }
 0x523   : > { %v6802_v1 = vadd.f32 %v14475_v41, %v6763_v20  ;;  %v6354_v33 = vadd.f32 %v14540_v34, %v14378_v44  ;;  %v16264_v34 = vld [vmem:[#allocation145_spill] sm:$0xff] }
 0x524   : > { %v6691_v61 = vpop.f32.mrf.mxu0  ;;  %9682 = vmatmul.mubr.msk.bf16.gmra.mxu0 %vm7659_vm3, %v14557_v60  ;;  %v6968_v26 = vpop.f32.mrf.mxu1  ;;  %v16255_v60 = vld [vmem:[#allocation18_spill] sm:$0xff] }
 0x525   : > { %v6834_v53 = vmax.f32 %v6802_v1, 0.0  ;;  %v6764_v35 = vadd.f32 %v6691_v61, %v6338_v55  ;;  %9685 = vmatprep.mubr.msk.bf16.mxu0 %vm7659_vm3, %v14575_v40  ;;  %9760 = vmatpush3.bf16.msra.mxu0 %v9931_v2  ;;  %v16259_v1 = vld [vmem:[#allocation65_spill] sm:$0xff]  ;;  %v16262_v26 = vld [vmem:[#allocation52_spill] sm:$0xff] }
 0x526   : > { %v6693_v24 = vpop.f32.mrf.mxu0  ;;  %9761 = vmatprep.subr.bf16.mxu0 %v9932_v10  ;;  %v6357_v61 = vadd.f32 %v14550_v48, %v16259_v1 }
 0x527   : > { %v7594_v21 = vpack.c.bf16 %v6834_v53, %v6833_v50  ;;  %v6803_v40 = vadd.f32 %v14475_v41, %v6764_v35  ;;  %v16260_v53 = vld [vmem:[#allocation82_spill] sm:$0xff] }
 0x528   : > { %v14661_v5 = vpop.f32.mrf.mxu1  ;;  %7376 = vmatmul.mubr.bf16.gmra.mxu1 %v16255_v60  ;;  %v6694_v38 = vpop.f32.mrf.mxu0 }
 0x529   : > { %9422 = vmatprep.mubr.msk.bf16.mxu1 %vm5899_vm2, %v16256_v36  ;;  %v6765_v43 = vadd.f32 %v6694_v38, %v6341_v57  ;;  %9762 = vmatpush3.bf16.msra.mxu0 %v9932_v10  ;;  %v6835_v47 = vmax.f32 %v6803_v40, 0.0  ;;  %v6362_v38 = vadd.f32 %v14559_v58, %v16264_v34 }
 0x52a   : > { %v6973_v7 = vpop.f32.mrf.mxu1  ;;  %v6696_v32 = vpop.f32.mrf.mxu0  ;;  %9763 = vmatprep.subr.bf16.mxu0 %v9933_v9 }
 0x52b   : > { %v6804_v0 = vadd.f32 %v14475_v41, %v6765_v43 }
 0x52c   : > { %v14671_v18 = vpop.f32.mrf.mxu1  ;;  %v6699_v51 = vpop.f32.mrf.mxu0  ;;  %9686 = vmatmul.mubr.msk.bf16.gmra.mxu0 %vm7659_vm3, %v14593_v13 }
 0x52d   : > { %v6836_v28 = vmax.f32 %v6804_v0, 0.0  ;;  %9689 = vmatprep.mubr.msk.bf16.mxu0 %vm7659_vm3, %v14611_v59  ;;  %9764 = vmatpush3.bf16.msra.mxu0 %v9933_v9  ;;  %v9935_v59 = vld [vmem:[%s15323_s5 + $0x70] sm:$0xff]   ;;  %v6766_v54 = vadd.f32 %v6699_v51, %v6346_v22 }
 0x52e   : > { %v6976_v37 = vpop.f32.mrf.mxu1  ;;  %v6701_v56 = vpop.f32.mrf.mxu0  ;;  %9765 = vmatprep.subr.bf16.mxu0 %v9934_v8 }
 0x52f   : > { %v7595_v13 = vpack.c.bf16 %v6836_v28, %v6835_v47  ;;  %v6805_v20 = vadd.f32 %v14475_v41, %v6766_v54  ;;  %v16265_v47 = vld [vmem:[#allocation147_spill] sm:$0xff]  ;;  %v16266_v37 = vld [vmem:[#allocation81_spill] sm:$0xff] }
 0x530   : > { %v14684_v19 = vpop.f32.mrf.mxu1  ;;  %7384 = vmatmul.mubr.bf16.gmra.mxu1 %v16257_v30  ;;  %v6702_v6 = vpop.f32.mrf.mxu0  ;;  %v6365_v28 = vadd.f32 %v14568_v62, %v16265_v47  ;;  %v16267_v56 = vld [vmem:[#allocation131_spill] sm:$0xff]  ;;  %v16269_v30 = vld [vmem:[#allocation136_spill] sm:$0xff] }
 0x531   : > { %9423 = vmatprep.mubr.msk.bf16.mxu1 %vm5899_vm2, %v16258_v42  ;;  %v6767_v2 = vadd.f32 %v6702_v6, %v6349_v12  ;;  %9766 = vmatpush3.bf16.msra.mxu0 %v9934_v8  ;;  %v16268_v22 = vpack.c.bf16 %v16266_v37, %v16267_v56  ;;  %v16270_v42 = vld [vmem:[#allocation86_spill] sm:$0xff]  ;;  %v16272_v62 = vld [vmem:[#allocation67_spill] sm:$0xff]  ;;  %v6381_v56 = vadd.f32 %v14604_v46, %v14445_v27 }
 0x532   : > { %v6981_v25 = vpop.f32.mrf.mxu1  ;;  %v6704_v17 = vpop.f32.mrf.mxu0  ;;  %9767 = vmatprep.subr.bf16.mxu0 %v9935_v59  ;;  %v16271_v6 = vpack.c.bf16 %v16269_v30, %v16270_v42  ;;  %v16281_v30 = vld [vmem:[#allocation85_spill] sm:$0xff]  ;;  %v16282_v42 = vld [vmem:[#allocation138_spill] sm:$0xff]  ;;  %v6386_v46 = vadd.f32 %v14613_v4, %v14449_v14  ;;  %v16290_v4 = vmov 0.0|0.0  }
 0x533   : > { %v6806_v11 = vadd.f32 %v14475_v41, %v6767_v2 }
 0x534   : > { %v14693_v15 = vpop.f32.mrf.mxu1  ;;  %v6707_v16 = vpop.f32.mrf.mxu0  ;;  %9690 = vmatmul.mubr.msk.bf16.gmra.mxu0 %vm7659_vm3, %v14636_v31  ;;  %v16261_v31 = vld [vmem:[#allocation133_spill] sm:$0xff] }
 0x535   : > { %9693 = vmatprep.mubr.msk.bf16.mxu0 %vm7659_vm3, %v7594_v21  ;;  %9768 = vmatpush3.bf16.msra.mxu0 %v9935_v59  ;;  %v6838_v10 = vmax.f32 %v6806_v11, 0.0  ;;  %v6768_v35 = vadd.f32 %v6707_v16, %v6354_v33  ;;  %v16263_v24 = vpack.c.bf16 %v16261_v31, %v16262_v26  ;;  %v6837_v21 = vmax.f32 %v6805_v20, 0.0 }
 0x536   : > { %v6984_v39 = vpop.f32.mrf.mxu1  ;;  %v6709_v55 = vpop.f32.mrf.mxu0  ;;  %v6370_v11 = vadd.f32 %v14577_v63, %v16272_v62  ;;  %v16275_v63 = vld [vmem:[#allocation84_spill] sm:$0xff] }
 0x537   : > { %v7596_v48 = vpack.c.bf16 %v6838_v10, %v6837_v21  ;;  %v6807_v43 = vadd.f32 %v14475_v41, %v6768_v35  ;;  %v16277_v21 = vld [vmem:[#allocation80_spill] sm:$0xff] }
 0x538   : > { %v14703_v50 = vpop.f32.mrf.mxu1  ;;  %7392 = vmatmul.mubr.bf16.gmra.mxu1 %v16260_v53  ;;  %v6710_v57 = vpop.f32.mrf.mxu0  ;;  %v16273_v53 = vld [vmem:[#allocation148_spill] sm:$0xff] }
 0x539   : > { %9424 = vmatprep.mubr.msk.bf16.mxu1 %vm5899_vm2, %v16263_v24  ;;  %v6769_v60 = vadd.f32 %v6710_v57, %v6357_v61  ;;  %v6839_v12 = vmax.f32 %v6807_v43, 0.0  ;;  %v6373_v35 = vadd.f32 %v14586_v45, %v16273_v53  ;;  %v16274_v24 = vld [vmem:[#allocation83_spill] sm:$0xff] }
 0x53a   : > { %v6989_v36 = vpop.f32.mrf.mxu1  ;;  %v6712_v44 = vpop.f32.mrf.mxu0  ;;  %v16276_v57 = vpack.c.bf16 %v16274_v24, %v16275_v63  ;;  %v16288_v24 = vld [vmem:[#allocation88_spill] sm:$0xff] }
 0x53b   : > { %v6808_v9 = vadd.f32 %v14475_v41, %v6769_v60  ;;  %v16278_v60 = vld [vmem:[#allocation139_spill] sm:$0xff] }
 0x53c   : > { %v14713_v40 = vpop.f32.mrf.mxu1  ;;  %v6715_v7 = vpop.f32.mrf.mxu0  ;;  %9694 = vmatmul.mubr.msk.bf16.gmra.mxu0 %vm7659_vm3, %v7595_v13  ;;  %v16279_v36 = vpack.c.bf16 %v16277_v21, %v16278_v60 }
 0x53d   : > { %v6770_v32 = vadd.f32 %v6715_v7, %v6362_v38  ;;  %9697 = vmatprep.mubr.msk.bf16.mxu0 %vm7659_vm3, %v7596_v48  ;;  %v6840_v51 = vmax.f32 %v6808_v9, 0.0  ;;  %v16280_v9 = vld [vmem:[#allocation10_spill] sm:$0xff] }
 0x53e   : > { %v6992_v0 = vpop.f32.mrf.mxu1  ;;  %v6717_v8 = vpop.f32.mrf.mxu0  ;;  %v6378_v43 = vadd.f32 %v14595_v23, %v16280_v9  ;;  %v16284_v23 = vld [vmem:[#allocation87_spill] sm:$0xff] }
 0x53f   : > { %v6809_v59 = vadd.f32 %v14475_v41, %v6770_v32  ;;  %v7597_v25 = vpack.c.bf16 %v6840_v51, %v6839_v12 }
 0x540   : > { %v14720_v58 = vpop.f32.mrf.mxu1  ;;  %7400 = vmatmul.mubr.bf16.gmra.mxu1 %v16268_v22  ;;  %v6718_v13 = vpop.f32.mrf.mxu0 }
 0x541   : > { %9425 = vmatprep.mubr.msk.bf16.mxu1 %vm5899_vm2, %v16271_v6  ;;  %v6771_v54 = vadd.f32 %v6718_v13, %v6365_v28  ;;  %v6841_v33 = vmax.f32 %v6809_v59, 0.0  ;;  %v16283_v6 = vpack.c.bf16 %v16281_v30, %v16282_v42  ;;  %v16285_v13 = vld [vmem:[#allocation143_spill] sm:$0xff] }
 0x542   : > { %v6997_v2 = vpop.f32.mrf.mxu1  ;;  %v6720_v17 = vpop.f32.mrf.mxu0  ;;  %v16286_v59 = vpack.c.bf16 %v16284_v23, %v16285_v13 }
 0x543   : > { %v6810_v16 = vadd.f32 %v14475_v41, %v6771_v54 }
 0x544   : > { %v14733_v20 = vpop.f32.mrf.mxu1  ;;  %v6723_v39 = vpop.f32.mrf.mxu0  ;;  %9698 = vmatmul.mubr.msk.bf16.gmra.mxu0 %vm7659_vm3, %v7597_v25 }
 0x545   : > { %v6842_v55 = vmax.f32 %v6810_v16, 0.0  ;;  %v6772_v1 = vadd.f32 %v6723_v39, %v6370_v11 }
 0x546   : > { %v7000_v61 = vpop.f32.mrf.mxu1  ;;  %v6725_v10 = vpop.f32.mrf.mxu0 }
 0x547   : > { %v7598_v31 = vpack.c.bf16 %v6842_v55, %v6841_v33  ;;  %v6811_v34 = vadd.f32 %v14475_v41, %v6772_v1  ;;  %v6389_v10 = vadd.f32 %v14625_v29, %v14461_v3 }
 0x548   : > { %v14738_v26 = vpop.f32.mrf.mxu1  ;;  %7408 = vmatmul.mubr.bf16.gmra.mxu1 %v16276_v57  ;;  %v6726_v44 = vpop.f32.mrf.mxu0 }
 0x549   : > { %9426 = vmatprep.mubr.msk.bf16.mxu1 %vm5899_vm2, %v16279_v36  ;;  %v6773_v38 = vadd.f32 %v6726_v44, %v6373_v35  ;;  %9701 = vmatprep.mubr.msk.bf16.mxu0 %vm7659_vm3, %v7598_v31  ;;  %v6843_v51 = vmax.f32 %v6811_v34, 0.0  ;;  %v16287_v31 = vld [vmem:[#allocation141_spill] sm:$0xff] }
 0x54a   : > { %v7005_v48 = vpop.f32.mrf.mxu1  ;;  %v6728_v45 = vpop.f32.mrf.mxu0  ;;  %v16289_v63 = vpack.c.bf16 %v16287_v31, %v16288_v24 }
 0x54b   : > { %v6812_v7 = vadd.f32 %v14475_v41, %v6773_v38 }
 0x54c   : > { %v14752_v32 = vpop.f32.mrf.mxu1  ;;  %v6731_v0 = vpop.f32.mrf.mxu0 }
 0x54d   : > { %v6844_v8 = vmax.f32 %v6812_v7, 0.0  ;;  %v6774_v47 = vadd.f32 %v6731_v0, %v6378_v43 }
 0x54e   : > { %v7008_v28 = vpop.f32.mrf.mxu1  ;;  %v6733_v37 = vpop.f32.mrf.mxu0 }
 0x54f   : > { %v7599_v22 = vpack.c.bf16 %v6844_v8, %v6843_v51  ;;  %v6813_v2 = vadd.f32 %v14475_v41, %v6774_v47 }
 0x550   : > { %v14756_v12 = vpop.f32.mrf.mxu1  ;;  %7416 = vmatmul.mubr.bf16.gmra.mxu1 %v16283_v6  ;;  %v6734_v54 = vpop.f32.mrf.mxu0 }
 0x551   : > { %9427 = vmatprep.mubr.msk.bf16.mxu1 %vm5899_vm2, %v16286_v59  ;;  %v6775_v25 = vadd.f32 %v6734_v54, %v6381_v56  ;;  %9702 = vmatmul.mubr.msk.bf16.gmra.mxu0 %vm7659_vm3, %v7599_v22  ;;  %v6845_v39 = vmax.f32 %v6813_v2, 0.0 }
 0x552   : > { %v7013_v17 = vpop.f32.mrf.mxu1  ;;  %v6736_v27 = vpop.f32.mrf.mxu0 }
 0x553   : > { %v6814_v62 = vadd.f32 %v14475_v41, %v6775_v25 }
 0x554   : > { %v14770_v11 = vpop.f32.mrf.mxu1  ;;  %v6739_v16 = vpop.f32.mrf.mxu0 }
 0x555   : > { %v6846_v33 = vmax.f32 %v6814_v62, 0.0  ;;  %v6776_v55 = vadd.f32 %v6739_v16, %v6386_v46 }
 0x556   : > { %v7016_v1 = vpop.f32.mrf.mxu1  ;;  %v6741_v61 = vpop.f32.mrf.mxu0 }
 0x557   : > { %v7600_v53 = vpack.c.bf16 %v6846_v33, %v6845_v39  ;;  %v6815_v57 = vadd.f32 %v14475_v41, %v6776_v55 }
 0x558   : > { %v14774_v35 = vpop.f32.mrf.mxu1  ;;  %7424 = vmatmul.mubr.bf16.gmra.mxu1 %v16289_v63  ;;  %v6742_v14 = vpop.f32.mrf.mxu0 }
 0x559   : > { %9723 = vmatprep.mubr.bf16.mxu1 %v16290_v4  ;;  %v6777_v21 = vadd.f32 %v6742_v14, %v6389_v10  ;;  %9705 = vmatprep.mubr.msk.bf16.mxu0 %vm7659_vm3, %v7600_v53  ;;  %v6847_v34 = vmax.f32 %v6815_v57, 0.0 }
 0x55a   : > { %v7021_v60 = vpop.f32.mrf.mxu1  ;;  %v6744_v36 = vpop.f32.mrf.mxu0 }
 0x55b   : > { %v6816_v44 = vadd.f32 %v14475_v41, %v6777_v21 }
 0x55c   : > { %v14783_v3 = vpop.f32.mrf.mxu1  ;;  %v7124_v29 = vpop.f32.mrf.mxu0 }
 0x55d   : > { %v6848_v38 = vmax.f32 %v6816_v44, 0.0  ;;  %v14786_v45 = vadd.f32 %v7124_v29, %v14638_v49 }
 0x55e   : > { %v7024_v48 = vpop.f32.mrf.mxu1  ;;  %v7126_v9 = vpop.f32.mrf.mxu0 }
 0x55f   : > { %v7601_v43 = vpack.c.bf16 %v6848_v38, %v6847_v34 }
 0x560   : > { %v14788_v7 = vpop.f32.mrf.mxu1  ;;  %9724 = vmatmul.mubr.bf16.vlgmr.msra.gmra.mxu1 %v16290_v4  ;;  %v7127_v0 = vpop.f32.mrf.mxu0 }
 0x561   : > { %9727 = vmatprep.mubr.bf16.mxu1 %v16290_v4  ;;  %v14793_v8 = vadd.f32 %v7127_v0, %v14650_v52  ;;  %9706 = vmatmul.mubr.msk.bf16.gmra.mxu0 %vm7659_vm3, %v7601_v43 }
 0x562   : > { %v7029_v51 = vpop.f32.mrf.mxu1  ;;  %v7129_v47 = vpop.f32.mrf.mxu0 }
 0x564   : > { %v14796_v28 = vpop.f32.mrf.mxu1  ;;  %v7132_v49 = vpop.f32.mrf.mxu0 }
 0x565   : > { %v14799_v56 = vadd.f32 %v7132_v49, %v14661_v5 }
 0x566   : > { %v7032_v37 = vpop.f32.mrf.mxu1  ;;  %v7134_v22 = vpop.f32.mrf.mxu0 }
 0x568   : > { %v14801_v30 = vpop.f32.mrf.mxu1  ;;  %9728 = vmatmul.mubr.bf16.gmra.mxu1 %v16290_v4  ;;  %v7135_v42 = vpop.f32.mrf.mxu0 }
 0x569   : > { %v14805_v52 = vadd.f32 %v7135_v42, %v14671_v18 }
 0x56a   : > { %v7037_v6 = vpop.f32.mrf.mxu1  ;;  %v7137_v23 = vpop.f32.mrf.mxu0 }
 0x56c   : > { %v14807_v13 = vpop.f32.mrf.mxu1  ;;  %v7140_v59 = vpop.f32.mrf.mxu0 }
 0x56d   : > { %v14810_v2 = vadd.f32 %v7140_v59, %v14684_v19 }
 0x56e   : > { %v7040_v54 = vpop.f32.mrf.mxu1  ;;  %v7142_v5 = vpop.f32.mrf.mxu0 }
 0x570   : > { %v14812_v25 = vpop.f32.mrf.mxu1  ;;  %v7143_v17 = vpop.f32.mrf.mxu0 }
 0x571   : > { %v14815_v46 = vadd.f32 %v7143_v17, %v14693_v15 }
 0x572   : > { %v7045_v27 = vpop.f32.mrf.mxu1  ;;  %v7145_v62 = vpop.f32.mrf.mxu0 }
 0x574   : > { %v14817_v16 = vpop.f32.mrf.mxu1  ;;  %v7148_v18 = vpop.f32.mrf.mxu0 }
 0x575   : > { %v14820_v33 = vadd.f32 %v7148_v18, %v14703_v50 }
 0x576   : > { %v7048_v39 = vpop.f32.mrf.mxu1  ;;  %v7150_v55 = vpop.f32.mrf.mxu0 }
 0x578   : > { %v14822_v1 = vpop.f32.mrf.mxu1  ;;  %v7151_v19 = vpop.f32.mrf.mxu0 }
 0x579   : > { %v14825_v10 = vadd.f32 %v7151_v19, %v14713_v40 }
 0x57a   : > { %v7053_v61 = vpop.f32.mrf.mxu1  ;;  %v7153_v53 = vpop.f32.mrf.mxu0 }
 0x57c   : > { %v14827_v31 = vpop.f32.mrf.mxu1  ;;  %v7156_v15 = vpop.f32.mrf.mxu0 }
 0x57d   : > { %v14830_v63 = vadd.f32 %v7156_v15, %v14720_v58 }
 0x57e   : > { %v7056_v24 = vpop.f32.mrf.mxu1  ;;  %v7158_v14 = vpop.f32.mrf.mxu0 }
 0x580   : > { %v14832_v4 = vpop.f32.mrf.mxu1  ;;  %v7159_v50 = vpop.f32.mrf.mxu0 }
 0x581   : > { %v14835_v21 = vadd.f32 %v7159_v50, %v14733_v20 }
 0x582   : > { %v7061_v57 = vpop.f32.mrf.mxu1  ;;  %v7161_v60 = vpop.f32.mrf.mxu0 }
 0x584   : > { %v14837_v36 = vpop.f32.mrf.mxu1  ;;  %v7164_v40 = vpop.f32.mrf.mxu0 }
 0x585   : > { %v14840_v29 = vadd.f32 %v7164_v40, %v14738_v26 }
 0x586   : > { %v7064_v44 = vpop.f32.mrf.mxu1  ;;  %v7166_v34 = vpop.f32.mrf.mxu0 }
 0x588   : > { %v14842_v38 = vpop.f32.mrf.mxu1  ;;  %v7167_v58 = vpop.f32.mrf.mxu0 }
 0x589   : > { %v14845_v9 = vadd.f32 %v7167_v58, %v14752_v32 }
 0x58a   : > { %v7069_v48 = vpop.f32.mrf.mxu1  ;;  %v7169_v43 = vpop.f32.mrf.mxu0 }
 0x58c   : > { %v14847_v0 = vpop.f32.mrf.mxu1  ;;  %v7172_v20 = vpop.f32.mrf.mxu0 }
 0x58d   : > { %v14850_v47 = vadd.f32 %v7172_v20, %v14756_v12 }
 0x58e   : > { %v7072_v51 = vpop.f32.mrf.mxu1  ;;  %v7174_v49 = vpop.f32.mrf.mxu0 }
 0x590   : > { %v14852_v37 = vpop.f32.mrf.mxu1  ;;  %v7175_v26 = vpop.f32.mrf.mxu0 }
 0x591   : > { %v14855_v42 = vadd.f32 %v7175_v26, %v14770_v11  ;;  %v16291_v26 = vld [vmem:[#allocation97_spill] sm:$0xff] }
 0x592   : > { %v7077_v22 = vpop.f32.mrf.mxu1  ;;  %v7177_v6 = vpop.f32.mrf.mxu0 }
 0x593   : > { %v16292_v22 = vld [vmem:[#allocation98_spill] sm:$0xff] }
 0x594   : > { %v14857_v23 = vpop.f32.mrf.mxu1  ;;  %v7180_v32 = vpop.f32.mrf.mxu0 }
 0x595   : > { %v14860_v54 = vadd.f32 %v7180_v32, %v14774_v35 }
 0x596   : > { %v7080_v59 = vpop.f32.mrf.mxu1  ;;  %v7182_v5 = vpop.f32.mrf.mxu0 }
 0x598   : > { %v14862_v17 = vpop.f32.mrf.mxu1  ;;  %v7183_v12 = vpop.f32.mrf.mxu0 }
 0x599   : > { %v14865_v62 = vadd.f32 %v7183_v12, %v14783_v3 }
 0x59a   : > { %v7085_v27 = vpop.f32.mrf.mxu1  ;;  %v7185_v18 = vpop.f32.mrf.mxu0 }
 0x59c   : > { %v14867_v39 = vpop.f32.mrf.mxu1  ;;  %v7188_v11 = vpop.f32.mrf.mxu0 }
 0x59d   : > { %v14870_v19 = vadd.f32 %v7188_v11, %v14788_v7 }
 0x59e   : > { %v7088_v55 = vpop.f32.mrf.mxu1  ;;  %v7190_v61 = vpop.f32.mrf.mxu0 }
 0x5a0   : > { %v7305_v53 = vpop.f32.mrf.mxu1  ;;  %v7191_v15 = vpop.f32.mrf.mxu0 }
 0x5a1   : > { %v7432_v35 = vadd.f32 %v7305_v53, %v14786_v45  ;;  %v14874_v24 = vadd.f32 %v7191_v15, %v14796_v28 }
 0x5a2   : > { %v7307_v14 = vpop.f32.mrf.mxu1  ;;  %v7193_v50 = vpop.f32.mrf.mxu0 }
 0x5a3   : > { %v7464_v3 = vadd.f32 %v14475_v41, %v7432_v35  ;;  %v16294_v50 = vld [vmem:[#allocation14_spill] sm:$0xff] }
 0x5a4   : > { %v7308_v57 = vpop.f32.mrf.mxu1  ;;  %v7196_v40 = vpop.f32.mrf.mxu0 }
 0x5a5   : > { %v7433_v60 = vadd.f32 %v7308_v57, %v14793_v8  ;;  %v14879_v44 = vadd.f32 %v7196_v40, %v14801_v30  ;;  %v7496_v34 = vmax.f32 %v7464_v3, 0.0 }
 0x5a6   : > { %v7310_v7 = vpop.f32.mrf.mxu1  ;;  %v7198_v45 = vpop.f32.mrf.mxu0 }
 0x5a7   : > { %v7465_v58 = vadd.f32 %v14475_v41, %v7433_v60  ;;  %v7528_v8 = vmul.f32 %v7496_v34, %v16291_v26 }
 0x5a8   : > { %v7313_v48 = vpop.f32.mrf.mxu1  ;;  %v7199_v20 = vpop.f32.mrf.mxu0 }
 0x5a9   : > { %v7497_v43 = vmax.f32 %v7465_v58, 0.0  ;;  %v7434_v28 = vadd.f32 %v7313_v48, %v14799_v56  ;;  %v14884_v51 = vadd.f32 %v7199_v20, %v14807_v13 }
 0x5aa   : > { %v7315_v49 = vpop.f32.mrf.mxu1  ;;  %v7201_v32 = vpop.f32.mrf.mxu0 }
 0x5ab   : > { %v7529_v6 = vmul.f32 %v7497_v43, %v16292_v22  ;;  %v7466_v30 = vadd.f32 %v14475_v41, %v7434_v28 }
 0x5ac   : > { %v7316_v59 = vpop.f32.mrf.mxu1  ;;  %v7204_v27 = vpop.f32.mrf.mxu0 }
 0x5ad   : > { %v7560_v5 = vpack.c.bf16 %v7529_v6, %v7528_v8  ;;  %v7435_v12 = vadd.f32 %v7316_v59, %v14805_v52  ;;  %v14891_v18 = vadd.f32 %v7204_v27, %v14812_v25  ;;  %v7498_v11 = vmax.f32 %v7466_v30, 0.0  ;;  %v16293_v25 = vld [vmem:[#allocation100_spill] sm:$0xff]  ;;  %v16296_v30 = vld [vmem:[#allocation107_spill] sm:$0xff] }
 0x5ae   : > { %v7318_v56 = vpop.f32.mrf.mxu1  ;;  %v7206_v55 = vpop.f32.mrf.mxu0 }
 0x5af   : > { %v7467_v13 = vadd.f32 %v14475_v41, %v7435_v12  ;;  %9731 = vmatprep.mubr.msk.bf16.mxu1 %vm7659_vm3, %v7560_v5  ;;  %9769 = vmatprep.mubr.msk.bf16.mxu0 %vm7659_vm3, %v7560_v5  ;;  %v7530_v3 = vmul.f32 %v7498_v11, %v16293_v25 }
 0x5b0   : > { %v7321_v61 = vpop.f32.mrf.mxu1  ;;  %v7207_v15 = vpop.f32.mrf.mxu0 }
 0x5b1   : > { %v7499_v53 = vmax.f32 %v7467_v13, 0.0  ;;  %v7436_v35 = vadd.f32 %v7321_v61, %v14810_v2  ;;  %v14898_v52 = vadd.f32 %v7207_v15, %v14817_v16 }
 0x5b2   : > { %v7323_v14 = vpop.f32.mrf.mxu1  ;;  %v7209_v40 = vpop.f32.mrf.mxu0 }
 0x5b3   : > { %v7531_v57 = vmul.f32 %v7499_v53, %v16294_v50  ;;  %v7468_v60 = vadd.f32 %v14475_v41, %v7436_v35  ;;  %v16298_v50 = vld [vmem:[#allocation112_spill] sm:$0xff] }
 0x5b4   : > { %v7324_v7 = vpop.f32.mrf.mxu1  ;;  %v7212_v45 = vpop.f32.mrf.mxu0 }
 0x5b5   : > { %v7561_v34 = vpack.c.bf16 %v7531_v57, %v7530_v3  ;;  %v7437_v58 = vadd.f32 %v7324_v7, %v14815_v46  ;;  %v14905_v48 = vadd.f32 %v7212_v45, %v14822_v1  ;;  %v7500_v43 = vmax.f32 %v7468_v60, 0.0  ;;  %v16295_v1 = vld [vmem:[#allocation15_spill] sm:$0xff] }
 0x5b6   : > { %v7326_v2 = vpop.f32.mrf.mxu1  ;;  %v7214_v28 = vpop.f32.mrf.mxu0 }
 0x5b7   : > { %v7469_v16 = vadd.f32 %v14475_v41, %v7437_v58  ;;  %9732 = vmatmul.mubr.msk.bf16.gmra.mxu1 %vm7659_vm3, %v7561_v34  ;;  %9770 = vmatmul.mubr.msk.bf16.vlgmr.msra.gmra.mxu0 %vm7659_vm3, %v7561_v34  ;;  %v7532_v6 = vmul.f32 %v7500_v43, %v16295_v1  ;;  %v14919_v41 = vld [vmem:[%s15322_s4] ss:$0 sm:$0xff]  ;;  %v16300_v1 = vld [vmem:[#allocation117_spill] sm:$0xff] }
 0x5b8   : > { %v7329_v20 = vpop.f32.mrf.mxu1  ;;  %v7215_v8 = vpop.f32.mrf.mxu0 }
 0x5b9   : > { %v7501_v49 = vmax.f32 %v7469_v16, 0.0  ;;  %v7438_v26 = vadd.f32 %v7329_v20, %v14820_v33  ;;  %v14912_v46 = vadd.f32 %v7215_v8, %v14827_v31 }
 0x5ba   : > { %v7331_v22 = vpop.f32.mrf.mxu1  ;;  %v7217_v5 = vpop.f32.mrf.mxu0 }
 0x5bb   : > { %v7533_v32 = vmul.f32 %v7501_v49, %v16296_v30  ;;  %v7470_v59 = vadd.f32 %v14919_v41, %v7438_v26 }
 0x5bc   : > { %v7332_v12 = vpop.f32.mrf.mxu1  ;;  %v7220_v56 = vpop.f32.mrf.mxu0 }
 0x5bd   : > { %v7562_v27 = vpack.c.bf16 %v7533_v32, %v7532_v6  ;;  %v7439_v33 = vadd.f32 %v7332_v12, %v14825_v10  ;;  %v14924_v31 = vadd.f32 %v7220_v56, %v14832_v4  ;;  %v7502_v13 = vmax.f32 %v7470_v59, 0.0  ;;  %v16297_v4 = vld [vmem:[#allocation16_spill] sm:$0xff] }
 0x5be   : > { %v7334_v11 = vpop.f32.mrf.mxu1  ;;  %v7222_v61 = vpop.f32.mrf.mxu0 }
 0x5bf   : > { %v7471_v55 = vadd.f32 %v14919_v41, %v7439_v33  ;;  %9735 = vmatprep.mubr.msk.bf16.mxu1 %vm7659_vm3, %v7562_v27  ;;  %9773 = vmatprep.mubr.msk.bf16.mxu0 %vm7659_vm3, %v7562_v27  ;;  %v7534_v3 = vmul.f32 %v7502_v13, %v16297_v4 }
 0x5c0   : > { %v7337_v53 = vpop.f32.mrf.mxu1  ;;  %v7223_v14 = vpop.f32.mrf.mxu0 }
 0x5c1   : > { %v7503_v35 = vmax.f32 %v7471_v55, 0.0  ;;  %v7440_v15 = vadd.f32 %v7337_v53, %v14830_v63  ;;  %v14931_v10 = vadd.f32 %v7223_v14, %v14837_v36  ;;  %v16302_v14 = vld [vmem:[#allocation122_spill] sm:$0xff] }
 0x5c2   : > { %v7339_v25 = vpop.f32.mrf.mxu1  ;;  %v7225_v40 = vpop.f32.mrf.mxu0 }
 0x5c3   : > { %v7535_v57 = vmul.f32 %v7503_v35, %v16298_v50  ;;  %v7472_v60 = vadd.f32 %v14919_v41, %v7440_v15 }
 0x5c4   : > { %v7340_v7 = vpop.f32.mrf.mxu1  ;;  %v7228_v45 = vpop.f32.mrf.mxu0 }
 0x5c5   : > { %v7563_v34 = vpack.c.bf16 %v7535_v57, %v7534_v3  ;;  %v7441_v58 = vadd.f32 %v7340_v7, %v14835_v21  ;;  %v14938_v2 = vadd.f32 %v7228_v45, %v14842_v38  ;;  %v7504_v43 = vmax.f32 %v7472_v60, 0.0  ;;  %v16299_v38 = vld [vmem:[#allocation17_spill] sm:$0xff] }
 0x5c6   : > { %v7342_v63 = vpop.f32.mrf.mxu1  ;;  %v7230_v16 = vpop.f32.mrf.mxu0 }
 0x5c7   : > { %v7473_v36 = vadd.f32 %v14919_v41, %v7441_v58  ;;  %9736 = vmatmul.mubr.msk.bf16.gmra.mxu1 %vm7659_vm3, %v7563_v34  ;;  %9774 = vmatmul.mubr.msk.bf16.gmra.mxu0 %vm7659_vm3, %v7563_v34  ;;  %v7536_v22 = vmul.f32 %v7504_v43, %v16299_v38 }
 0x5c8   : > { %v7345_v28 = vpop.f32.mrf.mxu1  ;;  %v7231_v26 = vpop.f32.mrf.mxu0 }
 0x5c9   : > { %v7505_v20 = vmax.f32 %v7473_v36, 0.0  ;;  %v7442_v49 = vadd.f32 %v7345_v28, %v14840_v29  ;;  %v14945_v21 = vadd.f32 %v7231_v26, %v14847_v0 }
 0x5ca   : > { %v7347_v8 = vpop.f32.mrf.mxu1  ;;  %v7233_v32 = vpop.f32.mrf.mxu0 }
 0x5cb   : > { %v7537_v6 = vmul.f32 %v7505_v20, %v16300_v1  ;;  %v7474_v30 = vadd.f32 %v14919_v41, %v7442_v49  ;;  %v16304_v20 = vld [vmem:[#allocation128_spill] sm:$0xff] }
 0x5cc   : > { %v7348_v59 = vpop.f32.mrf.mxu1  ;;  %v7236_v27 = vpop.f32.mrf.mxu0 }
 0x5cd   : > { %v7564_v5 = vpack.c.bf16 %v7537_v6, %v7536_v22  ;;  %v7443_v12 = vadd.f32 %v7348_v59, %v14845_v9  ;;  %v14952_v33 = vadd.f32 %v7236_v27, %v14852_v37  ;;  %v7506_v56 = vmax.f32 %v7474_v30, 0.0  ;;  %v16301_v37 = vld [vmem:[#allocation123_spill] sm:$0xff] }
 0x5ce   : > { %v7350_v29 = vpop.f32.mrf.mxu1  ;;  %v7238_v11 = vpop.f32.mrf.mxu0 }
 0x5cf   : > { %v7475_v0 = vadd.f32 %v14919_v41, %v7443_v12  ;;  %9739 = vmatprep.mubr.msk.bf16.mxu1 %vm7659_vm3, %v7564_v5  ;;  %9777 = vmatprep.mubr.msk.bf16.mxu0 %vm7659_vm3, %v7564_v5  ;;  %v7538_v15 = vmul.f32 %v7506_v56, %v16301_v37  ;;  %v16305_v12 = vld [vmem:[#allocation54_spill] sm:$0xff]  ;;  %v16306_v29 = vld [vmem:[#allocation132_spill] sm:$0xff] }
 0x5d0   : > { %v7353_v13 = vpop.f32.mrf.mxu1  ;;  %v7239_v53 = vpop.f32.mrf.mxu0 }
 0x5d1   : > { %v7507_v55 = vmax.f32 %v7475_v0, 0.0  ;;  %v7444_v61 = vadd.f32 %v7353_v13, %v14850_v47  ;;  %v14959_v9 = vadd.f32 %v7239_v53, %v14857_v23 }
 0x5d2   : > { %v7355_v35 = vpop.f32.mrf.mxu1  ;;  %v7241_v3 = vpop.f32.mrf.mxu0 }
 0x5d3   : > { %v7539_v25 = vmul.f32 %v7507_v55, %v16302_v14  ;;  %v7476_v4 = vadd.f32 %v14919_v41, %v7444_v61  ;;  %v16307_v14 = vld [vmem:[#allocation56_spill] sm:$0xff] }
 0x5d4   : > { %v7356_v50 = vpop.f32.mrf.mxu1  ;;  %v7244_v40 = vpop.f32.mrf.mxu0 }
 0x5d5   : > { %v7565_v57 = vpack.c.bf16 %v7539_v25, %v7538_v15  ;;  %v7445_v60 = vadd.f32 %v7356_v50, %v14855_v42  ;;  %v14966_v7 = vadd.f32 %v7244_v40, %v14862_v17  ;;  %v7508_v34 = vmax.f32 %v7476_v4, 0.0  ;;  %v16303_v17 = vld [vmem:[#allocation47_spill] sm:$0xff]  ;;  %v16308_v4 = vld [vmem:[#allocation50_spill] sm:$0xff] }
 0x5d6   : > { %v7358_v47 = vpop.f32.mrf.mxu1  ;;  %v7246_v58 = vpop.f32.mrf.mxu0 }
 0x5d7   : > { %v7477_v23 = vadd.f32 %v14919_v41, %v7445_v60  ;;  %9740 = vmatmul.mubr.msk.bf16.gmra.mxu1 %vm7659_vm3, %v7565_v57  ;;  %9778 = vmatmul.mubr.msk.bf16.gmra.mxu0 %vm7659_vm3, %v7565_v57  ;;  %v7540_v28 = vmul.f32 %v7508_v34, %v16303_v17 }
 0x5d8   : > { %v7361_v45 = vpop.f32.mrf.mxu1  ;;  %v7247_v36 = vpop.f32.mrf.mxu0 }
 0x5d9   : > { %v7509_v63 = vmax.f32 %v7477_v23, 0.0  ;;  %v7446_v43 = vadd.f32 %v7361_v45, %v14860_v54  ;;  %v14973_v42 = vadd.f32 %v7247_v36, %v14867_v39  ;;  %v16310_v36 = vld [vmem:[#allocation79_spill] sm:$0xff] }
 0x5da   : > { %v7363_v16 = vpop.f32.mrf.mxu1  ;;  %v7249_v8 = vpop.f32.mrf.mxu0 }
 0x5db   : > { %v7541_v49 = vmul.f32 %v7509_v63, %v16304_v20  ;;  %v7478_v26 = vadd.f32 %v14919_v41, %v7446_v43  ;;  %v16309_v63 = vld [vmem:[#allocation58_spill] sm:$0xff] }
 0x5dc   : > { %v7364_v38 = vpop.f32.mrf.mxu1 }
 0x5dd   : > { %v7566_v22 = vpack.c.bf16 %v7541_v49, %v7540_v28  ;;  %v7447_v1 = vadd.f32 %v7364_v38, %v14865_v62  ;;  %v7510_v30 = vmax.f32 %v7478_v26, 0.0 }
 0x5de   : > { %v7366_v6 = vpop.f32.mrf.mxu1 }
 0x5df   : > { %v7479_v54 = vadd.f32 %v14919_v41, %v7447_v1  ;;  %9743 = vmatprep.mubr.msk.bf16.mxu1 %vm7659_vm3, %v7566_v22  ;;  %9781 = vmatprep.mubr.msk.bf16.mxu0 %vm7659_vm3, %v7566_v22  ;;  %v7542_v27 = vmul.f32 %v7510_v30, %v16305_v12  ;;  %v16311_v6 = vld [vmem:[#allocation60_spill] sm:$0xff] }
 0x5e0   : > { %v7369_v39 = vpop.f32.mrf.mxu1 }
 0x5e1   : > { %v7511_v32 = vmax.f32 %v7479_v54, 0.0  ;;  %v7448_v59 = vadd.f32 %v7369_v39, %v14870_v19  ;;  %v16312_v54 = vld [vmem:[#allocation7_spill] sm:$0xff] }
 0x5e2   : > { %v7371_v5 = vpop.f32.mrf.mxu1 }
 0x5e3   : > { %v7543_v56 = vmul.f32 %v7511_v32, %v16306_v29  ;;  %v7480_v0 = vadd.f32 %v14919_v41, %v7448_v59  ;;  %v15010_v59 = vpop.f32.mrf.mxu0 }
 0x5e4   : > { %v7372_v62 = vpop.f32.mrf.mxu1 }
 0x5e5   : > { %v7567_v11 = vpack.c.bf16 %v7543_v56, %v7542_v27  ;;  %v7449_v13 = vadd.f32 %v7372_v62, %v14874_v24  ;;  %v7512_v61 = vmax.f32 %v7480_v0, 0.0  ;;  %v15016_v0 = vpop.f32.mrf.mxu0 }
 0x5e6   : > { %v7374_v55 = vpop.f32.mrf.mxu1 }
 0x5e7   : > { %v7481_v53 = vadd.f32 %v14919_v41, %v7449_v13  ;;  %9744 = vmatmul.mubr.msk.bf16.gmra.mxu1 %vm7659_vm3, %v7567_v11  ;;  %9782 = vmatmul.mubr.msk.bf16.gmra.mxu0 %vm7659_vm3, %v7567_v11  ;;  %v7544_v25 = vmul.f32 %v7512_v61, %v16307_v14  ;;  %v16313_v55 = vld [vmem:[#allocation62_spill] sm:$0xff] }
 0x5e8   : > { %v7377_v19 = vpop.f32.mrf.mxu1 }
 0x5e9   : > { %v7513_v35 = vmax.f32 %v7481_v53, 0.0  ;;  %v7450_v37 = vadd.f32 %v7377_v19, %v14879_v44  ;;  %v16314_v53 = vld [vmem:[#allocation90_spill] sm:$0xff] }
 0x5ea   : > { %v7379_v15 = vpop.f32.mrf.mxu1 }
 0x5eb   : > { %v7545_v3 = vmul.f32 %v7513_v35, %v16308_v4  ;;  %v7482_v50 = vadd.f32 %v14919_v41, %v7450_v37  ;;  %v15022_v37 = vpop.f32.mrf.mxu0 }
 0x5ec   : > { %v7380_v24 = vpop.f32.mrf.mxu1 }
 0x5ed   : > { %v7568_v57 = vpack.c.bf16 %v7545_v3, %v7544_v25  ;;  %v7451_v60 = vadd.f32 %v7380_v24, %v14884_v51  ;;  %v7514_v47 = vmax.f32 %v7482_v50, 0.0  ;;  %v15028_v50 = vpop.f32.mrf.mxu0 }
 0x5ee   : > { %v7382_v40 = vpop.f32.mrf.mxu1 }
 0x5ef   : > { %v7483_v34 = vadd.f32 %v14919_v41, %v7451_v60  ;;  %9747 = vmatprep.mubr.msk.bf16.mxu1 %vm7659_vm3, %v7568_v57  ;;  %9785 = vmatprep.mubr.msk.bf16.mxu0 %vm7659_vm3, %v7568_v57  ;;  %v7546_v43 = vmul.f32 %v7514_v47, %v16309_v63  ;;  %v16315_v40 = vld [vmem:[#allocation64_spill] sm:$0xff] }
 0x5f0   : > { %v7385_v44 = vpop.f32.mrf.mxu1 }
 0x5f1   : > { %v7515_v23 = vmax.f32 %v7483_v34, 0.0  ;;  %v7452_v58 = vadd.f32 %v7385_v44, %v14891_v18  ;;  %v16316_v34 = vld [vmem:[#allocation93_spill] sm:$0xff] }
 0x5f2   : > { %v7387_v45 = vpop.f32.mrf.mxu1 }
 0x5f3   : > { %v7547_v16 = vmul.f32 %v7515_v23, %v16310_v36  ;;  %v7484_v17 = vadd.f32 %v14919_v41, %v7452_v58  ;;  %v15034_v58 = vpop.f32.mrf.mxu0 }
 0x5f4   : > { %v7388_v51 = vpop.f32.mrf.mxu1 }
 0x5f5   : > { %v7569_v28 = vpack.c.bf16 %v7547_v16, %v7546_v43  ;;  %v7453_v20 = vadd.f32 %v7388_v51, %v14898_v52  ;;  %v7516_v26 = vmax.f32 %v7484_v17, 0.0  ;;  %v15039_v17 = vpop.f32.mrf.mxu0 }
 0x5f6   : > { %v7390_v49 = vpop.f32.mrf.mxu1 }
 0x5f7   : > { %v7485_v8 = vadd.f32 %v14919_v41, %v7453_v20  ;;  %9748 = vmatmul.mubr.msk.bf16.gmra.mxu1 %vm7659_vm3, %v7569_v28  ;;  %9786 = vmatmul.mubr.msk.bf16.gmra.mxu0 %vm7659_vm3, %v7569_v28  ;;  %v7548_v30 = vmul.f32 %v7516_v26, %v16311_v6  ;;  %v16317_v49 = vld [vmem:[#allocation69_spill] sm:$0xff] }
 0x5f8   : > { %v7393_v18 = vpop.f32.mrf.mxu1 }
 0x5f9   : > { %v7517_v38 = vmax.f32 %v7485_v8, 0.0  ;;  %v7454_v22 = vadd.f32 %v7393_v18, %v14905_v48  ;;  %v16318_v8 = vld [vmem:[#allocation96_spill] sm:$0xff] }
 0x5fa   : > { %v7395_v1 = vpop.f32.mrf.mxu1 }
 0x5fb   : > { %v7549_v39 = vmul.f32 %v7517_v38, %v16312_v54  ;;  %v7486_v32 = vadd.f32 %v14919_v41, %v7454_v22  ;;  %v15045_v22 = vpop.f32.mrf.mxu0 }
 0x5fc   : > { %v7396_v52 = vpop.f32.mrf.mxu1 }
 0x5fd   : > { %v7570_v5 = vpack.c.bf16 %v7549_v39, %v7548_v30  ;;  %v7455_v12 = vadd.f32 %v7396_v52, %v14912_v46  ;;  %v7518_v29 = vmax.f32 %v7486_v32, 0.0  ;;  %v15050_v32 = vpop.f32.mrf.mxu0 }
 0x5fe   : > { %v7398_v27 = vpop.f32.mrf.mxu1 }
 0x5ff   : > { %v7487_v56 = vadd.f32 %v14919_v41, %v7455_v12  ;;  %9751 = vmatprep.mubr.msk.bf16.mxu1 %vm7659_vm3, %v7570_v5  ;;  %9789 = vmatprep.mubr.msk.bf16.mxu0 %vm7659_vm3, %v7570_v5  ;;  %v7550_v61 = vmul.f32 %v7518_v29, %v16313_v55  ;;  %v16319_v27 = vld [vmem:[#allocation72_spill] sm:$0xff] }
 0x600   : > { %v7401_v48 = vpop.f32.mrf.mxu1 }
 0x601   : > { %v7519_v62 = vmax.f32 %v7487_v56, 0.0  ;;  %v7456_v11 = vadd.f32 %v7401_v48, %v14924_v31  ;;  %v16320_v56 = vld [vmem:[#allocation159_spill] sm:$0xff] }
 0x602   : > { %v7403_v13 = vpop.f32.mrf.mxu1 }
 0x603   : > { %v7551_v19 = vmul.f32 %v7519_v62, %v16314_v53  ;;  %v7488_v46 = vadd.f32 %v14919_v41, %v7456_v11  ;;  %v15056_v11 = vpop.f32.mrf.mxu0 }
 0x604   : > { %v7404_v35 = vpop.f32.mrf.mxu1 }
 0x605   : > { %v7571_v15 = vpack.c.bf16 %v7551_v19, %v7550_v61  ;;  %v7457_v14 = vadd.f32 %v7404_v35, %v14931_v10  ;;  %v7520_v4 = vmax.f32 %v7488_v46, 0.0  ;;  %v16321_v35 = vld [vmem:[#allocation167_spill] sm:$0xff] }
 0x606   : > { %v7406_v25 = vpop.f32.mrf.mxu1 }
 0x607   : > { %v7489_v3 = vadd.f32 %v14919_v41, %v7457_v14  ;;  %9752 = vmatmul.mubr.msk.bf16.gmra.mxu1 %vm7659_vm3, %v7571_v15  ;;  %9790 = vmatmul.mubr.msk.bf16.gmra.mxu0 %vm7659_vm3, %v7571_v15  ;;  %v7552_v47 = vmul.f32 %v7520_v4, %v16315_v40  ;;  %v16322_v14 = vld [vmem:[#allocation168_spill] sm:$0xff] }
 0x608   : > { %v7409_v31 = vpop.f32.mrf.mxu1 }
 0x609   : > { %v7521_v24 = vmax.f32 %v7489_v3, 0.0  ;;  %v7458_v57 = vadd.f32 %v7409_v31, %v14938_v2 }
 0x60a   : > { %v7411_v60 = vpop.f32.mrf.mxu1 }
 0x60b   : > { %v7553_v44 = vmul.f32 %v7521_v24, %v16316_v34  ;;  %v7490_v10 = vadd.f32 %v14919_v41, %v7458_v57 }
 0x60c   : > { %v7412_v23 = vpop.f32.mrf.mxu1 }
 0x60d   : > { %v8110_v45 = vpack.c.bf16 %v7553_v44, %v7552_v47  ;;  %v7459_v63 = vadd.f32 %v7412_v23, %v14945_v21  ;;  %v7522_v36 = vmax.f32 %v7490_v10, 0.0 }
 0x60e   : > { %v7414_v43 = vpop.f32.mrf.mxu1 }
 0x60f   : > { %v7491_v16 = vadd.f32 %v14919_v41, %v7459_v63  ;;  %9793 = vmatprep.mubr.msk.bf16.mxu0 %vm7659_vm3, %v8110_v45  ;;  %v7554_v26 = vmul.f32 %v7522_v36, %v16317_v49 }
 0x610   : > { %v7417_v2 = vpop.f32.mrf.mxu1 }
 0x611   : > { %v7523_v51 = vmax.f32 %v7491_v16, 0.0  ;;  %v7460_v28 = vadd.f32 %v7417_v2, %v14952_v33 }
 0x612   : > { %v7419_v20 = vpop.f32.mrf.mxu1 }
 0x613   : > { %v7555_v18 = vmul.f32 %v7523_v51, %v16318_v8  ;;  %v7492_v38 = vadd.f32 %v14919_v41, %v7460_v28 }
 0x614   : > { %v7420_v21 = vpop.f32.mrf.mxu1 }
 0x615   : > { %v8111_v1 = vpack.c.bf16 %v7555_v18, %v7554_v26  ;;  %v7461_v6 = vadd.f32 %v7420_v21, %v14959_v9  ;;  %v7524_v54 = vmax.f32 %v7492_v38, 0.0 }
 0x616   : > { %v7422_v30 = vpop.f32.mrf.mxu1 }
 0x617   : > { %v7493_v39 = vadd.f32 %v14919_v41, %v7461_v6  ;;  %9794 = vmatmul.mubr.msk.bf16.gmra.mxu0 %vm7659_vm3, %v8111_v1  ;;  %v7556_v29 = vmul.f32 %v7524_v54, %v16319_v27  ;;  %v15115_v30 = vld [vmem:[%s15324_s6] ss:$0 sm:$0xff] }
 0x618   : > { %v7425_v33 = vpop.f32.mrf.mxu1 }
 0x619   : > { %v7525_v52 = vmax.f32 %v7493_v39, 0.0  ;;  %v7462_v5 = vadd.f32 %v7425_v33, %v14966_v7  ;;  %v15061_v7 = vpop.f32.mrf.mxu0 }
 0x61a   : > { %v7427_v12 = vpop.f32.mrf.mxu1 }
 0x61b   : > { %v7557_v48 = vmul.f32 %v7525_v52, %v16320_v56  ;;  %v7494_v62 = vadd.f32 %v14919_v41, %v7462_v5  ;;  %v15065_v4 = vpop.f32.mrf.mxu0 }
 0x61c   : > { %v7428_v9 = vpop.f32.mrf.mxu1 }
 0x61d   : > { %v8112_v13 = vpack.c.bf16 %v7557_v48, %v7556_v29  ;;  %v7463_v55 = vadd.f32 %v7428_v9, %v14973_v42  ;;  %v7526_v53 = vmax.f32 %v7494_v62, 0.0  ;;  %v15068_v31 = vpop.f32.mrf.mxu0 }
 0x61e   : > { %v7430_v61 = vpop.f32.mrf.mxu1 }
 0x61f   : > { %v7495_v19 = vadd.f32 %v14919_v41, %v7463_v55  ;;  %9797 = vmatprep.mubr.msk.bf16.mxu0 %vm7659_vm3, %v8112_v13  ;;  %v7558_v15 = vmul.f32 %v7526_v53, %v16321_v35  ;;  %v15070_v42 = vpop.f32.mrf.mxu0 }
 0x620   : > { %v9725_v51 = vpop.f32.mrf.mxu1 }
 0x621   : > { %v7527_v46 = vmax.f32 %v7495_v19, 0.0  ;;  %v15072_v24 = vpop.f32.mrf.mxu0  ;;  %v7992_v18 = vadd.f32 %v9725_v51, %v15010_v59 }
 0x622   : > { %v7983_v20 = vpop.f32.mrf.mxu1 }
 0x623   : > { %v7559_v25 = vmul.f32 %v7527_v46, %v16322_v14  ;;  %v15074_v41 = vpop.f32.mrf.mxu0  ;;  %v7984_v21 = vadd.f32 %v7983_v20, %v15016_v0 }
 0x624   : > { %v9726_v26 = vpop.f32.mrf.mxu1 }
 0x625   : > { %v8113_v3 = vpack.c.bf16 %v7559_v25, %v7558_v15  ;;  %v15076_v57 = vpop.f32.mrf.mxu0  ;;  %v7995_v39 = vadd.f32 %v9726_v26, %v15022_v37 }
 0x626   : > { %v7986_v6 = vpop.f32.mrf.mxu1 }
 0x627   : > { %9798 = vmatmul.mubr.msk.bf16.gmra.mxu0 %vm7659_vm3, %v8113_v3  ;;  %v15078_v60 = vpop.f32.mrf.mxu0  ;;  %v7987_v5 = vadd.f32 %v7986_v6, %v15028_v50 }
 0x628   : > { %16323 = vst [vmem:[#allocation71_spill] sm:$0xff] %v15078_v60  ;;  %v9729_v27 = vpop.f32.mrf.mxu1 }
 0x629   : > { %v15080_v40 = vpop.f32.mrf.mxu0  ;;  %v8008_v46 = vadd.f32 %v9729_v27, %v15034_v58 }
 0x62a   : > { %16324 = vst [vmem:[#allocation149_spill] sm:$0xff] %v15080_v40  ;;  %v7999_v55 = vpop.f32.mrf.mxu1 }
 0x62b   : > { %v15082_v47 = vpop.f32.mrf.mxu0  ;;  %v8000_v15 = vadd.f32 %v7999_v55, %v15039_v17 }
 0x62c   : > { %16325 = vst [vmem:[#allocation151_spill] sm:$0xff] %v15082_v47  ;;  %v9730_v19 = vpop.f32.mrf.mxu1 }
 0x62d   : > { %v15084_v34 = vpop.f32.mrf.mxu0  ;;  %v8011_v51 = vadd.f32 %v9730_v19, %v15045_v22  ;;  %v9938_v22 = vld [vmem:[%s15325_s7 + $0x4] ss:$8 sps:$4 sm:$0xff]  }
 0x62e   : > { %16326 = vst [vmem:[#allocation68_spill] sm:$0xff] %v15084_v34  ;;  %v8002_v25 = vpop.f32.mrf.mxu1  ;;  %8543 = vmatprep.mubr.bf16.mxu1 %v9938_v22 }
 0x62f   : > { %v15086_v44 = vpop.f32.mrf.mxu0 }
 0x631   : > { %v15088_v10 = vpop.f32.mrf.mxu0 }
 0x632   : > { %16327 = vst [vmem:[#allocation152_spill] sm:$0xff] %v15088_v10 }
 0x633   : > { %v15090_v23 = vpop.f32.mrf.mxu0 }
 0x635   : > { %v15092_v45 = vpop.f32.mrf.mxu0 }
 0x637   : > { %v15094_v63 = vpop.f32.mrf.mxu0 }
 0x639   : > { %v15096_v43 = vpop.f32.mrf.mxu0 }
 0x63b   : > { %v15098_v36 = vpop.f32.mrf.mxu0 }
 0x63d   : > { %v15100_v16 = vpop.f32.mrf.mxu0 }
 0x63f   : > { %v15102_v2 = vpop.f32.mrf.mxu0 }
 0x641   : > { %v15104_v28 = vpop.f32.mrf.mxu0 }
 0x643   : > { %v15106_v49 = vpop.f32.mrf.mxu0 }
 0x645   : > { %v15108_v8 = vpop.f32.mrf.mxu0 }
 0x677   : > { %v9771_v38 = vpop.f32.mrf.mxu0 }
 0x678   : > { %v8346_v1 = vadd.f32 %v9771_v38, %v7992_v18  ;;  %v8003_v18 = vadd.f32 %v8002_v25, %v15050_v32 }
 0x679   : > { %v8217_v54 = vpop.f32.mrf.mxu0 }
 0x67a   : > { %v8344_v33 = vadd.f32 %v8217_v54, %v7984_v21  ;;  %v8385_v12 = vadd.f32 %v15115_v30, %v8346_v1 }
 0x67b   : > { %v9772_v52 = vpop.f32.mrf.mxu0 }
 0x67c   : > { %v8347_v59 = vadd.f32 %v9772_v52, %v7995_v39  ;;  %v8383_v0 = vadd.f32 %v15115_v30, %v8344_v33  ;;  %v8417_v62 = vmax.f32 %v8385_v12, 0.0 }
 0x67d   : > { %v8220_v29 = vpop.f32.mrf.mxu0 }
 0x67e   : > { %v8386_v56 = vadd.f32 %v15115_v30, %v8347_v59  ;;  %v8345_v48 = vadd.f32 %v8220_v29, %v7987_v5  ;;  %v8415_v37 = vmax.f32 %v8383_v0, 0.0  ;;  %v9733_v59 = vpop.f32.mrf.mxu1 }
 0x680   : > { %v8418_v9 = vmax.f32 %v8386_v56, 0.0  ;;  %v8384_v13 = vadd.f32 %v15115_v30, %v8345_v48  ;;  %v8015_v27 = vpop.f32.mrf.mxu1 }
 0x682   : > { %v15123_v61 = vpack.c.bf16 %v8418_v9, %v8417_v62  ;;  %v8416_v53 = vmax.f32 %v8384_v13, 0.0  ;;  %v9734_v29 = vpop.f32.mrf.mxu1 }
 0x683   : > { %v8027_v34 = vadd.f32 %v9734_v29, %v15065_v4 }
 0x684   : > { %16328 = vst [vmem:[#allocation11_spill] sm:$0xff] %v15123_v61  ;;  %v15125_v50 = vpack.c.bf16 %v8416_v53, %v8415_v37  ;;  %v8018_v56 = vpop.f32.mrf.mxu1 }
 0x685   : > { %v8019_v4 = vadd.f32 %v8018_v56, %v15068_v31 }
 0x686   : > { %16329 = vst [vmem:[#allocation28_spill] sm:$0xff] %v15125_v50 }
 0x687   : > { %v9775_v35 = vpop.f32.mrf.mxu0  ;;  %v9737_v48 = vpop.f32.mrf.mxu1 }
 0x688   : > { %v8350_v14 = vadd.f32 %v9775_v35, %v8008_v46 }
 0x689   : > { %v8233_v3 = vpop.f32.mrf.mxu0  ;;  %v8031_v9 = vpop.f32.mrf.mxu1 }
 0x68a   : > { %v8348_v20 = vadd.f32 %v8233_v3, %v8000_v15  ;;  %v8389_v38 = vadd.f32 %v15115_v30, %v8350_v14 }
 0x68b   : > { %v9776_v26 = vpop.f32.mrf.mxu0  ;;  %v9738_v55 = vpop.f32.mrf.mxu1 }
 0x68c   : > { %v8351_v21 = vadd.f32 %v9776_v26, %v8011_v51  ;;  %v8387_v6 = vadd.f32 %v15115_v30, %v8348_v20  ;;  %v8421_v39 = vmax.f32 %v8389_v38, 0.0 }
 0x68d   : > { %v8236_v1 = vpop.f32.mrf.mxu0  ;;  %v8034_v19 = vpop.f32.mrf.mxu1 }
 0x68e   : > { %v8390_v58 = vadd.f32 %v15115_v30, %v8351_v21  ;;  %v8349_v54 = vadd.f32 %v8236_v1, %v8003_v18  ;;  %v8419_v52 = vmax.f32 %v8387_v6, 0.0 }
 0x690   : > { %v8422_v17 = vmax.f32 %v8390_v58, 0.0  ;;  %v8388_v33 = vadd.f32 %v15115_v30, %v8349_v54 }
 0x692   : > { %v15138_v5 = vpack.c.bf16 %v8422_v17, %v8421_v39  ;;  %v8420_v32 = vmax.f32 %v8388_v33, 0.0 }
 0x694   : > { %16330 = vst [vmem:[#allocation153_spill] sm:$0xff] %v15138_v5  ;;  %v15140_v12 = vpack.c.bf16 %v8420_v32, %v8419_v52 }
 0x696   : > { %16331 = vst [vmem:[#allocation155_spill] sm:$0xff] %v15140_v12 }
 0x697   : > { %v15142_v0 = vpop.f32.mrf.mxu0  ;;  %v15148_v46 = vpop.f32.mrf.mxu1 }
 0x698   : > { %16332 = vst [vmem:[#allocation4_spill] sm:$0xff] %v15148_v46 }
 0x699   : > { %v15144_v62 = vpop.f32.mrf.mxu0  ;;  %v15150_v15 = vpop.f32.mrf.mxu1 }
 0x69a   : > { %16333 = vst [vmem:[#allocation26_spill] sm:$0xff] %v15150_v15 }
 0x69b   : > { %v9780_v13 = vpop.f32.mrf.mxu0  ;;  %v15152_v25 = vpop.f32.mrf.mxu1 }
 0x69c   : > { %16334 = vst [vmem:[#allocation158_spill] sm:$0xff] %v15152_v25  ;;  %v8016_v25 = vadd.f32 %v8015_v27, %v15061_v7 }
 0x69d   : > { %v15146_v37 = vpop.f32.mrf.mxu0  ;;  %v15156_v20 = vpop.f32.mrf.mxu1 }
 0x69e   : > { %16336 = vst [vmem:[#allocation29_spill] sm:$0xff] %v15156_v20 }
 0x6a7   : > { %v9783_v53 = vpop.f32.mrf.mxu0  ;;  %v15158_v26 = vpop.f32.mrf.mxu1 }
 0x6a9   : > { %v8265_v35 = vpop.f32.mrf.mxu0  ;;  %v15162_v38 = vpop.f32.mrf.mxu1 }
 0x6aa   : > { %16338 = vst [vmem:[#allocation75_spill] sm:$0xff] %v15162_v38  ;;  %v8035_v38 = vadd.f32 %v8034_v19, %v15076_v57 }
 0x6ab   : > { %v9784_v14 = vpop.f32.mrf.mxu0  ;;  %v15166_v1 = vpop.f32.mrf.mxu1 }
 0x6ad   : > { %v8268_v3 = vpop.f32.mrf.mxu0  ;;  %v15172_v54 = vpop.f32.mrf.mxu1 }
 0x6b7   : > { %v15154_v51 = vpop.f32.mrf.mxu0  ;;  %v9749_v39 = vpop.f32.mrf.mxu1 }
 0x6b8   : > { %16335 = vst [vmem:[#allocation160_spill] sm:$0xff] %v15154_v51 }
 0x6b9   : > { %v15160_v18 = vpop.f32.mrf.mxu0  ;;  %v8079_v33 = vpop.f32.mrf.mxu1 }
 0x6ba   : > { %16337 = vst [vmem:[#allocation76_spill] sm:$0xff] %v15160_v18 }
 0x6bb   : > { %v15164_v21 = vpop.f32.mrf.mxu0  ;;  %v9750_v52 = vpop.f32.mrf.mxu1 }
 0x6bc   : > { %16339 = vst [vmem:[#allocation163_spill] sm:$0xff] %v15164_v21  ;;  %v8040_v21 = vadd.f32 %v9737_v48, %v15070_v42  ;;  %v8091_v10 = vadd.f32 %v9750_v52, %v15098_v36  ;;  %v8032_v42 = vadd.f32 %v8031_v9, %v15072_v24 }
 0x6bd   : > { %v15168_v6 = vpop.f32.mrf.mxu0  ;;  %v8082_v61 = vpop.f32.mrf.mxu1 }
 0x6be   : > { %16340 = vst [vmem:[#allocation102_spill] sm:$0xff] %v15168_v6  ;;  %v8043_v6 = vadd.f32 %v9738_v55, %v15074_v41  ;;  %v8355_v41 = vadd.f32 %v9780_v13, %v8027_v34  ;;  %v8358_v55 = vadd.f32 %v9783_v53, %v8040_v21  ;;  %v8083_v56 = vadd.f32 %v8082_v61, %v15100_v16 }
 0x6bf   : > { %v8080_v13 = vadd.f32 %v8079_v33, %v15096_v43  ;;  %v8075_v61 = vadd.f32 %v15166_v1, %v15090_v23  ;;  %v8353_v43 = vadd.f32 %v15146_v37, %v8019_v4  ;;  %v8067_v37 = vadd.f32 %v15172_v54, %v15092_v45  ;;  %v16346_v54 = vld [vmem:[#allocation151_spill] sm:$0xff] }
 0x6c0   : > { %v8359_v46 = vadd.f32 %v9784_v14, %v8043_v6  ;;  %v8394_v31 = vadd.f32 %v15115_v30, %v8355_v41  ;;  %v8397_v24 = vadd.f32 %v15115_v30, %v8358_v55  ;;  %v16343_v55 = vld [vmem:[#allocation152_spill] sm:$0xff] }
 0x6c1   : > { %v8392_v41 = vadd.f32 %v15115_v30, %v8353_v43  ;;  %v16358_v43 = vld [vmem:[#allocation76_spill] sm:$0xff] }
 0x6c2   : > { %v8398_v7 = vadd.f32 %v15115_v30, %v8359_v46 }
 0x6c7   : > { %v15170_v58 = vpop.f32.mrf.mxu0  ;;  %v9753_v12 = vpop.f32.mrf.mxu1 }
 0x6c8   : > { %v8104_v20 = vadd.f32 %v9753_v12, %v15102_v2 }
 0x6c9   : > { %v15174_v17 = vpop.f32.mrf.mxu0  ;;  %v8095_v18 = vpop.f32.mrf.mxu1 }
 0x6ca   : > { %16341 = vst [vmem:[#allocation101_spill] sm:$0xff] %v15174_v17  ;;  %v8024_v17 = vadd.f32 %v9733_v59, %v15056_v11  ;;  %v8096_v47 = vadd.f32 %v8095_v18, %v15104_v28  ;;  %v8357_v59 = vadd.f32 %v8268_v3, %v8035_v38 }
 0x6cb   : > { %v15176_v22 = vpop.f32.mrf.mxu0  ;;  %v9754_v40 = vpop.f32.mrf.mxu1 }
 0x6cc   : > { %v8107_v29 = vadd.f32 %v9754_v40, %v15106_v49  ;;  %v8354_v34 = vadd.f32 %v15142_v0, %v8024_v17  ;;  %v8356_v40 = vadd.f32 %v8265_v35, %v8032_v42  ;;  %v8430_v0 = vmax.f32 %v8398_v7, 0.0  ;;  %v16347_v7 = vld [vmem:[#allocation158_spill] sm:$0xff] }
 0x6cd   : > { %v15178_v32 = vpop.f32.mrf.mxu0  ;;  %v8098_v2 = vpop.f32.mrf.mxu1  ;;  %v8429_v35 = vmax.f32 %v8397_v24, 0.0  ;;  %v8424_v24 = vmax.f32 %v8392_v41, 0.0  ;;  %v9936_v41 = vld [vmem:[%s15325_s7] ss:$8 sps:$4 sm:$0xff]  }
 0x6ce   : > { %16342 = vst [vmem:[#allocation166_spill] sm:$0xff] %v15178_v32  ;;  %v8099_v36 = vadd.f32 %v8098_v2, %v15108_v8  ;;  %v8396_v8 = vadd.f32 %v15115_v30, %v8357_v59  ;;  %v8395_v16 = vadd.f32 %v15115_v30, %v8356_v40  ;;  %v8393_v1 = vadd.f32 %v15115_v30, %v8354_v34  ;;  %v16344_v2 = vld [vmem:[#allocation75_spill] sm:$0xff] }
 0x6cf   : > { %v8462_v21 = vpack.c.bf16 %v8430_v0, %v8429_v35  ;;  %v8059_v59 = vadd.f32 %v16347_v7, %v16346_v54  ;;  %v16351_v40 = vld [vmem:[#allocation163_spill] sm:$0xff]  ;;  %v16353_v0 = vld [vmem:[#allocation29_spill] sm:$0xff] }
 0x6d0   : > { %v8428_v6 = vmax.f32 %v8396_v8, 0.0  ;;  %v8427_v52 = vmax.f32 %v8395_v16, 0.0  ;;  %v8425_v45 = vmax.f32 %v8393_v1, 0.0 }
 0x6d2   : > { %v8461_v4 = vpack.c.bf16 %v8428_v6, %v8427_v52 }
 0x6d7   : > { %v9795_v50 = vpop.f32.mrf.mxu0 }
 0x6d9   : > { %v8313_v5 = vpop.f32.mrf.mxu0 }
 0x6da   : > { %v8368_v3 = vadd.f32 %v8313_v5, %v8080_v13  ;;  %v8352_v5 = vadd.f32 %v15144_v62, %v8016_v25  ;;  %v16345_v25 = vld [vmem:[#allocation166_spill] sm:$0xff]  ;;  %v16354_v13 = vld [vmem:[#allocation160_spill] sm:$0xff] }
 0x6db   : > { %v9796_v15 = vpop.f32.mrf.mxu0  ;;  %v8365_v42 = vadd.f32 %v16345_v25, %v8067_v37  ;;  %v16360_v37 = vld [vmem:[#allocation155_spill] sm:$0xff]  ;;  %v9945_v25 = vld [vmem:[%s15325_s7 + $0x30] ss:$8 sps:$4 sm:$0xff]  }
 0x6dc   : > { %v8371_v28 = vadd.f32 %v9796_v15, %v8091_v10 }
 0x6dd   : > { %v8316_v51 = vpop.f32.mrf.mxu0 }
 0x6de   : > { %v8410_v53 = vadd.f32 %v15115_v30, %v8371_v28  ;;  %v8369_v19 = vadd.f32 %v8316_v51, %v8083_v56  ;;  %v8072_v51 = vadd.f32 %v15158_v26, %v15086_v44  ;;  %v16348_v28 = vld [vmem:[#allocation101_spill] sm:$0xff]  ;;  %v8404_v56 = vadd.f32 %v15115_v30, %v8365_v42  ;;  %v8579_v42 = vld [vmem:[%s15326_s8 + $0x18] sm:$0xff] }
 0x6e0   : > { %v8442_v17 = vmax.f32 %v8410_v53, 0.0  ;;  %v8408_v33 = vadd.f32 %v15115_v30, %v8369_v19  ;;  %v8366_v44 = vadd.f32 %v15170_v58, %v8072_v51  ;;  %v8391_v58 = vadd.f32 %v15115_v30, %v8352_v5 }
 0x6e7   : > { %v9799_v60 = vpop.f32.mrf.mxu0 }
 0x6e8   : > { %v8374_v32 = vadd.f32 %v9799_v60, %v8104_v20  ;;  %v8088_v60 = vadd.f32 %v9749_v39, %v15094_v63  ;;  %v8367_v39 = vadd.f32 %v15176_v22, %v8075_v61  ;;  %v8426_v22 = vmax.f32 %v8394_v31, 0.0 }
 0x6e9   : > { %v8329_v12 = vpop.f32.mrf.mxu0 }
 0x6ea   : > { %v8372_v11 = vadd.f32 %v8329_v12, %v8096_v47  ;;  %v8413_v27 = vadd.f32 %v15115_v30, %v8374_v32  ;;  %v8370_v47 = vadd.f32 %v9795_v50, %v8088_v60  ;;  %v8407_v32 = vadd.f32 %v15115_v30, %v8368_v3 }
 0x6eb   : > { %v9800_v57 = vpop.f32.mrf.mxu0  ;;  %v8064_v12 = vadd.f32 %v16344_v2, %v16343_v55  ;;  %v8406_v62 = vadd.f32 %v15115_v30, %v8367_v39  ;;  %v8405_v60 = vadd.f32 %v15115_v30, %v8366_v44  ;;  %v8460_v31 = vpack.c.bf16 %v8426_v22, %v8425_v45  ;;  %v8580_v22 = vld [vmem:[%s15326_s8 + $0x20] sm:$0xff]  ;;  %v9941_v55 = vld [vmem:[%s15325_s7 + $0x14] ss:$8 sps:$4 sm:$0xff]   ;;  %v9939_v2 = vld [vmem:[%s15325_s7 + $0x10] ss:$8 sps:$4 sm:$0xff]  }
 0x6ec   : > { %v8375_v48 = vadd.f32 %v9800_v57, %v8107_v29  ;;  %v8411_v63 = vadd.f32 %v15115_v30, %v8372_v11  ;;  %v8445_v46 = vmax.f32 %v8413_v27, 0.0  ;;  %v8409_v14 = vadd.f32 %v15115_v30, %v8370_v47  ;;  %v16350_v27 = vld [vmem:[#allocation4_spill] sm:$0xff]  ;;  %v8576_v45 = vld [vmem:[%s15326_s8] sm:$0xff] }
 0x6ed   : > { %v8332_v49 = vpop.f32.mrf.mxu0  ;;  %v8440_v29 = vmax.f32 %v8408_v33, 0.0  ;;  %v8364_v57 = vadd.f32 %v16348_v28, %v8064_v12  ;;  %v8439_v34 = vmax.f32 %v8407_v32, 0.0  ;;  %v8363_v47 = vadd.f32 %v16351_v40, %v8059_v59  ;;  %v16359_v33 = vld [vmem:[#allocation153_spill] sm:$0xff]  ;;  %v16361_v32 = vld [vmem:[#allocation11_spill] sm:$0xff] }
 0x6ee   : > { %v8414_v10 = vadd.f32 %v15115_v30, %v8375_v48  ;;  %v8373_v9 = vadd.f32 %v8332_v49, %v8099_v36  ;;  %v8443_v20 = vmax.f32 %v8411_v63, 0.0  ;;  %v8441_v26 = vmax.f32 %v8409_v14, 0.0  ;;  %v16349_v36 = vld [vmem:[#allocation71_spill] sm:$0xff]  ;;  %v16357_v14 = vld [vmem:[#allocation102_spill] sm:$0xff] }
 0x6ef   : > { %v8056_v48 = vadd.f32 %v16350_v27, %v16349_v36  ;;  %v8438_v49 = vmax.f32 %v8406_v62, 0.0  ;;  %v8467_v63 = vpack.c.bf16 %v8440_v29, %v8439_v34  ;;  %v8437_v19 = vmax.f32 %v8405_v60, 0.0  ;;  %v9944_v12 = vld [vmem:[%s15325_s7 + $0x24] ss:$8 sps:$4 sm:$0xff]   ;;  %v9947_v62 = vld [vmem:[%s15325_s7 + $0x34] ss:$8 sps:$4 sm:$0xff]  }
 0x6f0   : > { %v8446_v15 = vmax.f32 %v8414_v10, 0.0  ;;  %v8412_v50 = vadd.f32 %v15115_v30, %v8373_v9  ;;  %v8468_v11 = vpack.c.bf16 %v8442_v17, %v8441_v26  ;;  %v8423_v10 = vmax.f32 %v8391_v58, 0.0  ;;  %v16352_v9 = vld [vmem:[#allocation68_spill] sm:$0xff]  ;;  %v8578_v29 = vld [vmem:[%s15326_s8 + $0x10] sm:$0xff] }
 0x6f1   : > { %v8051_v8 = vadd.f32 %v16353_v0, %v16352_v9  ;;  %v8362_v53 = vadd.f32 %v16354_v13, %v8056_v48  ;;  %v8402_v61 = vadd.f32 %v15115_v30, %v8363_v47 }
 0x6f2   : > { %v8444_v18 = vmax.f32 %v8412_v50, 0.0  ;;  %v8470_v38 = vpack.c.bf16 %v8446_v15, %v8445_v46  ;;  %v8403_v46 = vadd.f32 %v15115_v30, %v8364_v57  ;;  %v16355_v15 = vld [vmem:[#allocation149_spill] sm:$0xff]  ;;  %v16356_v50 = vld [vmem:[#allocation26_spill] sm:$0xff]  ;;  %v8459_v16 = vpack.c.bf16 %v8424_v24, %v8423_v10 }
 0x6f3   : > { %v8048_v35 = vadd.f32 %v16356_v50, %v16355_v15  ;;  %v8361_v3 = vadd.f32 %v16357_v14, %v8051_v8  ;;  %v8434_v6 = vmax.f32 %v8402_v61, 0.0 }
 0x6f4   : > { %9610 = vmatprep.subr.bf16.mxu1 %v8470_v38  ;;  %v8469_v23 = vpack.c.bf16 %v8444_v18, %v8443_v20  ;;  %v8436_v20 = vmax.f32 %v8404_v56, 0.0  ;;  %v8466_v18 = vpack.c.bf16 %v8438_v49, %v8437_v19  ;;  %v8401_v38 = vadd.f32 %v15115_v30, %v8362_v53 }
 0x6f5   : > { %9611 = vmatpush3.bf16.msra.mxu1 %v8462_v21  ;;  %v8360_v51 = vadd.f32 %v16358_v43, %v8048_v35  ;;  %v8435_v21 = vmax.f32 %v8403_v46, 0.0  ;;  %v8400_v39 = vadd.f32 %v15115_v30, %v8361_v3 }
 0x6f6   : > { %9612 = vmatprep.subr.bf16.mxu1 %v8469_v23  ;;  %v8433_v23 = vmax.f32 %v8401_v38, 0.0 }
 0x6f7   : > { %v8465_v17 = vpack.c.bf16 %v8436_v20, %v8435_v21  ;;  %v8399_v1 = vadd.f32 %v15115_v30, %v8360_v51  ;;  %v8432_v5 = vmax.f32 %v8400_v39, 0.0  ;;  %v16362_v30 = vld [vmem:[#allocation28_spill] sm:$0xff] }
 0x6f8   : > { %v8464_v52 = vpack.c.bf16 %v8434_v6, %v8433_v23 }
 0x6f9   : > { %9613 = vmatpush3.bf16.msra.mxu1 %v8461_v4  ;;  %v8431_v44 = vmax.f32 %v8399_v1, 0.0  ;;  %v9942_v4 = vld [vmem:[%s15325_s7 + $0x20] ss:$8 sps:$4 sm:$0xff]  }
 0x6fa   : > { %9614 = vmatprep.subr.bf16.mxu1 %v8468_v11  ;;  %v8577_v11 = vld [vmem:[%s15326_s8 + $0x8] sm:$0xff] }
 0x6fb   : > { %v8463_v26 = vpack.c.bf16 %v8432_v5, %v8431_v44 }
 0x6fd   : > { %9615 = vmatpush3.bf16.msra.mxu1 %v8460_v31 }
 0x6fe   : > { %9616 = vmatprep.subr.bf16.mxu1 %v8467_v63 }
 0x701   : > { %9617 = vmatpush3.bf16.msra.mxu1 %v8459_v16 }
 0x702   : > { %9618 = vmatprep.subr.bf16.mxu1 %v8466_v18 }
 0x705   : > { %9619 = vmatpush3.bf16.msra.mxu1 %v16359_v33 }
 0x706   : > { %9620 = vmatprep.subr.bf16.mxu1 %v8465_v17 }
 0x709   : > { %9621 = vmatpush3.bf16.msra.mxu1 %v16360_v37 }
 0x70a   : > { %9622 = vmatprep.subr.bf16.mxu1 %v8464_v52 }
 0x70d   : > { %9623 = vmatpush3.bf16.msra.mxu1 %v16361_v32 }
 0x70e   : > { %9624 = vmatprep.subr.bf16.mxu1 %v8463_v26 }
 0x711   : > { %9625 = vmatpush3.bf16.msra.mxu1 %v16362_v30 }
 0x712   : > { %9801 = vmatprep.subr.mxu1 %v8580_v22 }
 0x714   : > { %8544 = vmatmul.mubr.bf16.vlgmr.msra.gmra.mxu1 %v9936_v41 }
 0x715   : > { %8551 = vmatprep.mubr.bf16.mxu1 %v9941_v55  ;;  %9802 = vmatpush3.msra.mxu1 %v8580_v22 }
 0x716   : > { %9803 = vmatprep.subr.mxu1 %v8579_v42 }
 0x717   : > { %9804 = vmatpush3.msra.mxu1 %v8579_v42 }
 0x718   : > { %9805 = vmatprep.subr.mxu1 %v8578_v29 }
 0x719   : > { %9806 = vmatpush3.msra.mxu1 %v8578_v29 }
 0x71a   : > { %9807 = vmatprep.subr.mxu1 %v8577_v11 }
 0x71b   : > { %9808 = vmatpush3.msra.mxu1 %v8577_v11 }
 0x71c   : > { %8552 = vmatmul.mubr.bf16.gmra.mxu1 %v9939_v2  ;;  %9809 = vmatprep.subr.mxu1 %v8576_v45 }
 0x71d   : > { %8559 = vmatprep.mubr.bf16.mxu1 %v9944_v12  ;;  %9810 = vmatpush3.msra.mxu1 %v8576_v45 }
 0x724   : > { %8560 = vmatmul.mubr.bf16.gmra.mxu1 %v9942_v4 }
 0x725   : > { %8567 = vmatprep.mubr.bf16.mxu1 %v9947_v62 }
 0x72c   : > { %8568 = vmatmul.mubr.bf16.gmra.mxu1 %v9945_v25 }
 0x7d4   : > { %v9626_v58 = vpop.f32.mrf.mxu1 }
 0x7d6   : > { %v9627_v54 = vpop.f32.mrf.mxu1 }
 0x7d7   : > { %v9628_v7 = vadd.f32 %v9627_v54, %v9626_v58 }
 0x7d8   : > { %v9629_v59 = vpop.f32.mrf.mxu1 }
 0x7d9   : > { %9811 = vmatprep.mubr.msk.f32.mxu1 %vm8581_vm4, %v9628_v7 }
 0x7da   : > { %v9630_v60 = vpop.f32.mrf.mxu1 }
 0x7db   : > { %v9631_v28 = vadd.f32 %v9630_v60, %v9629_v59 }
 0x7dc   : > { %v9632_v57 = vpop.f32.mrf.mxu1 }
 0x7dd   : > { %9812 = vmatmul.mubr.msk.f32.vlgmr.msra.gmra.mxu1 %vm8581_vm4, %v9631_v28 }
 0x7de   : > { %v9633_v34 = vpop.f32.mrf.mxu1 }
 0x7df   : > { %v9634_v36 = vadd.f32 %v9633_v34, %v9632_v57 }
 0x7e0   : > { %v9635_v27 = vpop.f32.mrf.mxu1 }
 0x7e1   : > { %9814 = vmatprep.mubr.msk.f32.mxu1 %vm8581_vm4, %v9634_v36 }
 0x7e2   : > { %v9636_v48 = vpop.f32.mrf.mxu1 }
 0x7e3   : > { %v9637_v31 = vadd.f32 %v9636_v48, %v9635_v27 }
 0x7e4   : > { %v9638_v24 = vpop.f32.mrf.mxu1 }
 0x7e5   : > { %9815 = vmatmul.mubr.msk.f32.gmra.mxu1 %vm8581_vm4, %v9637_v31 }
 0x7e6   : > { %v9639_v40 = vpop.f32.mrf.mxu1 }
 0x7e7   : > { %v9640_v47 = vadd.f32 %v9639_v40, %v9638_v24 }
 0x7e8   : > { %v9641_v49 = vpop.f32.mrf.mxu1 }
 0x7e9   : > { %9817 = vmatprep.mubr.msk.f32.mxu1 %vm8581_vm4, %v9640_v47 }
 0x7ea   : > { %v9642_v56 = vpop.f32.mrf.mxu1 }
 0x7eb   : > { %v9643_v63 = vadd.f32 %v9642_v56, %v9641_v49 }
 0x7ec   : > { %v9644_v10 = vpop.f32.mrf.mxu1 }
 0x7ed   : > { %9818 = vmatmul.mubr.msk.f32.gmra.mxu1 %vm8581_vm4, %v9643_v63 }
 0x7ee   : > { %v9645_v9 = vpop.f32.mrf.mxu1 }
 0x7ef   : > { %v9646_v0 = vadd.f32 %v9645_v9, %v9644_v10 }
 0x7f0   : > { %v9647_v8 = vpop.f32.mrf.mxu1 }
 0x7f1   : > { %9820 = vmatprep.mubr.msk.f32.mxu1 %vm8581_vm4, %v9646_v0 }
 0x7f2   : > { %v9648_v13 = vpop.f32.mrf.mxu1 }
 0x7f3   : > { %v9649_v53 = vadd.f32 %v9648_v13, %v9647_v8 }
 0x7f5   : > { %9821 = vmatmul.mubr.msk.f32.gmra.mxu1 %vm8581_vm4, %v9649_v53 }
 0x89d   : > { %v9813_v19 = vpop.f32.mrf.mxu1 }
 0x89e   : > { %8713 = vst.msk [vmem:[%s1416_s29 + $0x8] sm:$0xff] %vm8711_vm5, %v9813_v19 }
 0x89f   : > { %v8672_v46 = vpop.f32.mrf.mxu1 }
 0x8a0   : > { %8712 = vst.msk [vmem:[%s1416_s29] sm:$0xff] %vm8711_vm5, %v8672_v46 }
 0x8a5   : > { %v9816_v15 = vpop.f32.mrf.mxu1 }
 0x8a6   : > { %8715 = vst.msk [vmem:[%s1416_s29 + $0x18] sm:$0xff] %vm8711_vm5, %v9816_v15 }
 0x8a7   : > { %v8682_v50 = vpop.f32.mrf.mxu1 }
 0x8a8   : > { %8714 = vst.msk [vmem:[%s1416_s29 + $0x10] sm:$0xff] %vm8711_vm5, %v8682_v50 }
 0x8ad   : > { %v9819_v35 = vpop.f32.mrf.mxu1 }
 0x8ae   : > { %8717 = vst.msk [vmem:[%s1416_s29 + $0x28] sm:$0xff] %vm8711_vm5, %v9819_v35 }
 0x8af   : > { %v8692_v16 = vpop.f32.mrf.mxu1 }
 0x8b0   : > { %8716 = vst.msk [vmem:[%s1416_s29 + $0x20] sm:$0xff] %vm8711_vm5, %v8692_v16 }
 0x8b5   : > { %v9822_v61 = vpop.f32.mrf.mxu1 }
 0x8b6   : > { %8719 = vst.msk [vmem:[%s1416_s29 + $0x38] sm:$0xff] %vm8711_vm5, %v9822_v61 }
 0x8b7   : > { %v8702_v14 = vpop.f32.mrf.mxu1 }
 0x8b8   : > { %8718 = vst.msk [vmem:[%s1416_s29 + $0x30] sm:$0xff] %vm8711_vm5, %v8702_v14 }
 0x8b9 PF: > { %p17_p9 = scmp.ge.s32.totalorder %s10102_s17, 4   ;;  %s16363_s13 = smov %s10022_s14 }
 0x8ba   : > { %s16364_s14 = smov %s10111_s20  ;;  %s16365_s15 = smov %s10102_s17 }
 0x8bb   :  { %19 = sbr.rel (!%p17_p9) target bundleno = 2 (0x2), region = 146 }

</bundles_post_ra>
